<compile_context>
chip_gen: v5e
topology: v5e:2x2
jax: 0.10.0
libtpu: 0.0.40
codegen_flags: <defaults>
</compile_context>

<pallas_src>
import jax
import jax.numpy as jnp
from jax import lax
from jax.experimental import pallas as pl
from jax.experimental.pallas import tpu as pltpu

# ----------------------------- config (small, synthetic) -----------------------------
VOCAB = 100
MAX_POS = 64
HIDDEN = 32          # config.hidden_size
N_HEADS = 2
HEAD_DIM = HIDDEN // N_HEADS
INTERMEDIATE = 64
N_BERT_LAYERS = 2
RNN_HIDDEN = 16      # config.rnn_hidden
RNN_LAYERS = 2       # config.rnn_layers (2 -> hard-wired: layer0 full, layer1 last-step only)
NUM_CLASSES = 4      # config.num_classes
BATCH = 2
SEQ = 8


# ----------------------------------- fused kernel -----------------------------------
def _fused_kernel(x_ref, mask_ref, emb_ln_ref,
                  qkv_w_ref, qkv_b_ref, ao_w_ref, ao_b_ref,
                  ff_iw_ref, ff_ib_ref, ff_ow_ref, ff_ob_ref, ln_ref,
                  wih0_ref, b0_ref, whh0_ref,
                  wih1f_ref, wih1b_ref, b1_ref, whh1f_ref,
                  fc_w_ref, fc_b_ref,
                  o_ref):
    B, S, H = x_ref.shape
    D = HEAD_DIM
    RH = RNN_HIDDEN
    f32 = jnp.float32
    bf16 = jnp.bfloat16

    def layernorm(x, g, b, eps=1e-12):
        mu = jnp.mean(x, axis=-1, keepdims=True)
        var = jnp.mean((x - mu) ** 2, axis=-1, keepdims=True)
        return (x - mu) * lax.rsqrt(var + eps) * g + b

    # ------------------ BERT encoder (whole batch in one program) ------------------
    x = x_ref[...].reshape(B * S, H)                                  # [B*S, H] f32
    x = layernorm(x, emb_ln_ref[0:1, :], emb_ln_ref[1:2, :])          # embedding LN

    mask_bias = (mask_ref[...] - 1.0) * 10000.0                       # [B, 1, S]
    scale = 1.0 / (D ** 0.5)

    for l in range(N_BERT_LAYERS):                                    # static unroll (L=2)
        attn = jnp.zeros((B * S, H), f32)
        for h in range(N_HEADS):                                      # static unroll (2 heads)
            base = (l * N_HEADS + h) * 3
            # per-head Q/K/V: each result starts at lane 0 (no lane-realignment copies)
            q = jnp.dot(x.astype(bf16), qkv_w_ref[base + 0],
                        preferred_element_type=f32) + qkv_b_ref[base + 0]
            k = jnp.dot(x.astype(bf16), qkv_w_ref[base + 1],
                        preferred_element_type=f32) + qkv_b_ref[base + 1]
            v = jnp.dot(x.astype(bf16), qkv_w_ref[base + 2],
                        preferred_element_type=f32) + qkv_b_ref[base + 2]
            q3 = q.reshape(B, S, D)
            k3 = k.reshape(B, S, D)
            v3 = v.reshape(B, S, D)
            s = jnp.einsum('bqd,bkd->bqk', q3.astype(bf16), k3.astype(bf16),
                           preferred_element_type=f32) * scale + mask_bias  # [B, S, S]
            s = s - jnp.max(s, axis=-1, keepdims=True)
            p = jnp.exp(s)
            p = p * pl.reciprocal(jnp.sum(p, axis=-1, keepdims=True), approx=True)
            ctx = jnp.einsum('bqk,bkd->bqd', p.astype(bf16), v3.astype(bf16),
                             preferred_element_type=f32).reshape(B * S, D)
            # fold per-head output projection into an f32 accumulator (no lane concat)
            attn = attn + jnp.dot(ctx.astype(bf16), ao_w_ref[l * N_HEADS + h],
                                  preferred_element_type=f32)
        attn = attn + ao_b_ref[l]
        x = layernorm(attn + x, ln_ref[l, 0:1, :], ln_ref[l, 1:2, :])

        inter = jnp.dot(x.astype(bf16), ff_iw_ref[l],
                        preferred_element_type=f32) + ff_ib_ref[l]
        # TODO(synk): HF BERT default GELU is the exact erf form; tanh approximation used.
        inter = jax.nn.gelu(inter, approximate=True)
        ffn = jnp.dot(inter.astype(bf16), ff_ow_ref[l],
                      preferred_element_type=f32) + ff_ob_ref[l]
        x = layernorm(ffn + x, ln_ref[l, 2:3, :], ln_ref[l, 3:4, :])

    # ----------------------------------- BiLSTM ------------------------------------
    def lstm_cell(gates, c_prev):
        # gate columns packed [i | f | o | g]: one sigmoid over 3*RH lanes + one tanh
        sig = jax.nn.sigmoid(gates[:, 0:3 * RH])
        g = jnp.tanh(gates[:, 3 * RH:4 * RH])
        c = sig[:, RH:2 * RH] * c_prev + sig[:, 0:RH] * g
        h = sig[:, 2 * RH:3 * RH] * jnp.tanh(c)
        return h, c

    # ---- layer 0: hoisted input projection (one lane-dense [B*S, 128] matmul) ----
    gates0 = (jnp.dot(x.astype(bf16), wih0_ref[...], preferred_element_type=f32)
              + b0_ref[...]).reshape(B, S, 8 * RH)
    whh0_f = whh0_ref[0]                                              # [RH, 4*RH] bf16
    whh0_b = whh0_ref[1]
    h_f = jnp.zeros((B, RH), f32); c_f = jnp.zeros((B, RH), f32)
    h_b = jnp.zeros((B, RH), f32); c_b = jnp.zeros((B, RH), f32)
    hs_f = [None] * S
    hs_b = [None] * S
    for step in range(S):                       # static unroll, fw/bw interleaved
        tf = step
        tb = S - 1 - step
        g_f = gates0[:, tf, 0:4 * RH] + jnp.dot(h_f.astype(bf16), whh0_f,
                                                preferred_element_type=f32)
        g_b = gates0[:, tb, 4 * RH:8 * RH] + jnp.dot(h_b.astype(bf16), whh0_b,
                                                     preferred_element_type=f32)
        h_f, c_f = lstm_cell(g_f, c_f)
        h_b, c_b = lstm_cell(g_b, c_b)
        hs_f[tf] = h_f                           # kept in registers (no scratch stores)
        hs_b[tb] = h_b

    # layer-0 outputs assembled once, time-major (s, b) row order
    Hf = jnp.concatenate(hs_f, axis=0)                                # [S*B, RH]
    Hb = jnp.concatenate(hs_b, axis=0)                                # [S*B, RH]

    # ---- layer 1 (last): only out[:, -1, :] is consumed downstream ----
    gates1 = (jnp.dot(Hf.astype(bf16), wih1f_ref[...], preferred_element_type=f32)
              + jnp.dot(Hb.astype(bf16), wih1b_ref[...], preferred_element_type=f32)
              + b1_ref[...])                                          # [S*B, 8*RH]

    h1 = jnp.zeros((B, RH), f32); c1 = jnp.zeros((B, RH), f32)
    for t in range(S):
        g1 = gates1[t * B:(t + 1) * B, 0:4 * RH] + jnp.dot(
            h1.astype(bf16), whh1f_ref[...], preferred_element_type=f32)
        h1, c1 = lstm_cell(g1, c1)
    # backward direction's output at position S-1 is its first step (zero initial state)
    h1b, _ = lstm_cell(gates1[(S - 1) * B:S * B, 4 * RH:8 * RH], jnp.zeros((B, RH), f32))

    # TODO(synk): self.dropout(out) treated as identity (inference mode).
    last = jnp.concatenate([h1, h1b], axis=-1)                        # [B, 2*RH]
    o_ref[...] = (jnp.dot(last, fc_w_ref[...], preferred_element_type=f32)
                  + fc_b_ref[...])                                    # [B, NUM_CLASSES]


# ------------------------------------ parameters ------------------------------------
def init_params(key):
    def nxt():
        nonlocal key
        key, sub = jax.random.split(key)
        return sub

    def w(shape, scale=0.02):
        return jax.random.normal(nxt(), shape, jnp.float32) * scale

    L, H, I, RH, D = N_BERT_LAYERS, HIDDEN, INTERMEDIATE, RNN_HIDDEN, HEAD_DIM
    params = {
        "word_emb": w((VOCAB, H)),
        "pos_emb": w((MAX_POS, H)),
        "type_emb": w((2, H)),
        # row 0 = gamma, row 1 = beta
        "emb_ln": jnp.concatenate([jnp.ones((1, H), jnp.float32),
                                   jnp.zeros((1, H), jnp.float32)], axis=0),
        # per-(layer, head, {q,k,v}) projection slabs: slices always start at lane 0
        "qkv_w": w((L * N_HEADS * 3, H, D)),
        "qkv_b": jnp.zeros((L * N_HEADS * 3, 1, D), jnp.float32),
        # per-(layer, head) output projection; accumulated in-kernel (no lane concat)
        "ao_w": w((L * N_HEADS, D, H)),
        "ao_b": jnp.zeros((L, 1, H), jnp.float32),
        "ff_iw": w((L, H, I)),
        "ff_ib": jnp.zeros((L, 1, I), jnp.float32),
        "ff_ow": w((L, I, H)),
        "ff_ob": jnp.zeros((L, 1, H), jnp.float32),
        # rows: ln1_gamma, ln1_beta, ln2_gamma, ln2_beta
        "ln": jnp.tile(jnp.array([1.0, 0.0, 1.0, 0.0], jnp.float32)[None, :, None], (L, 1, H)),
        # BiLSTM layer 0: gate columns packed [i|f|o|g]; fw cols 0:4RH, bw cols 4RH:8RH
        "wih0": w((H, 8 * RH), 0.05),
        "b0": jnp.zeros((1, 8 * RH), jnp.float32),       # b_ih + b_hh combined
        "whh0": w((2, RH, 4 * RH), 0.05),                # [fw, bw]
        # BiLSTM layer 1: input weight split by fw/bw half of the layer-0 output
        "wih1f": w((RH, 8 * RH), 0.05),
        "wih1b": w((RH, 8 * RH), 0.05),
        "b1": jnp.zeros((1, 8 * RH), jnp.float32),
        "whh1f": w((RH, 4 * RH), 0.05),
        # FC head
        "fc_w": w((2 * RH, NUM_CLASSES)),
        "fc_b": jnp.zeros((1, NUM_CLASSES), jnp.float32),
    }
    return params


# ------------------------------------ forward pass -----------------------------------
@jax.jit
def model_forward(params, ids, mask):
    b, s = ids.shape
    # TODO(synk): embedding gather kept in XLA (data-dependent gather is not a rectangular
    # BlockSpec tile); token_type_ids hard-coded to 0, as the module passes no segment IDs.
    emb = (jnp.take(params["word_emb"], ids, axis=0)
           + params["pos_emb"][:s][None, :, :]
           + params["type_emb"][0][None, None, :])                  # [B, S, HIDDEN] f32
    mask3 = mask.astype(jnp.float32).reshape(b, 1, s)

    bf = lambda a: a.astype(jnp.bfloat16)                           # MXU operands in bf16
    args = (emb, mask3,
            params["emb_ln"],
            bf(params["qkv_w"]), params["qkv_b"],
            bf(params["ao_w"]), params["ao_b"],
            bf(params["ff_iw"]), params["ff_ib"],
            bf(params["ff_ow"]), params["ff_ob"],
            params["ln"],
            bf(params["wih0"]), params["b0"], bf(params["whh0"]),
            bf(params["wih1f"]), bf(params["wih1b"]), params["b1"], bf(params["whh1f"]),
            params["fc_w"], params["fc_b"])

    def full(a):
        return pl.BlockSpec(a.shape, lambda i, _nd=a.ndim: (0,) * _nd)

    # Whole batch in one program: every MXU op sees B*S rows, no grid-step overhead.
    out = pl.pallas_call(
        _fused_kernel,
        grid=(1,),
        out_shape=jax.ShapeDtypeStruct((b, NUM_CLASSES), jnp.float32),
        in_specs=[full(a) for a in args],
        out_specs=pl.BlockSpec((b, NUM_CLASSES), lambda i: (0, 0)),
        compiler_params=pltpu.CompilerParams(dimension_semantics=("arbitrary",)),
    )(*args)
    return out


# ---------------------------------------- main ----------------------------------------
if __name__ == "__main__":
    key = jax.random.PRNGKey(0)
    pkey, ikey = jax.random.split(key)
    params = init_params(pkey)

    ids = jax.random.randint(ikey, (BATCH, SEQ), 0, VOCAB, dtype=jnp.int32)
    seq_len = jnp.full((BATCH,), SEQ, dtype=jnp.int32)                 # unused (as in the module)
    mask = jnp.ones((BATCH, SEQ), dtype=jnp.int32).at[1, 6:].set(0)    # some padding in sample 1

    logits = model_forward(params, ids, mask)
    jax.block_until_ready(logits)
    assert logits.shape == (BATCH, NUM_CLASSES)
    assert bool(jnp.all(jnp.isfinite(logits)))
    print("KERNEL_OK")
</pallas_src>

<mosaic_0001>
module attributes {stable_mosaic.version = 11 : i64} {
  func.func @_fused_kernel(%arg0: i32, %arg1: memref<2x8x32xf32, #tpu.memory_space<vmem>>, %arg2: memref<2x1x8xf32, #tpu.memory_space<vmem>>, %arg3: memref<2x32xf32, #tpu.memory_space<vmem>>, %arg4: memref<12x32x16xbf16, #tpu.memory_space<vmem>>, %arg5: memref<12x1x16xf32, #tpu.memory_space<vmem>>, %arg6: memref<4x16x32xbf16, #tpu.memory_space<vmem>>, %arg7: memref<2x1x32xf32, #tpu.memory_space<vmem>>, %arg8: memref<2x32x64xbf16, #tpu.memory_space<vmem>>, %arg9: memref<2x1x64xf32, #tpu.memory_space<vmem>>, %arg10: memref<2x64x32xbf16, #tpu.memory_space<vmem>>, %arg11: memref<2x1x32xf32, #tpu.memory_space<vmem>>, %arg12: memref<2x4x32xf32, #tpu.memory_space<vmem>>, %arg13: memref<32x128xbf16, #tpu.memory_space<vmem>>, %arg14: memref<1x128xf32, #tpu.memory_space<vmem>>, %arg15: memref<2x16x64xbf16, #tpu.memory_space<vmem>>, %arg16: memref<16x128xbf16, #tpu.memory_space<vmem>>, %arg17: memref<16x128xbf16, #tpu.memory_space<vmem>>, %arg18: memref<1x128xf32, #tpu.memory_space<vmem>>, %arg19: memref<16x64xbf16, #tpu.memory_space<vmem>>, %arg20: memref<32x4xf32, #tpu.memory_space<vmem>>, %arg21: memref<1x4xf32, #tpu.memory_space<vmem>>, %arg22: memref<2x4xf32, #tpu.memory_space<vmem>>) attributes {dimension_semantics = [#tpu.dimension_semantics<arbitrary>], iteration_bounds = array<i64: 1>, scalar_prefetch = 0 : i64, scratch_operands = 0 : i64, tpu.core_type = #tpu.core_type<tc>, window_params = [{pipeline_mode = #tpu.pipeline_mode<synchronous>, transform_indices = @transform_0, window_bounds = array<i64: 2, 8, 32>}, {pipeline_mode = #tpu.pipeline_mode<synchronous>, transform_indices = @transform_1, window_bounds = array<i64: 2, 1, 8>}, {pipeline_mode = #tpu.pipeline_mode<synchronous>, transform_indices = @transform_2, window_bounds = array<i64: 2, 32>}, {pipeline_mode = #tpu.pipeline_mode<synchronous>, transform_indices = @transform_3, window_bounds = array<i64: 12, 32, 16>}, {pipeline_mode = #tpu.pipeline_mode<synchronous>, transform_indices = @transform_4, window_bounds = array<i64: 12, 1, 16>}, {pipeline_mode = #tpu.pipeline_mode<synchronous>, transform_indices = @transform_5, window_bounds = array<i64: 4, 16, 32>}, {pipeline_mode = #tpu.pipeline_mode<synchronous>, transform_indices = @transform_6, window_bounds = array<i64: 2, 1, 32>}, {pipeline_mode = #tpu.pipeline_mode<synchronous>, transform_indices = @transform_7, window_bounds = array<i64: 2, 32, 64>}, {pipeline_mode = #tpu.pipeline_mode<synchronous>, transform_indices = @transform_8, window_bounds = array<i64: 2, 1, 64>}, {pipeline_mode = #tpu.pipeline_mode<synchronous>, transform_indices = @transform_9, window_bounds = array<i64: 2, 64, 32>}, {pipeline_mode = #tpu.pipeline_mode<synchronous>, transform_indices = @transform_10, window_bounds = array<i64: 2, 1, 32>}, {pipeline_mode = #tpu.pipeline_mode<synchronous>, transform_indices = @transform_11, window_bounds = array<i64: 2, 4, 32>}, {pipeline_mode = #tpu.pipeline_mode<synchronous>, transform_indices = @transform_12, window_bounds = array<i64: 32, 128>}, {pipeline_mode = #tpu.pipeline_mode<synchronous>, transform_indices = @transform_13, window_bounds = array<i64: 1, 128>}, {pipeline_mode = #tpu.pipeline_mode<synchronous>, transform_indices = @transform_14, window_bounds = array<i64: 2, 16, 64>}, {pipeline_mode = #tpu.pipeline_mode<synchronous>, transform_indices = @transform_15, window_bounds = array<i64: 16, 128>}, {pipeline_mode = #tpu.pipeline_mode<synchronous>, transform_indices = @transform_16, window_bounds = array<i64: 16, 128>}, {pipeline_mode = #tpu.pipeline_mode<synchronous>, transform_indices = @transform_17, window_bounds = array<i64: 1, 128>}, {pipeline_mode = #tpu.pipeline_mode<synchronous>, transform_indices = @transform_18, window_bounds = array<i64: 16, 64>}, {pipeline_mode = #tpu.pipeline_mode<synchronous>, transform_indices = @transform_19, window_bounds = array<i64: 32, 4>}, {pipeline_mode = #tpu.pipeline_mode<synchronous>, transform_indices = @transform_20, window_bounds = array<i64: 1, 4>}, {pipeline_mode = #tpu.pipeline_mode<synchronous>, transform_indices = @transform_21, window_bounds = array<i64: 2, 4>}]} {
    %c0 = arith.constant 0 : index
    %c0_0 = arith.constant 0 : index
    %c0_1 = arith.constant 0 : index
    %0 = vector.load %arg1[%c0, %c0_0, %c0_1] : memref<2x8x32xf32, #tpu.memory_space<vmem>>, vector<2x8x32xf32>
    %1 = vector.shape_cast %0 : vector<2x8x32xf32> to vector<16x32xf32>
    %c0_2 = arith.constant 0 : index
    %c0_3 = arith.constant 0 : index
    %2 = vector.load %arg3[%c0_2, %c0_3] : memref<2x32xf32, #tpu.memory_space<vmem>>, vector<1x32xf32>
    %c1 = arith.constant 1 : index
    %c0_4 = arith.constant 0 : index
    %3 = vector.load %arg3[%c1, %c0_4] : memref<2x32xf32, #tpu.memory_space<vmem>>, vector<1x32xf32>
    %cst = arith.constant dense<0.000000e+00> : vector<16xf32>
    %4 = vector.multi_reduction <add>, %1, %cst [1] : vector<16x32xf32> to vector<16xf32>
    %5 = vector.shape_cast %4 : vector<16xf32> to vector<16x1xf32>
    %cst_5 = arith.constant 3.200000e+01 : f32
    %6 = vector.broadcast %cst_5 : f32 to vector<16x1xf32>
    %7 = arith.divf %5, %6 : vector<16x1xf32>
    %8 = vector.broadcast %7 : vector<16x1xf32> to vector<16x32xf32>
    %9 = arith.subf %1, %8 : vector<16x32xf32>
    %10 = arith.mulf %9, %9 : vector<16x32xf32>
    %cst_6 = arith.constant dense<0.000000e+00> : vector<16xf32>
    %11 = vector.multi_reduction <add>, %10, %cst_6 [1] : vector<16x32xf32> to vector<16xf32>
    %12 = vector.shape_cast %11 : vector<16xf32> to vector<16x1xf32>
    %cst_7 = arith.constant 3.200000e+01 : f32
    %13 = vector.broadcast %cst_7 : f32 to vector<16x1xf32>
    %14 = arith.divf %12, %13 : vector<16x1xf32>
    %15 = vector.broadcast %7 : vector<16x1xf32> to vector<16x32xf32>
    %16 = arith.subf %1, %15 : vector<16x32xf32>
    %cst_8 = arith.constant 9.99999996E-13 : f32
    %17 = vector.broadcast %cst_8 : f32 to vector<16x1xf32>
    %18 = arith.addf %14, %17 : vector<16x1xf32>
    %19 = math.rsqrt %18 : vector<16x1xf32>
    %20 = vector.broadcast %19 : vector<16x1xf32> to vector<16x32xf32>
    %21 = arith.mulf %16, %20 : vector<16x32xf32>
    %22 = vector.broadcast %2 : vector<1x32xf32> to vector<16x32xf32>
    %23 = arith.mulf %21, %22 : vector<16x32xf32>
    %24 = vector.broadcast %3 : vector<1x32xf32> to vector<16x32xf32>
    %25 = arith.addf %23, %24 : vector<16x32xf32>
    %c0_9 = arith.constant 0 : index
    %c0_10 = arith.constant 0 : index
    %c0_11 = arith.constant 0 : index
    %26 = vector.load %arg2[%c0_9, %c0_10, %c0_11] : memref<2x1x8xf32, #tpu.memory_space<vmem>>, vector<2x1x8xf32>
    %cst_12 = arith.constant 1.000000e+00 : f32
    %27 = vector.broadcast %cst_12 : f32 to vector<2x1x8xf32>
    %28 = arith.subf %26, %27 : vector<2x1x8xf32>
    %cst_13 = arith.constant 1.000000e+04 : f32
    %29 = vector.broadcast %cst_13 : f32 to vector<2x1x8xf32>
    %30 = arith.mulf %28, %29 : vector<2x1x8xf32>
    %cst_14 = arith.constant 0.000000e+00 : f32
    %31 = vector.broadcast %cst_14 : f32 to vector<16x32xf32>
    %32 = arith.truncf %25 : vector<16x32xf32> to vector<16x32xbf16>
    %c0_15 = arith.constant 0 : index
    %c0_16 = arith.constant 0 : index
    %c0_17 = arith.constant 0 : index
    %33 = vector.load %arg4[%c0_15, %c0_16, %c0_17] : memref<12x32x16xbf16, #tpu.memory_space<vmem>>, vector<1x32x16xbf16>
    %34 = vector.shape_cast %33 : vector<1x32x16xbf16> to vector<32x16xbf16>
    %cst_18 = arith.constant dense<0.000000e+00> : vector<16x16xf32>
    %35 = tpu.matmul %32, %34, %cst_18 {dimension_numbers = #tpu.dot_dimension_numbers<[1], [0], [0], [1], [0, 0, 1, 1], [], []>} : vector<16x32xbf16>, vector<32x16xbf16>, vector<16x16xf32> -> vector<16x16xf32>
    %c0_19 = arith.constant 0 : index
    %c0_20 = arith.constant 0 : index
    %c0_21 = arith.constant 0 : index
    %36 = vector.load %arg5[%c0_19, %c0_20, %c0_21] : memref<12x1x16xf32, #tpu.memory_space<vmem>>, vector<1x1x16xf32>
    %37 = vector.shape_cast %36 : vector<1x1x16xf32> to vector<1x16xf32>
    %38 = vector.broadcast %37 : vector<1x16xf32> to vector<16x16xf32>
    %39 = arith.addf %35, %38 : vector<16x16xf32>
    %40 = arith.truncf %25 : vector<16x32xf32> to vector<16x32xbf16>
    %c1_22 = arith.constant 1 : index
    %c0_23 = arith.constant 0 : index
    %c0_24 = arith.constant 0 : index
    %41 = vector.load %arg4[%c1_22, %c0_23, %c0_24] : memref<12x32x16xbf16, #tpu.memory_space<vmem>>, vector<1x32x16xbf16>
    %42 = vector.shape_cast %41 : vector<1x32x16xbf16> to vector<32x16xbf16>
    %cst_25 = arith.constant dense<0.000000e+00> : vector<16x16xf32>
    %43 = tpu.matmul %40, %42, %cst_25 {dimension_numbers = #tpu.dot_dimension_numbers<[1], [0], [0], [1], [0, 0, 1, 1], [], []>} : vector<16x32xbf16>, vector<32x16xbf16>, vector<16x16xf32> -> vector<16x16xf32>
    %c1_26 = arith.constant 1 : index
    %c0_27 = arith.constant 0 : index
    %c0_28 = arith.constant 0 : index
    %44 = vector.load %arg5[%c1_26, %c0_27, %c0_28] : memref<12x1x16xf32, #tpu.memory_space<vmem>>, vector<1x1x16xf32>
    %45 = vector.shape_cast %44 : vector<1x1x16xf32> to vector<1x16xf32>
    %46 = vector.broadcast %45 : vector<1x16xf32> to vector<16x16xf32>
    %47 = arith.addf %43, %46 : vector<16x16xf32>
    %48 = arith.truncf %25 : vector<16x32xf32> to vector<16x32xbf16>
    %c2 = arith.constant 2 : index
    %c0_29 = arith.constant 0 : index
    %c0_30 = arith.constant 0 : index
    %49 = vector.load %arg4[%c2, %c0_29, %c0_30] : memref<12x32x16xbf16, #tpu.memory_space<vmem>>, vector<1x32x16xbf16>
    %50 = vector.shape_cast %49 : vector<1x32x16xbf16> to vector<32x16xbf16>
    %cst_31 = arith.constant dense<0.000000e+00> : vector<16x16xf32>
    %51 = tpu.matmul %48, %50, %cst_31 {dimension_numbers = #tpu.dot_dimension_numbers<[1], [0], [0], [1], [0, 0, 1, 1], [], []>} : vector<16x32xbf16>, vector<32x16xbf16>, vector<16x16xf32> -> vector<16x16xf32>
    %c2_32 = arith.constant 2 : index
    %c0_33 = arith.constant 0 : index
    %c0_34 = arith.constant 0 : index
    %52 = vector.load %arg5[%c2_32, %c0_33, %c0_34] : memref<12x1x16xf32, #tpu.memory_space<vmem>>, vector<1x1x16xf32>
    %53 = vector.shape_cast %52 : vector<1x1x16xf32> to vector<1x16xf32>
    %54 = vector.broadcast %53 : vector<1x16xf32> to vector<16x16xf32>
    %55 = arith.addf %51, %54 : vector<16x16xf32>
    %56 = vector.shape_cast %39 : vector<16x16xf32> to vector<2x8x16xf32>
    %57 = vector.shape_cast %47 : vector<16x16xf32> to vector<2x8x16xf32>
    %58 = vector.shape_cast %55 : vector<16x16xf32> to vector<2x8x16xf32>
    %59 = arith.truncf %56 : vector<2x8x16xf32> to vector<2x8x16xbf16>
    %60 = arith.truncf %57 : vector<2x8x16xf32> to vector<2x8x16xbf16>
    "tpu.trace_start"() <{level = 10 : i32, message = "bqd,bkd->bqk"}> : () -> ()
    %cst_35 = arith.constant dense<0.000000e+00> : vector<2x8x8xf32>
    %61 = tpu.matmul %59, %60, %cst_35 {dimension_numbers = #tpu.dot_dimension_numbers<[2], [2], [1], [1], [0, 0, 0, 1, 1, 1], [0], [0]>} : vector<2x8x16xbf16>, vector<2x8x16xbf16>, vector<2x8x8xf32> -> vector<2x8x8xf32>
    "tpu.trace_stop"() : () -> ()
    %cst_36 = arith.constant 2.500000e-01 : f32
    %62 = vector.broadcast %cst_36 : f32 to vector<2x8x8xf32>
    %63 = arith.mulf %61, %62 : vector<2x8x8xf32>
    %64 = vector.broadcast %30 : vector<2x1x8xf32> to vector<2x8x8xf32>
    %65 = arith.addf %63, %64 : vector<2x8x8xf32>
    %cst_37 = arith.constant dense<0xFF800000> : vector<2x8xf32>
    %66 = vector.multi_reduction <maximumf>, %65, %cst_37 [2] : vector<2x8x8xf32> to vector<2x8xf32>
    %67 = vector.shape_cast %66 : vector<2x8xf32> to vector<2x8x1xf32>
    %68 = vector.broadcast %67 : vector<2x8x1xf32> to vector<2x8x8xf32>
    %69 = arith.subf %65, %68 : vector<2x8x8xf32>
    %70 = math.exp %69 : vector<2x8x8xf32>
    %cst_38 = arith.constant dense<0.000000e+00> : vector<2x8xf32>
    %71 = vector.multi_reduction <add>, %70, %cst_38 [2] : vector<2x8x8xf32> to vector<2x8xf32>
    %72 = vector.shape_cast %71 : vector<2x8xf32> to vector<2x8x1xf32>
    %73 = tpu.reciprocal %72 {approx = true} : vector<2x8x1xf32> -> vector<2x8x1xf32>
    %74 = vector.broadcast %73 : vector<2x8x1xf32> to vector<2x8x8xf32>
    %75 = arith.mulf %70, %74 : vector<2x8x8xf32>
    %76 = arith.truncf %75 : vector<2x8x8xf32> to vector<2x8x8xbf16>
    %77 = arith.truncf %58 : vector<2x8x16xf32> to vector<2x8x16xbf16>
    "tpu.trace_start"() <{level = 10 : i32, message = "bqk,bkd->bqd"}> : () -> ()
    %cst_39 = arith.constant dense<0.000000e+00> : vector<2x8x16xf32>
    %78 = tpu.matmul %76, %77, %cst_39 {dimension_numbers = #tpu.dot_dimension_numbers<[2], [1], [1], [2], [0, 0, 0, 1, 1, 2], [0], [0]>} : vector<2x8x8xbf16>, vector<2x8x16xbf16>, vector<2x8x16xf32> -> vector<2x8x16xf32>
    "tpu.trace_stop"() : () -> ()
    %79 = vector.shape_cast %78 : vector<2x8x16xf32> to vector<16x16xf32>
    %80 = arith.truncf %79 : vector<16x16xf32> to vector<16x16xbf16>
    %c0_40 = arith.constant 0 : index
    %c0_41 = arith.constant 0 : index
    %c0_42 = arith.constant 0 : index
    %81 = vector.load %arg6[%c0_40, %c0_41, %c0_42] : memref<4x16x32xbf16, #tpu.memory_space<vmem>>, vector<1x16x32xbf16>
    %82 = vector.shape_cast %81 : vector<1x16x32xbf16> to vector<16x32xbf16>
    %cst_43 = arith.constant dense<0.000000e+00> : vector<16x32xf32>
    %83 = tpu.matmul %80, %82, %cst_43 {dimension_numbers = #tpu.dot_dimension_numbers<[1], [0], [0], [1], [0, 0, 1, 1], [], []>} : vector<16x16xbf16>, vector<16x32xbf16>, vector<16x32xf32> -> vector<16x32xf32>
    %84 = arith.addf %31, %83 : vector<16x32xf32>
    %85 = arith.truncf %25 : vector<16x32xf32> to vector<16x32xbf16>
    %c3 = arith.constant 3 : index
    %c0_44 = arith.constant 0 : index
    %c0_45 = arith.constant 0 : index
    %86 = vector.load %arg4[%c3, %c0_44, %c0_45] : memref<12x32x16xbf16, #tpu.memory_space<vmem>>, vector<1x32x16xbf16>
    %87 = vector.shape_cast %86 : vector<1x32x16xbf16> to vector<32x16xbf16>
    %cst_46 = arith.constant dense<0.000000e+00> : vector<16x16xf32>
    %88 = tpu.matmul %85, %87, %cst_46 {dimension_numbers = #tpu.dot_dimension_numbers<[1], [0], [0], [1], [0, 0, 1, 1], [], []>} : vector<16x32xbf16>, vector<32x16xbf16>, vector<16x16xf32> -> vector<16x16xf32>
    %c3_47 = arith.constant 3 : index
    %c0_48 = arith.constant 0 : index
    %c0_49 = arith.constant 0 : index
    %89 = vector.load %arg5[%c3_47, %c0_48, %c0_49] : memref<12x1x16xf32, #tpu.memory_space<vmem>>, vector<1x1x16xf32>
    %90 = vector.shape_cast %89 : vector<1x1x16xf32> to vector<1x16xf32>
    %91 = vector.broadcast %90 : vector<1x16xf32> to vector<16x16xf32>
    %92 = arith.addf %88, %91 : vector<16x16xf32>
    %93 = arith.truncf %25 : vector<16x32xf32> to vector<16x32xbf16>
    %c4 = arith.constant 4 : index
    %c0_50 = arith.constant 0 : index
    %c0_51 = arith.constant 0 : index
    %94 = vector.load %arg4[%c4, %c0_50, %c0_51] : memref<12x32x16xbf16, #tpu.memory_space<vmem>>, vector<1x32x16xbf16>
    %95 = vector.shape_cast %94 : vector<1x32x16xbf16> to vector<32x16xbf16>
    %cst_52 = arith.constant dense<0.000000e+00> : vector<16x16xf32>
    %96 = tpu.matmul %93, %95, %cst_52 {dimension_numbers = #tpu.dot_dimension_numbers<[1], [0], [0], [1], [0, 0, 1, 1], [], []>} : vector<16x32xbf16>, vector<32x16xbf16>, vector<16x16xf32> -> vector<16x16xf32>
    %c4_53 = arith.constant 4 : index
    %c0_54 = arith.constant 0 : index
    %c0_55 = arith.constant 0 : index
    %97 = vector.load %arg5[%c4_53, %c0_54, %c0_55] : memref<12x1x16xf32, #tpu.memory_space<vmem>>, vector<1x1x16xf32>
    %98 = vector.shape_cast %97 : vector<1x1x16xf32> to vector<1x16xf32>
    %99 = vector.broadcast %98 : vector<1x16xf32> to vector<16x16xf32>
    %100 = arith.addf %96, %99 : vector<16x16xf32>
    %101 = arith.truncf %25 : vector<16x32xf32> to vector<16x32xbf16>
    %c5 = arith.constant 5 : index
    %c0_56 = arith.constant 0 : index
    %c0_57 = arith.constant 0 : index
    %102 = vector.load %arg4[%c5, %c0_56, %c0_57] : memref<12x32x16xbf16, #tpu.memory_space<vmem>>, vector<1x32x16xbf16>
    %103 = vector.shape_cast %102 : vector<1x32x16xbf16> to vector<32x16xbf16>
    %cst_58 = arith.constant dense<0.000000e+00> : vector<16x16xf32>
    %104 = tpu.matmul %101, %103, %cst_58 {dimension_numbers = #tpu.dot_dimension_numbers<[1], [0], [0], [1], [0, 0, 1, 1], [], []>} : vector<16x32xbf16>, vector<32x16xbf16>, vector<16x16xf32> -> vector<16x16xf32>
    %c5_59 = arith.constant 5 : index
    %c0_60 = arith.constant 0 : index
    %c0_61 = arith.constant 0 : index
    %105 = vector.load %arg5[%c5_59, %c0_60, %c0_61] : memref<12x1x16xf32, #tpu.memory_space<vmem>>, vector<1x1x16xf32>
    %106 = vector.shape_cast %105 : vector<1x1x16xf32> to vector<1x16xf32>
    %107 = vector.broadcast %106 : vector<1x16xf32> to vector<16x16xf32>
    %108 = arith.addf %104, %107 : vector<16x16xf32>
    %109 = vector.shape_cast %92 : vector<16x16xf32> to vector<2x8x16xf32>
    %110 = vector.shape_cast %100 : vector<16x16xf32> to vector<2x8x16xf32>
    %111 = vector.shape_cast %108 : vector<16x16xf32> to vector<2x8x16xf32>
    %112 = arith.truncf %109 : vector<2x8x16xf32> to vector<2x8x16xbf16>
    %113 = arith.truncf %110 : vector<2x8x16xf32> to vector<2x8x16xbf16>
    "tpu.trace_start"() <{level = 10 : i32, message = "bqd,bkd->bqk"}> : () -> ()
    %cst_62 = arith.constant dense<0.000000e+00> : vector<2x8x8xf32>
    %114 = tpu.matmul %112, %113, %cst_62 {dimension_numbers = #tpu.dot_dimension_numbers<[2], [2], [1], [1], [0, 0, 0, 1, 1, 1], [0], [0]>} : vector<2x8x16xbf16>, vector<2x8x16xbf16>, vector<2x8x8xf32> -> vector<2x8x8xf32>
    "tpu.trace_stop"() : () -> ()
    %cst_63 = arith.constant 2.500000e-01 : f32
    %115 = vector.broadcast %cst_63 : f32 to vector<2x8x8xf32>
    %116 = arith.mulf %114, %115 : vector<2x8x8xf32>
    %117 = vector.broadcast %30 : vector<2x1x8xf32> to vector<2x8x8xf32>
    %118 = arith.addf %116, %117 : vector<2x8x8xf32>
    %cst_64 = arith.constant dense<0xFF800000> : vector<2x8xf32>
    %119 = vector.multi_reduction <maximumf>, %118, %cst_64 [2] : vector<2x8x8xf32> to vector<2x8xf32>
    %120 = vector.shape_cast %119 : vector<2x8xf32> to vector<2x8x1xf32>
    %121 = vector.broadcast %120 : vector<2x8x1xf32> to vector<2x8x8xf32>
    %122 = arith.subf %118, %121 : vector<2x8x8xf32>
    %123 = math.exp %122 : vector<2x8x8xf32>
    %cst_65 = arith.constant dense<0.000000e+00> : vector<2x8xf32>
    %124 = vector.multi_reduction <add>, %123, %cst_65 [2] : vector<2x8x8xf32> to vector<2x8xf32>
    %125 = vector.shape_cast %124 : vector<2x8xf32> to vector<2x8x1xf32>
    %126 = tpu.reciprocal %125 {approx = true} : vector<2x8x1xf32> -> vector<2x8x1xf32>
    %127 = vector.broadcast %126 : vector<2x8x1xf32> to vector<2x8x8xf32>
    %128 = arith.mulf %123, %127 : vector<2x8x8xf32>
    %129 = arith.truncf %128 : vector<2x8x8xf32> to vector<2x8x8xbf16>
    %130 = arith.truncf %111 : vector<2x8x16xf32> to vector<2x8x16xbf16>
    "tpu.trace_start"() <{level = 10 : i32, message = "bqk,bkd->bqd"}> : () -> ()
    %cst_66 = arith.constant dense<0.000000e+00> : vector<2x8x16xf32>
    %131 = tpu.matmul %129, %130, %cst_66 {dimension_numbers = #tpu.dot_dimension_numbers<[2], [1], [1], [2], [0, 0, 0, 1, 1, 2], [0], [0]>} : vector<2x8x8xbf16>, vector<2x8x16xbf16>, vector<2x8x16xf32> -> vector<2x8x16xf32>
    "tpu.trace_stop"() : () -> ()
    %132 = vector.shape_cast %131 : vector<2x8x16xf32> to vector<16x16xf32>
    %133 = arith.truncf %132 : vector<16x16xf32> to vector<16x16xbf16>
    %c1_67 = arith.constant 1 : index
    %c0_68 = arith.constant 0 : index
    %c0_69 = arith.constant 0 : index
    %134 = vector.load %arg6[%c1_67, %c0_68, %c0_69] : memref<4x16x32xbf16, #tpu.memory_space<vmem>>, vector<1x16x32xbf16>
    %135 = vector.shape_cast %134 : vector<1x16x32xbf16> to vector<16x32xbf16>
    %cst_70 = arith.constant dense<0.000000e+00> : vector<16x32xf32>
    %136 = tpu.matmul %133, %135, %cst_70 {dimension_numbers = #tpu.dot_dimension_numbers<[1], [0], [0], [1], [0, 0, 1, 1], [], []>} : vector<16x16xbf16>, vector<16x32xbf16>, vector<16x32xf32> -> vector<16x32xf32>
    %137 = arith.addf %84, %136 : vector<16x32xf32>
    %c0_71 = arith.constant 0 : index
    %c0_72 = arith.constant 0 : index
    %c0_73 = arith.constant 0 : index
    %138 = vector.load %arg7[%c0_71, %c0_72, %c0_73] : memref<2x1x32xf32, #tpu.memory_space<vmem>>, vector<1x1x32xf32>
    %139 = vector.shape_cast %138 : vector<1x1x32xf32> to vector<1x32xf32>
    %140 = vector.broadcast %139 : vector<1x32xf32> to vector<16x32xf32>
    %141 = arith.addf %137, %140 : vector<16x32xf32>
    %142 = arith.addf %141, %25 : vector<16x32xf32>
    %c0_74 = arith.constant 0 : index
    %c0_75 = arith.constant 0 : index
    %c0_76 = arith.constant 0 : index
    %143 = vector.load %arg12[%c0_74, %c0_75, %c0_76] : memref<2x4x32xf32, #tpu.memory_space<vmem>>, vector<1x1x32xf32>
    %144 = vector.shape_cast %143 : vector<1x1x32xf32> to vector<1x32xf32>
    %c0_77 = arith.constant 0 : index
    %c1_78 = arith.constant 1 : index
    %c0_79 = arith.constant 0 : index
    %145 = vector.load %arg12[%c0_77, %c1_78, %c0_79] : memref<2x4x32xf32, #tpu.memory_space<vmem>>, vector<1x1x32xf32>
    %146 = vector.shape_cast %145 : vector<1x1x32xf32> to vector<1x32xf32>
    %cst_80 = arith.constant dense<0.000000e+00> : vector<16xf32>
    %147 = vector.multi_reduction <add>, %142, %cst_80 [1] : vector<16x32xf32> to vector<16xf32>
    %148 = vector.shape_cast %147 : vector<16xf32> to vector<16x1xf32>
    %cst_81 = arith.constant 3.200000e+01 : f32
    %149 = vector.broadcast %cst_81 : f32 to vector<16x1xf32>
    %150 = arith.divf %148, %149 : vector<16x1xf32>
    %151 = vector.broadcast %150 : vector<16x1xf32> to vector<16x32xf32>
    %152 = arith.subf %142, %151 : vector<16x32xf32>
    %153 = arith.mulf %152, %152 : vector<16x32xf32>
    %cst_82 = arith.constant dense<0.000000e+00> : vector<16xf32>
    %154 = vector.multi_reduction <add>, %153, %cst_82 [1] : vector<16x32xf32> to vector<16xf32>
    %155 = vector.shape_cast %154 : vector<16xf32> to vector<16x1xf32>
    %cst_83 = arith.constant 3.200000e+01 : f32
    %156 = vector.broadcast %cst_83 : f32 to vector<16x1xf32>
    %157 = arith.divf %155, %156 : vector<16x1xf32>
    %158 = vector.broadcast %150 : vector<16x1xf32> to vector<16x32xf32>
    %159 = arith.subf %142, %158 : vector<16x32xf32>
    %cst_84 = arith.constant 9.99999996E-13 : f32
    %160 = vector.broadcast %cst_84 : f32 to vector<16x1xf32>
    %161 = arith.addf %157, %160 : vector<16x1xf32>
    %162 = math.rsqrt %161 : vector<16x1xf32>
    %163 = vector.broadcast %162 : vector<16x1xf32> to vector<16x32xf32>
    %164 = arith.mulf %159, %163 : vector<16x32xf32>
    %165 = vector.broadcast %144 : vector<1x32xf32> to vector<16x32xf32>
    %166 = arith.mulf %164, %165 : vector<16x32xf32>
    %167 = vector.broadcast %146 : vector<1x32xf32> to vector<16x32xf32>
    %168 = arith.addf %166, %167 : vector<16x32xf32>
    %169 = arith.truncf %168 : vector<16x32xf32> to vector<16x32xbf16>
    %c0_85 = arith.constant 0 : index
    %c0_86 = arith.constant 0 : index
    %c0_87 = arith.constant 0 : index
    %170 = vector.load %arg8[%c0_85, %c0_86, %c0_87] : memref<2x32x64xbf16, #tpu.memory_space<vmem>>, vector<1x32x64xbf16>
    %171 = vector.shape_cast %170 : vector<1x32x64xbf16> to vector<32x64xbf16>
    %cst_88 = arith.constant dense<0.000000e+00> : vector<16x64xf32>
    %172 = tpu.matmul %169, %171, %cst_88 {dimension_numbers = #tpu.dot_dimension_numbers<[1], [0], [0], [1], [0, 0, 1, 1], [], []>} : vector<16x32xbf16>, vector<32x64xbf16>, vector<16x64xf32> -> vector<16x64xf32>
    %c0_89 = arith.constant 0 : index
    %c0_90 = arith.constant 0 : index
    %c0_91 = arith.constant 0 : index
    %173 = vector.load %arg9[%c0_89, %c0_90, %c0_91] : memref<2x1x64xf32, #tpu.memory_space<vmem>>, vector<1x1x64xf32>
    %174 = vector.shape_cast %173 : vector<1x1x64xf32> to vector<1x64xf32>
    %175 = vector.broadcast %174 : vector<1x64xf32> to vector<16x64xf32>
    %176 = arith.addf %172, %175 : vector<16x64xf32>
    %177 = arith.mulf %176, %176 : vector<16x64xf32>
    %178 = arith.mulf %176, %177 : vector<16x64xf32>
    %cst_92 = arith.constant 4.471500e-02 : f32
    %179 = vector.broadcast %cst_92 : f32 to vector<16x64xf32>
    %180 = arith.mulf %179, %178 : vector<16x64xf32>
    %181 = arith.addf %176, %180 : vector<16x64xf32>
    %cst_93 = arith.constant 0.797884583 : f32
    %182 = vector.broadcast %cst_93 : f32 to vector<16x64xf32>
    %183 = arith.mulf %182, %181 : vector<16x64xf32>
    %184 = math.tanh %183 : vector<16x64xf32>
    %cst_94 = arith.constant 1.000000e+00 : f32
    %185 = vector.broadcast %cst_94 : f32 to vector<16x64xf32>
    %186 = arith.addf %185, %184 : vector<16x64xf32>
    %cst_95 = arith.constant 5.000000e-01 : f32
    %187 = vector.broadcast %cst_95 : f32 to vector<16x64xf32>
    %188 = arith.mulf %187, %186 : vector<16x64xf32>
    %189 = arith.mulf %176, %188 : vector<16x64xf32>
    %190 = arith.truncf %189 : vector<16x64xf32> to vector<16x64xbf16>
    %c0_96 = arith.constant 0 : index
    %c0_97 = arith.constant 0 : index
    %c0_98 = arith.constant 0 : index
    %191 = vector.load %arg10[%c0_96, %c0_97, %c0_98] : memref<2x64x32xbf16, #tpu.memory_space<vmem>>, vector<1x64x32xbf16>
    %192 = vector.shape_cast %191 : vector<1x64x32xbf16> to vector<64x32xbf16>
    %cst_99 = arith.constant dense<0.000000e+00> : vector<16x32xf32>
    %193 = tpu.matmul %190, %192, %cst_99 {dimension_numbers = #tpu.dot_dimension_numbers<[1], [0], [0], [1], [0, 0, 1, 1], [], []>} : vector<16x64xbf16>, vector<64x32xbf16>, vector<16x32xf32> -> vector<16x32xf32>
    %c0_100 = arith.constant 0 : index
    %c0_101 = arith.constant 0 : index
    %c0_102 = arith.constant 0 : index
    %194 = vector.load %arg11[%c0_100, %c0_101, %c0_102] : memref<2x1x32xf32, #tpu.memory_space<vmem>>, vector<1x1x32xf32>
    %195 = vector.shape_cast %194 : vector<1x1x32xf32> to vector<1x32xf32>
    %196 = vector.broadcast %195 : vector<1x32xf32> to vector<16x32xf32>
    %197 = arith.addf %193, %196 : vector<16x32xf32>
    %198 = arith.addf %197, %168 : vector<16x32xf32>
    %c0_103 = arith.constant 0 : index
    %c2_104 = arith.constant 2 : index
    %c0_105 = arith.constant 0 : index
    %199 = vector.load %arg12[%c0_103, %c2_104, %c0_105] : memref<2x4x32xf32, #tpu.memory_space<vmem>>, vector<1x1x32xf32>
    %200 = vector.shape_cast %199 : vector<1x1x32xf32> to vector<1x32xf32>
    %c0_106 = arith.constant 0 : index
    %c3_107 = arith.constant 3 : index
    %c0_108 = arith.constant 0 : index
    %201 = vector.load %arg12[%c0_106, %c3_107, %c0_108] : memref<2x4x32xf32, #tpu.memory_space<vmem>>, vector<1x1x32xf32>
    %202 = vector.shape_cast %201 : vector<1x1x32xf32> to vector<1x32xf32>
    %cst_109 = arith.constant dense<0.000000e+00> : vector<16xf32>
    %203 = vector.multi_reduction <add>, %198, %cst_109 [1] : vector<16x32xf32> to vector<16xf32>
    %204 = vector.shape_cast %203 : vector<16xf32> to vector<16x1xf32>
    %cst_110 = arith.constant 3.200000e+01 : f32
    %205 = vector.broadcast %cst_110 : f32 to vector<16x1xf32>
    %206 = arith.divf %204, %205 : vector<16x1xf32>
    %207 = vector.broadcast %206 : vector<16x1xf32> to vector<16x32xf32>
    %208 = arith.subf %198, %207 : vector<16x32xf32>
    %209 = arith.mulf %208, %208 : vector<16x32xf32>
    %cst_111 = arith.constant dense<0.000000e+00> : vector<16xf32>
    %210 = vector.multi_reduction <add>, %209, %cst_111 [1] : vector<16x32xf32> to vector<16xf32>
    %211 = vector.shape_cast %210 : vector<16xf32> to vector<16x1xf32>
    %cst_112 = arith.constant 3.200000e+01 : f32
    %212 = vector.broadcast %cst_112 : f32 to vector<16x1xf32>
    %213 = arith.divf %211, %212 : vector<16x1xf32>
    %214 = vector.broadcast %206 : vector<16x1xf32> to vector<16x32xf32>
    %215 = arith.subf %198, %214 : vector<16x32xf32>
    %cst_113 = arith.constant 9.99999996E-13 : f32
    %216 = vector.broadcast %cst_113 : f32 to vector<16x1xf32>
    %217 = arith.addf %213, %216 : vector<16x1xf32>
    %218 = math.rsqrt %217 : vector<16x1xf32>
    %219 = vector.broadcast %218 : vector<16x1xf32> to vector<16x32xf32>
    %220 = arith.mulf %215, %219 : vector<16x32xf32>
    %221 = vector.broadcast %200 : vector<1x32xf32> to vector<16x32xf32>
    %222 = arith.mulf %220, %221 : vector<16x32xf32>
    %223 = vector.broadcast %202 : vector<1x32xf32> to vector<16x32xf32>
    %224 = arith.addf %222, %223 : vector<16x32xf32>
    %cst_114 = arith.constant 0.000000e+00 : f32
    %225 = vector.broadcast %cst_114 : f32 to vector<16x32xf32>
    %226 = arith.truncf %224 : vector<16x32xf32> to vector<16x32xbf16>
    %c6 = arith.constant 6 : index
    %c0_115 = arith.constant 0 : index
    %c0_116 = arith.constant 0 : index
    %227 = vector.load %arg4[%c6, %c0_115, %c0_116] : memref<12x32x16xbf16, #tpu.memory_space<vmem>>, vector<1x32x16xbf16>
    %228 = vector.shape_cast %227 : vector<1x32x16xbf16> to vector<32x16xbf16>
    %cst_117 = arith.constant dense<0.000000e+00> : vector<16x16xf32>
    %229 = tpu.matmul %226, %228, %cst_117 {dimension_numbers = #tpu.dot_dimension_numbers<[1], [0], [0], [1], [0, 0, 1, 1], [], []>} : vector<16x32xbf16>, vector<32x16xbf16>, vector<16x16xf32> -> vector<16x16xf32>
    %c6_118 = arith.constant 6 : index
    %c0_119 = arith.constant 0 : index
    %c0_120 = arith.constant 0 : index
    %230 = vector.load %arg5[%c6_118, %c0_119, %c0_120] : memref<12x1x16xf32, #tpu.memory_space<vmem>>, vector<1x1x16xf32>
    %231 = vector.shape_cast %230 : vector<1x1x16xf32> to vector<1x16xf32>
    %232 = vector.broadcast %231 : vector<1x16xf32> to vector<16x16xf32>
    %233 = arith.addf %229, %232 : vector<16x16xf32>
    %234 = arith.truncf %224 : vector<16x32xf32> to vector<16x32xbf16>
    %c7 = arith.constant 7 : index
    %c0_121 = arith.constant 0 : index
    %c0_122 = arith.constant 0 : index
    %235 = vector.load %arg4[%c7, %c0_121, %c0_122] : memref<12x32x16xbf16, #tpu.memory_space<vmem>>, vector<1x32x16xbf16>
    %236 = vector.shape_cast %235 : vector<1x32x16xbf16> to vector<32x16xbf16>
    %cst_123 = arith.constant dense<0.000000e+00> : vector<16x16xf32>
    %237 = tpu.matmul %234, %236, %cst_123 {dimension_numbers = #tpu.dot_dimension_numbers<[1], [0], [0], [1], [0, 0, 1, 1], [], []>} : vector<16x32xbf16>, vector<32x16xbf16>, vector<16x16xf32> -> vector<16x16xf32>
    %c7_124 = arith.constant 7 : index
    %c0_125 = arith.constant 0 : index
    %c0_126 = arith.constant 0 : index
    %238 = vector.load %arg5[%c7_124, %c0_125, %c0_126] : memref<12x1x16xf32, #tpu.memory_space<vmem>>, vector<1x1x16xf32>
    %239 = vector.shape_cast %238 : vector<1x1x16xf32> to vector<1x16xf32>
    %240 = vector.broadcast %239 : vector<1x16xf32> to vector<16x16xf32>
    %241 = arith.addf %237, %240 : vector<16x16xf32>
    %242 = arith.truncf %224 : vector<16x32xf32> to vector<16x32xbf16>
    %c8 = arith.constant 8 : index
    %c0_127 = arith.constant 0 : index
    %c0_128 = arith.constant 0 : index
    %243 = vector.load %arg4[%c8, %c0_127, %c0_128] : memref<12x32x16xbf16, #tpu.memory_space<vmem>>, vector<1x32x16xbf16>
    %244 = vector.shape_cast %243 : vector<1x32x16xbf16> to vector<32x16xbf16>
    %cst_129 = arith.constant dense<0.000000e+00> : vector<16x16xf32>
    %245 = tpu.matmul %242, %244, %cst_129 {dimension_numbers = #tpu.dot_dimension_numbers<[1], [0], [0], [1], [0, 0, 1, 1], [], []>} : vector<16x32xbf16>, vector<32x16xbf16>, vector<16x16xf32> -> vector<16x16xf32>
    %c8_130 = arith.constant 8 : index
    %c0_131 = arith.constant 0 : index
    %c0_132 = arith.constant 0 : index
    %246 = vector.load %arg5[%c8_130, %c0_131, %c0_132] : memref<12x1x16xf32, #tpu.memory_space<vmem>>, vector<1x1x16xf32>
    %247 = vector.shape_cast %246 : vector<1x1x16xf32> to vector<1x16xf32>
    %248 = vector.broadcast %247 : vector<1x16xf32> to vector<16x16xf32>
    %249 = arith.addf %245, %248 : vector<16x16xf32>
    %250 = vector.shape_cast %233 : vector<16x16xf32> to vector<2x8x16xf32>
    %251 = vector.shape_cast %241 : vector<16x16xf32> to vector<2x8x16xf32>
    %252 = vector.shape_cast %249 : vector<16x16xf32> to vector<2x8x16xf32>
    %253 = arith.truncf %250 : vector<2x8x16xf32> to vector<2x8x16xbf16>
    %254 = arith.truncf %251 : vector<2x8x16xf32> to vector<2x8x16xbf16>
    "tpu.trace_start"() <{level = 10 : i32, message = "bqd,bkd->bqk"}> : () -> ()
    %cst_133 = arith.constant dense<0.000000e+00> : vector<2x8x8xf32>
    %255 = tpu.matmul %253, %254, %cst_133 {dimension_numbers = #tpu.dot_dimension_numbers<[2], [2], [1], [1], [0, 0, 0, 1, 1, 1], [0], [0]>} : vector<2x8x16xbf16>, vector<2x8x16xbf16>, vector<2x8x8xf32> -> vector<2x8x8xf32>
    "tpu.trace_stop"() : () -> ()
    %cst_134 = arith.constant 2.500000e-01 : f32
    %256 = vector.broadcast %cst_134 : f32 to vector<2x8x8xf32>
    %257 = arith.mulf %255, %256 : vector<2x8x8xf32>
    %258 = vector.broadcast %30 : vector<2x1x8xf32> to vector<2x8x8xf32>
    %259 = arith.addf %257, %258 : vector<2x8x8xf32>
    %cst_135 = arith.constant dense<0xFF800000> : vector<2x8xf32>
    %260 = vector.multi_reduction <maximumf>, %259, %cst_135 [2] : vector<2x8x8xf32> to vector<2x8xf32>
    %261 = vector.shape_cast %260 : vector<2x8xf32> to vector<2x8x1xf32>
    %262 = vector.broadcast %261 : vector<2x8x1xf32> to vector<2x8x8xf32>
    %263 = arith.subf %259, %262 : vector<2x8x8xf32>
    %264 = math.exp %263 : vector<2x8x8xf32>
    %cst_136 = arith.constant dense<0.000000e+00> : vector<2x8xf32>
    %265 = vector.multi_reduction <add>, %264, %cst_136 [2] : vector<2x8x8xf32> to vector<2x8xf32>
    %266 = vector.shape_cast %265 : vector<2x8xf32> to vector<2x8x1xf32>
    %267 = tpu.reciprocal %266 {approx = true} : vector<2x8x1xf32> -> vector<2x8x1xf32>
    %268 = vector.broadcast %267 : vector<2x8x1xf32> to vector<2x8x8xf32>
    %269 = arith.mulf %264, %268 : vector<2x8x8xf32>
    %270 = arith.truncf %269 : vector<2x8x8xf32> to vector<2x8x8xbf16>
    %271 = arith.truncf %252 : vector<2x8x16xf32> to vector<2x8x16xbf16>
    "tpu.trace_start"() <{level = 10 : i32, message = "bqk,bkd->bqd"}> : () -> ()
    %cst_137 = arith.constant dense<0.000000e+00> : vector<2x8x16xf32>
    %272 = tpu.matmul %270, %271, %cst_137 {dimension_numbers = #tpu.dot_dimension_numbers<[2], [1], [1], [2], [0, 0, 0, 1, 1, 2], [0], [0]>} : vector<2x8x8xbf16>, vector<2x8x16xbf16>, vector<2x8x16xf32> -> vector<2x8x16xf32>
    "tpu.trace_stop"() : () -> ()
    %273 = vector.shape_cast %272 : vector<2x8x16xf32> to vector<16x16xf32>
    %274 = arith.truncf %273 : vector<16x16xf32> to vector<16x16xbf16>
    %c2_138 = arith.constant 2 : index
    %c0_139 = arith.constant 0 : index
    %c0_140 = arith.constant 0 : index
    %275 = vector.load %arg6[%c2_138, %c0_139, %c0_140] : memref<4x16x32xbf16, #tpu.memory_space<vmem>>, vector<1x16x32xbf16>
    %276 = vector.shape_cast %275 : vector<1x16x32xbf16> to vector<16x32xbf16>
    %cst_141 = arith.constant dense<0.000000e+00> : vector<16x32xf32>
    %277 = tpu.matmul %274, %276, %cst_141 {dimension_numbers = #tpu.dot_dimension_numbers<[1], [0], [0], [1], [0, 0, 1, 1], [], []>} : vector<16x16xbf16>, vector<16x32xbf16>, vector<16x32xf32> -> vector<16x32xf32>
    %278 = arith.addf %225, %277 : vector<16x32xf32>
    %279 = arith.truncf %224 : vector<16x32xf32> to vector<16x32xbf16>
    %c9 = arith.constant 9 : index
    %c0_142 = arith.constant 0 : index
    %c0_143 = arith.constant 0 : index
    %280 = vector.load %arg4[%c9, %c0_142, %c0_143] : memref<12x32x16xbf16, #tpu.memory_space<vmem>>, vector<1x32x16xbf16>
    %281 = vector.shape_cast %280 : vector<1x32x16xbf16> to vector<32x16xbf16>
    %cst_144 = arith.constant dense<0.000000e+00> : vector<16x16xf32>
    %282 = tpu.matmul %279, %281, %cst_144 {dimension_numbers = #tpu.dot_dimension_numbers<[1], [0], [0], [1], [0, 0, 1, 1], [], []>} : vector<16x32xbf16>, vector<32x16xbf16>, vector<16x16xf32> -> vector<16x16xf32>
    %c9_145 = arith.constant 9 : index
    %c0_146 = arith.constant 0 : index
    %c0_147 = arith.constant 0 : index
    %283 = vector.load %arg5[%c9_145, %c0_146, %c0_147] : memref<12x1x16xf32, #tpu.memory_space<vmem>>, vector<1x1x16xf32>
    %284 = vector.shape_cast %283 : vector<1x1x16xf32> to vector<1x16xf32>
    %285 = vector.broadcast %284 : vector<1x16xf32> to vector<16x16xf32>
    %286 = arith.addf %282, %285 : vector<16x16xf32>
    %287 = arith.truncf %224 : vector<16x32xf32> to vector<16x32xbf16>
    %c10 = arith.constant 10 : index
    %c0_148 = arith.constant 0 : index
    %c0_149 = arith.constant 0 : index
    %288 = vector.load %arg4[%c10, %c0_148, %c0_149] : memref<12x32x16xbf16, #tpu.memory_space<vmem>>, vector<1x32x16xbf16>
    %289 = vector.shape_cast %288 : vector<1x32x16xbf16> to vector<32x16xbf16>
    %cst_150 = arith.constant dense<0.000000e+00> : vector<16x16xf32>
    %290 = tpu.matmul %287, %289, %cst_150 {dimension_numbers = #tpu.dot_dimension_numbers<[1], [0], [0], [1], [0, 0, 1, 1], [], []>} : vector<16x32xbf16>, vector<32x16xbf16>, vector<16x16xf32> -> vector<16x16xf32>
    %c10_151 = arith.constant 10 : index
    %c0_152 = arith.constant 0 : index
    %c0_153 = arith.constant 0 : index
    %291 = vector.load %arg5[%c10_151, %c0_152, %c0_153] : memref<12x1x16xf32, #tpu.memory_space<vmem>>, vector<1x1x16xf32>
    %292 = vector.shape_cast %291 : vector<1x1x16xf32> to vector<1x16xf32>
    %293 = vector.broadcast %292 : vector<1x16xf32> to vector<16x16xf32>
    %294 = arith.addf %290, %293 : vector<16x16xf32>
    %295 = arith.truncf %224 : vector<16x32xf32> to vector<16x32xbf16>
    %c11 = arith.constant 11 : index
    %c0_154 = arith.constant 0 : index
    %c0_155 = arith.constant 0 : index
    %296 = vector.load %arg4[%c11, %c0_154, %c0_155] : memref<12x32x16xbf16, #tpu.memory_space<vmem>>, vector<1x32x16xbf16>
    %297 = vector.shape_cast %296 : vector<1x32x16xbf16> to vector<32x16xbf16>
    %cst_156 = arith.constant dense<0.000000e+00> : vector<16x16xf32>
    %298 = tpu.matmul %295, %297, %cst_156 {dimension_numbers = #tpu.dot_dimension_numbers<[1], [0], [0], [1], [0, 0, 1, 1], [], []>} : vector<16x32xbf16>, vector<32x16xbf16>, vector<16x16xf32> -> vector<16x16xf32>
    %c11_157 = arith.constant 11 : index
    %c0_158 = arith.constant 0 : index
    %c0_159 = arith.constant 0 : index
    %299 = vector.load %arg5[%c11_157, %c0_158, %c0_159] : memref<12x1x16xf32, #tpu.memory_space<vmem>>, vector<1x1x16xf32>
    %300 = vector.shape_cast %299 : vector<1x1x16xf32> to vector<1x16xf32>
    %301 = vector.broadcast %300 : vector<1x16xf32> to vector<16x16xf32>
    %302 = arith.addf %298, %301 : vector<16x16xf32>
    %303 = vector.shape_cast %286 : vector<16x16xf32> to vector<2x8x16xf32>
    %304 = vector.shape_cast %294 : vector<16x16xf32> to vector<2x8x16xf32>
    %305 = vector.shape_cast %302 : vector<16x16xf32> to vector<2x8x16xf32>
    %306 = arith.truncf %303 : vector<2x8x16xf32> to vector<2x8x16xbf16>
    %307 = arith.truncf %304 : vector<2x8x16xf32> to vector<2x8x16xbf16>
    "tpu.trace_start"() <{level = 10 : i32, message = "bqd,bkd->bqk"}> : () -> ()
    %cst_160 = arith.constant dense<0.000000e+00> : vector<2x8x8xf32>
    %308 = tpu.matmul %306, %307, %cst_160 {dimension_numbers = #tpu.dot_dimension_numbers<[2], [2], [1], [1], [0, 0, 0, 1, 1, 1], [0], [0]>} : vector<2x8x16xbf16>, vector<2x8x16xbf16>, vector<2x8x8xf32> -> vector<2x8x8xf32>
    "tpu.trace_stop"() : () -> ()
    %cst_161 = arith.constant 2.500000e-01 : f32
    %309 = vector.broadcast %cst_161 : f32 to vector<2x8x8xf32>
    %310 = arith.mulf %308, %309 : vector<2x8x8xf32>
    %311 = vector.broadcast %30 : vector<2x1x8xf32> to vector<2x8x8xf32>
    %312 = arith.addf %310, %311 : vector<2x8x8xf32>
    %cst_162 = arith.constant dense<0xFF800000> : vector<2x8xf32>
    %313 = vector.multi_reduction <maximumf>, %312, %cst_162 [2] : vector<2x8x8xf32> to vector<2x8xf32>
    %314 = vector.shape_cast %313 : vector<2x8xf32> to vector<2x8x1xf32>
    %315 = vector.broadcast %314 : vector<2x8x1xf32> to vector<2x8x8xf32>
    %316 = arith.subf %312, %315 : vector<2x8x8xf32>
    %317 = math.exp %316 : vector<2x8x8xf32>
    %cst_163 = arith.constant dense<0.000000e+00> : vector<2x8xf32>
    %318 = vector.multi_reduction <add>, %317, %cst_163 [2] : vector<2x8x8xf32> to vector<2x8xf32>
    %319 = vector.shape_cast %318 : vector<2x8xf32> to vector<2x8x1xf32>
    %320 = tpu.reciprocal %319 {approx = true} : vector<2x8x1xf32> -> vector<2x8x1xf32>
    %321 = vector.broadcast %320 : vector<2x8x1xf32> to vector<2x8x8xf32>
    %322 = arith.mulf %317, %321 : vector<2x8x8xf32>
    %323 = arith.truncf %322 : vector<2x8x8xf32> to vector<2x8x8xbf16>
    %324 = arith.truncf %305 : vector<2x8x16xf32> to vector<2x8x16xbf16>
    "tpu.trace_start"() <{level = 10 : i32, message = "bqk,bkd->bqd"}> : () -> ()
    %cst_164 = arith.constant dense<0.000000e+00> : vector<2x8x16xf32>
    %325 = tpu.matmul %323, %324, %cst_164 {dimension_numbers = #tpu.dot_dimension_numbers<[2], [1], [1], [2], [0, 0, 0, 1, 1, 2], [0], [0]>} : vector<2x8x8xbf16>, vector<2x8x16xbf16>, vector<2x8x16xf32> -> vector<2x8x16xf32>
    "tpu.trace_stop"() : () -> ()
    %326 = vector.shape_cast %325 : vector<2x8x16xf32> to vector<16x16xf32>
    %327 = arith.truncf %326 : vector<16x16xf32> to vector<16x16xbf16>
    %c3_165 = arith.constant 3 : index
    %c0_166 = arith.constant 0 : index
    %c0_167 = arith.constant 0 : index
    %328 = vector.load %arg6[%c3_165, %c0_166, %c0_167] : memref<4x16x32xbf16, #tpu.memory_space<vmem>>, vector<1x16x32xbf16>
    %329 = vector.shape_cast %328 : vector<1x16x32xbf16> to vector<16x32xbf16>
    %cst_168 = arith.constant dense<0.000000e+00> : vector<16x32xf32>
    %330 = tpu.matmul %327, %329, %cst_168 {dimension_numbers = #tpu.dot_dimension_numbers<[1], [0], [0], [1], [0, 0, 1, 1], [], []>} : vector<16x16xbf16>, vector<16x32xbf16>, vector<16x32xf32> -> vector<16x32xf32>
    %331 = arith.addf %278, %330 : vector<16x32xf32>
    %c1_169 = arith.constant 1 : index
    %c0_170 = arith.constant 0 : index
    %c0_171 = arith.constant 0 : index
    %332 = vector.load %arg7[%c1_169, %c0_170, %c0_171] : memref<2x1x32xf32, #tpu.memory_space<vmem>>, vector<1x1x32xf32>
    %333 = vector.shape_cast %332 : vector<1x1x32xf32> to vector<1x32xf32>
    %334 = vector.broadcast %333 : vector<1x32xf32> to vector<16x32xf32>
    %335 = arith.addf %331, %334 : vector<16x32xf32>
    %336 = arith.addf %335, %224 : vector<16x32xf32>
    %c1_172 = arith.constant 1 : index
    %c0_173 = arith.constant 0 : index
    %c0_174 = arith.constant 0 : index
    %337 = vector.load %arg12[%c1_172, %c0_173, %c0_174] : memref<2x4x32xf32, #tpu.memory_space<vmem>>, vector<1x1x32xf32>
    %338 = vector.shape_cast %337 : vector<1x1x32xf32> to vector<1x32xf32>
    %c1_175 = arith.constant 1 : index
    %c1_176 = arith.constant 1 : index
    %c0_177 = arith.constant 0 : index
    %339 = vector.load %arg12[%c1_175, %c1_176, %c0_177] : memref<2x4x32xf32, #tpu.memory_space<vmem>>, vector<1x1x32xf32>
    %340 = vector.shape_cast %339 : vector<1x1x32xf32> to vector<1x32xf32>
    %cst_178 = arith.constant dense<0.000000e+00> : vector<16xf32>
    %341 = vector.multi_reduction <add>, %336, %cst_178 [1] : vector<16x32xf32> to vector<16xf32>
    %342 = vector.shape_cast %341 : vector<16xf32> to vector<16x1xf32>
    %cst_179 = arith.constant 3.200000e+01 : f32
    %343 = vector.broadcast %cst_179 : f32 to vector<16x1xf32>
    %344 = arith.divf %342, %343 : vector<16x1xf32>
    %345 = vector.broadcast %344 : vector<16x1xf32> to vector<16x32xf32>
    %346 = arith.subf %336, %345 : vector<16x32xf32>
    %347 = arith.mulf %346, %346 : vector<16x32xf32>
    %cst_180 = arith.constant dense<0.000000e+00> : vector<16xf32>
    %348 = vector.multi_reduction <add>, %347, %cst_180 [1] : vector<16x32xf32> to vector<16xf32>
    %349 = vector.shape_cast %348 : vector<16xf32> to vector<16x1xf32>
    %cst_181 = arith.constant 3.200000e+01 : f32
    %350 = vector.broadcast %cst_181 : f32 to vector<16x1xf32>
    %351 = arith.divf %349, %350 : vector<16x1xf32>
    %352 = vector.broadcast %344 : vector<16x1xf32> to vector<16x32xf32>
    %353 = arith.subf %336, %352 : vector<16x32xf32>
    %cst_182 = arith.constant 9.99999996E-13 : f32
    %354 = vector.broadcast %cst_182 : f32 to vector<16x1xf32>
    %355 = arith.addf %351, %354 : vector<16x1xf32>
    %356 = math.rsqrt %355 : vector<16x1xf32>
    %357 = vector.broadcast %356 : vector<16x1xf32> to vector<16x32xf32>
    %358 = arith.mulf %353, %357 : vector<16x32xf32>
    %359 = vector.broadcast %338 : vector<1x32xf32> to vector<16x32xf32>
    %360 = arith.mulf %358, %359 : vector<16x32xf32>
    %361 = vector.broadcast %340 : vector<1x32xf32> to vector<16x32xf32>
    %362 = arith.addf %360, %361 : vector<16x32xf32>
    %363 = arith.truncf %362 : vector<16x32xf32> to vector<16x32xbf16>
    %c1_183 = arith.constant 1 : index
    %c0_184 = arith.constant 0 : index
    %c0_185 = arith.constant 0 : index
    %364 = vector.load %arg8[%c1_183, %c0_184, %c0_185] : memref<2x32x64xbf16, #tpu.memory_space<vmem>>, vector<1x32x64xbf16>
    %365 = vector.shape_cast %364 : vector<1x32x64xbf16> to vector<32x64xbf16>
    %cst_186 = arith.constant dense<0.000000e+00> : vector<16x64xf32>
    %366 = tpu.matmul %363, %365, %cst_186 {dimension_numbers = #tpu.dot_dimension_numbers<[1], [0], [0], [1], [0, 0, 1, 1], [], []>} : vector<16x32xbf16>, vector<32x64xbf16>, vector<16x64xf32> -> vector<16x64xf32>
    %c1_187 = arith.constant 1 : index
    %c0_188 = arith.constant 0 : index
    %c0_189 = arith.constant 0 : index
    %367 = vector.load %arg9[%c1_187, %c0_188, %c0_189] : memref<2x1x64xf32, #tpu.memory_space<vmem>>, vector<1x1x64xf32>
    %368 = vector.shape_cast %367 : vector<1x1x64xf32> to vector<1x64xf32>
    %369 = vector.broadcast %368 : vector<1x64xf32> to vector<16x64xf32>
    %370 = arith.addf %366, %369 : vector<16x64xf32>
    %371 = arith.mulf %370, %370 : vector<16x64xf32>
    %372 = arith.mulf %370, %371 : vector<16x64xf32>
    %cst_190 = arith.constant 4.471500e-02 : f32
    %373 = vector.broadcast %cst_190 : f32 to vector<16x64xf32>
    %374 = arith.mulf %373, %372 : vector<16x64xf32>
    %375 = arith.addf %370, %374 : vector<16x64xf32>
    %cst_191 = arith.constant 0.797884583 : f32
    %376 = vector.broadcast %cst_191 : f32 to vector<16x64xf32>
    %377 = arith.mulf %376, %375 : vector<16x64xf32>
    %378 = math.tanh %377 : vector<16x64xf32>
    %cst_192 = arith.constant 1.000000e+00 : f32
    %379 = vector.broadcast %cst_192 : f32 to vector<16x64xf32>
    %380 = arith.addf %379, %378 : vector<16x64xf32>
    %cst_193 = arith.constant 5.000000e-01 : f32
    %381 = vector.broadcast %cst_193 : f32 to vector<16x64xf32>
    %382 = arith.mulf %381, %380 : vector<16x64xf32>
    %383 = arith.mulf %370, %382 : vector<16x64xf32>
    %384 = arith.truncf %383 : vector<16x64xf32> to vector<16x64xbf16>
    %c1_194 = arith.constant 1 : index
    %c0_195 = arith.constant 0 : index
    %c0_196 = arith.constant 0 : index
    %385 = vector.load %arg10[%c1_194, %c0_195, %c0_196] : memref<2x64x32xbf16, #tpu.memory_space<vmem>>, vector<1x64x32xbf16>
    %386 = vector.shape_cast %385 : vector<1x64x32xbf16> to vector<64x32xbf16>
    %cst_197 = arith.constant dense<0.000000e+00> : vector<16x32xf32>
    %387 = tpu.matmul %384, %386, %cst_197 {dimension_numbers = #tpu.dot_dimension_numbers<[1], [0], [0], [1], [0, 0, 1, 1], [], []>} : vector<16x64xbf16>, vector<64x32xbf16>, vector<16x32xf32> -> vector<16x32xf32>
    %c1_198 = arith.constant 1 : index
    %c0_199 = arith.constant 0 : index
    %c0_200 = arith.constant 0 : index
    %388 = vector.load %arg11[%c1_198, %c0_199, %c0_200] : memref<2x1x32xf32, #tpu.memory_space<vmem>>, vector<1x1x32xf32>
    %389 = vector.shape_cast %388 : vector<1x1x32xf32> to vector<1x32xf32>
    %390 = vector.broadcast %389 : vector<1x32xf32> to vector<16x32xf32>
    %391 = arith.addf %387, %390 : vector<16x32xf32>
    %392 = arith.addf %391, %362 : vector<16x32xf32>
    %c1_201 = arith.constant 1 : index
    %c2_202 = arith.constant 2 : index
    %c0_203 = arith.constant 0 : index
    %393 = vector.load %arg12[%c1_201, %c2_202, %c0_203] : memref<2x4x32xf32, #tpu.memory_space<vmem>>, vector<1x1x32xf32>
    %394 = vector.shape_cast %393 : vector<1x1x32xf32> to vector<1x32xf32>
    %c1_204 = arith.constant 1 : index
    %c3_205 = arith.constant 3 : index
    %c0_206 = arith.constant 0 : index
    %395 = vector.load %arg12[%c1_204, %c3_205, %c0_206] : memref<2x4x32xf32, #tpu.memory_space<vmem>>, vector<1x1x32xf32>
    %396 = vector.shape_cast %395 : vector<1x1x32xf32> to vector<1x32xf32>
    %cst_207 = arith.constant dense<0.000000e+00> : vector<16xf32>
    %397 = vector.multi_reduction <add>, %392, %cst_207 [1] : vector<16x32xf32> to vector<16xf32>
    %398 = vector.shape_cast %397 : vector<16xf32> to vector<16x1xf32>
    %cst_208 = arith.constant 3.200000e+01 : f32
    %399 = vector.broadcast %cst_208 : f32 to vector<16x1xf32>
    %400 = arith.divf %398, %399 : vector<16x1xf32>
    %401 = vector.broadcast %400 : vector<16x1xf32> to vector<16x32xf32>
    %402 = arith.subf %392, %401 : vector<16x32xf32>
    %403 = arith.mulf %402, %402 : vector<16x32xf32>
    %cst_209 = arith.constant dense<0.000000e+00> : vector<16xf32>
    %404 = vector.multi_reduction <add>, %403, %cst_209 [1] : vector<16x32xf32> to vector<16xf32>
    %405 = vector.shape_cast %404 : vector<16xf32> to vector<16x1xf32>
    %cst_210 = arith.constant 3.200000e+01 : f32
    %406 = vector.broadcast %cst_210 : f32 to vector<16x1xf32>
    %407 = arith.divf %405, %406 : vector<16x1xf32>
    %408 = vector.broadcast %400 : vector<16x1xf32> to vector<16x32xf32>
    %409 = arith.subf %392, %408 : vector<16x32xf32>
    %cst_211 = arith.constant 9.99999996E-13 : f32
    %410 = vector.broadcast %cst_211 : f32 to vector<16x1xf32>
    %411 = arith.addf %407, %410 : vector<16x1xf32>
    %412 = math.rsqrt %411 : vector<16x1xf32>
    %413 = vector.broadcast %412 : vector<16x1xf32> to vector<16x32xf32>
    %414 = arith.mulf %409, %413 : vector<16x32xf32>
    %415 = vector.broadcast %394 : vector<1x32xf32> to vector<16x32xf32>
    %416 = arith.mulf %414, %415 : vector<16x32xf32>
    %417 = vector.broadcast %396 : vector<1x32xf32> to vector<16x32xf32>
    %418 = arith.addf %416, %417 : vector<16x32xf32>
    %419 = arith.truncf %418 : vector<16x32xf32> to vector<16x32xbf16>
    %c0_212 = arith.constant 0 : index
    %c0_213 = arith.constant 0 : index
    %420 = vector.load %arg13[%c0_212, %c0_213] : memref<32x128xbf16, #tpu.memory_space<vmem>>, vector<32x128xbf16>
    %cst_214 = arith.constant dense<0.000000e+00> : vector<16x128xf32>
    %421 = tpu.matmul %419, %420, %cst_214 {dimension_numbers = #tpu.dot_dimension_numbers<[1], [0], [0], [1], [0, 0, 1, 1], [], []>} : vector<16x32xbf16>, vector<32x128xbf16>, vector<16x128xf32> -> vector<16x128xf32>
    %c0_215 = arith.constant 0 : index
    %c0_216 = arith.constant 0 : index
    %422 = vector.load %arg14[%c0_215, %c0_216] : memref<1x128xf32, #tpu.memory_space<vmem>>, vector<1x128xf32>
    %423 = vector.broadcast %422 : vector<1x128xf32> to vector<16x128xf32>
    %424 = arith.addf %421, %423 : vector<16x128xf32>
    %425 = vector.shape_cast %424 : vector<16x128xf32> to vector<2x8x128xf32>
    %c0_217 = arith.constant 0 : index
    %c0_218 = arith.constant 0 : index
    %c0_219 = arith.constant 0 : index
    %426 = vector.load %arg15[%c0_217, %c0_218, %c0_219] : memref<2x16x64xbf16, #tpu.memory_space<vmem>>, vector<1x16x64xbf16>
    %427 = vector.shape_cast %426 : vector<1x16x64xbf16> to vector<16x64xbf16>
    %c1_220 = arith.constant 1 : index
    %c0_221 = arith.constant 0 : index
    %c0_222 = arith.constant 0 : index
    %428 = vector.load %arg15[%c1_220, %c0_221, %c0_222] : memref<2x16x64xbf16, #tpu.memory_space<vmem>>, vector<1x16x64xbf16>
    %429 = vector.shape_cast %428 : vector<1x16x64xbf16> to vector<16x64xbf16>
    %cst_223 = arith.constant 0.000000e+00 : f32
    %430 = vector.broadcast %cst_223 : f32 to vector<2x16xf32>
    %cst_224 = arith.constant 0.000000e+00 : f32
    %431 = vector.broadcast %cst_224 : f32 to vector<2x16xf32>
    %cst_225 = arith.constant 0.000000e+00 : f32
    %432 = vector.broadcast %cst_225 : f32 to vector<2x16xf32>
    %cst_226 = arith.constant 0.000000e+00 : f32
    %433 = vector.broadcast %cst_226 : f32 to vector<2x16xf32>
    %434 = vector.extract_strided_slice %425 {offsets = [0, 0, 0], sizes = [2, 1, 64], strides = [1, 1, 1]} : vector<2x8x128xf32> to vector<2x1x64xf32>
    %435 = vector.shape_cast %434 : vector<2x1x64xf32> to vector<2x64xf32>
    %436 = arith.truncf %430 : vector<2x16xf32> to vector<2x16xbf16>
    %cst_227 = arith.constant dense<0.000000e+00> : vector<2x64xf32>
    %437 = tpu.matmul %436, %427, %cst_227 {dimension_numbers = #tpu.dot_dimension_numbers<[1], [0], [0], [1], [0, 0, 1, 1], [], []>} : vector<2x16xbf16>, vector<16x64xbf16>, vector<2x64xf32> -> vector<2x64xf32>
    %438 = arith.addf %435, %437 : vector<2x64xf32>
    %439 = vector.extract_strided_slice %425 {offsets = [0, 7, 64], sizes = [2, 1, 64], strides = [1, 1, 1]} : vector<2x8x128xf32> to vector<2x1x64xf32>
    %440 = vector.shape_cast %439 : vector<2x1x64xf32> to vector<2x64xf32>
    %441 = arith.truncf %432 : vector<2x16xf32> to vector<2x16xbf16>
    %cst_228 = arith.constant dense<0.000000e+00> : vector<2x64xf32>
    %442 = tpu.matmul %441, %429, %cst_228 {dimension_numbers = #tpu.dot_dimension_numbers<[1], [0], [0], [1], [0, 0, 1, 1], [], []>} : vector<2x16xbf16>, vector<16x64xbf16>, vector<2x64xf32> -> vector<2x64xf32>
    %443 = arith.addf %440, %442 : vector<2x64xf32>
    %444 = vector.extract_strided_slice %438 {offsets = [0, 0], sizes = [2, 48], strides = [1, 1]} : vector<2x64xf32> to vector<2x48xf32>
    %445 = arith.negf %444 : vector<2x48xf32>
    %446 = math.exp %445 : vector<2x48xf32>
    %cst_229 = arith.constant 1.000000e+00 : f32
    %447 = vector.broadcast %cst_229 : f32 to vector<2x48xf32>
    %448 = arith.addf %447, %446 : vector<2x48xf32>
    %449 = arith.divf %447, %448 : vector<2x48xf32>
    %450 = vector.extract_strided_slice %438 {offsets = [0, 48], sizes = [2, 16], strides = [1, 1]} : vector<2x64xf32> to vector<2x16xf32>
    %451 = math.tanh %450 : vector<2x16xf32>
    %452 = vector.extract_strided_slice %449 {offsets = [0, 16], sizes = [2, 16], strides = [1, 1]} : vector<2x48xf32> to vector<2x16xf32>
    %453 = arith.mulf %452, %431 : vector<2x16xf32>
    %454 = vector.extract_strided_slice %449 {offsets = [0, 0], sizes = [2, 16], strides = [1, 1]} : vector<2x48xf32> to vector<2x16xf32>
    %455 = arith.mulf %454, %451 : vector<2x16xf32>
    %456 = arith.addf %453, %455 : vector<2x16xf32>
    %457 = vector.extract_strided_slice %449 {offsets = [0, 32], sizes = [2, 16], strides = [1, 1]} : vector<2x48xf32> to vector<2x16xf32>
    %458 = math.tanh %456 : vector<2x16xf32>
    %459 = arith.mulf %457, %458 : vector<2x16xf32>
    %460 = vector.extract_strided_slice %443 {offsets = [0, 0], sizes = [2, 48], strides = [1, 1]} : vector<2x64xf32> to vector<2x48xf32>
    %461 = arith.negf %460 : vector<2x48xf32>
    %462 = math.exp %461 : vector<2x48xf32>
    %cst_230 = arith.constant 1.000000e+00 : f32
    %463 = vector.broadcast %cst_230 : f32 to vector<2x48xf32>
    %464 = arith.addf %463, %462 : vector<2x48xf32>
    %465 = arith.divf %463, %464 : vector<2x48xf32>
    %466 = vector.extract_strided_slice %443 {offsets = [0, 48], sizes = [2, 16], strides = [1, 1]} : vector<2x64xf32> to vector<2x16xf32>
    %467 = math.tanh %466 : vector<2x16xf32>
    %468 = vector.extract_strided_slice %465 {offsets = [0, 16], sizes = [2, 16], strides = [1, 1]} : vector<2x48xf32> to vector<2x16xf32>
    %469 = arith.mulf %468, %433 : vector<2x16xf32>
    %470 = vector.extract_strided_slice %465 {offsets = [0, 0], sizes = [2, 16], strides = [1, 1]} : vector<2x48xf32> to vector<2x16xf32>
    %471 = arith.mulf %470, %467 : vector<2x16xf32>
    %472 = arith.addf %469, %471 : vector<2x16xf32>
    %473 = vector.extract_strided_slice %465 {offsets = [0, 32], sizes = [2, 16], strides = [1, 1]} : vector<2x48xf32> to vector<2x16xf32>
    %474 = math.tanh %472 : vector<2x16xf32>
    %475 = arith.mulf %473, %474 : vector<2x16xf32>
    %476 = vector.extract_strided_slice %425 {offsets = [0, 1, 0], sizes = [2, 1, 64], strides = [1, 1, 1]} : vector<2x8x128xf32> to vector<2x1x64xf32>
    %477 = vector.shape_cast %476 : vector<2x1x64xf32> to vector<2x64xf32>
    %478 = arith.truncf %459 : vector<2x16xf32> to vector<2x16xbf16>
    %cst_231 = arith.constant dense<0.000000e+00> : vector<2x64xf32>
    %479 = tpu.matmul %478, %427, %cst_231 {dimension_numbers = #tpu.dot_dimension_numbers<[1], [0], [0], [1], [0, 0, 1, 1], [], []>} : vector<2x16xbf16>, vector<16x64xbf16>, vector<2x64xf32> -> vector<2x64xf32>
    %480 = arith.addf %477, %479 : vector<2x64xf32>
    %481 = vector.extract_strided_slice %425 {offsets = [0, 6, 64], sizes = [2, 1, 64], strides = [1, 1, 1]} : vector<2x8x128xf32> to vector<2x1x64xf32>
    %482 = vector.shape_cast %481 : vector<2x1x64xf32> to vector<2x64xf32>
    %483 = arith.truncf %475 : vector<2x16xf32> to vector<2x16xbf16>
    %cst_232 = arith.constant dense<0.000000e+00> : vector<2x64xf32>
    %484 = tpu.matmul %483, %429, %cst_232 {dimension_numbers = #tpu.dot_dimension_numbers<[1], [0], [0], [1], [0, 0, 1, 1], [], []>} : vector<2x16xbf16>, vector<16x64xbf16>, vector<2x64xf32> -> vector<2x64xf32>
    %485 = arith.addf %482, %484 : vector<2x64xf32>
    %486 = vector.extract_strided_slice %480 {offsets = [0, 0], sizes = [2, 48], strides = [1, 1]} : vector<2x64xf32> to vector<2x48xf32>
    %487 = arith.negf %486 : vector<2x48xf32>
    %488 = math.exp %487 : vector<2x48xf32>
    %cst_233 = arith.constant 1.000000e+00 : f32
    %489 = vector.broadcast %cst_233 : f32 to vector<2x48xf32>
    %490 = arith.addf %489, %488 : vector<2x48xf32>
    %491 = arith.divf %489, %490 : vector<2x48xf32>
    %492 = vector.extract_strided_slice %480 {offsets = [0, 48], sizes = [2, 16], strides = [1, 1]} : vector<2x64xf32> to vector<2x16xf32>
    %493 = math.tanh %492 : vector<2x16xf32>
    %494 = vector.extract_strided_slice %491 {offsets = [0, 16], sizes = [2, 16], strides = [1, 1]} : vector<2x48xf32> to vector<2x16xf32>
    %495 = arith.mulf %494, %456 : vector<2x16xf32>
    %496 = vector.extract_strided_slice %491 {offsets = [0, 0], sizes = [2, 16], strides = [1, 1]} : vector<2x48xf32> to vector<2x16xf32>
    %497 = arith.mulf %496, %493 : vector<2x16xf32>
    %498 = arith.addf %495, %497 : vector<2x16xf32>
    %499 = vector.extract_strided_slice %491 {offsets = [0, 32], sizes = [2, 16], strides = [1, 1]} : vector<2x48xf32> to vector<2x16xf32>
    %500 = math.tanh %498 : vector<2x16xf32>
    %501 = arith.mulf %499, %500 : vector<2x16xf32>
    %502 = vector.extract_strided_slice %485 {offsets = [0, 0], sizes = [2, 48], strides = [1, 1]} : vector<2x64xf32> to vector<2x48xf32>
    %503 = arith.negf %502 : vector<2x48xf32>
    %504 = math.exp %503 : vector<2x48xf32>
    %cst_234 = arith.constant 1.000000e+00 : f32
    %505 = vector.broadcast %cst_234 : f32 to vector<2x48xf32>
    %506 = arith.addf %505, %504 : vector<2x48xf32>
    %507 = arith.divf %505, %506 : vector<2x48xf32>
    %508 = vector.extract_strided_slice %485 {offsets = [0, 48], sizes = [2, 16], strides = [1, 1]} : vector<2x64xf32> to vector<2x16xf32>
    %509 = math.tanh %508 : vector<2x16xf32>
    %510 = vector.extract_strided_slice %507 {offsets = [0, 16], sizes = [2, 16], strides = [1, 1]} : vector<2x48xf32> to vector<2x16xf32>
    %511 = arith.mulf %510, %472 : vector<2x16xf32>
    %512 = vector.extract_strided_slice %507 {offsets = [0, 0], sizes = [2, 16], strides = [1, 1]} : vector<2x48xf32> to vector<2x16xf32>
    %513 = arith.mulf %512, %509 : vector<2x16xf32>
    %514 = arith.addf %511, %513 : vector<2x16xf32>
    %515 = vector.extract_strided_slice %507 {offsets = [0, 32], sizes = [2, 16], strides = [1, 1]} : vector<2x48xf32> to vector<2x16xf32>
    %516 = math.tanh %514 : vector<2x16xf32>
    %517 = arith.mulf %515, %516 : vector<2x16xf32>
    %518 = vector.extract_strided_slice %425 {offsets = [0, 2, 0], sizes = [2, 1, 64], strides = [1, 1, 1]} : vector<2x8x128xf32> to vector<2x1x64xf32>
    %519 = vector.shape_cast %518 : vector<2x1x64xf32> to vector<2x64xf32>
    %520 = arith.truncf %501 : vector<2x16xf32> to vector<2x16xbf16>
    %cst_235 = arith.constant dense<0.000000e+00> : vector<2x64xf32>
    %521 = tpu.matmul %520, %427, %cst_235 {dimension_numbers = #tpu.dot_dimension_numbers<[1], [0], [0], [1], [0, 0, 1, 1], [], []>} : vector<2x16xbf16>, vector<16x64xbf16>, vector<2x64xf32> -> vector<2x64xf32>
    %522 = arith.addf %519, %521 : vector<2x64xf32>
    %523 = vector.extract_strided_slice %425 {offsets = [0, 5, 64], sizes = [2, 1, 64], strides = [1, 1, 1]} : vector<2x8x128xf32> to vector<2x1x64xf32>
    %524 = vector.shape_cast %523 : vector<2x1x64xf32> to vector<2x64xf32>
    %525 = arith.truncf %517 : vector<2x16xf32> to vector<2x16xbf16>
    %cst_236 = arith.constant dense<0.000000e+00> : vector<2x64xf32>
    %526 = tpu.matmul %525, %429, %cst_236 {dimension_numbers = #tpu.dot_dimension_numbers<[1], [0], [0], [1], [0, 0, 1, 1], [], []>} : vector<2x16xbf16>, vector<16x64xbf16>, vector<2x64xf32> -> vector<2x64xf32>
    %527 = arith.addf %524, %526 : vector<2x64xf32>
    %528 = vector.extract_strided_slice %522 {offsets = [0, 0], sizes = [2, 48], strides = [1, 1]} : vector<2x64xf32> to vector<2x48xf32>
    %529 = arith.negf %528 : vector<2x48xf32>
    %530 = math.exp %529 : vector<2x48xf32>
    %cst_237 = arith.constant 1.000000e+00 : f32
    %531 = vector.broadcast %cst_237 : f32 to vector<2x48xf32>
    %532 = arith.addf %531, %530 : vector<2x48xf32>
    %533 = arith.divf %531, %532 : vector<2x48xf32>
    %534 = vector.extract_strided_slice %522 {offsets = [0, 48], sizes = [2, 16], strides = [1, 1]} : vector<2x64xf32> to vector<2x16xf32>
    %535 = math.tanh %534 : vector<2x16xf32>
    %536 = vector.extract_strided_slice %533 {offsets = [0, 16], sizes = [2, 16], strides = [1, 1]} : vector<2x48xf32> to vector<2x16xf32>
    %537 = arith.mulf %536, %498 : vector<2x16xf32>
    %538 = vector.extract_strided_slice %533 {offsets = [0, 0], sizes = [2, 16], strides = [1, 1]} : vector<2x48xf32> to vector<2x16xf32>
    %539 = arith.mulf %538, %535 : vector<2x16xf32>
    %540 = arith.addf %537, %539 : vector<2x16xf32>
    %541 = vector.extract_strided_slice %533 {offsets = [0, 32], sizes = [2, 16], strides = [1, 1]} : vector<2x48xf32> to vector<2x16xf32>
    %542 = math.tanh %540 : vector<2x16xf32>
    %543 = arith.mulf %541, %542 : vector<2x16xf32>
    %544 = vector.extract_strided_slice %527 {offsets = [0, 0], sizes = [2, 48], strides = [1, 1]} : vector<2x64xf32> to vector<2x48xf32>
    %545 = arith.negf %544 : vector<2x48xf32>
    %546 = math.exp %545 : vector<2x48xf32>
    %cst_238 = arith.constant 1.000000e+00 : f32
    %547 = vector.broadcast %cst_238 : f32 to vector<2x48xf32>
    %548 = arith.addf %547, %546 : vector<2x48xf32>
    %549 = arith.divf %547, %548 : vector<2x48xf32>
    %550 = vector.extract_strided_slice %527 {offsets = [0, 48], sizes = [2, 16], strides = [1, 1]} : vector<2x64xf32> to vector<2x16xf32>
    %551 = math.tanh %550 : vector<2x16xf32>
    %552 = vector.extract_strided_slice %549 {offsets = [0, 16], sizes = [2, 16], strides = [1, 1]} : vector<2x48xf32> to vector<2x16xf32>
    %553 = arith.mulf %552, %514 : vector<2x16xf32>
    %554 = vector.extract_strided_slice %549 {offsets = [0, 0], sizes = [2, 16], strides = [1, 1]} : vector<2x48xf32> to vector<2x16xf32>
    %555 = arith.mulf %554, %551 : vector<2x16xf32>
    %556 = arith.addf %553, %555 : vector<2x16xf32>
    %557 = vector.extract_strided_slice %549 {offsets = [0, 32], sizes = [2, 16], strides = [1, 1]} : vector<2x48xf32> to vector<2x16xf32>
    %558 = math.tanh %556 : vector<2x16xf32>
    %559 = arith.mulf %557, %558 : vector<2x16xf32>
    %560 = vector.extract_strided_slice %425 {offsets = [0, 3, 0], sizes = [2, 1, 64], strides = [1, 1, 1]} : vector<2x8x128xf32> to vector<2x1x64xf32>
    %561 = vector.shape_cast %560 : vector<2x1x64xf32> to vector<2x64xf32>
    %562 = arith.truncf %543 : vector<2x16xf32> to vector<2x16xbf16>
    %cst_239 = arith.constant dense<0.000000e+00> : vector<2x64xf32>
    %563 = tpu.matmul %562, %427, %cst_239 {dimension_numbers = #tpu.dot_dimension_numbers<[1], [0], [0], [1], [0, 0, 1, 1], [], []>} : vector<2x16xbf16>, vector<16x64xbf16>, vector<2x64xf32> -> vector<2x64xf32>
    %564 = arith.addf %561, %563 : vector<2x64xf32>
    %565 = vector.extract_strided_slice %425 {offsets = [0, 4, 64], sizes = [2, 1, 64], strides = [1, 1, 1]} : vector<2x8x128xf32> to vector<2x1x64xf32>
    %566 = vector.shape_cast %565 : vector<2x1x64xf32> to vector<2x64xf32>
    %567 = arith.truncf %559 : vector<2x16xf32> to vector<2x16xbf16>
    %cst_240 = arith.constant dense<0.000000e+00> : vector<2x64xf32>
    %568 = tpu.matmul %567, %429, %cst_240 {dimension_numbers = #tpu.dot_dimension_numbers<[1], [0], [0], [1], [0, 0, 1, 1], [], []>} : vector<2x16xbf16>, vector<16x64xbf16>, vector<2x64xf32> -> vector<2x64xf32>
    %569 = arith.addf %566, %568 : vector<2x64xf32>
    %570 = vector.extract_strided_slice %564 {offsets = [0, 0], sizes = [2, 48], strides = [1, 1]} : vector<2x64xf32> to vector<2x48xf32>
    %571 = arith.negf %570 : vector<2x48xf32>
    %572 = math.exp %571 : vector<2x48xf32>
    %cst_241 = arith.constant 1.000000e+00 : f32
    %573 = vector.broadcast %cst_241 : f32 to vector<2x48xf32>
    %574 = arith.addf %573, %572 : vector<2x48xf32>
    %575 = arith.divf %573, %574 : vector<2x48xf32>
    %576 = vector.extract_strided_slice %564 {offsets = [0, 48], sizes = [2, 16], strides = [1, 1]} : vector<2x64xf32> to vector<2x16xf32>
    %577 = math.tanh %576 : vector<2x16xf32>
    %578 = vector.extract_strided_slice %575 {offsets = [0, 16], sizes = [2, 16], strides = [1, 1]} : vector<2x48xf32> to vector<2x16xf32>
    %579 = arith.mulf %578, %540 : vector<2x16xf32>
    %580 = vector.extract_strided_slice %575 {offsets = [0, 0], sizes = [2, 16], strides = [1, 1]} : vector<2x48xf32> to vector<2x16xf32>
    %581 = arith.mulf %580, %577 : vector<2x16xf32>
    %582 = arith.addf %579, %581 : vector<2x16xf32>
    %583 = vector.extract_strided_slice %575 {offsets = [0, 32], sizes = [2, 16], strides = [1, 1]} : vector<2x48xf32> to vector<2x16xf32>
    %584 = math.tanh %582 : vector<2x16xf32>
    %585 = arith.mulf %583, %584 : vector<2x16xf32>
    %586 = vector.extract_strided_slice %569 {offsets = [0, 0], sizes = [2, 48], strides = [1, 1]} : vector<2x64xf32> to vector<2x48xf32>
    %587 = arith.negf %586 : vector<2x48xf32>
    %588 = math.exp %587 : vector<2x48xf32>
    %cst_242 = arith.constant 1.000000e+00 : f32
    %589 = vector.broadcast %cst_242 : f32 to vector<2x48xf32>
    %590 = arith.addf %589, %588 : vector<2x48xf32>
    %591 = arith.divf %589, %590 : vector<2x48xf32>
    %592 = vector.extract_strided_slice %569 {offsets = [0, 48], sizes = [2, 16], strides = [1, 1]} : vector<2x64xf32> to vector<2x16xf32>
    %593 = math.tanh %592 : vector<2x16xf32>
    %594 = vector.extract_strided_slice %591 {offsets = [0, 16], sizes = [2, 16], strides = [1, 1]} : vector<2x48xf32> to vector<2x16xf32>
    %595 = arith.mulf %594, %556 : vector<2x16xf32>
    %596 = vector.extract_strided_slice %591 {offsets = [0, 0], sizes = [2, 16], strides = [1, 1]} : vector<2x48xf32> to vector<2x16xf32>
    %597 = arith.mulf %596, %593 : vector<2x16xf32>
    %598 = arith.addf %595, %597 : vector<2x16xf32>
    %599 = vector.extract_strided_slice %591 {offsets = [0, 32], sizes = [2, 16], strides = [1, 1]} : vector<2x48xf32> to vector<2x16xf32>
    %600 = math.tanh %598 : vector<2x16xf32>
    %601 = arith.mulf %599, %600 : vector<2x16xf32>
    %602 = vector.extract_strided_slice %425 {offsets = [0, 4, 0], sizes = [2, 1, 64], strides = [1, 1, 1]} : vector<2x8x128xf32> to vector<2x1x64xf32>
    %603 = vector.shape_cast %602 : vector<2x1x64xf32> to vector<2x64xf32>
    %604 = arith.truncf %585 : vector<2x16xf32> to vector<2x16xbf16>
    %cst_243 = arith.constant dense<0.000000e+00> : vector<2x64xf32>
    %605 = tpu.matmul %604, %427, %cst_243 {dimension_numbers = #tpu.dot_dimension_numbers<[1], [0], [0], [1], [0, 0, 1, 1], [], []>} : vector<2x16xbf16>, vector<16x64xbf16>, vector<2x64xf32> -> vector<2x64xf32>
    %606 = arith.addf %603, %605 : vector<2x64xf32>
    %607 = vector.extract_strided_slice %425 {offsets = [0, 3, 64], sizes = [2, 1, 64], strides = [1, 1, 1]} : vector<2x8x128xf32> to vector<2x1x64xf32>
    %608 = vector.shape_cast %607 : vector<2x1x64xf32> to vector<2x64xf32>
    %609 = arith.truncf %601 : vector<2x16xf32> to vector<2x16xbf16>
    %cst_244 = arith.constant dense<0.000000e+00> : vector<2x64xf32>
    %610 = tpu.matmul %609, %429, %cst_244 {dimension_numbers = #tpu.dot_dimension_numbers<[1], [0], [0], [1], [0, 0, 1, 1], [], []>} : vector<2x16xbf16>, vector<16x64xbf16>, vector<2x64xf32> -> vector<2x64xf32>
    %611 = arith.addf %608, %610 : vector<2x64xf32>
    %612 = vector.extract_strided_slice %606 {offsets = [0, 0], sizes = [2, 48], strides = [1, 1]} : vector<2x64xf32> to vector<2x48xf32>
    %613 = arith.negf %612 : vector<2x48xf32>
    %614 = math.exp %613 : vector<2x48xf32>
    %cst_245 = arith.constant 1.000000e+00 : f32
    %615 = vector.broadcast %cst_245 : f32 to vector<2x48xf32>
    %616 = arith.addf %615, %614 : vector<2x48xf32>
    %617 = arith.divf %615, %616 : vector<2x48xf32>
    %618 = vector.extract_strided_slice %606 {offsets = [0, 48], sizes = [2, 16], strides = [1, 1]} : vector<2x64xf32> to vector<2x16xf32>
    %619 = math.tanh %618 : vector<2x16xf32>
    %620 = vector.extract_strided_slice %617 {offsets = [0, 16], sizes = [2, 16], strides = [1, 1]} : vector<2x48xf32> to vector<2x16xf32>
    %621 = arith.mulf %620, %582 : vector<2x16xf32>
    %622 = vector.extract_strided_slice %617 {offsets = [0, 0], sizes = [2, 16], strides = [1, 1]} : vector<2x48xf32> to vector<2x16xf32>
    %623 = arith.mulf %622, %619 : vector<2x16xf32>
    %624 = arith.addf %621, %623 : vector<2x16xf32>
    %625 = vector.extract_strided_slice %617 {offsets = [0, 32], sizes = [2, 16], strides = [1, 1]} : vector<2x48xf32> to vector<2x16xf32>
    %626 = math.tanh %624 : vector<2x16xf32>
    %627 = arith.mulf %625, %626 : vector<2x16xf32>
    %628 = vector.extract_strided_slice %611 {offsets = [0, 0], sizes = [2, 48], strides = [1, 1]} : vector<2x64xf32> to vector<2x48xf32>
    %629 = arith.negf %628 : vector<2x48xf32>
    %630 = math.exp %629 : vector<2x48xf32>
    %cst_246 = arith.constant 1.000000e+00 : f32
    %631 = vector.broadcast %cst_246 : f32 to vector<2x48xf32>
    %632 = arith.addf %631, %630 : vector<2x48xf32>
    %633 = arith.divf %631, %632 : vector<2x48xf32>
    %634 = vector.extract_strided_slice %611 {offsets = [0, 48], sizes = [2, 16], strides = [1, 1]} : vector<2x64xf32> to vector<2x16xf32>
    %635 = math.tanh %634 : vector<2x16xf32>
    %636 = vector.extract_strided_slice %633 {offsets = [0, 16], sizes = [2, 16], strides = [1, 1]} : vector<2x48xf32> to vector<2x16xf32>
    %637 = arith.mulf %636, %598 : vector<2x16xf32>
    %638 = vector.extract_strided_slice %633 {offsets = [0, 0], sizes = [2, 16], strides = [1, 1]} : vector<2x48xf32> to vector<2x16xf32>
    %639 = arith.mulf %638, %635 : vector<2x16xf32>
    %640 = arith.addf %637, %639 : vector<2x16xf32>
    %641 = vector.extract_strided_slice %633 {offsets = [0, 32], sizes = [2, 16], strides = [1, 1]} : vector<2x48xf32> to vector<2x16xf32>
    %642 = math.tanh %640 : vector<2x16xf32>
    %643 = arith.mulf %641, %642 : vector<2x16xf32>
    %644 = vector.extract_strided_slice %425 {offsets = [0, 5, 0], sizes = [2, 1, 64], strides = [1, 1, 1]} : vector<2x8x128xf32> to vector<2x1x64xf32>
    %645 = vector.shape_cast %644 : vector<2x1x64xf32> to vector<2x64xf32>
    %646 = arith.truncf %627 : vector<2x16xf32> to vector<2x16xbf16>
    %cst_247 = arith.constant dense<0.000000e+00> : vector<2x64xf32>
    %647 = tpu.matmul %646, %427, %cst_247 {dimension_numbers = #tpu.dot_dimension_numbers<[1], [0], [0], [1], [0, 0, 1, 1], [], []>} : vector<2x16xbf16>, vector<16x64xbf16>, vector<2x64xf32> -> vector<2x64xf32>
    %648 = arith.addf %645, %647 : vector<2x64xf32>
    %649 = vector.extract_strided_slice %425 {offsets = [0, 2, 64], sizes = [2, 1, 64], strides = [1, 1, 1]} : vector<2x8x128xf32> to vector<2x1x64xf32>
    %650 = vector.shape_cast %649 : vector<2x1x64xf32> to vector<2x64xf32>
    %651 = arith.truncf %643 : vector<2x16xf32> to vector<2x16xbf16>
    %cst_248 = arith.constant dense<0.000000e+00> : vector<2x64xf32>
    %652 = tpu.matmul %651, %429, %cst_248 {dimension_numbers = #tpu.dot_dimension_numbers<[1], [0], [0], [1], [0, 0, 1, 1], [], []>} : vector<2x16xbf16>, vector<16x64xbf16>, vector<2x64xf32> -> vector<2x64xf32>
    %653 = arith.addf %650, %652 : vector<2x64xf32>
    %654 = vector.extract_strided_slice %648 {offsets = [0, 0], sizes = [2, 48], strides = [1, 1]} : vector<2x64xf32> to vector<2x48xf32>
    %655 = arith.negf %654 : vector<2x48xf32>
    %656 = math.exp %655 : vector<2x48xf32>
    %cst_249 = arith.constant 1.000000e+00 : f32
    %657 = vector.broadcast %cst_249 : f32 to vector<2x48xf32>
    %658 = arith.addf %657, %656 : vector<2x48xf32>
    %659 = arith.divf %657, %658 : vector<2x48xf32>
    %660 = vector.extract_strided_slice %648 {offsets = [0, 48], sizes = [2, 16], strides = [1, 1]} : vector<2x64xf32> to vector<2x16xf32>
    %661 = math.tanh %660 : vector<2x16xf32>
    %662 = vector.extract_strided_slice %659 {offsets = [0, 16], sizes = [2, 16], strides = [1, 1]} : vector<2x48xf32> to vector<2x16xf32>
    %663 = arith.mulf %662, %624 : vector<2x16xf32>
    %664 = vector.extract_strided_slice %659 {offsets = [0, 0], sizes = [2, 16], strides = [1, 1]} : vector<2x48xf32> to vector<2x16xf32>
    %665 = arith.mulf %664, %661 : vector<2x16xf32>
    %666 = arith.addf %663, %665 : vector<2x16xf32>
    %667 = vector.extract_strided_slice %659 {offsets = [0, 32], sizes = [2, 16], strides = [1, 1]} : vector<2x48xf32> to vector<2x16xf32>
    %668 = math.tanh %666 : vector<2x16xf32>
    %669 = arith.mulf %667, %668 : vector<2x16xf32>
    %670 = vector.extract_strided_slice %653 {offsets = [0, 0], sizes = [2, 48], strides = [1, 1]} : vector<2x64xf32> to vector<2x48xf32>
    %671 = arith.negf %670 : vector<2x48xf32>
    %672 = math.exp %671 : vector<2x48xf32>
    %cst_250 = arith.constant 1.000000e+00 : f32
    %673 = vector.broadcast %cst_250 : f32 to vector<2x48xf32>
    %674 = arith.addf %673, %672 : vector<2x48xf32>
    %675 = arith.divf %673, %674 : vector<2x48xf32>
    %676 = vector.extract_strided_slice %653 {offsets = [0, 48], sizes = [2, 16], strides = [1, 1]} : vector<2x64xf32> to vector<2x16xf32>
    %677 = math.tanh %676 : vector<2x16xf32>
    %678 = vector.extract_strided_slice %675 {offsets = [0, 16], sizes = [2, 16], strides = [1, 1]} : vector<2x48xf32> to vector<2x16xf32>
    %679 = arith.mulf %678, %640 : vector<2x16xf32>
    %680 = vector.extract_strided_slice %675 {offsets = [0, 0], sizes = [2, 16], strides = [1, 1]} : vector<2x48xf32> to vector<2x16xf32>
    %681 = arith.mulf %680, %677 : vector<2x16xf32>
    %682 = arith.addf %679, %681 : vector<2x16xf32>
    %683 = vector.extract_strided_slice %675 {offsets = [0, 32], sizes = [2, 16], strides = [1, 1]} : vector<2x48xf32> to vector<2x16xf32>
    %684 = math.tanh %682 : vector<2x16xf32>
    %685 = arith.mulf %683, %684 : vector<2x16xf32>
    %686 = vector.extract_strided_slice %425 {offsets = [0, 6, 0], sizes = [2, 1, 64], strides = [1, 1, 1]} : vector<2x8x128xf32> to vector<2x1x64xf32>
    %687 = vector.shape_cast %686 : vector<2x1x64xf32> to vector<2x64xf32>
    %688 = arith.truncf %669 : vector<2x16xf32> to vector<2x16xbf16>
    %cst_251 = arith.constant dense<0.000000e+00> : vector<2x64xf32>
    %689 = tpu.matmul %688, %427, %cst_251 {dimension_numbers = #tpu.dot_dimension_numbers<[1], [0], [0], [1], [0, 0, 1, 1], [], []>} : vector<2x16xbf16>, vector<16x64xbf16>, vector<2x64xf32> -> vector<2x64xf32>
    %690 = arith.addf %687, %689 : vector<2x64xf32>
    %691 = vector.extract_strided_slice %425 {offsets = [0, 1, 64], sizes = [2, 1, 64], strides = [1, 1, 1]} : vector<2x8x128xf32> to vector<2x1x64xf32>
    %692 = vector.shape_cast %691 : vector<2x1x64xf32> to vector<2x64xf32>
    %693 = arith.truncf %685 : vector<2x16xf32> to vector<2x16xbf16>
    %cst_252 = arith.constant dense<0.000000e+00> : vector<2x64xf32>
    %694 = tpu.matmul %693, %429, %cst_252 {dimension_numbers = #tpu.dot_dimension_numbers<[1], [0], [0], [1], [0, 0, 1, 1], [], []>} : vector<2x16xbf16>, vector<16x64xbf16>, vector<2x64xf32> -> vector<2x64xf32>
    %695 = arith.addf %692, %694 : vector<2x64xf32>
    %696 = vector.extract_strided_slice %690 {offsets = [0, 0], sizes = [2, 48], strides = [1, 1]} : vector<2x64xf32> to vector<2x48xf32>
    %697 = arith.negf %696 : vector<2x48xf32>
    %698 = math.exp %697 : vector<2x48xf32>
    %cst_253 = arith.constant 1.000000e+00 : f32
    %699 = vector.broadcast %cst_253 : f32 to vector<2x48xf32>
    %700 = arith.addf %699, %698 : vector<2x48xf32>
    %701 = arith.divf %699, %700 : vector<2x48xf32>
    %702 = vector.extract_strided_slice %690 {offsets = [0, 48], sizes = [2, 16], strides = [1, 1]} : vector<2x64xf32> to vector<2x16xf32>
    %703 = math.tanh %702 : vector<2x16xf32>
    %704 = vector.extract_strided_slice %701 {offsets = [0, 16], sizes = [2, 16], strides = [1, 1]} : vector<2x48xf32> to vector<2x16xf32>
    %705 = arith.mulf %704, %666 : vector<2x16xf32>
    %706 = vector.extract_strided_slice %701 {offsets = [0, 0], sizes = [2, 16], strides = [1, 1]} : vector<2x48xf32> to vector<2x16xf32>
    %707 = arith.mulf %706, %703 : vector<2x16xf32>
    %708 = arith.addf %705, %707 : vector<2x16xf32>
    %709 = vector.extract_strided_slice %701 {offsets = [0, 32], sizes = [2, 16], strides = [1, 1]} : vector<2x48xf32> to vector<2x16xf32>
    %710 = math.tanh %708 : vector<2x16xf32>
    %711 = arith.mulf %709, %710 : vector<2x16xf32>
    %712 = vector.extract_strided_slice %695 {offsets = [0, 0], sizes = [2, 48], strides = [1, 1]} : vector<2x64xf32> to vector<2x48xf32>
    %713 = arith.negf %712 : vector<2x48xf32>
    %714 = math.exp %713 : vector<2x48xf32>
    %cst_254 = arith.constant 1.000000e+00 : f32
    %715 = vector.broadcast %cst_254 : f32 to vector<2x48xf32>
    %716 = arith.addf %715, %714 : vector<2x48xf32>
    %717 = arith.divf %715, %716 : vector<2x48xf32>
    %718 = vector.extract_strided_slice %695 {offsets = [0, 48], sizes = [2, 16], strides = [1, 1]} : vector<2x64xf32> to vector<2x16xf32>
    %719 = math.tanh %718 : vector<2x16xf32>
    %720 = vector.extract_strided_slice %717 {offsets = [0, 16], sizes = [2, 16], strides = [1, 1]} : vector<2x48xf32> to vector<2x16xf32>
    %721 = arith.mulf %720, %682 : vector<2x16xf32>
    %722 = vector.extract_strided_slice %717 {offsets = [0, 0], sizes = [2, 16], strides = [1, 1]} : vector<2x48xf32> to vector<2x16xf32>
    %723 = arith.mulf %722, %719 : vector<2x16xf32>
    %724 = arith.addf %721, %723 : vector<2x16xf32>
    %725 = vector.extract_strided_slice %717 {offsets = [0, 32], sizes = [2, 16], strides = [1, 1]} : vector<2x48xf32> to vector<2x16xf32>
    %726 = math.tanh %724 : vector<2x16xf32>
    %727 = arith.mulf %725, %726 : vector<2x16xf32>
    %728 = vector.extract_strided_slice %425 {offsets = [0, 7, 0], sizes = [2, 1, 64], strides = [1, 1, 1]} : vector<2x8x128xf32> to vector<2x1x64xf32>
    %729 = vector.shape_cast %728 : vector<2x1x64xf32> to vector<2x64xf32>
    %730 = arith.truncf %711 : vector<2x16xf32> to vector<2x16xbf16>
    %cst_255 = arith.constant dense<0.000000e+00> : vector<2x64xf32>
    %731 = tpu.matmul %730, %427, %cst_255 {dimension_numbers = #tpu.dot_dimension_numbers<[1], [0], [0], [1], [0, 0, 1, 1], [], []>} : vector<2x16xbf16>, vector<16x64xbf16>, vector<2x64xf32> -> vector<2x64xf32>
    %732 = arith.addf %729, %731 : vector<2x64xf32>
    %733 = vector.extract_strided_slice %425 {offsets = [0, 0, 64], sizes = [2, 1, 64], strides = [1, 1, 1]} : vector<2x8x128xf32> to vector<2x1x64xf32>
    %734 = vector.shape_cast %733 : vector<2x1x64xf32> to vector<2x64xf32>
    %735 = arith.truncf %727 : vector<2x16xf32> to vector<2x16xbf16>
    %cst_256 = arith.constant dense<0.000000e+00> : vector<2x64xf32>
    %736 = tpu.matmul %735, %429, %cst_256 {dimension_numbers = #tpu.dot_dimension_numbers<[1], [0], [0], [1], [0, 0, 1, 1], [], []>} : vector<2x16xbf16>, vector<16x64xbf16>, vector<2x64xf32> -> vector<2x64xf32>
    %737 = arith.addf %734, %736 : vector<2x64xf32>
    %738 = vector.extract_strided_slice %732 {offsets = [0, 0], sizes = [2, 48], strides = [1, 1]} : vector<2x64xf32> to vector<2x48xf32>
    %739 = arith.negf %738 : vector<2x48xf32>
    %740 = math.exp %739 : vector<2x48xf32>
    %cst_257 = arith.constant 1.000000e+00 : f32
    %741 = vector.broadcast %cst_257 : f32 to vector<2x48xf32>
    %742 = arith.addf %741, %740 : vector<2x48xf32>
    %743 = arith.divf %741, %742 : vector<2x48xf32>
    %744 = vector.extract_strided_slice %732 {offsets = [0, 48], sizes = [2, 16], strides = [1, 1]} : vector<2x64xf32> to vector<2x16xf32>
    %745 = math.tanh %744 : vector<2x16xf32>
    %746 = vector.extract_strided_slice %743 {offsets = [0, 16], sizes = [2, 16], strides = [1, 1]} : vector<2x48xf32> to vector<2x16xf32>
    %747 = arith.mulf %746, %708 : vector<2x16xf32>
    %748 = vector.extract_strided_slice %743 {offsets = [0, 0], sizes = [2, 16], strides = [1, 1]} : vector<2x48xf32> to vector<2x16xf32>
    %749 = arith.mulf %748, %745 : vector<2x16xf32>
    %750 = arith.addf %747, %749 : vector<2x16xf32>
    %751 = vector.extract_strided_slice %743 {offsets = [0, 32], sizes = [2, 16], strides = [1, 1]} : vector<2x48xf32> to vector<2x16xf32>
    %752 = math.tanh %750 : vector<2x16xf32>
    %753 = arith.mulf %751, %752 : vector<2x16xf32>
    %754 = vector.extract_strided_slice %737 {offsets = [0, 0], sizes = [2, 48], strides = [1, 1]} : vector<2x64xf32> to vector<2x48xf32>
    %755 = arith.negf %754 : vector<2x48xf32>
    %756 = math.exp %755 : vector<2x48xf32>
    %cst_258 = arith.constant 1.000000e+00 : f32
    %757 = vector.broadcast %cst_258 : f32 to vector<2x48xf32>
    %758 = arith.addf %757, %756 : vector<2x48xf32>
    %759 = arith.divf %757, %758 : vector<2x48xf32>
    %760 = vector.extract_strided_slice %737 {offsets = [0, 48], sizes = [2, 16], strides = [1, 1]} : vector<2x64xf32> to vector<2x16xf32>
    %761 = math.tanh %760 : vector<2x16xf32>
    %762 = vector.extract_strided_slice %759 {offsets = [0, 16], sizes = [2, 16], strides = [1, 1]} : vector<2x48xf32> to vector<2x16xf32>
    %763 = arith.mulf %762, %724 : vector<2x16xf32>
    %764 = vector.extract_strided_slice %759 {offsets = [0, 0], sizes = [2, 16], strides = [1, 1]} : vector<2x48xf32> to vector<2x16xf32>
    %765 = arith.mulf %764, %761 : vector<2x16xf32>
    %766 = arith.addf %763, %765 : vector<2x16xf32>
    %767 = vector.extract_strided_slice %759 {offsets = [0, 32], sizes = [2, 16], strides = [1, 1]} : vector<2x48xf32> to vector<2x16xf32>
    %768 = math.tanh %766 : vector<2x16xf32>
    %769 = arith.mulf %767, %768 : vector<2x16xf32>
    %770 = tpu.concatenate %459, %501, %543, %585, %627, %669, %711, %753 in 0 : vector<2x16xf32>, vector<2x16xf32>, vector<2x16xf32>, vector<2x16xf32>, vector<2x16xf32>, vector<2x16xf32>, vector<2x16xf32>, vector<2x16xf32> -> vector<16x16xf32>
    %771 = tpu.concatenate %769, %727, %685, %643, %601, %559, %517, %475 in 0 : vector<2x16xf32>, vector<2x16xf32>, vector<2x16xf32>, vector<2x16xf32>, vector<2x16xf32>, vector<2x16xf32>, vector<2x16xf32>, vector<2x16xf32> -> vector<16x16xf32>
    %772 = arith.truncf %770 : vector<16x16xf32> to vector<16x16xbf16>
    %c0_259 = arith.constant 0 : index
    %c0_260 = arith.constant 0 : index
    %773 = vector.load %arg16[%c0_259, %c0_260] : memref<16x128xbf16, #tpu.memory_space<vmem>>, vector<16x128xbf16>
    %cst_261 = arith.constant dense<0.000000e+00> : vector<16x128xf32>
    %774 = tpu.matmul %772, %773, %cst_261 {dimension_numbers = #tpu.dot_dimension_numbers<[1], [0], [0], [1], [0, 0, 1, 1], [], []>} : vector<16x16xbf16>, vector<16x128xbf16>, vector<16x128xf32> -> vector<16x128xf32>
    %775 = arith.truncf %771 : vector<16x16xf32> to vector<16x16xbf16>
    %c0_262 = arith.constant 0 : index
    %c0_263 = arith.constant 0 : index
    %776 = vector.load %arg17[%c0_262, %c0_263] : memref<16x128xbf16, #tpu.memory_space<vmem>>, vector<16x128xbf16>
    %cst_264 = arith.constant dense<0.000000e+00> : vector<16x128xf32>
    %777 = tpu.matmul %775, %776, %cst_264 {dimension_numbers = #tpu.dot_dimension_numbers<[1], [0], [0], [1], [0, 0, 1, 1], [], []>} : vector<16x16xbf16>, vector<16x128xbf16>, vector<16x128xf32> -> vector<16x128xf32>
    %778 = arith.addf %774, %777 : vector<16x128xf32>
    %c0_265 = arith.constant 0 : index
    %c0_266 = arith.constant 0 : index
    %779 = vector.load %arg18[%c0_265, %c0_266] : memref<1x128xf32, #tpu.memory_space<vmem>>, vector<1x128xf32>
    %780 = vector.broadcast %779 : vector<1x128xf32> to vector<16x128xf32>
    %781 = arith.addf %778, %780 : vector<16x128xf32>
    %cst_267 = arith.constant 0.000000e+00 : f32
    %782 = vector.broadcast %cst_267 : f32 to vector<2x16xf32>
    %cst_268 = arith.constant 0.000000e+00 : f32
    %783 = vector.broadcast %cst_268 : f32 to vector<2x16xf32>
    %784 = vector.extract_strided_slice %781 {offsets = [0, 0], sizes = [2, 64], strides = [1, 1]} : vector<16x128xf32> to vector<2x64xf32>
    %785 = arith.truncf %782 : vector<2x16xf32> to vector<2x16xbf16>
    %c0_269 = arith.constant 0 : index
    %c0_270 = arith.constant 0 : index
    %786 = vector.load %arg19[%c0_269, %c0_270] : memref<16x64xbf16, #tpu.memory_space<vmem>>, vector<16x64xbf16>
    %cst_271 = arith.constant dense<0.000000e+00> : vector<2x64xf32>
    %787 = tpu.matmul %785, %786, %cst_271 {dimension_numbers = #tpu.dot_dimension_numbers<[1], [0], [0], [1], [0, 0, 1, 1], [], []>} : vector<2x16xbf16>, vector<16x64xbf16>, vector<2x64xf32> -> vector<2x64xf32>
    %788 = arith.addf %784, %787 : vector<2x64xf32>
    %789 = vector.extract_strided_slice %788 {offsets = [0, 0], sizes = [2, 48], strides = [1, 1]} : vector<2x64xf32> to vector<2x48xf32>
    %790 = arith.negf %789 : vector<2x48xf32>
    %791 = math.exp %790 : vector<2x48xf32>
    %cst_272 = arith.constant 1.000000e+00 : f32
    %792 = vector.broadcast %cst_272 : f32 to vector<2x48xf32>
    %793 = arith.addf %792, %791 : vector<2x48xf32>
    %794 = arith.divf %792, %793 : vector<2x48xf32>
    %795 = vector.extract_strided_slice %788 {offsets = [0, 48], sizes = [2, 16], strides = [1, 1]} : vector<2x64xf32> to vector<2x16xf32>
    %796 = math.tanh %795 : vector<2x16xf32>
    %797 = vector.extract_strided_slice %794 {offsets = [0, 16], sizes = [2, 16], strides = [1, 1]} : vector<2x48xf32> to vector<2x16xf32>
    %798 = arith.mulf %797, %783 : vector<2x16xf32>
    %799 = vector.extract_strided_slice %794 {offsets = [0, 0], sizes = [2, 16], strides = [1, 1]} : vector<2x48xf32> to vector<2x16xf32>
    %800 = arith.mulf %799, %796 : vector<2x16xf32>
    %801 = arith.addf %798, %800 : vector<2x16xf32>
    %802 = vector.extract_strided_slice %794 {offsets = [0, 32], sizes = [2, 16], strides = [1, 1]} : vector<2x48xf32> to vector<2x16xf32>
    %803 = math.tanh %801 : vector<2x16xf32>
    %804 = arith.mulf %802, %803 : vector<2x16xf32>
    %805 = vector.extract_strided_slice %781 {offsets = [2, 0], sizes = [2, 64], strides = [1, 1]} : vector<16x128xf32> to vector<2x64xf32>
    %806 = arith.truncf %804 : vector<2x16xf32> to vector<2x16xbf16>
    %c0_273 = arith.constant 0 : index
    %c0_274 = arith.constant 0 : index
    %807 = vector.load %arg19[%c0_273, %c0_274] : memref<16x64xbf16, #tpu.memory_space<vmem>>, vector<16x64xbf16>
    %cst_275 = arith.constant dense<0.000000e+00> : vector<2x64xf32>
    %808 = tpu.matmul %806, %807, %cst_275 {dimension_numbers = #tpu.dot_dimension_numbers<[1], [0], [0], [1], [0, 0, 1, 1], [], []>} : vector<2x16xbf16>, vector<16x64xbf16>, vector<2x64xf32> -> vector<2x64xf32>
    %809 = arith.addf %805, %808 : vector<2x64xf32>
    %810 = vector.extract_strided_slice %809 {offsets = [0, 0], sizes = [2, 48], strides = [1, 1]} : vector<2x64xf32> to vector<2x48xf32>
    %811 = arith.negf %810 : vector<2x48xf32>
    %812 = math.exp %811 : vector<2x48xf32>
    %cst_276 = arith.constant 1.000000e+00 : f32
    %813 = vector.broadcast %cst_276 : f32 to vector<2x48xf32>
    %814 = arith.addf %813, %812 : vector<2x48xf32>
    %815 = arith.divf %813, %814 : vector<2x48xf32>
    %816 = vector.extract_strided_slice %809 {offsets = [0, 48], sizes = [2, 16], strides = [1, 1]} : vector<2x64xf32> to vector<2x16xf32>
    %817 = math.tanh %816 : vector<2x16xf32>
    %818 = vector.extract_strided_slice %815 {offsets = [0, 16], sizes = [2, 16], strides = [1, 1]} : vector<2x48xf32> to vector<2x16xf32>
    %819 = arith.mulf %818, %801 : vector<2x16xf32>
    %820 = vector.extract_strided_slice %815 {offsets = [0, 0], sizes = [2, 16], strides = [1, 1]} : vector<2x48xf32> to vector<2x16xf32>
    %821 = arith.mulf %820, %817 : vector<2x16xf32>
    %822 = arith.addf %819, %821 : vector<2x16xf32>
    %823 = vector.extract_strided_slice %815 {offsets = [0, 32], sizes = [2, 16], strides = [1, 1]} : vector<2x48xf32> to vector<2x16xf32>
    %824 = math.tanh %822 : vector<2x16xf32>
    %825 = arith.mulf %823, %824 : vector<2x16xf32>
    %826 = vector.extract_strided_slice %781 {offsets = [4, 0], sizes = [2, 64], strides = [1, 1]} : vector<16x128xf32> to vector<2x64xf32>
    %827 = arith.truncf %825 : vector<2x16xf32> to vector<2x16xbf16>
    %c0_277 = arith.constant 0 : index
    %c0_278 = arith.constant 0 : index
    %828 = vector.load %arg19[%c0_277, %c0_278] : memref<16x64xbf16, #tpu.memory_space<vmem>>, vector<16x64xbf16>
    %cst_279 = arith.constant dense<0.000000e+00> : vector<2x64xf32>
    %829 = tpu.matmul %827, %828, %cst_279 {dimension_numbers = #tpu.dot_dimension_numbers<[1], [0], [0], [1], [0, 0, 1, 1], [], []>} : vector<2x16xbf16>, vector<16x64xbf16>, vector<2x64xf32> -> vector<2x64xf32>
    %830 = arith.addf %826, %829 : vector<2x64xf32>
    %831 = vector.extract_strided_slice %830 {offsets = [0, 0], sizes = [2, 48], strides = [1, 1]} : vector<2x64xf32> to vector<2x48xf32>
    %832 = arith.negf %831 : vector<2x48xf32>
    %833 = math.exp %832 : vector<2x48xf32>
    %cst_280 = arith.constant 1.000000e+00 : f32
    %834 = vector.broadcast %cst_280 : f32 to vector<2x48xf32>
    %835 = arith.addf %834, %833 : vector<2x48xf32>
    %836 = arith.divf %834, %835 : vector<2x48xf32>
    %837 = vector.extract_strided_slice %830 {offsets = [0, 48], sizes = [2, 16], strides = [1, 1]} : vector<2x64xf32> to vector<2x16xf32>
    %838 = math.tanh %837 : vector<2x16xf32>
    %839 = vector.extract_strided_slice %836 {offsets = [0, 16], sizes = [2, 16], strides = [1, 1]} : vector<2x48xf32> to vector<2x16xf32>
    %840 = arith.mulf %839, %822 : vector<2x16xf32>
    %841 = vector.extract_strided_slice %836 {offsets = [0, 0], sizes = [2, 16], strides = [1, 1]} : vector<2x48xf32> to vector<2x16xf32>
    %842 = arith.mulf %841, %838 : vector<2x16xf32>
    %843 = arith.addf %840, %842 : vector<2x16xf32>
    %844 = vector.extract_strided_slice %836 {offsets = [0, 32], sizes = [2, 16], strides = [1, 1]} : vector<2x48xf32> to vector<2x16xf32>
    %845 = math.tanh %843 : vector<2x16xf32>
    %846 = arith.mulf %844, %845 : vector<2x16xf32>
    %847 = vector.extract_strided_slice %781 {offsets = [6, 0], sizes = [2, 64], strides = [1, 1]} : vector<16x128xf32> to vector<2x64xf32>
    %848 = arith.truncf %846 : vector<2x16xf32> to vector<2x16xbf16>
    %c0_281 = arith.constant 0 : index
    %c0_282 = arith.constant 0 : index
    %849 = vector.load %arg19[%c0_281, %c0_282] : memref<16x64xbf16, #tpu.memory_space<vmem>>, vector<16x64xbf16>
    %cst_283 = arith.constant dense<0.000000e+00> : vector<2x64xf32>
    %850 = tpu.matmul %848, %849, %cst_283 {dimension_numbers = #tpu.dot_dimension_numbers<[1], [0], [0], [1], [0, 0, 1, 1], [], []>} : vector<2x16xbf16>, vector<16x64xbf16>, vector<2x64xf32> -> vector<2x64xf32>
    %851 = arith.addf %847, %850 : vector<2x64xf32>
    %852 = vector.extract_strided_slice %851 {offsets = [0, 0], sizes = [2, 48], strides = [1, 1]} : vector<2x64xf32> to vector<2x48xf32>
    %853 = arith.negf %852 : vector<2x48xf32>
    %854 = math.exp %853 : vector<2x48xf32>
    %cst_284 = arith.constant 1.000000e+00 : f32
    %855 = vector.broadcast %cst_284 : f32 to vector<2x48xf32>
    %856 = arith.addf %855, %854 : vector<2x48xf32>
    %857 = arith.divf %855, %856 : vector<2x48xf32>
    %858 = vector.extract_strided_slice %851 {offsets = [0, 48], sizes = [2, 16], strides = [1, 1]} : vector<2x64xf32> to vector<2x16xf32>
    %859 = math.tanh %858 : vector<2x16xf32>
    %860 = vector.extract_strided_slice %857 {offsets = [0, 16], sizes = [2, 16], strides = [1, 1]} : vector<2x48xf32> to vector<2x16xf32>
    %861 = arith.mulf %860, %843 : vector<2x16xf32>
    %862 = vector.extract_strided_slice %857 {offsets = [0, 0], sizes = [2, 16], strides = [1, 1]} : vector<2x48xf32> to vector<2x16xf32>
    %863 = arith.mulf %862, %859 : vector<2x16xf32>
    %864 = arith.addf %861, %863 : vector<2x16xf32>
    %865 = vector.extract_strided_slice %857 {offsets = [0, 32], sizes = [2, 16], strides = [1, 1]} : vector<2x48xf32> to vector<2x16xf32>
    %866 = math.tanh %864 : vector<2x16xf32>
    %867 = arith.mulf %865, %866 : vector<2x16xf32>
    %868 = vector.extract_strided_slice %781 {offsets = [8, 0], sizes = [2, 64], strides = [1, 1]} : vector<16x128xf32> to vector<2x64xf32>
    %869 = arith.truncf %867 : vector<2x16xf32> to vector<2x16xbf16>
    %c0_285 = arith.constant 0 : index
    %c0_286 = arith.constant 0 : index
    %870 = vector.load %arg19[%c0_285, %c0_286] : memref<16x64xbf16, #tpu.memory_space<vmem>>, vector<16x64xbf16>
    %cst_287 = arith.constant dense<0.000000e+00> : vector<2x64xf32>
    %871 = tpu.matmul %869, %870, %cst_287 {dimension_numbers = #tpu.dot_dimension_numbers<[1], [0], [0], [1], [0, 0, 1, 1], [], []>} : vector<2x16xbf16>, vector<16x64xbf16>, vector<2x64xf32> -> vector<2x64xf32>
    %872 = arith.addf %868, %871 : vector<2x64xf32>
    %873 = vector.extract_strided_slice %872 {offsets = [0, 0], sizes = [2, 48], strides = [1, 1]} : vector<2x64xf32> to vector<2x48xf32>
    %874 = arith.negf %873 : vector<2x48xf32>
    %875 = math.exp %874 : vector<2x48xf32>
    %cst_288 = arith.constant 1.000000e+00 : f32
    %876 = vector.broadcast %cst_288 : f32 to vector<2x48xf32>
    %877 = arith.addf %876, %875 : vector<2x48xf32>
    %878 = arith.divf %876, %877 : vector<2x48xf32>
    %879 = vector.extract_strided_slice %872 {offsets = [0, 48], sizes = [2, 16], strides = [1, 1]} : vector<2x64xf32> to vector<2x16xf32>
    %880 = math.tanh %879 : vector<2x16xf32>
    %881 = vector.extract_strided_slice %878 {offsets = [0, 16], sizes = [2, 16], strides = [1, 1]} : vector<2x48xf32> to vector<2x16xf32>
    %882 = arith.mulf %881, %864 : vector<2x16xf32>
    %883 = vector.extract_strided_slice %878 {offsets = [0, 0], sizes = [2, 16], strides = [1, 1]} : vector<2x48xf32> to vector<2x16xf32>
    %884 = arith.mulf %883, %880 : vector<2x16xf32>
    %885 = arith.addf %882, %884 : vector<2x16xf32>
    %886 = vector.extract_strided_slice %878 {offsets = [0, 32], sizes = [2, 16], strides = [1, 1]} : vector<2x48xf32> to vector<2x16xf32>
    %887 = math.tanh %885 : vector<2x16xf32>
    %888 = arith.mulf %886, %887 : vector<2x16xf32>
    %889 = vector.extract_strided_slice %781 {offsets = [10, 0], sizes = [2, 64], strides = [1, 1]} : vector<16x128xf32> to vector<2x64xf32>
    %890 = arith.truncf %888 : vector<2x16xf32> to vector<2x16xbf16>
    %c0_289 = arith.constant 0 : index
    %c0_290 = arith.constant 0 : index
    %891 = vector.load %arg19[%c0_289, %c0_290] : memref<16x64xbf16, #tpu.memory_space<vmem>>, vector<16x64xbf16>
    %cst_291 = arith.constant dense<0.000000e+00> : vector<2x64xf32>
    %892 = tpu.matmul %890, %891, %cst_291 {dimension_numbers = #tpu.dot_dimension_numbers<[1], [0], [0], [1], [0, 0, 1, 1], [], []>} : vector<2x16xbf16>, vector<16x64xbf16>, vector<2x64xf32> -> vector<2x64xf32>
    %893 = arith.addf %889, %892 : vector<2x64xf32>
    %894 = vector.extract_strided_slice %893 {offsets = [0, 0], sizes = [2, 48], strides = [1, 1]} : vector<2x64xf32> to vector<2x48xf32>
    %895 = arith.negf %894 : vector<2x48xf32>
    %896 = math.exp %895 : vector<2x48xf32>
    %cst_292 = arith.constant 1.000000e+00 : f32
    %897 = vector.broadcast %cst_292 : f32 to vector<2x48xf32>
    %898 = arith.addf %897, %896 : vector<2x48xf32>
    %899 = arith.divf %897, %898 : vector<2x48xf32>
    %900 = vector.extract_strided_slice %893 {offsets = [0, 48], sizes = [2, 16], strides = [1, 1]} : vector<2x64xf32> to vector<2x16xf32>
    %901 = math.tanh %900 : vector<2x16xf32>
    %902 = vector.extract_strided_slice %899 {offsets = [0, 16], sizes = [2, 16], strides = [1, 1]} : vector<2x48xf32> to vector<2x16xf32>
    %903 = arith.mulf %902, %885 : vector<2x16xf32>
    %904 = vector.extract_strided_slice %899 {offsets = [0, 0], sizes = [2, 16], strides = [1, 1]} : vector<2x48xf32> to vector<2x16xf32>
    %905 = arith.mulf %904, %901 : vector<2x16xf32>
    %906 = arith.addf %903, %905 : vector<2x16xf32>
    %907 = vector.extract_strided_slice %899 {offsets = [0, 32], sizes = [2, 16], strides = [1, 1]} : vector<2x48xf32> to vector<2x16xf32>
    %908 = math.tanh %906 : vector<2x16xf32>
    %909 = arith.mulf %907, %908 : vector<2x16xf32>
    %910 = vector.extract_strided_slice %781 {offsets = [12, 0], sizes = [2, 64], strides = [1, 1]} : vector<16x128xf32> to vector<2x64xf32>
    %911 = arith.truncf %909 : vector<2x16xf32> to vector<2x16xbf16>
    %c0_293 = arith.constant 0 : index
    %c0_294 = arith.constant 0 : index
    %912 = vector.load %arg19[%c0_293, %c0_294] : memref<16x64xbf16, #tpu.memory_space<vmem>>, vector<16x64xbf16>
    %cst_295 = arith.constant dense<0.000000e+00> : vector<2x64xf32>
    %913 = tpu.matmul %911, %912, %cst_295 {dimension_numbers = #tpu.dot_dimension_numbers<[1], [0], [0], [1], [0, 0, 1, 1], [], []>} : vector<2x16xbf16>, vector<16x64xbf16>, vector<2x64xf32> -> vector<2x64xf32>
    %914 = arith.addf %910, %913 : vector<2x64xf32>
    %915 = vector.extract_strided_slice %914 {offsets = [0, 0], sizes = [2, 48], strides = [1, 1]} : vector<2x64xf32> to vector<2x48xf32>
    %916 = arith.negf %915 : vector<2x48xf32>
    %917 = math.exp %916 : vector<2x48xf32>
    %cst_296 = arith.constant 1.000000e+00 : f32
    %918 = vector.broadcast %cst_296 : f32 to vector<2x48xf32>
    %919 = arith.addf %918, %917 : vector<2x48xf32>
    %920 = arith.divf %918, %919 : vector<2x48xf32>
    %921 = vector.extract_strided_slice %914 {offsets = [0, 48], sizes = [2, 16], strides = [1, 1]} : vector<2x64xf32> to vector<2x16xf32>
    %922 = math.tanh %921 : vector<2x16xf32>
    %923 = vector.extract_strided_slice %920 {offsets = [0, 16], sizes = [2, 16], strides = [1, 1]} : vector<2x48xf32> to vector<2x16xf32>
    %924 = arith.mulf %923, %906 : vector<2x16xf32>
    %925 = vector.extract_strided_slice %920 {offsets = [0, 0], sizes = [2, 16], strides = [1, 1]} : vector<2x48xf32> to vector<2x16xf32>
    %926 = arith.mulf %925, %922 : vector<2x16xf32>
    %927 = arith.addf %924, %926 : vector<2x16xf32>
    %928 = vector.extract_strided_slice %920 {offsets = [0, 32], sizes = [2, 16], strides = [1, 1]} : vector<2x48xf32> to vector<2x16xf32>
    %929 = math.tanh %927 : vector<2x16xf32>
    %930 = arith.mulf %928, %929 : vector<2x16xf32>
    %931 = vector.extract_strided_slice %781 {offsets = [14, 0], sizes = [2, 64], strides = [1, 1]} : vector<16x128xf32> to vector<2x64xf32>
    %932 = arith.truncf %930 : vector<2x16xf32> to vector<2x16xbf16>
    %c0_297 = arith.constant 0 : index
    %c0_298 = arith.constant 0 : index
    %933 = vector.load %arg19[%c0_297, %c0_298] : memref<16x64xbf16, #tpu.memory_space<vmem>>, vector<16x64xbf16>
    %cst_299 = arith.constant dense<0.000000e+00> : vector<2x64xf32>
    %934 = tpu.matmul %932, %933, %cst_299 {dimension_numbers = #tpu.dot_dimension_numbers<[1], [0], [0], [1], [0, 0, 1, 1], [], []>} : vector<2x16xbf16>, vector<16x64xbf16>, vector<2x64xf32> -> vector<2x64xf32>
    %935 = arith.addf %931, %934 : vector<2x64xf32>
    %936 = vector.extract_strided_slice %935 {offsets = [0, 0], sizes = [2, 48], strides = [1, 1]} : vector<2x64xf32> to vector<2x48xf32>
    %937 = arith.negf %936 : vector<2x48xf32>
    %938 = math.exp %937 : vector<2x48xf32>
    %cst_300 = arith.constant 1.000000e+00 : f32
    %939 = vector.broadcast %cst_300 : f32 to vector<2x48xf32>
    %940 = arith.addf %939, %938 : vector<2x48xf32>
    %941 = arith.divf %939, %940 : vector<2x48xf32>
    %942 = vector.extract_strided_slice %935 {offsets = [0, 48], sizes = [2, 16], strides = [1, 1]} : vector<2x64xf32> to vector<2x16xf32>
    %943 = math.tanh %942 : vector<2x16xf32>
    %944 = vector.extract_strided_slice %941 {offsets = [0, 16], sizes = [2, 16], strides = [1, 1]} : vector<2x48xf32> to vector<2x16xf32>
    %945 = arith.mulf %944, %927 : vector<2x16xf32>
    %946 = vector.extract_strided_slice %941 {offsets = [0, 0], sizes = [2, 16], strides = [1, 1]} : vector<2x48xf32> to vector<2x16xf32>
    %947 = arith.mulf %946, %943 : vector<2x16xf32>
    %948 = arith.addf %945, %947 : vector<2x16xf32>
    %949 = vector.extract_strided_slice %941 {offsets = [0, 32], sizes = [2, 16], strides = [1, 1]} : vector<2x48xf32> to vector<2x16xf32>
    %950 = math.tanh %948 : vector<2x16xf32>
    %951 = arith.mulf %949, %950 : vector<2x16xf32>
    %952 = vector.extract_strided_slice %781 {offsets = [14, 64], sizes = [2, 64], strides = [1, 1]} : vector<16x128xf32> to vector<2x64xf32>
    %cst_301 = arith.constant 0.000000e+00 : f32
    %953 = vector.broadcast %cst_301 : f32 to vector<2x16xf32>
    %954 = vector.extract_strided_slice %952 {offsets = [0, 0], sizes = [2, 48], strides = [1, 1]} : vector<2x64xf32> to vector<2x48xf32>
    %955 = arith.negf %954 : vector<2x48xf32>
    %956 = math.exp %955 : vector<2x48xf32>
    %cst_302 = arith.constant 1.000000e+00 : f32
    %957 = vector.broadcast %cst_302 : f32 to vector<2x48xf32>
    %958 = arith.addf %957, %956 : vector<2x48xf32>
    %959 = arith.divf %957, %958 : vector<2x48xf32>
    %960 = vector.extract_strided_slice %952 {offsets = [0, 48], sizes = [2, 16], strides = [1, 1]} : vector<2x64xf32> to vector<2x16xf32>
    %961 = math.tanh %960 : vector<2x16xf32>
    %962 = vector.extract_strided_slice %959 {offsets = [0, 16], sizes = [2, 16], strides = [1, 1]} : vector<2x48xf32> to vector<2x16xf32>
    %963 = arith.mulf %962, %953 : vector<2x16xf32>
    %964 = vector.extract_strided_slice %959 {offsets = [0, 0], sizes = [2, 16], strides = [1, 1]} : vector<2x48xf32> to vector<2x16xf32>
    %965 = arith.mulf %964, %961 : vector<2x16xf32>
    %966 = arith.addf %963, %965 : vector<2x16xf32>
    %967 = vector.extract_strided_slice %959 {offsets = [0, 32], sizes = [2, 16], strides = [1, 1]} : vector<2x48xf32> to vector<2x16xf32>
    %968 = math.tanh %966 : vector<2x16xf32>
    %969 = arith.mulf %967, %968 : vector<2x16xf32>
    %970 = tpu.concatenate %951, %969 in 1 : vector<2x16xf32>, vector<2x16xf32> -> vector<2x32xf32>
    %c0_303 = arith.constant 0 : index
    %c0_304 = arith.constant 0 : index
    %971 = vector.load %arg20[%c0_303, %c0_304] : memref<32x4xf32, #tpu.memory_space<vmem>>, vector<32x4xf32>
    %cst_305 = arith.constant dense<0.000000e+00> : vector<2x4xf32>
    %972 = tpu.matmul %970, %971, %cst_305 {dimension_numbers = #tpu.dot_dimension_numbers<[1], [0], [0], [1], [0, 0, 1, 1], [], []>} : vector<2x32xf32>, vector<32x4xf32>, vector<2x4xf32> -> vector<2x4xf32>
    %c0_306 = arith.constant 0 : index
    %c0_307 = arith.constant 0 : index
    %973 = vector.load %arg21[%c0_306, %c0_307] : memref<1x4xf32, #tpu.memory_space<vmem>>, vector<1x4xf32>
    %974 = vector.broadcast %973 : vector<1x4xf32> to vector<2x4xf32>
    %975 = arith.addf %972, %974 : vector<2x4xf32>
    %c0_308 = arith.constant 0 : index
    %c0_309 = arith.constant 0 : index
    %976 = vector.load %arg22[%c0_308, %c0_309] : memref<2x4xf32, #tpu.memory_space<vmem>>, vector<2x4xf32>
    tpu.vector_store %arg22[%c0_308, %c0_309], %975 {strides = array<i32>} : memref<2x4xf32, #tpu.memory_space<vmem>>, vector<2x4xf32>,
    return
  }
  func.func @transform_0(%arg0: i32) -> (i32, i32, i32) {
    %c0_i32 = arith.constant 0 : i32
    %c0_i32_0 = arith.constant 0 : i32
    %c0_i32_1 = arith.constant 0 : i32
    %c0_i32_2 = arith.constant 0 : i32
    return %c0_i32, %c0_i32_0, %c0_i32_1 : i32, i32, i32
  }
  func.func @transform_1(%arg0: i32) -> (i32, i32, i32) {
    %c0_i32 = arith.constant 0 : i32
    %c0_i32_0 = arith.constant 0 : i32
    %c0_i32_1 = arith.constant 0 : i32
    %c0_i32_2 = arith.constant 0 : i32
    return %c0_i32, %c0_i32_0, %c0_i32_1 : i32, i32, i32
  }
  func.func @transform_2(%arg0: i32) -> (i32, i32) {
    %c0_i32 = arith.constant 0 : i32
    %c0_i32_0 = arith.constant 0 : i32
    %c0_i32_1 = arith.constant 0 : i32
    return %c0_i32, %c0_i32_0 : i32, i32
  }
  func.func @transform_3(%arg0: i32) -> (i32, i32, i32) {
    %c0_i32 = arith.constant 0 : i32
    %c0_i32_0 = arith.constant 0 : i32
    %c0_i32_1 = arith.constant 0 : i32
    %c0_i32_2 = arith.constant 0 : i32
    return %c0_i32, %c0_i32_0, %c0_i32_1 : i32, i32, i32
  }
  func.func @transform_4(%arg0: i32) -> (i32, i32, i32) {
    %c0_i32 = arith.constant 0 : i32
    %c0_i32_0 = arith.constant 0 : i32
    %c0_i32_1 = arith.constant 0 : i32
    %c0_i32_2 = arith.constant 0 : i32
    return %c0_i32, %c0_i32_0, %c0_i32_1 : i32, i32, i32
  }
  func.func @transform_5(%arg0: i32) -> (i32, i32, i32) {
    %c0_i32 = arith.constant 0 : i32
    %c0_i32_0 = arith.constant 0 : i32
    %c0_i32_1 = arith.constant 0 : i32
    %c0_i32_2 = arith.constant 0 : i32
    return %c0_i32, %c0_i32_0, %c0_i32_1 : i32, i32, i32
  }
  func.func @transform_6(%arg0: i32) -> (i32, i32, i32) {
    %c0_i32 = arith.constant 0 : i32
    %c0_i32_0 = arith.constant 0 : i32
    %c0_i32_1 = arith.constant 0 : i32
    %c0_i32_2 = arith.constant 0 : i32
    return %c0_i32, %c0_i32_0, %c0_i32_1 : i32, i32, i32
  }
  func.func @transform_7(%arg0: i32) -> (i32, i32, i32) {
    %c0_i32 = arith.constant 0 : i32
    %c0_i32_0 = arith.constant 0 : i32
    %c0_i32_1 = arith.constant 0 : i32
    %c0_i32_2 = arith.constant 0 : i32
    return %c0_i32, %c0_i32_0, %c0_i32_1 : i32, i32, i32
  }
  func.func @transform_8(%arg0: i32) -> (i32, i32, i32) {
    %c0_i32 = arith.constant 0 : i32
    %c0_i32_0 = arith.constant 0 : i32
    %c0_i32_1 = arith.constant 0 : i32
    %c0_i32_2 = arith.constant 0 : i32
    return %c0_i32, %c0_i32_0, %c0_i32_1 : i32, i32, i32
  }
  func.func @transform_9(%arg0: i32) -> (i32, i32, i32) {
    %c0_i32 = arith.constant 0 : i32
    %c0_i32_0 = arith.constant 0 : i32
    %c0_i32_1 = arith.constant 0 : i32
    %c0_i32_2 = arith.constant 0 : i32
    return %c0_i32, %c0_i32_0, %c0_i32_1 : i32, i32, i32
  }
  func.func @transform_10(%arg0: i32) -> (i32, i32, i32) {
    %c0_i32 = arith.constant 0 : i32
    %c0_i32_0 = arith.constant 0 : i32
    %c0_i32_1 = arith.constant 0 : i32
    %c0_i32_2 = arith.constant 0 : i32
    return %c0_i32, %c0_i32_0, %c0_i32_1 : i32, i32, i32
  }
  func.func @transform_11(%arg0: i32) -> (i32, i32, i32) {
    %c0_i32 = arith.constant 0 : i32
    %c0_i32_0 = arith.constant 0 : i32
    %c0_i32_1 = arith.constant 0 : i32
    %c0_i32_2 = arith.constant 0 : i32
    return %c0_i32, %c0_i32_0, %c0_i32_1 : i32, i32, i32
  }
  func.func @transform_12(%arg0: i32) -> (i32, i32) {
    %c0_i32 = arith.constant 0 : i32
    %c0_i32_0 = arith.constant 0 : i32
    %c0_i32_1 = arith.constant 0 : i32
    return %c0_i32, %c0_i32_0 : i32, i32
  }
  func.func @transform_13(%arg0: i32) -> (i32, i32) {
    %c0_i32 = arith.constant 0 : i32
    %c0_i32_0 = arith.constant 0 : i32
    %c0_i32_1 = arith.constant 0 : i32
    return %c0_i32, %c0_i32_0 : i32, i32
  }
  func.func @transform_14(%arg0: i32) -> (i32, i32, i32) {
    %c0_i32 = arith.constant 0 : i32
    %c0_i32_0 = arith.constant 0 : i32
    %c0_i32_1 = arith.constant 0 : i32
    %c0_i32_2 = arith.constant 0 : i32
    return %c0_i32, %c0_i32_0, %c0_i32_1 : i32, i32, i32
  }
  func.func @transform_15(%arg0: i32) -> (i32, i32) {
    %c0_i32 = arith.constant 0 : i32
    %c0_i32_0 = arith.constant 0 : i32
    %c0_i32_1 = arith.constant 0 : i32
    return %c0_i32, %c0_i32_0 : i32, i32
  }
  func.func @transform_16(%arg0: i32) -> (i32, i32) {
    %c0_i32 = arith.constant 0 : i32
    %c0_i32_0 = arith.constant 0 : i32
    %c0_i32_1 = arith.constant 0 : i32
    return %c0_i32, %c0_i32_0 : i32, i32
  }
  func.func @transform_17(%arg0: i32) -> (i32, i32) {
    %c0_i32 = arith.constant 0 : i32
    %c0_i32_0 = arith.constant 0 : i32
    %c0_i32_1 = arith.constant 0 : i32
    return %c0_i32, %c0_i32_0 : i32, i32
  }
  func.func @transform_18(%arg0: i32) -> (i32, i32) {
    %c0_i32 = arith.constant 0 : i32
    %c0_i32_0 = arith.constant 0 : i32
    %c0_i32_1 = arith.constant 0 : i32
    return %c0_i32, %c0_i32_0 : i32, i32
  }
  func.func @transform_19(%arg0: i32) -> (i32, i32) {
    %c0_i32 = arith.constant 0 : i32
    %c0_i32_0 = arith.constant 0 : i32
    %c0_i32_1 = arith.constant 0 : i32
    return %c0_i32, %c0_i32_0 : i32, i32
  }
  func.func @transform_20(%arg0: i32) -> (i32, i32) {
    %c0_i32 = arith.constant 0 : i32
    %c0_i32_0 = arith.constant 0 : i32
    %c0_i32_1 = arith.constant 0 : i32
    return %c0_i32, %c0_i32_0 : i32, i32
  }
  func.func @transform_21(%arg0: i32) -> (i32, i32) {
    %c0_i32 = arith.constant 0 : i32
    %c0_i32_0 = arith.constant 0 : i32
    %c0_i32_1 = arith.constant 0 : i32
    return %c0_i32, %c0_i32_0 : i32, i32
  }
}

</mosaic_0001>

<bundles_post_ra>
// kernel: model_forward.1
= control target key start
LH: loop header
LB: loop body
LE: loop exit
PB: predicated region body
PF: predicated region fallthrough
CT: control target
= control target key end

     0   :  { %s6187_s0 = inlined_call_operand.vmem [shape: f32[2,8,32], index: 0, kind: input, shape index: {}]   ;;  %s6188_s1 = inlined_call_operand.vmem [shape: f32[2,1,8], index: 1, kind: input, shape index: {}]   ;;  %s6189_s2 = inlined_call_operand.vmem [shape: f32[2,32], index: 2, kind: input, shape index: {}]   ;;  %s6190_s3 = inlined_call_operand.vmem [shape: bf16[12,32,16], index: 3, kind: input, shape index: {}]   ;;  %s6191_s4 = inlined_call_operand.vmem [shape: f32[12,1,16], index: 4, kind: input, shape index: {}]   ;;  %s6192_s5 = inlined_call_operand.vmem [shape: bf16[4,16,32], index: 5, kind: input, shape index: {}]   ;;  %s6193_s6 = inlined_call_operand.vmem [shape: f32[2,1,32], index: 6, kind: input, shape index: {}]   ;;  %s6194_s7 = inlined_call_operand.vmem [shape: bf16[2,32,64], index: 7, kind: input, shape index: {}]   ;;  %s6195_s8 = inlined_call_operand.vmem [shape: f32[2,1,64], index: 8, kind: input, shape index: {}]   ;;  %s6196_s9 = inlined_call_operand.vmem [shape: bf16[2,64,32], index: 9, kind: input, shape index: {}]   ;;  %s6197_s10 = inlined_call_operand.vmem [shape: f32[2,1,32], index: 10, kind: input, shape index: {}]   ;;  %s6198_s11 = inlined_call_operand.vmem [shape: f32[2,4,32], index: 11, kind: input, shape index: {}]   ;;  %s6199_s12 = inlined_call_operand.vmem [shape: bf16[32,128], index: 12, kind: input, shape index: {}]   ;;  %s6200_s13 = inlined_call_operand.vmem [shape: f32[1,128], index: 13, kind: input, shape index: {}]   ;;  %s6201_s14 = inlined_call_operand.vmem [shape: bf16[2,16,64], index: 14, kind: input, shape index: {}]   ;;  %s6202_s15 = inlined_call_operand.vmem [shape: bf16[16,128], index: 15, kind: input, shape index: {}]   ;;  %s6203_s16 = inlined_call_operand.vmem [shape: bf16[16,128], index: 16, kind: input, shape index: {}]   ;;  %s6204_s17 = inlined_call_operand.vmem [shape: f32[1,128], index: 17, kind: input, shape index: {}]   ;;  %s6205_s18 = inlined_call_operand.vmem [shape: bf16[16,64], index: 18, kind: input, shape index: {}]   ;;  %s6206_s19 = inlined_call_operand.vmem [shape: f32[32,4], index: 19, kind: input, shape index: {}]   ;;  %s6207_s20 = inlined_call_operand.vmem [shape: f32[1,4], index: 20, kind: input, shape index: {}]   ;;  %s6208_s21 = inlined_call_operand.hbm [shape: f32[2,4], index: 21, kind: output, shape index: {}]  }
   0x1   :  { %6216 = sst [smem:[#allocation5_spill]] %s6187_s0 }
   0x2   :  { %6217 = sst [smem:[#allocation6_spill]] %s6188_s1 }
   0x3   :  { %6218 = sst [smem:[#allocation7_spill]] %s6189_s2 }
   0x4   :  { %6219 = sst [smem:[#allocation8_spill]] %s6190_s3 }
   0x5   :  { %6220 = sst [smem:[#allocation9_spill]] %s6191_s4 }
   0x6   :  { %6221 = sst [smem:[#allocation10_spill]] %s6192_s5 }
   0x7   :  { %s6222_s26 = sld [smem:[#allocation5_spill]]  ;;  %vm6215_vm0 = vcmask 261120  }
   0xd   :  { %v70_v0 = vld [vmem:[%s6222_s26] sm:$0xff]  ;;  %v71_v1 = vld [vmem:[%s6222_s26 + $0x8] sm:$0xff] }
   0xe   :  { %v75_v2 = vsel %vm6215_vm0, %v70_v0, 0.0  ;;  %v78_v3 = vsel %vm6215_vm0, %v71_v1, 0.0 }
   0xf   :  { %76 = vadd.xlane.f32.xlu0 %v75_v2 }
  0x17   :  { %79 = vadd.xlane.f32.xlu0 %v78_v3 }
  0x18   :  { %26 = vsyncpa [#allocation3], 0  ;;  %v5126_v4 = vmov 32.0   ;;  %s6223_s0 = sld [smem:[#allocation8_spill]]  ;;  %vm252_vm8 = vcmask 130048   ;;  %vm331_vm9 = vcmask 1043456  }
  0x19   :  { %4708 = vrcp.f32 %v5126_v4  ;;  %s6224_s28 = sld [smem:[#allocation7_spill]]  ;;  %vm301_vm10 = vcmask 64512   ;;  %s5131_s29 = smov 32  }
  0x1a   :  { %s6225_s22 = sld [smem:[#allocation9_spill]]  ;;  %s5132_s4 = smov 96  }
  0x1b   :  { %s6226_s1 = sld [smem:[#allocation6_spill]] }
  0x1e   :  { %v4622_v21 = vld [vmem:[%s6223_s0 + $0x8] sm:$0xff]  ;;  %v4624_v22 = vld [vmem:[%s6223_s0 + $0x18] sm:$0xff]  ;;  %v4621_v26 = vld [vmem:[%s6223_s0] sm:$0xff] }
  0x1f   :  { %v4709_v5 = vpop.eup %4708  ;;  %v4626_v23 = vld [vmem:[%s6223_s0 + $0x28] sm:$0xff]  ;;  %168 = vmatpush.bf16.msra.mxu0 %v4622_v21  ;;  %204 = vmatpush.bf16.msra.mxu1 %v4624_v22  ;;  %v4623_v27 = vld [vmem:[%s6223_s0 + $0x10] sm:$0xff]  ;;  %v4625_v28 = vld [vmem:[%s6223_s0 + $0x20] sm:$0xff] }
  0x20   :  { %v82_v6 = vmul.f32 32.0, %v4709_v5  ;;  %vm86_vm1 = vweird.f32 %v4709_v5  ;;  %240 = vmatpush.bf16.msra.mxu2 %v4626_v23  ;;  %v4677_v45 = vld [vmem:[%s6224_s28] ss:$0 sm:$0xff]  ;;  %v4678_v49 = vld [vmem:[%s6224_s28 + $0x1] ss:$0 sm:$0xff]  ;;  %v4629_v62 = vld [vmem:[%s6223_s0 + $0x38] sm:$0xff] }
  0x21   :  { %v4680_v56 = vld [vmem:[%s6225_s22 + $0x1] ss:$0 sm:$0xff]  ;;  %v4679_v60 = vld [vmem:[%s6225_s22] ss:$0 sm:$0xff]  ;;  %v4681_v63 = vld [vmem:[%s6225_s22 + $0x2] ss:$0 sm:$0xff] }
  0x22   :  { %v83_v7 = vsub.f32 1.0, %v82_v6  ;;  %v4628_v3 = vld [vmem:[%s6223_s0 + $0x30] sm:$0xff]  ;;  %v132_v22 = vld [vmem:[%s6226_s1] sm:$0x1]  ;;  %v133_v23 = vld [vmem:[%s6226_s1 + $0x1] sm:$0x1] }
  0x23   :  { %169 = vmatpush.bf16.msra.mxu0 %v4621_v26  ;;  %205 = vmatpush.bf16.msra.mxu1 %v4623_v27  ;;  %s6227_s1 = sld [smem:[#allocation10_spill]] }
  0x24   :  { %v84_v8 = vmul.f32 %v4709_v5, %v83_v7  ;;  %241 = vmatpush.bf16.msra.mxu2 %v4625_v28 }
  0x26   :  { %v85_v9 = vadd.f32 %v4709_v5, %v84_v8 }
  0x28   :  { %v5253_v10 = vsel %vm86_vm1, %v4709_v5, %v85_v9 }
  0x82   :  { %v77_v11 = vpop.xlane.xlu0 %76 }
  0x83   :  { %v88_v12 = vmul.f32 %v5253_v10, %v77_v11  ;;  %v4631_v11 = vld [vmem:[%s6223_s0 + $0x48] sm:$0xff] }
  0x85   :  { %v90_v13 = vsub.f32 %v70_v0, %v88_v12 }
  0x87   :  { %v92_v14 = vmul.f32 %v90_v13, %v90_v13 }
  0x89   :  { %v94_v15 = vsel %vm6215_vm0, %v92_v14, 0.0 }
  0x8a   :  { %95 = vadd.xlane.f32.xlu1 %v94_v15  ;;  %v80_v16 = vpop.xlane.xlu0 %79 }
  0x8b   :  { %v89_v17 = vmul.f32 %v5253_v10, %v80_v16 }
  0x8d   :  { %v91_v18 = vsub.f32 %v71_v1, %v89_v17  ;;  %v4630_v17 = vld [vmem:[%s6223_s0 + $0x40] sm:$0xff] }
  0x8f   :  { %v93_v19 = vmul.f32 %v91_v18, %v91_v18 }
  0x91   :  { %v97_v20 = vsel %vm6215_vm0, %v93_v19, 0.0 }
  0x92   :  { %98 = vadd.xlane.f32.xlu1 %v97_v20 }
  0xfd   :  { %v96_v24 = vpop.xlane.xlu1 %95 }
  0xfe   :  { %v100_v25 = vmul.f32 %v96_v24, %v5253_v10  ;;  %v4247_v24 = vadd.f32 -1.0, %v132_v22 }
 0x100   :  { %v102_v29 = vadd.f32 1e-12, %v100_v25  ;;  %v4248_v25 = vadd.f32 -1.0, %v133_v23  ;;  %v136_v26 = vmul.f32 10000.0, %v4247_v24 }
 0x102   :  { %4710 = vrsqrt.f32 %v102_v29  ;;  %vm110_vm3 = vweird.f32 %v102_v29  ;;  %v137_v27 = vmul.f32 10000.0, %v4248_v25  ;;  %v5336_v28 = vperm.slane %v136_v26, 0  ;;  %v4684_v26 = vld [vmem:[%s6225_s22 + $0x5] ss:$0 sm:$0xff] }
 0x105   :  { %v99_v30 = vpop.xlane.xlu1 %98 }
 0x106   :  { %v101_v31 = vmul.f32 %v99_v30, %v5253_v10 }
 0x108   :  { %v4711_v32 = vpop.eup %4710  ;;  %v103_v33 = vadd.f32 1e-12, %v101_v31  ;;  %v5338_v31 = vperm.slane %v137_v27, 0 }
 0x109   :  { %v105_v34 = vmul.f32 %v4711_v32, %v102_v29  ;;  %vm111_vm2 = vweird.f32 %v4711_v32 }
 0x10a   :  { %4712 = vrsqrt.f32 %v103_v33  ;;  %vm112_vm4 = vmor %vm110_vm3, %vm111_vm2  ;;  %vm120_vm6 = vweird.f32 %v103_v33  ;;  %vm791_vm2 = vcmask 523264  }
 0x10b   :  { %v106_v35 = vmul.f32 %v4711_v32, %v105_v34 }
 0x10d   :  { %v107_v36 = vmul.f32 0.5, %v106_v35 }
 0x10f   :  { %v108_v37 = vsub.f32 1.5, %v107_v36 }
 0x110   :  { %v4713_v38 = vpop.eup %4712 }
 0x111   :  { %v109_v39 = vmul.f32 %v4711_v32, %v108_v37  ;;  %v115_v40 = vmul.f32 %v4713_v38, %v103_v33  ;;  %vm121_vm5 = vweird.f32 %v4713_v38 }
 0x112   :  { %vm122_vm7 = vmor %vm120_vm6, %vm121_vm5 }
 0x113   :  { %v116_v41 = vmul.f32 %v4713_v38, %v115_v40  ;;  %v113_v42 = vsel %vm112_vm4, %v4711_v32, %v109_v39  ;;  %v4682_v40 = vld [vmem:[%s6225_s22 + $0x3] ss:$0 sm:$0xff] }
 0x114   :  { %v124_v46 = vmul.f32 %v113_v42, %v90_v13 }
 0x115   :  { %v117_v43 = vmul.f32 0.5, %v116_v41  ;;  %v4683_v41 = vld [vmem:[%s6225_s22 + $0x4] ss:$0 sm:$0xff] }
 0x116   :  { %v127_v50 = vmul.f32 %v4677_v45, %v124_v46 }
 0x117   :  { %v118_v44 = vsub.f32 1.5, %v117_v43 }
 0x118   :  { %v5285_v53 = vadd.f32 %v4678_v49, %v127_v50 }
 0x119   :  { %v119_v47 = vmul.f32 %v4713_v38, %v118_v44 }
 0x11b   :  { %v123_v48 = vsel %vm122_vm7, %v4713_v38, %v119_v47 }
 0x11c   :  { %v125_v51 = vmul.f32 %v123_v48, %v91_v18 }
 0x11e   :  { %v128_v52 = vmul.f32 %v4677_v45, %v125_v51 }
 0x120   :  { %v5287_v54 = vadd.f32 %v4678_v49, %v128_v52 }
 0x122   :  { %v5291_v55 = vpack.c.bf16 %v5287_v54, %v5285_v53 }
 0x124   :  { %4257 = vmatmul.msk.bf16.vlgmr.msra.gmra.mxu0 %vm6215_vm0, %v5291_v55  ;;  %4271 = vmatmul.msk.bf16.vlgmr.msra.gmra.mxu1 %vm6215_vm0, %v5291_v55 }
 0x125   :  { %4285 = vmatmul.msk.bf16.vlgmr.msra.gmra.mxu2 %vm6215_vm0, %v5291_v55 }
 0x1a1   :  { %v207_v57 = vpop.f32.mrf.mxu1  ;;  %v171_v59 = vpop.f32.mrf.mxu0 }
 0x1a2   :  { %v208_v58 = vadd.f32 %v4680_v56, %v207_v57  ;;  %v172_v1 = vadd.f32 %v4679_v60, %v171_v59 }
 0x1a4   :  { %v250_v61 = vpack.c.bf16 %v208_v58, %v208_v58  ;;  %v248_v8 = vpack.c.bf16 %v172_v1, %v172_v1 }
 0x1a6   :  { %v257_v0 = vsel %vm252_vm8, %v250_v61, 0 }
 0x1a7   :  { %266 = vmatpush.bf16.xpose.msra.mxu3 %v257_v0 }
 0x1a8   :  { %v243_v2 = vpop.f32.mrf.mxu2 }
 0x1a9   :  { %v244_v4 = vadd.f32 %v4681_v63, %v243_v2  ;;  %v209_v5 = vpop.f32.mrf.mxu1  ;;  %v173_v12 = vpop.f32.mrf.mxu0 }
 0x1aa   :  { %v210_v6 = vadd.f32 %v4680_v56, %v209_v5  ;;  %v174_v15 = vadd.f32 %v4679_v60, %v173_v12 }
 0x1ab   :  { %v326_v7 = vpack.c.bf16 %v244_v4, %v244_v4 }
 0x1ac   :  { %v251_v9 = vpack.c.bf16 %v210_v6, %v210_v6  ;;  %v249_v20 = vpack.c.bf16 %v174_v15, %v174_v15 }
 0x1ad   :  { %v333_v13 = vsel %vm331_vm9, %v326_v7, 0 }
 0x1ae   :  { %342 = vmatpush.bf16.msrb.mxu1 %v333_v13  ;;  %4286 = vmatmul.msk.bf16.vlgmr.msra.gmra.mxu3 %vm252_vm8, %v248_v8  ;;  %v276_v14 = vsel %vm252_vm8, %v251_v9, 0  ;;  %v4633_v9 = vld [vmem:[%s6223_s0 + $0x58] sm:$0xff] }
 0x1af   :  { %398 = vmatpush.bf16.msrb.mxu3 %v4629_v62  ;;  %285 = vmatpush.bf16.xpose.msrb.mxu0 %v276_v14 }
 0x1b0   :  { %v245_v16 = vpop.f32.mrf.mxu2 }
 0x1b1   :  { %v246_v18 = vadd.f32 %v4681_v63, %v245_v16 }
 0x1b2   :  { %470 = vmatpush.bf16.msra.mxu1 %v4633_v9 }
 0x1b3   :  { %399 = vmatpush.bf16.msrb.mxu3 %v4628_v3  ;;  %v327_v19 = vpack.c.bf16 %v246_v18, %v246_v18 }
 0x1b5   :  { %v352_v21 = vsel %vm331_vm9, %v327_v19, 0 }
 0x1b6   :  { %361 = vmatpush.bf16.msrb.mxu2 %v352_v21  ;;  %4287 = vmatmul.msk.bf16.vlgmr.msrb.gmra.mxu0 %vm252_vm8, %v249_v20  ;;  %v4627_v21 = vld [vmem:[%s6227_s1] sm:$0xff] }
 0x1b7   :  { %434 = vmatpush.bf16.msra.mxu0 %v4631_v11  ;;  %v4632_v11 = vld [vmem:[%s6223_s0 + $0x50] sm:$0xff] }
 0x1b8   :  { %471 = vmatpush.bf16.msra.mxu1 %v4632_v11 }
 0x1bb   :  { %435 = vmatpush.bf16.msra.mxu0 %v4630_v17 }
 0x1be   :  { %4303 = vmatmul.msk.bf16.vlgmr.msrb.gmra.mxu3 %vm6215_vm0, %v5291_v55 }
 0x1c6   :  { %4317 = vmatmul.msk.bf16.vlgmr.msra.gmra.mxu0 %vm6215_vm0, %v5291_v55 }
 0x231   :  { %v268_v29 = vpop.f32.mrf.mxu3 }
 0x232   :  { %v291_v30 = vmul.f32 0.25, %v268_v29 }
 0x233   :  { %v287_v32 = vpop.f32.mrf.mxu0 }
 0x234   :  { %v292_v33 = vmul.f32 0.25, %v287_v32  ;;  %v299_v34 = vadd.f32 %v5336_v28, %v291_v30 }
 0x236   :  { %v302_v35 = vsel %vm301_vm10, %v299_v34, -inf  ;;  %v300_v36 = vadd.f32 %v5338_v31, %v292_v33 }
 0x237   :  { %303 = vmax.xlane.f32.xlu0 %v302_v35 }
 0x238   :  { %v305_v37 = vsel %vm301_vm10, %v300_v36, -inf }
 0x239   :  { %306 = vmax.xlane.f32.xlu2 %v305_v37  ;;  %v270_v38 = vpop.f32.mrf.mxu3 }
 0x23b   :  { %v289_v39 = vpop.f32.mrf.mxu0 }
 0x241   :  { %v401_v42 = vpop.f32.mrf.mxu3 }
 0x242   :  { %v402_v43 = vadd.f32 %v4682_v40, %v401_v42 }
 0x243   :  { %v437_v44 = vpop.f32.mrf.mxu0 }
 0x244   :  { %v438_v45 = vadd.f32 %v4683_v41, %v437_v44  ;;  %v478_v20 = vpack.c.bf16 %v402_v43, %v402_v43 }
 0x246   :  { %v480_v46 = vpack.c.bf16 %v438_v45, %v438_v45 }
 0x248   :  { %v486_v47 = vsel %vm252_vm8, %v480_v46, 0 }
 0x249   :  { %495 = vmatpush.bf16.xpose.msra.mxu2 %v486_v47  ;;  %v403_v51 = vpop.f32.mrf.mxu3 }
 0x24a   :  { %v404_v56 = vadd.f32 %v4682_v40, %v403_v51 }
 0x24b   :  { %v439_v48 = vpop.f32.mrf.mxu0 }
 0x24c   :  { %v440_v49 = vadd.f32 %v4683_v41, %v439_v48  ;;  %v479_v57 = vpack.c.bf16 %v404_v56, %v404_v56 }
 0x24e   :  { %v481_v50 = vpack.c.bf16 %v440_v49, %v440_v49 }
 0x250   :  { %v505_v52 = vsel %vm252_vm8, %v481_v50, 0 }
 0x251   :  { %514 = vmatpush.bf16.xpose.msra.mxu3 %v505_v52 }
 0x258   :  { %4333 = vmatmul.msk.bf16.vlgmr.msra.gmra.mxu3 %vm252_vm8, %v479_v57 }
 0x259   :  { %631 = vmatpush.bf16.msrb.mxu3 %v4627_v21 }
 0x2aa   :  { %v304_v58 = vpop.xlane.xlu0 %303 }
 0x2ab   :  { %v308_v59 = vsub.f32 %v299_v34, %v304_v58 }
 0x2ac   :  { %v307_v60 = vpop.xlane.xlu2 %306 }
 0x2ad   :  { %v310_v61 = vmul.f32 1.442695, %v308_v59  ;;  %v309_v62 = vsub.f32 %v300_v36, %v307_v60  ;;  %v4634_v59 = vld [vmem:[%s6227_s1 + $0x8] sm:$0xff] }
 0x2af   :  { %4714 = vpow2.f32 %v310_v61  ;;  %v312_v63 = vmul.f32 1.442695, %v309_v62 }
 0x2b1   :  { %4716 = vpow2.f32 %v312_v63 }
 0x2b5   :  { %v4715_v0 = vpop.eup %4714 }
 0x2b6   :  { %v314_v1 = vsel %vm301_vm10, %v4715_v0, 0.0 }
 0x2b7   :  { %v4717_v2 = vpop.eup %4716  ;;  %315 = vadd.xlane.f32.xlu1 %v314_v1 }
 0x2b8   :  { %v317_v3 = vsel %vm301_vm10, %v4717_v2, 0.0 }
 0x2b9   :  { %318 = vadd.xlane.f32.xlu2 %v317_v3 }
 0x2db   :  { %v516_v4 = vpop.f32.mrf.mxu3 }
 0x2dc   :  { %v521_v5 = vmul.f32 0.25, %v516_v4 }
 0x2de   :  { %v523_v6 = vadd.f32 %v521_v5, %v5338_v31 }
 0x2e0   :  { %v527_v7 = vsel %vm301_vm10, %v523_v6, -inf }
 0x2e1   :  { %528 = vmax.xlane.f32.xlu0 %v527_v7 }
 0x2e3   :  { %v518_v8 = vpop.f32.mrf.mxu3 }
 0x32a   :  { %v316_v12 = vpop.xlane.xlu1 %315 }
 0x32b   :  { %4718 = vrcp.f32 %v316_v12 }
 0x32c   :  { %v319_v13 = vpop.xlane.xlu2 %318 }
 0x32d   :  { %4720 = vrcp.f32 %v319_v13 }
 0x331   :  { %v4719_v14 = vpop.eup %4718 }
 0x332   :  { %v322_v15 = vmul.f32 %v4719_v14, %v4715_v0 }
 0x333   :  { %v4721_v16 = vpop.eup %4720 }
 0x334   :  { %v324_v17 = vpack.c.bf16 %v322_v15, %v322_v15  ;;  %v323_v18 = vmul.f32 %v4721_v16, %v4717_v2 }
 0x336   :  { %4288 = vmatmul.msk.bf16.vlgmr.msrb.gmra.mxu1 %vm301_vm10, %v324_v17  ;;  %v325_v19 = vpack.c.bf16 %v323_v18, %v323_v18 }
 0x338   :  { %4289 = vmatmul.msk.bf16.vlgmr.msrb.gmra.mxu2 %vm301_vm10, %v325_v19 }
 0x339   :  { %608 = vmatpush.bf16.msrb.mxu2 %v4634_v59 }
 0x346   :  { %4331 = vmatmul.msk.bf16.vlgmr.msra.gmra.mxu1 %vm6215_vm0, %v5291_v55 }
 0x348   :  { %4332 = vmatmul.msk.bf16.vlgmr.msra.gmra.mxu2 %vm252_vm8, %v478_v20 }
 0x354   :  { %v529_v55 = vpop.xlane.xlu0 %528 }
 0x355   :  { %v531_v33 = vsub.f32 %v523_v6, %v529_v55  ;;  %v4685_v6 = vld [vmem:[%s6193_s6] ss:$0 sm:$0xff] }
 0x357   :  { %v534_v35 = vmul.f32 1.442695, %v531_v33 }
 0x359   :  { %4722 = vpow2.f32 %v534_v35 }
 0x35f   :  { %v4723_v45 = vpop.eup %4722 }
 0x360   :  { %v539_v46 = vsel %vm301_vm10, %v4723_v45, 0.0 }
 0x3b3   :  { %v344_v22 = vpop.f32.mrf.mxu1 }
 0x3bb   :  { %v346_v23 = vpop.f32.mrf.mxu1  ;;  %v363_v24 = vpop.f32.mrf.mxu2 }
 0x3bc   :  { %v367_v25 = vpack.c.bf16 %v363_v24, %v344_v22 }
 0x3be   :  { %4347 = vmatmul.msk.bf16.vlgmr.msrb.gmra.mxu3 %vm252_vm8, %v367_v25 }
 0x3c3   :  { %v365_v27 = vpop.f32.mrf.mxu2  ;;  %v473_v29 = vpop.f32.mrf.mxu1 }
 0x3c4   :  { %v474_v30 = vadd.f32 %v4684_v26, %v473_v29 }
 0x3c6   :  { %v548_v32 = vpack.c.bf16 %v474_v30, %v474_v30  ;;  %v4635_v30 = vld [vmem:[%s6194_s7] sm:$0xff] }
 0x3c8   :  { %v554_v34 = vsel %vm331_vm9, %v548_v32, 0 }
 0x3c9   :  { %563 = vmatpush.bf16.msrb.mxu0 %v554_v34 }
 0x3cb   :  { %v475_v36 = vpop.f32.mrf.mxu1  ;;  %v497_v37 = vpop.f32.mrf.mxu2 }
 0x3cc   :  { %v476_v38 = vadd.f32 %v4684_v26, %v475_v36  ;;  %v520_v39 = vmul.f32 0.25, %v497_v37 }
 0x3ce   :  { %v549_v40 = vpack.c.bf16 %v476_v38, %v476_v38  ;;  %v522_v41 = vadd.f32 %v520_v39, %v5336_v28 }
 0x3d0   :  { %v573_v42 = vsel %vm331_vm9, %v549_v40, 0  ;;  %v524_v43 = vsel %vm301_vm10, %v522_v41, -inf }
 0x3d1   :  { %582 = vmatpush.bf16.msrb.mxu1 %v573_v42  ;;  %525 = vmax.xlane.f32.xlu2 %v524_v43 }
 0x3d3   :  { %v499_v44 = vpop.f32.mrf.mxu2 }
 0x3d9   :  { %540 = vadd.xlane.f32.xlu2 %v539_v46 }
 0x441   :  { %v633_v5 = vpop.f32.mrf.mxu3 }
 0x444   :  { %v526_v47 = vpop.xlane.xlu2 %525 }
 0x445   :  { %v530_v48 = vsub.f32 %v522_v41, %v526_v47 }
 0x447   :  { %v532_v49 = vmul.f32 1.442695, %v530_v48  ;;  %v4686_v48 = vld [vmem:[%s6198_s11] ss:$0 sm:$0xff] }
 0x449   :  { %4724 = vpow2.f32 %v532_v49  ;;  %v635_v13 = vpop.f32.mrf.mxu3 }
 0x44c   :  { %v541_v50 = vpop.xlane.xlu2 %540 }
 0x44d   :  { %4726 = vrcp.f32 %v541_v50 }
 0x44f   :  { %v4725_v51 = vpop.eup %4724 }
 0x450   :  { %v536_v52 = vsel %vm301_vm10, %v4725_v51, 0.0 }
 0x451   :  { %537 = vadd.xlane.f32.xlu1 %v536_v52 }
 0x453   :  { %v4727_v56 = vpop.eup %4726 }
 0x454   :  { %v545_v57 = vmul.f32 %v4727_v56, %v4723_v45 }
 0x456   :  { %v547_v58 = vpack.c.bf16 %v545_v57, %v545_v57  ;;  %v4687_v57 = vld [vmem:[%s6198_s11 + $0x1] ss:$0 sm:$0xff] }
 0x458   :  { %4335 = vmatmul.msk.bf16.vlgmr.msrb.gmra.mxu1 %vm301_vm10, %v547_v58 }
 0x4c4   :  { %v538_v60 = vpop.xlane.xlu1 %537 }
 0x4c5   :  { %4728 = vrcp.f32 %v538_v60 }
 0x4cb   :  { %v4729_v61 = vpop.eup %4728 }
 0x4cc   :  { %v544_v62 = vmul.f32 %v4729_v61, %v4725_v51 }
 0x4ce   :  { %v546_v63 = vpack.c.bf16 %v544_v62, %v544_v62  ;;  %v4640_v62 = vld [vmem:[%s6196_s9 + $0x18] sm:$0xff] }
 0x4cf   :  { %799 = vmatpush.bf16.msra.mxu1 %v4640_v62 }
 0x4d0   :  { %4334 = vmatmul.msk.bf16.vlgmr.msrb.gmra.mxu0 %vm301_vm10, %v546_v63  ;;  %v4639_v63 = vld [vmem:[%s6196_s9 + $0x10] sm:$0xff] }
 0x4d3   :  { %800 = vmatpush.bf16.msra.mxu1 %v4639_v63 }
 0x4d5   :  { %v584_v0 = vpop.f32.mrf.mxu1 }
 0x4dd   :  { %v586_v1 = vpop.f32.mrf.mxu1 }
 0x4de   :  { %v4688_v1 = vld [vmem:[%s6195_s8] ss:$0 sm:$0xff] }
 0x54d   :  { %v565_v2 = vpop.f32.mrf.mxu0 }
 0x54e   :  { %v588_v3 = vpack.c.bf16 %v584_v0, %v565_v2  ;;  %v4638_v0 = vld [vmem:[%s6196_s9 + $0x8] sm:$0xff] }
 0x54f   :  { %801 = vmatpush.bf16.msra.mxu1 %v4638_v0 }
 0x550   :  { %4342 = vmatmul.msk.bf16.vlgmr.msrb.gmra.mxu2 %vm252_vm8, %v588_v3  ;;  %v4637_v3 = vld [vmem:[%s6196_s9] sm:$0xff] }
 0x553   :  { %802 = vmatpush.bf16.msra.mxu1 %v4637_v3 }
 0x555   :  { %v567_v4 = vpop.f32.mrf.mxu0 }
 0x5d3   :  { %v610_v7 = vpop.f32.mrf.mxu2 }
 0x5d4   :  { %v634_v8 = vadd.f32 %v633_v5, %v610_v7 }
 0x5d6   :  { %v642_v9 = vadd.f32 %v4685_v6, %v634_v8 }
 0x5d8   :  { %v644_v11 = vadd.f32 %v642_v9, %v5285_v53 }
 0x5da   :  { %v648_v12 = vsel %vm6215_vm0, %v644_v11, 0.0 }
 0x5db   :  { %649 = vadd.xlane.f32.xlu0 %v648_v12  ;;  %v612_v14 = vpop.f32.mrf.mxu2 }
 0x5dc   :  { %v636_v15 = vadd.f32 %v635_v13, %v612_v14 }
 0x5de   :  { %v643_v16 = vadd.f32 %v4685_v6, %v636_v15 }
 0x5e0   :  { %v645_v17 = vadd.f32 %v643_v16, %v5287_v54  ;;  %v4636_v54 = vld [vmem:[%s6194_s7 + $0x8] sm:$0xff] }
 0x5e1   :  { %728 = vmatpush.bf16.msra.mxu0 %v4636_v54 }
 0x5e2   :  { %v651_v18 = vsel %vm6215_vm0, %v645_v17, 0.0 }
 0x5e3   :  { %652 = vadd.xlane.f32.xlu1 %v651_v18 }
 0x5e5   :  { %729 = vmatpush.bf16.msra.mxu0 %v4635_v30 }
 0x64e   :  { %v650_v19 = vpop.xlane.xlu0 %649 }
 0x64f   :  { %v654_v20 = vmul.f32 %v650_v19, %v5253_v10 }
 0x651   :  { %v656_v21 = vsub.f32 %v644_v11, %v654_v20 }
 0x653   :  { %v658_v22 = vmul.f32 %v656_v21, %v656_v21 }
 0x655   :  { %v660_v23 = vsel %vm6215_vm0, %v658_v22, 0.0 }
 0x656   :  { %661 = vadd.xlane.f32.xlu2 %v660_v23  ;;  %v653_v53 = vpop.xlane.xlu1 %652 }
 0x657   :  { %v655_v24 = vmul.f32 %v653_v53, %v5253_v10 }
 0x659   :  { %v657_v25 = vsub.f32 %v645_v17, %v655_v24 }
 0x65b   :  { %v659_v26 = vmul.f32 %v657_v25, %v657_v25 }
 0x65d   :  { %v663_v27 = vsel %vm6215_vm0, %v659_v26, 0.0  ;;  %v4689_v26 = vld [vmem:[%s6197_s10] ss:$0 sm:$0xff] }
 0x65e   :  { %664 = vadd.xlane.f32.xlu0 %v663_v27 }
 0x6c9   :  { %v662_v29 = vpop.xlane.xlu2 %661 }
 0x6ca   :  { %v666_v55 = vmul.f32 %v662_v29, %v5253_v10 }
 0x6cc   :  { %v668_v32 = vadd.f32 1e-12, %v666_v55 }
 0x6ce   :  { %4730 = vrsqrt.f32 %v668_v32  ;;  %vm676_vm12 = vweird.f32 %v668_v32 }
 0x6d1   :  { %v665_v33 = vpop.xlane.xlu0 %664 }
 0x6d2   :  { %v667_v34 = vmul.f32 %v665_v33, %v5253_v10 }
 0x6d4   :  { %v4731_v35 = vpop.eup %4730  ;;  %v669_v36 = vadd.f32 1e-12, %v667_v34 }
 0x6d5   :  { %v671_v37 = vmul.f32 %v4731_v35, %v668_v32  ;;  %vm677_vm11 = vweird.f32 %v4731_v35 }
 0x6d6   :  { %4732 = vrsqrt.f32 %v669_v36  ;;  %vm678_vm13 = vmor %vm676_vm12, %vm677_vm11  ;;  %vm686_vm15 = vweird.f32 %v669_v36 }
 0x6d7   :  { %v672_v38 = vmul.f32 %v4731_v35, %v671_v37 }
 0x6d9   :  { %v673_v39 = vmul.f32 0.5, %v672_v38 }
 0x6db   :  { %v674_v40 = vsub.f32 1.5, %v673_v39 }
 0x6dc   :  { %v4733_v41 = vpop.eup %4732 }
 0x6dd   :  { %v675_v42 = vmul.f32 %v4731_v35, %v674_v40  ;;  %v681_v43 = vmul.f32 %v4733_v41, %v669_v36  ;;  %vm687_vm14 = vweird.f32 %v4733_v41 }
 0x6de   :  { %vm688_vm1 = vmor %vm686_vm15, %vm687_vm14 }
 0x6df   :  { %v682_v44 = vmul.f32 %v4733_v41, %v681_v43  ;;  %v679_v45 = vsel %vm678_vm13, %v4731_v35, %v675_v42 }
 0x6e0   :  { %v690_v49 = vmul.f32 %v679_v45, %v656_v21  ;;  %v4642_v45 = vld [vmem:[%s6223_s0 + $0x68] sm:$0xff] }
 0x6e1   :  { %v683_v46 = vmul.f32 0.5, %v682_v44  ;;  %895 = vmatpush.bf16.msra.mxu2 %v4642_v45 }
 0x6e2   :  { %v693_v52 = vmul.f32 %v4686_v48, %v690_v49 }
 0x6e3   :  { %v684_v47 = vsub.f32 1.5, %v683_v46  ;;  %v4644_v46 = vld [vmem:[%s6223_s0 + $0x78] sm:$0xff] }
 0x6e4   :  { %v696_v59 = vadd.f32 %v4687_v57, %v693_v52  ;;  %931 = vmatpush.bf16.msra.mxu3 %v4644_v46  ;;  %v4643_v52 = vld [vmem:[%s6223_s0 + $0x70] sm:$0xff]  ;;  %v4650_v46 = vld [vmem:[%s6223_s0 + $0xa0] sm:$0xff] }
 0x6e5   :  { %v685_v50 = vmul.f32 %v4733_v41, %v684_v47  ;;  %v4646_v47 = vld [vmem:[%s6223_s0 + $0x88] sm:$0xff] }
 0x6e6   :  { %967 = vmatpush.bf16.msrb.mxu0 %v4646_v47 }
 0x6e7   :  { %v689_v51 = vsel %vm688_vm1, %v4733_v41, %v685_v50 }
 0x6e8   :  { %v691_v56 = vmul.f32 %v689_v51, %v657_v25  ;;  %v4641_v51 = vld [vmem:[%s6223_s0 + $0x60] sm:$0xff]  ;;  %932 = vmatpush.bf16.msra.mxu3 %v4643_v52 }
 0x6e9   :  { %896 = vmatpush.bf16.msra.mxu2 %v4641_v51 }
 0x6ea   :  { %v694_v58 = vmul.f32 %v4686_v48, %v691_v56  ;;  %v4645_v56 = vld [vmem:[%s6223_s0 + $0x80] sm:$0xff] }
 0x6eb   :  { %968 = vmatpush.bf16.msrb.mxu0 %v4645_v56  ;;  %v4695_v56 = vld [vmem:[%s6225_s22 + $0x9] ss:$0 sm:$0xff] }
 0x6ec   :  { %v697_v60 = vadd.f32 %v4687_v57, %v694_v58 }
 0x6ee   :  { %v698_v61 = vpack.c.bf16 %v697_v60, %v696_v59 }
 0x6f0   :  { %4356 = vmatmul.msk.bf16.vlgmr.msra.gmra.mxu0 %vm6215_vm0, %v698_v61 }
 0x76d   :  { %v731_v2 = vpop.f32.mrf.mxu0 }
 0x76e   :  { %v732_v4 = vadd.f32 %v4688_v1, %v731_v2 }
 0x770   :  { %v736_v5 = vmul.f32 %v732_v4, %v732_v4 }
 0x772   :  { %v738_v6 = vmul.f32 %v736_v5, %v732_v4 }
 0x774   :  { %v740_v7 = vmul.f32 0.044715, %v738_v6 }
 0x775   :  { %v733_v8 = vpop.f32.mrf.mxu0 }
 0x776   :  { %v742_v9 = vadd.f32 %v740_v7, %v732_v4  ;;  %v734_v11 = vadd.f32 %v4688_v1, %v733_v8  ;;  %v4690_v8 = vld [vmem:[%s6198_s11 + $0x2] ss:$0 sm:$0xff] }
 0x778   :  { %v744_v12 = vmul.f32 0.7978846, %v742_v9  ;;  %v737_v13 = vmul.f32 %v734_v11, %v734_v11 }
 0x77a   :  { %v739_v14 = vmul.f32 %v737_v13, %v734_v11  ;;  %4734 = vtanh.f32 %v744_v12  ;;  %v4691_v13 = vld [vmem:[%s6198_s11 + $0x3] ss:$0 sm:$0xff] }
 0x77c   :  { %v741_v15 = vmul.f32 0.044715, %v739_v14 }
 0x77e   :  { %v743_v16 = vadd.f32 %v741_v15, %v734_v11 }
 0x780   :  { %v745_v17 = vmul.f32 0.7978846, %v743_v16  ;;  %v4735_v18 = vpop.eup %4734 }
 0x781   :  { %v748_v19 = vadd.f32 1.0, %v4735_v18 }
 0x782   :  { %4736 = vtanh.f32 %v745_v17 }
 0x783   :  { %v750_v21 = vmul.f32 0.5, %v748_v19 }
 0x785   :  { %v752_v53 = vmul.f32 %v750_v21, %v732_v4 }
 0x788   :  { %v4737_v20 = vpop.eup %4736 }
 0x789   :  { %v749_v22 = vadd.f32 1.0, %v4737_v20  ;;  %v4692_v20 = vld [vmem:[%s6225_s22 + $0x8] ss:$0 sm:$0xff] }
 0x78b   :  { %v751_v23 = vmul.f32 0.5, %v749_v22 }
 0x78d   :  { %v753_v24 = vmul.f32 %v751_v23, %v734_v11  ;;  %v4694_v23 = vld [vmem:[%s6225_s22 + $0x7] ss:$0 sm:$0xff] }
 0x78f   :  { %v754_v25 = vpack.c.bf16 %v753_v24, %v752_v53 }
 0x791   :  { %4373 = vmatmul.msk.bf16.vlgmr.msra.gmra.mxu1 %vm791_vm2, %v754_v25 }
 0x80e   :  { %v804_v27 = vpop.f32.mrf.mxu1 }
 0x80f   :  { %v805_v54 = vadd.f32 %v4689_v26, %v804_v27 }
 0x811   :  { %v809_v29 = vadd.f32 %v805_v54, %v696_v59  ;;  %v4693_v54 = vld [vmem:[%s6225_s22 + $0x6] ss:$0 sm:$0xff] }
 0x813   :  { %v813_v55 = vsel %vm6215_vm0, %v809_v29, 0.0 }
 0x814   :  { %814 = vadd.xlane.f32.xlu1 %v813_v55 }
 0x816   :  { %v806_v30 = vpop.f32.mrf.mxu1 }
 0x817   :  { %v807_v32 = vadd.f32 %v4689_v26, %v806_v30  ;;  %v4649_v30 = vld [vmem:[%s6223_s0 + $0x98] sm:$0xff] }
 0x819   :  { %v810_v33 = vadd.f32 %v807_v32, %v697_v60 }
 0x81b   :  { %v816_v34 = vsel %vm6215_vm0, %v810_v33, 0.0 }
 0x81c   :  { %817 = vadd.xlane.f32.xlu2 %v816_v34 }
 0x887   :  { %v815_v35 = vpop.xlane.xlu1 %814 }
 0x888   :  { %v819_v36 = vmul.f32 %v815_v35, %v5253_v10 }
 0x88a   :  { %v821_v37 = vsub.f32 %v809_v29, %v819_v36  ;;  %v4648_v36 = vld [vmem:[%s6223_s0 + $0x90] sm:$0xff] }
 0x88c   :  { %v823_v38 = vmul.f32 %v821_v37, %v821_v37 }
 0x88e   :  { %v825_v39 = vsel %vm6215_vm0, %v823_v38, 0.0 }
 0x88f   :  { %v818_v40 = vpop.xlane.xlu2 %817  ;;  %826 = vadd.xlane.f32.xlu0 %v825_v39 }
 0x890   :  { %v820_v41 = vmul.f32 %v818_v40, %v5253_v10 }
 0x892   :  { %v822_v42 = vsub.f32 %v810_v33, %v820_v41 }
 0x894   :  { %v824_v43 = vmul.f32 %v822_v42, %v822_v42 }
 0x896   :  { %v828_v44 = vsel %vm6215_vm0, %v824_v43, 0.0 }
 0x897   :  { %829 = vadd.xlane.f32.xlu1 %v828_v44 }
 0x902   :  { %v827_v48 = vpop.xlane.xlu0 %826 }
 0x903   :  { %v831_v49 = vmul.f32 %v827_v48, %v5253_v10 }
 0x905   :  { %v833_v50 = vadd.f32 1e-12, %v831_v49 }
 0x907   :  { %4738 = vrsqrt.f32 %v833_v50  ;;  %vm841_vm4 = vweird.f32 %v833_v50 }
 0x90a   :  { %v830_v57 = vpop.xlane.xlu1 %829 }
 0x90b   :  { %v832_v58 = vmul.f32 %v830_v57, %v5253_v10 }
 0x90d   :  { %v4739_v59 = vpop.eup %4738  ;;  %v834_v60 = vadd.f32 1e-12, %v832_v58 }
 0x90e   :  { %v836_v61 = vmul.f32 %v4739_v59, %v833_v50  ;;  %vm842_vm3 = vweird.f32 %v4739_v59 }
 0x90f   :  { %4740 = vrsqrt.f32 %v834_v60  ;;  %vm843_vm5 = vmor %vm841_vm4, %vm842_vm3  ;;  %vm851_vm7 = vweird.f32 %v834_v60 }
 0x910   :  { %v837_v62 = vmul.f32 %v4739_v59, %v836_v61 }
 0x912   :  { %v838_v63 = vmul.f32 0.5, %v837_v62 }
 0x914   :  { %v839_v0 = vsub.f32 1.5, %v838_v63 }
 0x915   :  { %v4741_v1 = vpop.eup %4740 }
 0x916   :  { %v840_v2 = vmul.f32 %v4739_v59, %v839_v0  ;;  %v846_v3 = vmul.f32 %v4741_v1, %v834_v60  ;;  %vm852_vm6 = vweird.f32 %v4741_v1  ;;  %v4696_v0 = vld [vmem:[%s6225_s22 + $0xa] ss:$0 sm:$0xff] }
 0x917   :  { %vm853_vm11 = vmor %vm851_vm7, %vm852_vm6 }
 0x918   :  { %v847_v4 = vmul.f32 %v4741_v1, %v846_v3  ;;  %v844_v5 = vsel %vm843_vm5, %v4739_v59, %v840_v2 }
 0x919   :  { %v855_v9 = vmul.f32 %v844_v5, %v821_v37 }
 0x91a   :  { %v848_v6 = vmul.f32 0.5, %v847_v4 }
 0x91b   :  { %v858_v14 = vmul.f32 %v4690_v8, %v855_v9 }
 0x91c   :  { %v849_v7 = vsub.f32 1.5, %v848_v6 }
 0x91d   :  { %v5464_v17 = vadd.f32 %v4691_v13, %v858_v14 }
 0x91e   :  { %v850_v11 = vmul.f32 %v4741_v1, %v849_v7 }
 0x920   :  { %v854_v12 = vsel %vm853_vm11, %v4741_v1, %v850_v11 }
 0x921   :  { %v856_v15 = vmul.f32 %v854_v12, %v822_v42  ;;  %v4651_v42 = vld [vmem:[%s6223_s0 + $0xa8] sm:$0xff] }
 0x923   :  { %v859_v16 = vmul.f32 %v4690_v8, %v856_v15 }
 0x925   :  { %v5466_v18 = vadd.f32 %v4691_v13, %v859_v16 }
 0x927   :  { %v5470_v19 = vpack.c.bf16 %v5466_v18, %v5464_v17 }
 0x929   :  { %4387 = vmatmul.msk.bf16.vlgmr.msra.gmra.mxu2 %vm6215_vm0, %v5470_v19  ;;  %4401 = vmatmul.msk.bf16.vlgmr.msra.gmra.mxu3 %vm6215_vm0, %v5470_v19 }
 0x92a   :  { %4415 = vmatmul.msk.bf16.vlgmr.msrb.gmra.mxu0 %vm6215_vm0, %v5470_v19 }
 0x9a7   :  { %v970_v21 = vpop.f32.mrf.mxu0 }
 0x9a8   :  { %v971_v22 = vadd.f32 %v4692_v20, %v970_v21 }
 0x9aa   :  { %v1045_v53 = vpack.c.bf16 %v971_v22, %v971_v22 }
 0x9ac   :  { %v1051_v24 = vsel %vm331_vm9, %v1045_v53, 0  ;;  %v934_v25 = vpop.f32.mrf.mxu3  ;;  %v898_v27 = vpop.f32.mrf.mxu2 }
 0x9ad   :  { %v935_v26 = vadd.f32 %v4694_v23, %v934_v25  ;;  %1060 = vmatpush.bf16.msrb.mxu3 %v1051_v24  ;;  %v899_v35 = vadd.f32 %v4693_v54, %v898_v27 }
 0x9af   :  { %v977_v29 = vpack.c.bf16 %v935_v26, %v935_v26  ;;  %v972_v55 = vpop.f32.mrf.mxu0  ;;  %v975_v40 = vpack.c.bf16 %v899_v35, %v899_v35 }
 0x9b0   :  { %v973_v32 = vadd.f32 %v4692_v20, %v972_v55  ;;  %v4653_v55 = vld [vmem:[%s6223_s0 + $0xb8] sm:$0xff] }
 0x9b1   :  { %v983_v33 = vsel %vm252_vm8, %v977_v29, 0  ;;  %1189 = vmatpush.bf16.msra.mxu3 %v4653_v55 }
 0x9b2   :  { %v1046_v34 = vpack.c.bf16 %v973_v32, %v973_v32  ;;  %992 = vmatpush.bf16.xpose.msrb.mxu1 %v983_v33 }
 0x9b4   :  { %v1070_v37 = vsel %vm331_vm9, %v1046_v34, 0  ;;  %v936_v38 = vpop.f32.mrf.mxu3  ;;  %v900_v43 = vpop.f32.mrf.mxu2 }
 0x9b5   :  { %v937_v39 = vadd.f32 %v4694_v23, %v936_v38  ;;  %1079 = vmatpush.bf16.msra.mxu0 %v1070_v37  ;;  %v901_v45 = vadd.f32 %v4693_v54, %v900_v43 }
 0x9b7   :  { %v978_v41 = vpack.c.bf16 %v937_v39, %v937_v39  ;;  %v976_v47 = vpack.c.bf16 %v901_v45, %v901_v45  ;;  %v4697_v45 = vld [vmem:[%s6225_s22 + $0xb] ss:$0 sm:$0xff]  ;;  %s5134_s22 = smov [#allocation2]  }
 0x9b9   :  { %v1002_v44 = vsel %vm252_vm8, %v978_v41, 0  ;;  %4416 = vmatmul.msk.bf16.vlgmr.msrb.gmra.mxu1 %vm252_vm8, %v975_v40  ;;  %v4647_v40 = vld [vmem:[%s6227_s1 + $0x10] sm:$0xff] }
 0x9ba   :  { %1117 = vmatpush.bf16.msra.mxu1 %v4649_v30  ;;  %1011 = vmatpush.bf16.xpose.msrb.mxu2 %v1002_v44  ;;  %v4652_v30 = vld [vmem:[%s6223_s0 + $0xb0] sm:$0xff] }
 0x9bb   :  { %1190 = vmatpush.bf16.msra.mxu3 %v4652_v30 }
 0x9be   :  { %1118 = vmatpush.bf16.msra.mxu1 %v4648_v36 }
 0x9c1   :  { %4417 = vmatmul.msk.bf16.vlgmr.msrb.gmra.mxu2 %vm252_vm8, %v976_v47 }
 0x9c2   :  { %1153 = vmatpush.bf16.msra.mxu2 %v4651_v42 }
 0x9c6   :  { %1154 = vmatpush.bf16.msra.mxu2 %v4650_v46 }
 0x9c9   :  { %4435 = vmatmul.msk.bf16.vlgmr.msra.gmra.mxu1 %vm6215_vm0, %v5470_v19 }
 0x9d1   :  { %4449 = vmatmul.msk.bf16.vlgmr.msra.gmra.mxu2 %vm6215_vm0, %v5470_v19 }
 0xa36   :  { %v994_v48 = vpop.f32.mrf.mxu1 }
 0xa37   :  { %v1017_v49 = vmul.f32 0.25, %v994_v48 }
 0xa39   :  { %v1019_v50 = vadd.f32 %v1017_v49, %v5336_v28 }
 0xa3b   :  { %v1021_v51 = vsel %vm301_vm10, %v1019_v50, -inf }
 0xa3c   :  { %1022 = vmax.xlane.f32.xlu1 %v1021_v51 }
 0xa3e   :  { %v996_v52 = vpop.f32.mrf.mxu1 }
 0xa44   :  { %v1013_v57 = vpop.f32.mrf.mxu2 }
 0xa45   :  { %v1018_v58 = vmul.f32 0.25, %v1013_v57 }
 0xa46   :  { %v1120_v59 = vpop.f32.mrf.mxu1 }
 0xa47   :  { %v1121_v60 = vadd.f32 %v4695_v56, %v1120_v59  ;;  %v1020_v61 = vadd.f32 %v1018_v58, %v5338_v31 }
 0xa49   :  { %v1024_v62 = vsel %vm301_vm10, %v1020_v61, -inf  ;;  %v1197_v39 = vpack.c.bf16 %v1121_v60, %v1121_v60 }
 0xa4a   :  { %1025 = vmax.xlane.f32.xlu2 %v1024_v62 }
 0xa4c   :  { %v1015_v63 = vpop.f32.mrf.mxu2 }
 0xa4e   :  { %v1122_v8 = vpop.f32.mrf.mxu1 }
 0xa4f   :  { %v1123_v11 = vadd.f32 %v4695_v56, %v1122_v8 }
 0xa51   :  { %v1198_v12 = vpack.c.bf16 %v1123_v11, %v1123_v11 }
 0xa54   :  { %v1156_v1 = vpop.f32.mrf.mxu2 }
 0xa55   :  { %v1157_v2 = vadd.f32 %v4696_v0, %v1156_v1 }
 0xa57   :  { %v1199_v3 = vpack.c.bf16 %v1157_v2, %v1157_v2 }
 0xa59   :  { %v1205_v4 = vsel %vm252_vm8, %v1199_v3, 0 }
 0xa5a   :  { %1214 = vmatpush.bf16.xpose.msrb.mxu0 %v1205_v4 }
 0xa5c   :  { %v1158_v5 = vpop.f32.mrf.mxu2 }
 0xa5d   :  { %v1159_v6 = vadd.f32 %v4696_v0, %v1158_v5 }
 0xa5f   :  { %v1200_v7 = vpack.c.bf16 %v1159_v6, %v1159_v6 }
 0xa61   :  { %v1224_v9 = vsel %vm252_vm8, %v1200_v7, 0 }
 0xa62   :  { %1233 = vmatpush.bf16.xpose.msrb.mxu1 %v1224_v9 }
 0xa69   :  { %4465 = vmatmul.msk.bf16.vlgmr.msrb.gmra.mxu1 %vm252_vm8, %v1198_v12  ;;  %v4654_v12 = vld [vmem:[%s6227_s1 + $0x18] sm:$0xff] }
 0xa6a   :  { %1350 = vmatpush.bf16.msra.mxu1 %v4647_v40 }
 0xaaf   :  { %v1023_v13 = vpop.xlane.xlu1 %1022 }
 0xab0   :  { %v1027_v14 = vsub.f32 %v1019_v50, %v1023_v13 }
 0xab2   :  { %v1029_v15 = vmul.f32 1.442695, %v1027_v14 }
 0xab4   :  { %4742 = vpow2.f32 %v1029_v15 }
 0xaba   :  { %v4743_v16 = vpop.eup %4742 }
 0xabb   :  { %v1033_v20 = vsel %vm301_vm10, %v4743_v16, 0.0 }
 0xabc   :  { %1034 = vadd.xlane.f32.xlu2 %v1033_v20 }
 0xabd   :  { %v1026_v21 = vpop.xlane.xlu2 %1025 }
 0xabe   :  { %v1028_v22 = vsub.f32 %v1020_v61, %v1026_v21 }
 0xac0   :  { %v1031_v23 = vmul.f32 1.442695, %v1028_v22 }
 0xac2   :  { %4744 = vpow2.f32 %v1031_v23 }
 0xac8   :  { %v4745_v53 = vpop.eup %4744 }
 0xac9   :  { %v1036_v24 = vsel %vm301_vm10, %v4745_v53, 0.0 }
 0xaca   :  { %1037 = vadd.xlane.f32.xlu0 %v1036_v24 }
 0xae6   :  { %v1235_v25 = vpop.f32.mrf.mxu1 }
 0xae7   :  { %v1240_v26 = vmul.f32 0.25, %v1235_v25  ;;  %v4698_v25 = vld [vmem:[%s6193_s6 + $0x1] ss:$0 sm:$0xff] }
 0xae9   :  { %v1242_v27 = vadd.f32 %v1240_v26, %v5338_v31 }
 0xaeb   :  { %v1246_v54 = vsel %vm301_vm10, %v1242_v27, -inf }
 0xaec   :  { %1247 = vmax.xlane.f32.xlu1 %v1246_v54 }
 0xaee   :  { %v1237_v29 = vpop.f32.mrf.mxu1 }
 0xb2f   :  { %v1035_v32 = vpop.xlane.xlu2 %1034 }
 0xb30   :  { %4746 = vrcp.f32 %v1035_v32 }
 0xb36   :  { %v4747_v33 = vpop.eup %4746 }
 0xb37   :  { %v1041_v34 = vmul.f32 %v4747_v33, %v4743_v16 }
 0xb39   :  { %v1043_v35 = vpack.c.bf16 %v1041_v34, %v1041_v34 }
 0xb3b   :  { %4418 = vmatmul.msk.bf16.vlgmr.msrb.gmra.mxu3 %vm301_vm10, %v1043_v35 }
 0xb3d   :  { %v1038_v31 = vpop.xlane.xlu0 %1037 }
 0xb3e   :  { %4748 = vrcp.f32 %v1038_v31 }
 0xb44   :  { %v4749_v36 = vpop.eup %4748 }
 0xb45   :  { %v1042_v37 = vmul.f32 %v4749_v36, %v4745_v53 }
 0xb47   :  { %v1044_v38 = vpack.c.bf16 %v1042_v37, %v1042_v37 }
 0xb49   :  { %4419 = vmatmul.msk.bf16.vlgmr.msra.gmra.mxu0 %vm301_vm10, %v1044_v38 }
 0xb4a   :  { %1327 = vmatpush.bf16.msra.mxu0 %v4654_v12 }
 0xb4b   :  { %4463 = vmatmul.msk.bf16.vlgmr.msra.gmra.mxu3 %vm6215_vm0, %v5470_v19 }
 0xb59   :  { %4464 = vmatmul.msk.bf16.vlgmr.msrb.gmra.mxu0 %vm252_vm8, %v1197_v39 }
 0xb5f   :  { %v1248_v47 = vpop.xlane.xlu1 %1247 }
 0xb60   :  { %v1250_v50 = vsub.f32 %v1242_v27, %v1248_v47 }
 0xb62   :  { %v1253_v52 = vmul.f32 1.442695, %v1250_v50 }
 0xb64   :  { %4750 = vpow2.f32 %v1253_v52 }
 0xb6a   :  { %v4751_v1 = vpop.eup %4750 }
 0xb6b   :  { %v1258_v2 = vsel %vm301_vm10, %v4751_v1, 0.0 }
 0xbbe   :  { %v1062_v41 = vpop.f32.mrf.mxu3 }
 0xbc6   :  { %v1064_v42 = vpop.f32.mrf.mxu3  ;;  %v1081_v43 = vpop.f32.mrf.mxu0 }
 0xbc7   :  { %v1085_v44 = vpack.c.bf16 %v1081_v43, %v1062_v41 }
 0xbc9   :  { %4479 = vmatmul.msk.bf16.vlgmr.msra.gmra.mxu1 %vm252_vm8, %v1085_v44 }
 0xbce   :  { %v1083_v46 = vpop.f32.mrf.mxu0  ;;  %v1192_v19 = vpop.f32.mrf.mxu3 }
 0xbcf   :  { %v1193_v48 = vadd.f32 %v4697_v45, %v1192_v19  ;;  %v4655_v19 = vld [vmem:[%s6194_s7 + $0x10] sm:$0xff] }
 0xbd1   :  { %v1267_v49 = vpack.c.bf16 %v1193_v48, %v1193_v48 }
 0xbd3   :  { %v1273_v51 = vsel %vm331_vm9, %v1267_v49, 0 }
 0xbd4   :  { %1282 = vmatpush.bf16.msrb.mxu2 %v1273_v51 }
 0xbd6   :  { %v1194_v56 = vpop.f32.mrf.mxu3  ;;  %v1216_v57 = vpop.f32.mrf.mxu0 }
 0xbd7   :  { %v1195_v58 = vadd.f32 %v4697_v45, %v1194_v56  ;;  %v1239_v59 = vmul.f32 0.25, %v1216_v57 }
 0xbd9   :  { %v1268_v60 = vpack.c.bf16 %v1195_v58, %v1195_v58  ;;  %v1241_v61 = vadd.f32 %v1239_v59, %v5336_v28 }
 0xbdb   :  { %v1292_v62 = vsel %vm331_vm9, %v1268_v60, 0  ;;  %v1243_v63 = vsel %vm301_vm10, %v1241_v61, -inf }
 0xbdc   :  { %1301 = vmatpush.bf16.msrb.mxu3 %v1292_v62  ;;  %1244 = vmax.xlane.f32.xlu0 %v1243_v63 }
 0xbde   :  { %v1218_v0 = vpop.f32.mrf.mxu0 }
 0xbe4   :  { %1259 = vadd.xlane.f32.xlu0 %v1258_v2  ;;  %v4699_v2 = vld [vmem:[%s6198_s11 + $0x4] ss:$0 sm:$0xff] }
 0xc46   :  { %v1352_v24 = vpop.f32.mrf.mxu1 }
 0xc4e   :  { %v1354_v30 = vpop.f32.mrf.mxu1 }
 0xc4f   :  { %v1245_v3 = vpop.xlane.xlu0 %1244 }
 0xc50   :  { %v1249_v4 = vsub.f32 %v1241_v61, %v1245_v3 }
 0xc52   :  { %v1251_v5 = vmul.f32 1.442695, %v1249_v4 }
 0xc54   :  { %4752 = vpow2.f32 %v1251_v5 }
 0xc57   :  { %v1260_v6 = vpop.xlane.xlu0 %1259 }
 0xc58   :  { %4754 = vrcp.f32 %v1260_v6 }
 0xc5a   :  { %v4753_v7 = vpop.eup %4752 }
 0xc5b   :  { %v1255_v28 = vsel %vm301_vm10, %v4753_v7, 0.0 }
 0xc5c   :  { %1256 = vadd.xlane.f32.xlu2 %v1255_v28  ;;  %v4700_v28 = vld [vmem:[%s6198_s11 + $0x5] ss:$0 sm:$0xff] }
 0xc5e   :  { %v4755_v8 = vpop.eup %4754 }
 0xc5f   :  { %v1264_v9 = vmul.f32 %v4755_v8, %v4751_v1 }
 0xc61   :  { %v1266_v11 = vpack.c.bf16 %v1264_v9, %v1264_v9 }
 0xc63   :  { %4467 = vmatmul.msk.bf16.vlgmr.msrb.gmra.mxu3 %vm301_vm10, %v1266_v11 }
 0xccf   :  { %v1257_v13 = vpop.xlane.xlu2 %1256 }
 0xcd0   :  { %4756 = vrcp.f32 %v1257_v13  ;;  %v4660_v13 = vld [vmem:[%s6196_s9 + $0x38] sm:$0xff] }
 0xcd1   :  { %1523 = vmatpush.bf16.msra.mxu3 %v4660_v13 }
 0xcd6   :  { %v4757_v14 = vpop.eup %4756 }
 0xcd7   :  { %v1263_v15 = vmul.f32 %v4757_v14, %v4753_v7  ;;  %v4659_v14 = vld [vmem:[%s6196_s9 + $0x30] sm:$0xff] }
 0xcd8   :  { %1524 = vmatpush.bf16.msra.mxu3 %v4659_v14 }
 0xcd9   :  { %v1265_v16 = vpack.c.bf16 %v1263_v15, %v1263_v15  ;;  %v4658_v15 = vld [vmem:[%s6196_s9 + $0x28] sm:$0xff] }
 0xcdb   :  { %4466 = vmatmul.msk.bf16.vlgmr.msrb.gmra.mxu2 %vm301_vm10, %v1265_v16  ;;  %v4701_v16 = vld [vmem:[%s6195_s8 + $0x1] ss:$0 sm:$0xff] }
 0xcdc   :  { %1525 = vmatpush.bf16.msra.mxu3 %v4658_v15 }
 0xce6   :  { %v1303_v20 = vpop.f32.mrf.mxu3 }
 0xcee   :  { %v1305_v21 = vpop.f32.mrf.mxu3 }
 0xcef   :  { %v4657_v21 = vld [vmem:[%s6196_s9 + $0x20] sm:$0xff] }
 0xcf0   :  { %1526 = vmatpush.bf16.msra.mxu3 %v4657_v21 }
 0xd5e   :  { %v1284_v22 = vpop.f32.mrf.mxu2 }
 0xd5f   :  { %v1307_v23 = vpack.c.bf16 %v1303_v20, %v1284_v22 }
 0xd61   :  { %4474 = vmatmul.msk.bf16.vlgmr.msra.gmra.mxu0 %vm252_vm8, %v1307_v23 }
 0xd66   :  { %v1286_v53 = vpop.f32.mrf.mxu2 }
 0xdde   :  { %v1329_v26 = vpop.f32.mrf.mxu0 }
 0xddf   :  { %v1353_v27 = vadd.f32 %v1352_v24, %v1329_v26 }
 0xde1   :  { %v1362_v54 = vadd.f32 %v4698_v25, %v1353_v27 }
 0xde3   :  { %v1364_v29 = vadd.f32 %v1362_v54, %v5464_v17 }
 0xde5   :  { %v1369_v55 = vsel %vm6215_vm0, %v1364_v29, 0.0 }
 0xde6   :  { %1370 = vadd.xlane.f32.xlu1 %v1369_v55  ;;  %v1331_v32 = vpop.f32.mrf.mxu0 }
 0xde7   :  { %v1355_v33 = vadd.f32 %v1354_v30, %v1331_v32 }
 0xde9   :  { %v1363_v34 = vadd.f32 %v4698_v25, %v1355_v33 }
 0xdeb   :  { %v1365_v35 = vadd.f32 %v1363_v34, %v5466_v18  ;;  %v4656_v18 = vld [vmem:[%s6194_s7 + $0x18] sm:$0xff] }
 0xdec   :  { %1451 = vmatpush.bf16.msra.mxu2 %v4656_v18 }
 0xded   :  { %v1372_v31 = vsel %vm6215_vm0, %v1365_v35, 0.0 }
 0xdee   :  { %1373 = vadd.xlane.f32.xlu2 %v1372_v31 }
 0xdf0   :  { %1452 = vmatpush.bf16.msra.mxu2 %v4655_v19 }
 0xe59   :  { %v1371_v36 = vpop.xlane.xlu1 %1370 }
 0xe5a   :  { %v1375_v37 = vmul.f32 %v1371_v36, %v5253_v10 }
 0xe5c   :  { %v1377_v38 = vsub.f32 %v1364_v29, %v1375_v37 }
 0xe5e   :  { %v1379_v39 = vmul.f32 %v1377_v38, %v1377_v38 }
 0xe60   :  { %v1381_v40 = vsel %vm6215_vm0, %v1379_v39, 0.0 }
 0xe61   :  { %1382 = vadd.xlane.f32.xlu0 %v1381_v40  ;;  %v1374_v17 = vpop.xlane.xlu2 %1373 }
 0xe62   :  { %v1376_v41 = vmul.f32 %v1374_v17, %v5253_v10 }
 0xe64   :  { %v1378_v42 = vsub.f32 %v1365_v35, %v1376_v41  ;;  %v4702_v41 = vld [vmem:[%s6197_s10 + $0x1] ss:$0 sm:$0xff] }
 0xe66   :  { %v1380_v43 = vmul.f32 %v1378_v42, %v1378_v42 }
 0xe68   :  { %v1384_v44 = vsel %vm6215_vm0, %v1380_v43, 0.0 }
 0xe69   :  { %1385 = vadd.xlane.f32.xlu1 %v1384_v44 }
 0xed4   :  { %v1383_v45 = vpop.xlane.xlu0 %1382 }
 0xed5   :  { %v1387_v46 = vmul.f32 %v1383_v45, %v5253_v10 }
 0xed7   :  { %v1389_v47 = vadd.f32 1e-12, %v1387_v46 }
 0xed9   :  { %4758 = vrsqrt.f32 %v1389_v47  ;;  %vm1397_vm12 = vweird.f32 %v1389_v47 }
 0xedc   :  { %v1386_v48 = vpop.xlane.xlu1 %1385 }
 0xedd   :  { %v1388_v49 = vmul.f32 %v1386_v48, %v5253_v10  ;;  %v5606_v48 = vld [vmem:[%s6201_s14 + $0x8] sm:$0xff] }
 0xede   :  { %1671 = vmatpush.bf16.msrb.mxu2 %v5606_v48 }
 0xedf   :  { %v4759_v50 = vpop.eup %4758  ;;  %v1390_v51 = vadd.f32 1e-12, %v1388_v49  ;;  %v5127_v49 = vmov 0  }
 0xee0   :  { %v1392_v52 = vmul.f32 %v4759_v50, %v1389_v47  ;;  %vm1398_vm10 = vweird.f32 %v4759_v50 }
 0xee1   :  { %4760 = vrsqrt.f32 %v1390_v51  ;;  %vm1399_vm13 = vmor %vm1397_vm12, %vm1398_vm10  ;;  %vm1407_vm15 = vweird.f32 %v1390_v51 }
 0xee2   :  { %v1393_v56 = vmul.f32 %v4759_v50, %v1392_v52 }
 0xee4   :  { %v1394_v57 = vmul.f32 0.5, %v1393_v56 }
 0xee6   :  { %v1395_v58 = vsub.f32 1.5, %v1394_v57 }
 0xee7   :  { %v4761_v59 = vpop.eup %4760 }
 0xee8   :  { %v1396_v60 = vmul.f32 %v4759_v50, %v1395_v58  ;;  %v1402_v61 = vmul.f32 %v4761_v59, %v1390_v51  ;;  %vm1408_vm14 = vweird.f32 %v4761_v59 }
 0xee9   :  { %vm1409_vm1 = vmor %vm1407_vm15, %vm1408_vm14 }
 0xeea   :  { %v1403_v62 = vmul.f32 %v4761_v59, %v1402_v61  ;;  %v1400_v63 = vsel %vm1399_vm13, %v4759_v50, %v1396_v60 }
 0xeeb   :  { %v1411_v3 = vmul.f32 %v1400_v63, %v1377_v38  ;;  %v4662_v63 = vld [vmem:[%s6199_s12 + $0x8] sm:$0xff] }
 0xeec   :  { %v1404_v0 = vmul.f32 0.5, %v1403_v62  ;;  %1617 = vmatpush.bf16.msrb.mxu0 %v4662_v63 }
 0xeed   :  { %v1414_v6 = vmul.f32 %v4699_v2, %v1411_v3  ;;  %v5626_v3 = vld [vmem:[%s6201_s14] sm:$0xff] }
 0xeee   :  { %v1405_v1 = vsub.f32 1.5, %v1404_v0  ;;  %1646 = vmatpush.bf16.msrb.mxu1 %v5626_v3  ;;  %1858 = vmatpush.bf16.msrb.mxu3 %v5626_v3 }
 0xeef   :  { %v1417_v9 = vadd.f32 %v4700_v28, %v1414_v6 }
 0xef0   :  { %v1406_v4 = vmul.f32 %v4761_v59, %v1405_v1 }
 0xef1   :  { %1647 = vmatmul.bf16.vlgmr.msrb.gmra.mxu1 %v5127_v49 }
 0xef2   :  { %v1410_v5 = vsel %vm1409_vm1, %v4761_v59, %v1406_v4  ;;  %2090 = vmatpush.bf16.msra.mxu1 %v5626_v3 }
 0xef3   :  { %v1412_v7 = vmul.f32 %v1410_v5, %v1378_v42 }
 0xef5   :  { %v1415_v8 = vmul.f32 %v4699_v2, %v1412_v7  ;;  %v4661_v2 = vld [vmem:[%s6199_s12] sm:$0xff]  ;;  %s5128_s12 = smov 64  }
 0xef6   :  { %1618 = vmatpush.bf16.msrb.mxu0 %v4661_v2  ;;  %2558 = vmatpush.bf16.msrb.mxu1 %v5626_v3 }
 0xef7   :  { %v1418_v11 = vadd.f32 %v4700_v28, %v1415_v8 }
 0xef9   :  { %v1419_v12 = vpack.c.bf16 %v1418_v11, %v1417_v9 }
 0xefa   :  { %1892 = vmatpush.bf16.msra.mxu0 %v5606_v48 }
 0xefb   :  { %4496 = vmatmul.msk.bf16.vlgmr.msra.gmra.mxu2 %vm6215_vm0, %v1419_v12 }
 0xefc   :  { %2125 = vmatpush.bf16.msra.mxu2 %v5606_v48 }
 0xf0b   :  { %1672 = vmatmul.bf16.vlgmr.msrb.gmra.mxu2 %v5127_v49 }
 0xf0c   :  { %2593 = vmatpush.bf16.msrb.mxu2 %v5606_v48 }
 0xf7e   :  { %v1454_v20 = vpop.f32.mrf.mxu2 }
 0xf7f   :  { %v1455_v22 = vadd.f32 %v4701_v16, %v1454_v20 }
 0xf81   :  { %v1459_v23 = vmul.f32 %v1455_v22, %v1455_v22 }
 0xf83   :  { %v1461_v53 = vmul.f32 %v1459_v23, %v1455_v22 }
 0xf85   :  { %v1463_v24 = vmul.f32 0.044715, %v1461_v53 }
 0xf86   :  { %v1456_v25 = vpop.f32.mrf.mxu2 }
 0xf87   :  { %v1465_v26 = vadd.f32 %v1463_v24, %v1455_v22  ;;  %v1457_v27 = vadd.f32 %v4701_v16, %v1456_v25  ;;  %v4703_v25 = vld [vmem:[%s6198_s11 + $0x6] ss:$0 sm:$0xff] }
 0xf89   :  { %v1467_v54 = vmul.f32 0.7978846, %v1465_v26  ;;  %v1460_v29 = vmul.f32 %v1457_v27, %v1457_v27 }
 0xf8b   :  { %v1462_v55 = vmul.f32 %v1460_v29, %v1457_v27  ;;  %4762 = vtanh.f32 %v1467_v54 }
 0xf8d   :  { %v1464_v30 = vmul.f32 0.044715, %v1462_v55 }
 0xf8e   :  { %v1673_v5 = vpop.f32.mrf.mxu2 }
 0xf8f   :  { %v1466_v32 = vadd.f32 %v1464_v30, %v1457_v27  ;;  %v1678_v7 = vrot.slane %v1673_v5, 1  ;;  %v1679_v28 = vrot.slane %v1673_v5, 2  ;;  %v4704_v30 = vld [vmem:[%s6198_s11 + $0x7] ss:$0 sm:$0xff]  ;;  %s5129_s11 = smov 80  }
 0xf91   :  { %v1468_v33 = vmul.f32 0.7978846, %v1466_v32  ;;  %v4763_v34 = vpop.eup %4762 }
 0xf92   :  { %v1471_v35 = vadd.f32 1.0, %v4763_v34 }
 0xf93   :  { %4764 = vtanh.f32 %v1468_v33 }
 0xf94   :  { %v1473_v36 = vmul.f32 0.5, %v1471_v35 }
 0xf96   :  { %v1475_v39 = vmul.f32 %v1473_v36, %v1455_v22  ;;  %v1675_v14 = vpop.f32.mrf.mxu2 }
 0xf99   :  { %v4765_v31 = vpop.eup %4764 }
 0xf9a   :  { %v1472_v37 = vadd.f32 1.0, %v4765_v31  ;;  %v5646_v31 = vpop.f32.mrf.mxu1 }
 0xf9c   :  { %v1474_v38 = vmul.f32 0.5, %v1472_v37  ;;  %v4705_v37 = vld [vmem:[%s6200_s13] ss:$0 sm:$0xff]  ;;  %s5130_s13 = smov 16  }
 0xf9e   :  { %v1476_v40 = vmul.f32 %v1474_v38, %v1457_v27 }
 0xfa0   :  { %v1477_v17 = vpack.c.bf16 %v1476_v40, %v1475_v39 }
 0xfa2   :  { %4522 = vmatmul.msk.bf16.vlgmr.msra.gmra.mxu3 %vm791_vm2, %v1477_v17  ;;  %v1650_v36 = vpop.f32.mrf.mxu1 }
 0xfa3   :  { %2324 = vmatpush.bf16.msra.mxu3 %v5626_v3 }
0x1025   :  { %v1528_v42 = vpop.f32.mrf.mxu3 }
0x1026   :  { %v1529_v43 = vadd.f32 %v4702_v41, %v1528_v42 }
0x1028   :  { %v1533_v44 = vadd.f32 %v1529_v43, %v1417_v9 }
0x102a   :  { %v1537_v18 = vsel %vm6215_vm0, %v1533_v44, 0.0 }
0x102b   :  { %1538 = vadd.xlane.f32.xlu2 %v1537_v18 }
0x102d   :  { %v1530_v45 = vpop.f32.mrf.mxu3 }
0x102e   :  { %v1531_v46 = vadd.f32 %v4702_v41, %v1530_v45 }
0x1030   :  { %v1534_v19 = vadd.f32 %v1531_v46, %v1418_v11 }
0x1032   :  { %v1540_v47 = vsel %vm6215_vm0, %v1534_v19, 0.0 }
0x1033   :  { %1541 = vadd.xlane.f32.xlu0 %v1540_v47 }
0x1047   :  { %1680 = vrot.lane.b32.xlu0 %v1678_v7, %s5128_s12 }
0x109e   :  { %v1539_v50 = vpop.xlane.xlu2 %1538 }
0x109f   :  { %v1543_v51 = vmul.f32 %v1539_v50, %v5253_v10 }
0x10a1   :  { %v1545_v52 = vsub.f32 %v1533_v44, %v1543_v51 }
0x10a3   :  { %v1547_v56 = vmul.f32 %v1545_v52, %v1545_v52 }
0x10a5   :  { %v1549_v57 = vsel %vm6215_vm0, %v1547_v56, 0.0 }
0x10a6   :  { %v1542_v58 = vpop.xlane.xlu0 %1541  ;;  %1550 = vadd.xlane.f32.xlu1 %v1549_v57 }
0x10a7   :  { %v1544_v59 = vmul.f32 %v1542_v58, %v5253_v10 }
0x10a9   :  { %v1546_v60 = vsub.f32 %v1534_v19, %v1544_v59 }
0x10ab   :  { %v1548_v61 = vmul.f32 %v1546_v60, %v1546_v60 }
0x10ad   :  { %v1552_v62 = vsel %vm6215_vm0, %v1548_v61, 0.0 }
0x10ae   :  { %1553 = vadd.xlane.f32.xlu2 %v1552_v62 }
0x10b9   :  { %v1681_v39 = vpop.permute.xlu0 %1680 }
0x10bf   :  { %1682 = vrot.lane.b32.xlu1 %v1679_v28, %s5128_s12 }
0x1119   :  { %v1551_v0 = vpop.xlane.xlu1 %1550 }
0x111a   :  { %v1555_v1 = vmul.f32 %v1551_v0, %v5253_v10 }
0x111c   :  { %v1557_v4 = vadd.f32 1e-12, %v1555_v1 }
0x111e   :  { %4766 = vrsqrt.f32 %v1557_v4  ;;  %vm1565_vm3 = vweird.f32 %v1557_v4 }
0x1121   :  { %v1554_v6 = vpop.xlane.xlu2 %1553 }
0x1122   :  { %v1556_v8 = vmul.f32 %v1554_v6, %v5253_v10 }
0x1124   :  { %v4767_v9 = vpop.eup %4766  ;;  %v1558_v11 = vadd.f32 1e-12, %v1556_v8 }
0x1125   :  { %v1560_v12 = vmul.f32 %v4767_v9, %v1557_v4  ;;  %vm1566_vm2 = vweird.f32 %v4767_v9 }
0x1126   :  { %4768 = vrsqrt.f32 %v1558_v11  ;;  %vm1567_vm4 = vmor %vm1565_vm3, %vm1566_vm2  ;;  %vm1575_vm6 = vweird.f32 %v1558_v11  ;;  %vm3492_vm3 = vcmask 1047559  }
0x1127   :  { %v1561_v13 = vmul.f32 %v4767_v9, %v1560_v12 }
0x1129   :  { %v1562_v15 = vmul.f32 0.5, %v1561_v13 }
0x112b   :  { %v1563_v16 = vsub.f32 1.5, %v1562_v15 }
0x112c   :  { %v4769_v20 = vpop.eup %4768 }
0x112d   :  { %v1564_v21 = vmul.f32 %v4767_v9, %v1563_v16  ;;  %v1570_v22 = vmul.f32 %v4769_v20, %v1558_v11  ;;  %vm1576_vm5 = vweird.f32 %v4769_v20 }
0x112e   :  { %vm1577_vm7 = vmor %vm1575_vm6, %vm1576_vm5 }
0x112f   :  { %v1571_v23 = vmul.f32 %v4769_v20, %v1570_v22  ;;  %v1568_v10 = vsel %vm1567_vm4, %v4767_v9, %v1564_v21 }
0x1130   :  { %v1579_v26 = vmul.f32 %v1568_v10, %v1545_v52 }
0x1131   :  { %v1572_v53 = vmul.f32 0.5, %v1571_v23  ;;  %v1683_v42 = vpop.permute.xlu1 %1682  ;;  %v1653_v23 = vrot.slane %v5646_v31, 1 }
0x1132   :  { %v1582_v29 = vmul.f32 %v4703_v25, %v1579_v26 }
0x1133   :  { %v1573_v24 = vsub.f32 1.5, %v1572_v53 }
0x1134   :  { %v1585_v33 = vadd.f32 %v4704_v30, %v1582_v29 }
0x1135   :  { %v1574_v27 = vmul.f32 %v4769_v20, %v1573_v24 }
0x1137   :  { %v1578_v54 = vsel %vm1577_vm7, %v4769_v20, %v1574_v27  ;;  %vm1843_vm7 = vcmask 1041409  }
0x1138   :  { %v1580_v55 = vmul.f32 %v1578_v54, %v1546_v60 }
0x113a   :  { %v1583_v32 = vmul.f32 %v4703_v25, %v1580_v55 }
0x113c   :  { %v1586_v34 = vadd.f32 %v4704_v30, %v1583_v32 }
0x113e   :  { %v1587_v35 = vpack.c.bf16 %v1586_v34, %v1585_v33 }
0x1140   :  { %4533 = vmatmul.msk.bf16.vlgmr.msrb.gmra.mxu0 %vm6215_vm0, %v1587_v35 }
0x1141   :  { %2359 = vmatpush.bf16.msrb.mxu0 %v5606_v48 }
0x11bd   :  { %v1620_v38 = vpop.f32.mrf.mxu0 }
0x11be   :  { %v5651_v40 = vadd.f32 %v4705_v37, %v1620_v38 }
0x11c0   :  { %v1686_v17 = vadd.f32 %v1681_v39, %v5651_v40  ;;  %v1656_v54 = vadd.f32 %v5646_v31, %v5651_v40 }
0x11c2   :  { %4770 = vtanh.f32 %v1686_v17  ;;  %v4546_v46 = vmul.f32 -1.442695, %v1686_v17  ;;  %v4544_v30 = vmul.f32 -1.442695, %v1656_v54 }
0x11c5   :  { %v1622_v41 = vpop.f32.mrf.mxu0 }
0x11c6   :  { %v5654_v43 = vadd.f32 %v4705_v37, %v1622_v41 }
0x11c8   :  { %v1687_v44 = vadd.f32 %v1683_v42, %v5654_v43  ;;  %v4771_v18 = vpop.eup %4770  ;;  %v1657_v10 = vadd.f32 %v1653_v23, %v5654_v43 }
0x11c9   :  { %1806 = vrot.lane.b32.xlu2 %v4771_v18, %s5129_s11 }
0x11ca   :  { %4772 = vtanh.f32 %v1687_v44  ;;  %v4547_v56 = vmul.f32 -1.442695, %v1687_v44  ;;  %v4545_v32 = vmul.f32 -1.442695, %v1657_v10 }
0x11cb   :  { %4774 = vpow2.f32 %v4546_v46 }
0x11d0   :  { %v4773_v45 = vpop.eup %4772 }
0x11d1   :  { %1808 = vrot.lane.b32.xlu0 %v4773_v45, %s5129_s11  ;;  %v4775_v19 = vpop.eup %4774 }
0x11d2   :  { %v1768_v47 = vadd.f32 1.0, %v4775_v19 }
0x11d4   :  { %4776 = vrcp.f32 %v1768_v47  ;;  %v1781_v59 = vand.u32 2147483648, %v1768_v47  ;;  %vm1775_vm10 = vweird.f32 %v1768_v47  ;;  %v1779_v60 = vand.u32 2147483647, %v1768_v47 }
0x11d5   :  { %4778 = vpow2.f32 %v4547_v56 }
0x11d6   :  { %v1782_v63 = vor.u32 1.1754944e-38, %v1781_v59  ;;  %vm1780_vm13 = vcmp.eq.f32.partialorder %v1779_v60, 8.507059e+37 }
0x11da   :  { %v4777_v50 = vpop.eup %4776 }
0x11db   :  { %v1771_v51 = vmul.f32 %v4777_v50, %v1768_v47  ;;  %vm1776_vm11 = vweird.f32 %v4777_v50  ;;  %v4779_v61 = vpop.eup %4778 }
0x11dc   :  { %vm1777_vm12 = vmor %vm1775_vm10, %vm1776_vm11  ;;  %v1769_v0 = vadd.f32 1.0, %v4779_v61 }
0x11dd   :  { %v1772_v52 = vsub.f32 1.0, %v1771_v51 }
0x11de   :  { %4780 = vrcp.f32 %v1769_v0  ;;  %v1796_v9 = vand.u32 2147483648, %v1769_v0  ;;  %vm1790_vm15 = vweird.f32 %v1769_v0  ;;  %v1794_v11 = vand.u32 2147483647, %v1769_v0 }
0x11df   :  { %v1773_v57 = vmul.f32 %v4777_v50, %v1772_v52 }
0x11e0   :  { %v1797_v13 = vor.u32 1.1754944e-38, %v1796_v9  ;;  %vm1795_vm2 = vcmp.eq.f32.partialorder %v1794_v11, 8.507059e+37 }
0x11e1   :  { %v1774_v58 = vadd.f32 %v4777_v50, %v1773_v57 }
0x11e3   :  { %v1778_v62 = vsel %vm1777_vm12, %v4777_v50, %v1774_v58 }
0x11e4   :  { %v1783_v2 = vsel %vm1780_vm13, %v1782_v63, %v1778_v62  ;;  %v4781_v5 = vpop.eup %4780 }
0x11e5   :  { %v1786_v6 = vmul.f32 %v4781_v5, %v1769_v0  ;;  %vm1791_vm14 = vweird.f32 %v4781_v5  ;;  %v1802_v20 = vmul.f32 0.0, %v1783_v2 }
0x11e6   :  { %vm1792_vm1 = vmor %vm1790_vm15, %vm1791_vm14 }
0x11e7   :  { %v1787_v7 = vsub.f32 1.0, %v1786_v6 }
0x11e9   :  { %v1788_v28 = vmul.f32 %v4781_v5, %v1787_v7 }
0x11eb   :  { %v1789_v8 = vadd.f32 %v4781_v5, %v1788_v28 }
0x11ed   :  { %v1793_v12 = vsel %vm1792_vm1, %v4781_v5, %v1789_v8 }
0x11ee   :  { %v1798_v15 = vsel %vm1795_vm2, %v1797_v13, %v1793_v12 }
0x11ef   :  { %v1803_v25 = vmul.f32 0.0, %v1798_v15 }
0x1223   :  { %v1807_v1 = vpop.permute.xlu2 %1806 }
0x1224   :  { %v1812_v4 = vmul.f32 %v1807_v1, %v1783_v2 }
0x1226   :  { %1816 = vrot.lane.b32.xlu2 %v1812_v4, %s5130_s13 }
0x1243   :  { %v1809_v14 = vpop.permute.xlu0 %1808 }
0x1244   :  { %v1813_v16 = vmul.f32 %v1809_v14, %v1798_v15 }
0x1246   :  { %1818 = vrot.lane.b32.xlu1 %v1813_v16, %s5130_s13 }
0x1280   :  { %v1817_v21 = vpop.permute.xlu2 %1816 }
0x1281   :  { %v5661_v22 = vadd.f32 %v1817_v21, %v1802_v20 }
0x1283   :  { %4782 = vtanh.f32 %v5661_v22 }
0x1284   :  { %4784 = vtanh.f32 %v1657_v10 }
0x1289   :  { %v4783_v53 = vpop.eup %4782 }
0x128a   :  { %1828 = vrot.lane.b32.xlu0 %v4783_v53, %s5130_s13  ;;  %v4785_v24 = vpop.eup %4784 }
0x1292   :  { %1734 = vrot.lane.b32.xlu0 %v4785_v24, %s5129_s11 }
0x12b8   :  { %v1819_v26 = vpop.permute.xlu1 %1818 }
0x12b9   :  { %v5668_v27 = vadd.f32 %v1819_v26, %v1803_v25 }
0x12bb   :  { %4786 = vtanh.f32 %v5668_v27 }
0x12bc   :  { %4788 = vtanh.f32 %v1656_v54 }
0x12bd   :  { %4790 = vpow2.f32 %v4544_v30 }
0x12be   :  { %4792 = vpow2.f32 %v4545_v32 }
0x12c1   :  { %v4787_v29 = vpop.eup %4786 }
0x12c2   :  { %1830 = vrot.lane.b32.xlu2 %v4787_v29, %s5130_s13  ;;  %v4789_v55 = vpop.eup %4788 }
0x12c3   :  { %v4791_v33 = vpop.eup %4790 }
0x12c4   :  { %v1694_v34 = vadd.f32 1.0, %v4791_v33  ;;  %v4793_v35 = vpop.eup %4792 }
0x12c5   :  { %v1695_v36 = vadd.f32 1.0, %v4793_v35 }
0x12c6   :  { %4794 = vrcp.f32 %v1694_v34  ;;  %vm1701_vm5 = vweird.f32 %v1694_v34  ;;  %v1707_v51 = vand.u32 2147483648, %v1694_v34  ;;  %v1705_v58 = vand.u32 2147483647, %v1694_v34 }
0x12c7   :  { %4796 = vrcp.f32 %v1695_v36  ;;  %v1722_v28 = vand.u32 2147483648, %v1695_v36  ;;  %vm1716_vm12 = vweird.f32 %v1695_v36  ;;  %v1720_v8 = vand.u32 2147483647, %v1695_v36 }
0x12c8   :  { %v1708_v62 = vor.u32 1.1754944e-38, %v1707_v51  ;;  %vm1706_vm11 = vcmp.eq.f32.partialorder %v1705_v58, 8.507059e+37 }
0x12c9   :  { %v1723_v11 = vor.u32 1.1754944e-38, %v1722_v28  ;;  %vm1721_vm14 = vcmp.eq.f32.partialorder %v1720_v8, 8.507059e+37 }
0x12ca   :  { %1732 = vrot.lane.b32.xlu2 %v4789_v55, %s5129_s11 }
0x12cc   :  { %v4795_v37 = vpop.eup %4794 }
0x12cd   :  { %v1697_v38 = vmul.f32 %v4795_v37, %v1694_v34  ;;  %v4797_v17 = vpop.eup %4796  ;;  %vm1702_vm4 = vweird.f32 %v4795_v37 }
0x12ce   :  { %v1712_v44 = vmul.f32 %v4797_v17, %v1695_v36  ;;  %vm1703_vm6 = vmor %vm1701_vm5, %vm1702_vm4  ;;  %vm1717_vm10 = vweird.f32 %v4797_v17 }
0x12cf   :  { %v1698_v39 = vsub.f32 1.0, %v1697_v38  ;;  %vm1718_vm13 = vmor %vm1716_vm12, %vm1717_vm10  ;;  %vm3485_vm12 = vcmask 1045509  }
0x12d0   :  { %v1713_v50 = vsub.f32 1.0, %v1712_v44 }
0x12d1   :  { %v1699_v42 = vmul.f32 %v4795_v37, %v1698_v39 }
0x12d2   :  { %v1714_v61 = vmul.f32 %v4797_v17, %v1713_v50 }
0x12d3   :  { %v1700_v47 = vadd.f32 %v4795_v37, %v1699_v42 }
0x12d4   :  { %v1715_v6 = vadd.f32 %v4797_v17, %v1714_v61 }
0x12d5   :  { %v1704_v60 = vsel %vm1703_vm6, %v4795_v37, %v1700_v47 }
0x12d6   :  { %v1719_v9 = vsel %vm1718_vm13, %v4797_v17, %v1715_v6 }
0x12d7   :  { %v1724_v13 = vsel %vm1721_vm14, %v1723_v11, %v1719_v9 }
0x12d8   :  { %v1729_v16 = vmul.f32 0.0, %v1724_v13 }
0x12fc   :  { %v1829_v31 = vpop.permute.xlu0 %1828 }
0x12fd   :  { %v1834_v41 = vmul.f32 %v1829_v31, %v1783_v2  ;;  %v1709_v2 = vsel %vm1706_vm11, %v1708_v62, %v1704_v60 }
0x12fe   :  { %v1728_v53 = vmul.f32 0.0, %v1709_v2 }
0x12ff   :  { %v1870_v18 = vpack.c.bf16 %v1834_v41, %v1834_v41  ;;  %v3569_v46 = vrot.slane %v1834_v41, 1 }
0x1301   :  { %v1874_v52 = vunpack.c.l.b16 %v1870_v18 }
0x1303   :  { %v1876_v63 = vrot.slane %v1874_v52, 7 }
0x1304   :  { %v1735_v12 = vpop.permute.xlu0 %1734 }
0x1305   :  { %v1739_v14 = vmul.f32 %v1735_v12, %v1724_v13 }
0x131c   :  { %v1831_v45 = vpop.permute.xlu2 %1830 }
0x131d   :  { %v1835_v19 = vmul.f32 %v1831_v45, %v1798_v15 }
0x131f   :  { %v1871_v56 = vpack.c.bf16 %v1835_v19, %v1835_v19  ;;  %v5676_v57 = vsel %vm3492_vm3, %v1835_v19, %v3569_v46 }
0x1321   :  { %v1875_v59 = vunpack.c.l.b16 %v1871_v56 }
0x1323   :  { %v1877_v0 = vrot.slane %v1875_v59, 6 }
0x1324   :  { %v1733_v1 = vpop.permute.xlu2 %1732 }
0x1325   :  { %v1738_v4 = vmul.f32 %v1733_v1, %v1709_v2  ;;  %v1878_v5 = vsel %vm1843_vm7, %v1877_v0, %v1876_v63 }
0x1326   :  { %v1879_v7 = vpack.c.b16 %v1878_v5, %v1878_v5 }
0x1327   :  { %1742 = vrot.lane.b32.xlu0 %v1738_v4, %s5130_s13 }
0x1328   :  { %1880 = vrot.lane.b32.xlu1 %v1879_v7, %s5131_s29 }
0x1330   :  { %1744 = vrot.lane.b32.xlu1 %v1739_v14, %s5130_s13 }
0x1399   :  { %v1743_v10 = vpop.permute.xlu0 %1742 }
0x139a   :  { %v1881_v15 = vpop.permute.xlu1 %1880  ;;  %v5688_v24 = vadd.f32 %v1743_v10, %v1728_v53 }
0x139b   :  { %4549 = vmatmul.msk.bf16.vlgmr.msra.gmra.mxu0 %vm252_vm8, %v1881_v15 }
0x139c   :  { %2827 = vmatpush.bf16.msra.mxu0 %v5606_v48 }
0x13a2   :  { %v1745_v20 = vpop.permute.xlu1 %1744 }
0x13a3   :  { %v5684_v21 = vadd.f32 %v1745_v20, %v1729_v16 }
0x13a5   :  { %4798 = vtanh.f32 %v5684_v21 }
0x13a6   :  { %4800 = vtanh.f32 %v5688_v24 }
0x13ab   :  { %v4799_v23 = vpop.eup %4798 }
0x13ac   :  { %1756 = vrot.lane.b32.xlu0 %v4799_v23, %s5130_s13  ;;  %v4801_v55 = vpop.eup %4800 }
0x1418   :  { %v1894_v25 = vpop.f32.mrf.mxu0 }
0x1419   :  { %v1899_v26 = vrot.slane %v1894_v25, 2  ;;  %v1900_v54 = vrot.slane %v1894_v25, 3 }
0x141b   :  { %1903 = vrot.lane.b32.xlu1 %v1900_v54, %s5128_s12  ;;  %1901 = vrot.lane.b32.xlu2 %v1899_v26, %s5128_s12  ;;  %v2031_v26 = vrot.slane %v5661_v22, 1 }
0x141e   :  { %v1757_v33 = vpop.permute.xlu0 %1756 }
0x141f   :  { %v1761_v34 = vmul.f32 %v1757_v33, %v1724_v13 }
0x1420   :  { %v1896_v29 = vpop.f32.mrf.mxu0 }
0x1421   :  { %v3471_v37 = vrot.slane %v1761_v34, 7  ;;  %v1837_v41 = vpack.c.bf16 %v1761_v34, %v1761_v34 }
0x1423   :  { %1754 = vrot.lane.b32.xlu2 %v4801_v55, %s5130_s13  ;;  %v1841_v44 = vunpack.c.l.b16 %v1837_v41 }
0x1425   :  { %v1842_v46 = vrot.slane %v1841_v44, 7 }
0x1475   :  { %v1902_v30 = vpop.permute.xlu2 %1901 }
0x1476   :  { %v1907_v32 = vadd.f32 %v1902_v30, %v5651_v40 }
0x1478   :  { %4802 = vtanh.f32 %v1907_v32  ;;  %v4552_v50 = vmul.f32 -1.442695, %v1907_v32  ;;  %v2032_v32 = vrot.slane %v5668_v27, 1 }
0x147d   :  { %v1755_v35 = vpop.permute.xlu2 %1754 }
0x147e   :  { %v4803_v36 = vpop.eup %4802  ;;  %v1760_v38 = vmul.f32 %v1755_v35, %v1709_v2 }
0x147f   :  { %2039 = vrot.lane.b32.xlu1 %v4803_v36, %s5129_s11 }
0x1480   :  { %v5697_v31 = vsel %vm1843_vm7, %v3471_v37, %v1760_v38  ;;  %v1836_v42 = vpack.c.bf16 %v1760_v38, %v1760_v38 }
0x1482   :  { %v1840_v45 = vunpack.c.l.b16 %v1836_v42 }
0x1484   :  { %v1844_v19 = vsel %vm1843_vm7, %v1842_v46, %v1840_v45 }
0x1485   :  { %v1845_v47 = vpack.c.b16 %v1844_v19, %v1844_v19 }
0x148d   :  { %v1904_v39 = vpop.permute.xlu1 %1903 }
0x148e   :  { %v1908_v17 = vadd.f32 %v1904_v39, %v5654_v43 }
0x1490   :  { %4804 = vtanh.f32 %v1908_v17  ;;  %v4553_v58 = vmul.f32 -1.442695, %v1908_v17 }
0x1491   :  { %4806 = vpow2.f32 %v4552_v50 }
0x1496   :  { %v4805_v18 = vpop.eup %4804 }
0x1497   :  { %2041 = vrot.lane.b32.xlu0 %v4805_v18, %s5129_s11  ;;  %v4807_v51 = vpop.eup %4806 }
0x1498   :  { %v1995_v52 = vadd.f32 1.0, %v4807_v51 }
0x149a   :  { %4808 = vrcp.f32 %v1995_v52  ;;  %v2008_v1 = vand.u32 2147483648, %v1995_v52  ;;  %vm2002_vm1 = vweird.f32 %v1995_v52  ;;  %v2006_v2 = vand.u32 2147483647, %v1995_v52 }
0x149b   :  { %4810 = vpow2.f32 %v4553_v58 }
0x149c   :  { %v2009_v5 = vor.u32 1.1754944e-38, %v2008_v1  ;;  %vm2007_vm4 = vcmp.eq.f32.partialorder %v2006_v2, 8.507059e+37 }
0x149f   :  { %1846 = vrot.lane.b32.xlu0 %v1845_v47, %s5132_s4 }
0x14a0   :  { %v4809_v56 = vpop.eup %4808 }
0x14a1   :  { %v1998_v59 = vmul.f32 %v4809_v56, %v1995_v52  ;;  %v4811_v61 = vpop.eup %4810  ;;  %vm2003_vm15 = vweird.f32 %v4809_v56 }
0x14a2   :  { %v1996_v63 = vadd.f32 1.0, %v4811_v61  ;;  %vm2004_vm2 = vmor %vm2002_vm1, %vm2003_vm15 }
0x14a3   :  { %v1999_v60 = vsub.f32 1.0, %v1998_v59 }
0x14a4   :  { %4812 = vrcp.f32 %v1996_v63  ;;  %v2023_v14 = vand.u32 2147483648, %v1996_v63  ;;  %vm2017_vm6 = vweird.f32 %v1996_v63  ;;  %v2021_v15 = vand.u32 2147483647, %v1996_v63 }
0x14a5   :  { %v2000_v62 = vmul.f32 %v4809_v56, %v1999_v60 }
0x14a6   :  { %v2024_v20 = vor.u32 1.1754944e-38, %v2023_v14  ;;  %vm2022_vm10 = vcmp.eq.f32.partialorder %v2021_v15, 8.507059e+37 }
0x14a7   :  { %v2001_v0 = vadd.f32 %v4809_v56, %v2000_v62 }
0x14a9   :  { %v2005_v4 = vsel %vm2004_vm2, %v4809_v56, %v2001_v0 }
0x14aa   :  { %v2010_v7 = vsel %vm2007_vm4, %v2009_v5, %v2005_v4  ;;  %v4813_v8 = vpop.eup %4812 }
0x14ab   :  { %v2013_v9 = vmul.f32 %v4813_v8, %v1996_v63  ;;  %vm2018_vm5 = vweird.f32 %v4813_v8  ;;  %v2035_v54 = vmul.f32 %v2031_v26, %v2010_v7 }
0x14ac   :  { %vm2019_vm11 = vmor %vm2017_vm6, %vm2018_vm5 }
0x14ad   :  { %v2014_v11 = vsub.f32 1.0, %v2013_v9 }
0x14af   :  { %v2015_v12 = vmul.f32 %v4813_v8, %v2014_v11 }
0x14b1   :  { %v2016_v13 = vadd.f32 %v4813_v8, %v2015_v12 }
0x14b3   :  { %v2020_v16 = vsel %vm2019_vm11, %v4813_v8, %v2016_v13  ;;  %vm3478_vm11 = vcmask 1043459  }
0x14b4   :  { %v2025_v23 = vsel %vm2022_vm10, %v2024_v20, %v2020_v16  ;;  %vm3518_vm10 = vcmask 1041408  }
0x14b5   :  { %v2036_v33 = vmul.f32 %v2032_v32, %v2025_v23 }
0x14f1   :  { %v2040_v6 = vpop.permute.xlu1 %2039 }
0x14f2   :  { %v2045_v28 = vmul.f32 %v2040_v6, %v2010_v7 }
0x14f4   :  { %2049 = vrot.lane.b32.xlu2 %v2045_v28, %s5130_s13 }
0x1509   :  { %v2042_v10 = vpop.permute.xlu0 %2041 }
0x150a   :  { %v2046_v53 = vmul.f32 %v2042_v10, %v2025_v23 }
0x150c   :  { %2051 = vrot.lane.b32.xlu1 %v2046_v53, %s5130_s13 }
0x1511   :  { %v1847_v25 = vpop.permute.xlu0 %1846 }
0x1512   :  { %4548 = vmatmul.msk.bf16.vlgmr.msrb.gmra.mxu3 %vm252_vm8, %v1847_v25 }
0x1513   :  { %2792 = vmatpush.bf16.msrb.mxu3 %v5626_v3 }
0x154e   :  { %v2050_v29 = vpop.permute.xlu2 %2049 }
0x154f   :  { %v5708_v55 = vadd.f32 %v2050_v29, %v2035_v54 }
0x1551   :  { %4814 = vtanh.f32 %v5708_v55 }
0x1557   :  { %v4815_v30 = vpop.eup %4814 }
0x1558   :  { %2061 = vrot.lane.b32.xlu2 %v4815_v30, %s5130_s13 }
0x157e   :  { %v2052_v34 = vpop.permute.xlu1 %2051 }
0x157f   :  { %v5713_v35 = vadd.f32 %v2052_v34, %v2036_v33 }
0x1581   :  { %4816 = vtanh.f32 %v5713_v35 }
0x1587   :  { %v4817_v36 = vpop.eup %4816 }
0x1588   :  { %2063 = vrot.lane.b32.xlu1 %v4817_v36, %s5130_s13 }
0x1595   :  { %v1860_v22 = vpop.f32.mrf.mxu3 }
0x1596   :  { %v1865_v37 = vrot.slane %v1860_v22, 7  ;;  %v1869_v38 = vadd.f32 %v1860_v22, %v5654_v43  ;;  %v1951_v22 = vrot.slane %v5688_v24, 7 }
0x1598   :  { %v1868_v39 = vadd.f32 %v1865_v37, %v5651_v40  ;;  %4818 = vtanh.f32 %v1869_v38  ;;  %v4551_v44 = vmul.f32 -1.442695, %v1869_v38 }
0x159a   :  { %4820 = vtanh.f32 %v1868_v39  ;;  %v4550_v42 = vmul.f32 -1.442695, %v1868_v39 }
0x159c   :  { %4822 = vpow2.f32 %v4550_v42 }
0x159d   :  { %v1862_v17 = vpop.f32.mrf.mxu3  ;;  %4824 = vpow2.f32 %v4551_v44 }
0x159e   :  { %v4819_v41 = vpop.eup %4818 }
0x159f   :  { %1961 = vrot.lane.b32.xlu1 %v4819_v41, %s5129_s11  ;;  %v1952_v41 = vrot.slane %v5684_v21, 7 }
0x15a0   :  { %v4821_v27 = vpop.eup %4820 }
0x15a1   :  { %1959 = vrot.lane.b32.xlu2 %v4821_v27, %s5129_s11 }
0x15a2   :  { %v4823_v18 = vpop.eup %4822 }
0x15a3   :  { %v1915_v45 = vadd.f32 1.0, %v4823_v18  ;;  %v4825_v46 = vpop.eup %4824 }
0x15a4   :  { %v1916_v19 = vadd.f32 1.0, %v4825_v46 }
0x15a5   :  { %4826 = vrcp.f32 %v1915_v45  ;;  %v1928_v13 = vand.u32 2147483648, %v1915_v45  ;;  %vm1922_vm14 = vweird.f32 %v1915_v45  ;;  %v1926_v14 = vand.u32 2147483647, %v1915_v45 }
0x15a6   :  { %4828 = vrcp.f32 %v1916_v19  ;;  %v1943_v25 = vand.u32 2147483648, %v1916_v19  ;;  %vm1937_vm4 = vweird.f32 %v1916_v19  ;;  %v1941_v54 = vand.u32 2147483647, %v1916_v19 }
0x15a7   :  { %v1929_v20 = vor.u32 1.1754944e-38, %v1928_v13  ;;  %vm1927_vm1 = vcmp.eq.f32.partialorder %v1926_v14, 8.507059e+37 }
0x15a8   :  { %v1944_v30 = vor.u32 1.1754944e-38, %v1943_v25  ;;  %vm1942_vm6 = vcmp.eq.f32.partialorder %v1941_v54, 8.507059e+37 }
0x15ab   :  { %v4827_v50 = vpop.eup %4826 }
0x15ac   :  { %v1918_v52 = vmul.f32 %v4827_v50, %v1915_v45  ;;  %v4829_v59 = vpop.eup %4828  ;;  %vm1923_vm13 = vweird.f32 %v4827_v50 }
0x15ad   :  { %v1933_v2 = vmul.f32 %v4829_v59, %v1916_v19  ;;  %vm1924_vm15 = vmor %vm1922_vm14, %vm1923_vm13  ;;  %vm1938_vm2 = vweird.f32 %v4829_v59 }
0x15ae   :  { %v1919_v61 = vsub.f32 1.0, %v1918_v52  ;;  %vm1939_vm5 = vmor %vm1937_vm4, %vm1938_vm2 }
0x15b0   :  { %v1920_v6 = vmul.f32 %v4827_v50, %v1919_v61 }
0x15b2   :  { %v2062_v47 = vpop.permute.xlu2 %2061  ;;  %v1921_v11 = vadd.f32 %v4827_v50, %v1920_v6 }
0x15b3   :  { %v2067_v51 = vmul.f32 %v2062_v47, %v2010_v7  ;;  %v1934_v7 = vsub.f32 1.0, %v1933_v2 }
0x15b4   :  { %v1925_v16 = vsel %vm1924_vm15, %v4827_v50, %v1921_v11 }
0x15b5   :  { %v2103_v56 = vpack.c.bf16 %v2067_v51, %v2067_v51  ;;  %v3563_v63 = vrot.slane %v2067_v51, 2  ;;  %v1935_v15 = vmul.f32 %v4829_v59, %v1934_v7  ;;  %v1930_v53 = vsel %vm1927_vm1, %v1929_v20, %v1925_v16 }
0x15b6   :  { %v1955_v37 = vmul.f32 %v1951_v22, %v1930_v53 }
0x15b7   :  { %v2107_v62 = vunpack.c.l.b16 %v2103_v56  ;;  %v1936_v10 = vadd.f32 %v4829_v59, %v1935_v15 }
0x15b9   :  { %v2109_v28 = vrot.slane %v2107_v62, 6  ;;  %v1940_v29 = vsel %vm1939_vm5, %v4829_v59, %v1936_v10 }
0x15ba   :  { %v1945_v33 = vsel %vm1942_vm6, %v1944_v30, %v1940_v29 }
0x15bb   :  { %v1956_v42 = vmul.f32 %v1952_v41, %v1945_v33 }
0x15fa   :  { %v2064_v58 = vpop.permute.xlu1 %2063 }
0x15fb   :  { %v2068_v60 = vmul.f32 %v2064_v58, %v2025_v23  ;;  %v1960_v23 = vpop.permute.xlu2 %1959 }
0x15fc   :  { %v1965_v26 = vmul.f32 %v1960_v23, %v1930_v53 }
0x15fd   :  { %v2104_v0 = vpack.c.bf16 %v2068_v60, %v2068_v60  ;;  %v3564_v1 = vrot.slane %v2068_v60, 1 }
0x15ff   :  { %v2108_v4 = vunpack.c.l.b16 %v2104_v0  ;;  %v5722_v5 = vsel %vm3485_vm12, %v3564_v1, %v3563_v63 }
0x1601   :  { %v2110_v8 = vrot.slane %v2108_v4, 5 }
0x1603   :  { %v2111_v9 = vsel %vm1843_vm7, %v2110_v8, %v2109_v28 }
0x1604   :  { %v2112_v12 = vpack.c.b16 %v2111_v9, %v2111_v9 }
0x1606   :  { %2113 = vrot.lane.b32.xlu0 %v2112_v12, %s5131_s29 }
0x160e   :  { %1969 = vrot.lane.b32.xlu0 %v1965_v26, %s5130_s13 }
0x1611   :  { %v1962_v32 = vpop.permute.xlu1 %1961 }
0x1612   :  { %v1966_v34 = vmul.f32 %v1962_v32, %v1945_v33 }
0x1614   :  { %1971 = vrot.lane.b32.xlu2 %v1966_v34, %s5130_s13 }
0x166e   :  { %v1972_v27 = vpop.permute.xlu2 %1971 }
0x166f   :  { %v5736_v44 = vadd.f32 %v1972_v27, %v1956_v42 }
0x1678   :  { %v2114_v36 = vpop.permute.xlu0 %2113 }
0x1679   :  { %4555 = vmatmul.msk.bf16.vlgmr.msra.gmra.mxu2 %vm252_vm8, %v2114_v36 }
0x167a   :  { %3061 = vmatpush.bf16.msra.mxu2 %v5606_v48 }
0x1680   :  { %v1970_v38 = vpop.permute.xlu0 %1969 }
0x1681   :  { %v5731_v39 = vadd.f32 %v1970_v38, %v1955_v37 }
0x1683   :  { %4830 = vtanh.f32 %v5731_v39 }
0x1684   :  { %4832 = vtanh.f32 %v5736_v44 }
0x1689   :  { %v4831_v17 = vpop.eup %4830 }
0x168a   :  { %1981 = vrot.lane.b32.xlu2 %v4831_v17, %s5130_s13  ;;  %v4833_v46 = vpop.eup %4832 }
0x16e4   :  { %v1982_v19 = vpop.permute.xlu2 %1981 }
0x16e5   :  { %v1987_v50 = vmul.f32 %v1982_v19, %v1930_v53 }
0x16e7   :  { %v2069_v56 = vpack.c.bf16 %v1987_v50, %v1987_v50  ;;  %v3476_v63 = vrot.slane %v1987_v50, 7  ;;  %v2264_v50 = vrot.slane %v5708_v55, 1 }
0x16e9   :  { %v2073_v60 = vunpack.c.l.b16 %v2069_v56 }
0x16eb   :  { %v2075_v2 = vrot.slane %v2073_v60, 1 }
0x16fc   :  { %v2127_v18 = vpop.f32.mrf.mxu2 }
0x16fd   :  { %v2132_v45 = vrot.slane %v2127_v18, 3  ;;  %v2133_v48 = vrot.slane %v2127_v18, 4 }
0x16ff   :  { %2134 = vrot.lane.b32.xlu1 %v2132_v45, %s5128_s12  ;;  %2136 = vrot.lane.b32.xlu0 %v2133_v48, %s5128_s12 }
0x1704   :  { %v2129_v24 = vpop.f32.mrf.mxu2 }
0x1705   :  { %v2265_v24 = vrot.slane %v5713_v35, 1 }
0x1707   :  { %1983 = vrot.lane.b32.xlu1 %v4833_v46, %s5130_s13 }
0x1771   :  { %v2135_v47 = vpop.permute.xlu1 %2134  ;;  %v2137_v21 = vpop.permute.xlu0 %2136 }
0x1772   :  { %v2140_v51 = vadd.f32 %v2135_v47, %v5651_v40  ;;  %v2141_v52 = vadd.f32 %v2137_v21, %v5654_v43 }
0x1774   :  { %4834 = vtanh.f32 %v2140_v51  ;;  %v4559_v9 = vmul.f32 -1.442695, %v2141_v52  ;;  %v4558_v14 = vmul.f32 -1.442695, %v2140_v51 }
0x1775   :  { %4836 = vtanh.f32 %v2141_v52 }
0x1776   :  { %4838 = vpow2.f32 %v4559_v9 }
0x1779   :  { %v1984_v58 = vpop.permute.xlu1 %1983 }
0x177a   :  { %v4835_v59 = vpop.eup %4834  ;;  %v1988_v61 = vmul.f32 %v1984_v58, %v1945_v33 }
0x177b   :  { %v4837_v62 = vpop.eup %4836  ;;  %2272 = vrot.lane.b32.xlu0 %v4835_v59, %s5129_s11 }
0x177c   :  { %v2070_v0 = vpack.c.bf16 %v1988_v61, %v1988_v61  ;;  %v3477_v1 = vrot.slane %v1988_v61, 6  ;;  %2274 = vrot.lane.b32.xlu2 %v4837_v62, %s5129_s11  ;;  %v4839_v11 = vpop.eup %4838 }
0x177d   :  { %v2229_v12 = vadd.f32 1.0, %v4839_v11 }
0x177e   :  { %v2074_v4 = vunpack.c.l.b16 %v2070_v0  ;;  %v3479_v6 = vsel %vm3478_vm11, %v3477_v1, %v3476_v63 }
0x177f   :  { %v5749_v28 = vsel %vm3518_vm10, %v5697_v31, %v3479_v6  ;;  %4840 = vrcp.f32 %v2229_v12  ;;  %v2256_v53 = vand.u32 2147483648, %v2229_v12  ;;  %vm2250_vm14 = vweird.f32 %v2229_v12 }
0x1780   :  { %v2076_v8 = vsel %vm1843_vm7, %v2074_v4, %v2075_v2  ;;  %4842 = vpow2.f32 %v4558_v14  ;;  %v2254_v25 = vand.u32 2147483647, %v2229_v12 }
0x1781   :  { %v2077_v7 = vpack.c.b16 %v2076_v8, %v2076_v8  ;;  %v2257_v54 = vor.u32 1.1754944e-38, %v2256_v53 }
0x1782   :  { %vm2255_vm1 = vcmp.eq.f32.partialorder %v2254_v25, 8.507059e+37 }
0x1783   :  { %2078 = vrot.lane.b32.xlu1 %v2077_v7, %s5132_s4 }
0x1785   :  { %v4841_v13 = vpop.eup %4840 }
0x1786   :  { %v2246_v15 = vmul.f32 %v4841_v13, %v2229_v12  ;;  %v4843_v20 = vpop.eup %4842  ;;  %vm2251_vm13 = vweird.f32 %v4841_v13 }
0x1787   :  { %v2228_v10 = vadd.f32 1.0, %v4843_v20  ;;  %vm2252_vm15 = vmor %vm2250_vm14, %vm2251_vm13 }
0x1788   :  { %v2247_v16 = vsub.f32 1.0, %v2246_v15 }
0x1789   :  { %4844 = vrcp.f32 %v2228_v10  ;;  %v2241_v38 = vand.u32 2147483648, %v2228_v10  ;;  %vm2235_vm4 = vweird.f32 %v2228_v10  ;;  %v2239_v17 = vand.u32 2147483647, %v2228_v10 }
0x178a   :  { %v2248_v23 = vmul.f32 %v4841_v13, %v2247_v16 }
0x178b   :  { %v2242_v27 = vor.u32 1.1754944e-38, %v2241_v38  ;;  %vm2240_vm6 = vcmp.eq.f32.partialorder %v2239_v17, 8.507059e+37 }
0x178c   :  { %v2249_v31 = vadd.f32 %v4841_v13, %v2248_v23 }
0x178e   :  { %v2253_v26 = vsel %vm2252_vm15, %v4841_v13, %v2249_v31 }
0x178f   :  { %v2258_v29 = vsel %vm2255_vm1, %v2257_v54, %v2253_v26  ;;  %v4845_v32 = vpop.eup %4844 }
0x1790   :  { %v2231_v34 = vmul.f32 %v4845_v32, %v2228_v10  ;;  %vm2236_vm2 = vweird.f32 %v4845_v32  ;;  %v2269_v46 = vmul.f32 %v2265_v24, %v2258_v29 }
0x1791   :  { %vm2237_vm5 = vmor %vm2235_vm4, %vm2236_vm2 }
0x1792   :  { %v2232_v36 = vsub.f32 1.0, %v2231_v34 }
0x1794   :  { %v2233_v22 = vmul.f32 %v4845_v32, %v2232_v36 }
0x1796   :  { %v2234_v37 = vadd.f32 %v4845_v32, %v2233_v22 }
0x1798   :  { %v2238_v41 = vsel %vm2237_vm5, %v4845_v32, %v2234_v37 }
0x1799   :  { %v2243_v42 = vsel %vm2240_vm6, %v2242_v27, %v2238_v41 }
0x179a   :  { %v2268_v51 = vmul.f32 %v2264_v50, %v2243_v42 }
0x17d6   :  { %v2275_v30 = vpop.permute.xlu2 %2274 }
0x17d7   :  { %v2279_v33 = vmul.f32 %v2275_v30, %v2258_v29 }
0x17d9   :  { %2284 = vrot.lane.b32.xlu2 %v2279_v33, %s5130_s13 }
0x17ed   :  { %v2273_v18 = vpop.permute.xlu0 %2272 }
0x17ee   :  { %v2278_v45 = vmul.f32 %v2273_v18, %v2243_v42 }
0x17f0   :  { %2282 = vrot.lane.b32.xlu0 %v2278_v45, %s5130_s13 }
0x17f5   :  { %v2079_v48 = vpop.permute.xlu1 %2078 }
0x17f6   :  { %4554 = vmatmul.msk.bf16.vlgmr.msra.gmra.mxu1 %vm252_vm8, %v2079_v48 }
0x17f7   :  { %3026 = vmatpush.bf16.msra.mxu1 %v5626_v3 }
0x1833   :  { %v2285_v19 = vpop.permute.xlu2 %2284 }
0x1834   :  { %v5758_v47 = vadd.f32 %v2285_v19, %v2269_v46 }
0x1836   :  { %4846 = vtanh.f32 %v5758_v47 }
0x183c   :  { %v4847_v21 = vpop.eup %4846 }
0x183d   :  { %2296 = vrot.lane.b32.xlu0 %v4847_v21, %s5130_s13 }
0x1862   :  { %v2283_v52 = vpop.permute.xlu0 %2282 }
0x1863   :  { %v5763_v56 = vadd.f32 %v2283_v52, %v2268_v51 }
0x1865   :  { %4848 = vtanh.f32 %v5763_v56 }
0x186b   :  { %v4849_v3 = vpop.eup %4848 }
0x186c   :  { %2294 = vrot.lane.b32.xlu1 %v4849_v3, %s5130_s13 }
0x1873   :  { %v2092_v35 = vpop.f32.mrf.mxu1 }
0x1874   :  { %v2097_v58 = vrot.slane %v2092_v35, 6  ;;  %v2098_v59 = vrot.slane %v2092_v35, 7  ;;  %v5098_v35 = vld [vmem:[%s6201_s14 + $0x8] sm:$0xff] }
0x1876   :  { %v2101_v60 = vadd.f32 %v2097_v58, %v5651_v40  ;;  %v2102_v61 = vadd.f32 %v2098_v59, %v5654_v43  ;;  %v2184_v58 = vrot.slane %v5731_v39, 7 }
0x1878   :  { %4850 = vtanh.f32 %v2101_v60  ;;  %v4556_v0 = vmul.f32 -1.442695, %v2101_v60  ;;  %v4557_v1 = vmul.f32 -1.442695, %v2102_v61 }
0x1879   :  { %4852 = vtanh.f32 %v2102_v61 }
0x187a   :  { %4854 = vpow2.f32 %v4556_v0 }
0x187b   :  { %v2094_v62 = vpop.f32.mrf.mxu1  ;;  %4856 = vpow2.f32 %v4557_v1 }
0x187e   :  { %v4851_v55 = vpop.eup %4850 }
0x187f   :  { %v4853_v63 = vpop.eup %4852  ;;  %2192 = vrot.lane.b32.xlu1 %v4851_v55, %s5129_s11  ;;  %v2185_v55 = vrot.slane %v5736_v44, 7 }
0x1880   :  { %2194 = vrot.lane.b32.xlu0 %v4853_v63, %s5129_s11  ;;  %v4855_v2 = vpop.eup %4854 }
0x1881   :  { %v4857_v4 = vpop.eup %4856  ;;  %v2148_v6 = vadd.f32 1.0, %v4855_v2 }
0x1882   :  { %v2149_v8 = vadd.f32 1.0, %v4857_v4 }
0x1883   :  { %4858 = vrcp.f32 %v2148_v6  ;;  %v2161_v38 = vand.u32 2147483648, %v2148_v6  ;;  %vm2155_vm15 = vweird.f32 %v2148_v6  ;;  %v2159_v41 = vand.u32 2147483647, %v2148_v6 }
0x1884   :  { %4860 = vrcp.f32 %v2149_v8  ;;  %v2176_v27 = vand.u32 2147483648, %v2149_v8  ;;  %vm2170_vm2 = vweird.f32 %v2149_v8 }
0x1885   :  { %v2162_v45 = vor.u32 1.1754944e-38, %v2161_v38  ;;  %vm2160_vm5 = vcmp.eq.f32.partialorder %v2159_v41, 8.507059e+37 }
0x1886   :  { %v2177_v24 = vor.u32 1.1754944e-38, %v2176_v27 }
0x1889   :  { %v4859_v11 = vpop.eup %4858 }
0x188a   :  { %v4861_v12 = vpop.eup %4860  ;;  %v2151_v15 = vmul.f32 %v4859_v11, %v2148_v6  ;;  %vm2156_vm13 = vweird.f32 %v4859_v11 }
0x188b   :  { %v2166_v20 = vmul.f32 %v4861_v12, %v2149_v8  ;;  %vm2171_vm14 = vweird.f32 %v4861_v12  ;;  %vm2157_vm1 = vmor %vm2155_vm15, %vm2156_vm13 }
0x188c   :  { %v2152_v25 = vsub.f32 1.0, %v2151_v15  ;;  %vm2172_vm4 = vmor %vm2170_vm2, %vm2171_vm14 }
0x188d   :  { %v2167_v30 = vsub.f32 1.0, %v2166_v20 }
0x188f   :  { %v2168_v36 = vmul.f32 %v4861_v12, %v2167_v30 }
0x1891   :  { %v2169_v17 = vadd.f32 %v4861_v12, %v2168_v36 }
0x1893   :  { %v2173_v48 = vsel %vm2172_vm4, %v4861_v12, %v2169_v17 }
0x18af   :  { %v2297_v7 = vpop.permute.xlu0 %2296 }
0x18b0   :  { %v2301_v9 = vmul.f32 %v2297_v7, %v2258_v29  ;;  %v2153_v29 = vmul.f32 %v4859_v11, %v2152_v25 }
0x18b2   :  { %v2338_v13 = vpack.c.bf16 %v2301_v9, %v2301_v9  ;;  %v3558_v10 = vrot.slane %v2301_v9, 2  ;;  %v2154_v37 = vadd.f32 %v4859_v11, %v2153_v29 }
0x18b4   :  { %v2342_v23 = vunpack.c.l.b16 %v2338_v13  ;;  %v2158_v18 = vsel %vm2157_vm1, %v4859_v11, %v2154_v37 }
0x18b5   :  { %v2163_v46 = vsel %vm2160_vm5, %v2162_v45, %v2158_v18 }
0x18b6   :  { %v2344_v32 = vrot.slane %v2342_v23, 4  ;;  %v2188_v59 = vmul.f32 %v2184_v58, %v2163_v46 }
0x18de   :  { %v2295_v14 = vpop.permute.xlu1 %2294 }
0x18df   :  { %v2300_v16 = vmul.f32 %v2295_v14, %v2243_v42  ;;  %v2174_v42 = vand.u32 2147483647, %v2149_v8 }
0x18e1   :  { %v2337_v31 = vpack.c.bf16 %v2300_v16, %v2300_v16  ;;  %v3557_v53 = vrot.slane %v2300_v16, 3  ;;  %vm2175_vm6 = vcmp.eq.f32.partialorder %v2174_v42, 8.507059e+37 }
0x18e2   :  { %v2178_v50 = vsel %vm2175_vm6, %v2177_v24, %v2173_v48 }
0x18e3   :  { %v2341_v26 = vunpack.c.l.b16 %v2337_v31  ;;  %v5772_v54 = vsel %vm3478_vm11, %v3558_v10, %v3557_v53  ;;  %v2189_v63 = vmul.f32 %v2185_v55, %v2178_v50 }
0x18e5   :  { %v2343_v33 = vrot.slane %v2341_v26, 5 }
0x18e7   :  { %v2345_v34 = vsel %vm1843_vm7, %v2344_v32, %v2343_v33  ;;  %v5099_v32 = vld [vmem:[%s6201_s14] sm:$0xff] }
0x18e8   :  { %v2346_v22 = vpack.c.b16 %v2345_v34, %v2345_v34 }
0x18ea   :  { %2347 = vrot.lane.b32.xlu2 %v2346_v22, %s5131_s29 }
0x18f1   :  { %v2193_v19 = vpop.permute.xlu1 %2192 }
0x18f2   :  { %v2198_v21 = vmul.f32 %v2193_v19, %v2163_v46  ;;  %v2195_v51 = vpop.permute.xlu0 %2194 }
0x18f3   :  { %v2199_v52 = vmul.f32 %v2195_v51, %v2178_v50 }
0x18f4   :  { %2202 = vrot.lane.b32.xlu2 %v2198_v21, %s5130_s13 }
0x18f5   :  { %2204 = vrot.lane.b32.xlu1 %v2199_v52, %s5130_s13 }
0x1944   :  { %v2348_v3 = vpop.permute.xlu2 %2347 }
0x1945   :  { %4561 = vmatmul.msk.bf16.vlgmr.msrb.gmra.mxu0 %vm252_vm8, %v2348_v3 }
0x1946   :  { %3293 = vmatpush.bf16.msrb.mxu0 %v5098_v35 }
0x194e   :  { %v2203_v60 = vpop.permute.xlu2 %2202 }
0x194f   :  { %v5783_v61 = vadd.f32 %v2203_v60, %v2188_v59 }
0x1951   :  { %4862 = vtanh.f32 %v5783_v61 }
0x1957   :  { %v4863_v62 = vpop.eup %4862 }
0x1958   :  { %2214 = vrot.lane.b32.xlu0 %v4863_v62, %s5130_s13 }
0x1967   :  { %v2205_v0 = vpop.permute.xlu1 %2204 }
0x1968   :  { %v5788_v1 = vadd.f32 %v2205_v0, %v2189_v63 }
0x196a   :  { %4864 = vtanh.f32 %v5788_v1 }
0x1970   :  { %v4865_v2 = vpop.eup %4864 }
0x1971   :  { %2216 = vrot.lane.b32.xlu2 %v4865_v2, %s5130_s13 }
0x19c2   :  { %v2361_v39 = vpop.f32.mrf.mxu0 }
0x19c3   :  { %v2366_v4 = vrot.slane %v2361_v39, 4  ;;  %v2367_v6 = vrot.slane %v2361_v39, 5 }
0x19c5   :  { %2370 = vrot.lane.b32.xlu0 %v2367_v6, %s5128_s12  ;;  %2368 = vrot.lane.b32.xlu1 %v2366_v4, %s5128_s12 }
0x19ca   :  { %v2363_v8 = vpop.f32.mrf.mxu0  ;;  %v2215_v7 = vpop.permute.xlu0 %2214 }
0x19cb   :  { %v2217_v9 = vpop.permute.xlu2 %2216  ;;  %v2220_v44 = vmul.f32 %v2215_v7, %v2163_v46 }
0x19cc   :  { %v2221_v11 = vmul.f32 %v2217_v9, %v2178_v50 }
0x19cd   :  { %v2302_v12 = vpack.c.bf16 %v2220_v44, %v2220_v44  ;;  %v3483_v13 = vrot.slane %v2220_v44, 6  ;;  %v2498_v44 = vrot.slane %v5763_v56, 1 }
0x19ce   :  { %v2303_v14 = vpack.c.bf16 %v2221_v11, %v2221_v11  ;;  %v3484_v15 = vrot.slane %v2221_v11, 5 }
0x19cf   :  { %v2306_v16 = vunpack.c.l.b16 %v2302_v12 }
0x19d0   :  { %v2307_v20 = vunpack.c.l.b16 %v2303_v14  ;;  %v3486_v23 = vsel %vm3485_vm12, %v3484_v15, %v3483_v13 }
0x19d1   :  { %v2308_v10 = vrot.slane %v2306_v16, 2  ;;  %v5797_v31 = vsel %vm331_vm9, %v5749_v28, %v3486_v23  ;;  %v2499_v23 = vrot.slane %v5758_v47, 1 }
0x19d2   :  { %v2309_v53 = vrot.slane %v2307_v20, 1 }
0x19d4   :  { %v2310_v25 = vsel %vm1843_vm7, %v2309_v53, %v2308_v10 }
0x19d5   :  { %v2311_v26 = vpack.c.b16 %v2310_v25, %v2310_v25 }
0x19d7   :  { %2312 = vrot.lane.b32.xlu2 %v2311_v26, %s5132_s4 }
0x1a31   :  { %v2313_v30 = vpop.permute.xlu2 %2312 }
0x1a32   :  { %4560 = vmatmul.msk.bf16.vlgmr.msra.gmra.mxu3 %vm252_vm8, %v2313_v30 }
0x1a33   :  { %3259 = vmatpush.bf16.msra.mxu3 %v5099_v32 }
0x1a37   :  { %v2369_v33 = vpop.permute.xlu1 %2368  ;;  %v2371_v29 = vpop.permute.xlu0 %2370 }
0x1a38   :  { %v2374_v34 = vadd.f32 %v2369_v33, %v5651_v40  ;;  %v2375_v28 = vadd.f32 %v2371_v29, %v5654_v43 }
0x1a3a   :  { %4866 = vtanh.f32 %v2374_v34  ;;  %v4564_v37 = vmul.f32 -1.442695, %v2374_v34  ;;  %v4565_v38 = vmul.f32 -1.442695, %v2375_v28 }
0x1a3b   :  { %4868 = vtanh.f32 %v2375_v28 }
0x1a3c   :  { %4870 = vpow2.f32 %v4564_v37 }
0x1a3d   :  { %4872 = vpow2.f32 %v4565_v38 }
0x1a40   :  { %v4867_v36 = vpop.eup %4866 }
0x1a41   :  { %v4869_v22 = vpop.eup %4868  ;;  %2506 = vrot.lane.b32.xlu1 %v4867_v36, %s5129_s11 }
0x1a42   :  { %2508 = vrot.lane.b32.xlu0 %v4869_v22, %s5129_s11  ;;  %v4871_v17 = vpop.eup %4870 }
0x1a43   :  { %v4873_v41 = vpop.eup %4872  ;;  %v2462_v27 = vadd.f32 1.0, %v4871_v17 }
0x1a44   :  { %v2463_v42 = vadd.f32 1.0, %v4873_v41 }
0x1a45   :  { %4874 = vrcp.f32 %v2462_v27  ;;  %v2475_v52 = vand.u32 2147483648, %v2462_v27  ;;  %vm2469_vm15 = vweird.f32 %v2462_v27  ;;  %v2473_v35 = vand.u32 2147483647, %v2462_v27 }
0x1a46   :  { %4876 = vrcp.f32 %v2463_v42  ;;  %v2490_v58 = vand.u32 2147483648, %v2463_v42  ;;  %vm2484_vm2 = vweird.f32 %v2463_v42  ;;  %v2488_v59 = vand.u32 2147483647, %v2463_v42 }
0x1a47   :  { %v2476_v62 = vor.u32 1.1754944e-38, %v2475_v52  ;;  %vm2474_vm5 = vcmp.eq.f32.partialorder %v2473_v35, 8.507059e+37 }
0x1a48   :  { %v2491_v63 = vor.u32 1.1754944e-38, %v2490_v58  ;;  %vm2489_vm6 = vcmp.eq.f32.partialorder %v2488_v59, 8.507059e+37 }
0x1a4b   :  { %v4875_v18 = vpop.eup %4874 }
0x1a4c   :  { %v4877_v45 = vpop.eup %4876  ;;  %v2465_v48 = vmul.f32 %v4875_v18, %v2462_v27  ;;  %vm2470_vm13 = vweird.f32 %v4875_v18 }
0x1a4d   :  { %v2480_v24 = vmul.f32 %v4877_v45, %v2463_v42  ;;  %vm2485_vm14 = vweird.f32 %v4877_v45  ;;  %vm2471_vm1 = vmor %vm2469_vm15, %vm2470_vm13 }
0x1a4e   :  { %v2466_v46 = vsub.f32 1.0, %v2465_v48  ;;  %vm2486_vm4 = vmor %vm2484_vm2, %vm2485_vm14 }
0x1a4f   :  { %v2481_v19 = vsub.f32 1.0, %v2480_v24 }
0x1a50   :  { %v2467_v21 = vmul.f32 %v4875_v18, %v2466_v46 }
0x1a51   :  { %v2482_v50 = vmul.f32 %v4877_v45, %v2481_v19 }
0x1a52   :  { %v2468_v51 = vadd.f32 %v4875_v18, %v2467_v21 }
0x1a53   :  { %v2483_v3 = vadd.f32 %v4877_v45, %v2482_v50 }
0x1a54   :  { %v2472_v60 = vsel %vm2471_vm1, %v4875_v18, %v2468_v51  ;;  %vm3521_vm1 = vcmask 1045504  }
0x1a55   :  { %v2487_v55 = vsel %vm2486_vm4, %v4877_v45, %v2483_v3  ;;  %v2477_v2 = vsel %vm2474_vm5, %v2476_v62, %v2472_v60 }
0x1a56   :  { %v2492_v6 = vsel %vm2489_vm6, %v2491_v63, %v2487_v55  ;;  %v2502_v11 = vmul.f32 %v2498_v44, %v2477_v2 }
0x1a57   :  { %v2503_v10 = vmul.f32 %v2499_v23, %v2492_v6 }
0x1ab3   :  { %v2507_v0 = vpop.permute.xlu1 %2506 }
0x1ab4   :  { %v2512_v39 = vmul.f32 %v2507_v0, %v2477_v2  ;;  %v2509_v4 = vpop.permute.xlu0 %2508 }
0x1ab5   :  { %v2513_v8 = vmul.f32 %v2509_v4, %v2492_v6  ;;  %v2326_v7 = vpop.f32.mrf.mxu3 }
0x1ab6   :  { %2516 = vrot.lane.b32.xlu2 %v2512_v39, %s5130_s13  ;;  %v2331_v14 = vrot.slane %v2326_v7, 5  ;;  %v2332_v25 = vrot.slane %v2326_v7, 6 }
0x1ab7   :  { %2518 = vrot.lane.b32.xlu1 %v2513_v8, %s5130_s13 }
0x1ab8   :  { %v2335_v15 = vadd.f32 %v2331_v14, %v5651_v40  ;;  %v2336_v26 = vadd.f32 %v2332_v25, %v5654_v43 }
0x1aba   :  { %v4563_v33 = vmul.f32 -1.442695, %v2336_v26  ;;  %v4562_v29 = vmul.f32 -1.442695, %v2335_v15 }
0x1abd   :  { %v2328_v9 = vpop.f32.mrf.mxu3 }
0x1b10   :  { %v2517_v12 = vpop.permute.xlu2 %2516 }
0x1b11   :  { %v5812_v13 = vadd.f32 %v2517_v12, %v2502_v11 }
0x1b13   :  { %4878 = vtanh.f32 %v5812_v13 }
0x1b14   :  { %4880 = vtanh.f32 %v2335_v15 }
0x1b19   :  { %v4879_v16 = vpop.eup %4878 }
0x1b1a   :  { %2528 = vrot.lane.b32.xlu0 %v4879_v16, %s5130_s13  ;;  %v4881_v20 = vpop.eup %4880 }
0x1b22   :  { %2426 = vrot.lane.b32.xlu0 %v4881_v20, %s5129_s11  ;;  %v2419_v20 = vrot.slane %v5788_v1, 7 }
0x1b29   :  { %v2519_v56 = vpop.permute.xlu1 %2518 }
0x1b2a   :  { %v5819_v53 = vadd.f32 %v2519_v56, %v2503_v10 }
0x1b2c   :  { %4882 = vtanh.f32 %v5819_v53 }
0x1b2d   :  { %4884 = vtanh.f32 %v2336_v26  ;;  %v2418_v26 = vrot.slane %v5783_v61, 7 }
0x1b2e   :  { %4886 = vpow2.f32 %v4563_v33 }
0x1b2f   :  { %4888 = vpow2.f32 %v4562_v29 }
0x1b32   :  { %v4883_v30 = vpop.eup %4882 }
0x1b33   :  { %2530 = vrot.lane.b32.xlu2 %v4883_v30, %s5130_s13  ;;  %v4885_v32 = vpop.eup %4884 }
0x1b34   :  { %v4887_v47 = vpop.eup %4886 }
0x1b35   :  { %v2383_v34 = vadd.f32 1.0, %v4887_v47  ;;  %v4889_v28 = vpop.eup %4888 }
0x1b36   :  { %v2382_v36 = vadd.f32 1.0, %v4889_v28 }
0x1b37   :  { %4890 = vrcp.f32 %v2383_v34  ;;  %v2410_v50 = vand.u32 2147483648, %v2383_v34  ;;  %vm2404_vm14 = vweird.f32 %v2383_v34  ;;  %v2408_v3 = vand.u32 2147483647, %v2383_v34 }
0x1b38   :  { %4892 = vrcp.f32 %v2382_v36  ;;  %vm2389_vm5 = vweird.f32 %v2382_v36  ;;  %v2393_v12 = vand.u32 2147483647, %v2382_v36 }
0x1b39   :  { %v2411_v0 = vor.u32 1.1754944e-38, %v2410_v50  ;;  %vm2409_vm2 = vcmp.eq.f32.partialorder %v2408_v3, 8.507059e+37 }
0x1b3b   :  { %2428 = vrot.lane.b32.xlu2 %v4885_v32, %s5129_s11 }
0x1b3d   :  { %v4891_v22 = vpop.eup %4890 }
0x1b3e   :  { %v2400_v37 = vmul.f32 %v4891_v22, %v2383_v34  ;;  %v4893_v17 = vpop.eup %4892  ;;  %vm2405_vm13 = vweird.f32 %v4891_v22 }
0x1b3f   :  { %v2385_v27 = vmul.f32 %v4893_v17, %v2382_v36  ;;  %vm2406_vm15 = vmor %vm2404_vm14, %vm2405_vm13  ;;  %vm2390_vm4 = vweird.f32 %v4893_v17  ;;  %vm2394_vm13 = vcmp.eq.f32.partialorder %v2393_v12, 8.507059e+37 }
0x1b40   :  { %v2401_v38 = vsub.f32 1.0, %v2400_v37  ;;  %vm2391_vm6 = vmor %vm2389_vm5, %vm2390_vm4 }
0x1b41   :  { %v2386_v21 = vsub.f32 1.0, %v2385_v27 }
0x1b42   :  { %v2402_v41 = vmul.f32 %v4891_v22, %v2401_v38 }
0x1b43   :  { %v2387_v63 = vmul.f32 %v4893_v17, %v2386_v21 }
0x1b44   :  { %v2403_v24 = vadd.f32 %v4891_v22, %v2402_v41 }
0x1b45   :  { %v2388_v44 = vadd.f32 %v4893_v17, %v2387_v63 }
0x1b46   :  { %v2407_v60 = vsel %vm2406_vm15, %v4891_v22, %v2403_v24 }
0x1b47   :  { %v2412_v4 = vsel %vm2409_vm2, %v2411_v0, %v2407_v60 }
0x1b48   :  { %v2423_v23 = vmul.f32 %v2419_v20, %v2412_v4 }
0x1b8c   :  { %v2529_v42 = vpop.permute.xlu0 %2528 }
0x1b8d   :  { %v2534_v18 = vmul.f32 %v2529_v42, %v2477_v2  ;;  %v2531_v45 = vpop.permute.xlu2 %2530 }
0x1b8e   :  { %v2535_v48 = vmul.f32 %v2531_v45, %v2492_v6 }
0x1b8f   :  { %v2571_v46 = vpack.c.bf16 %v2534_v18, %v2534_v18  ;;  %v3551_v19 = vrot.slane %v2534_v18, 4 }
0x1b90   :  { %v2572_v51 = vpack.c.bf16 %v2535_v48, %v2535_v48  ;;  %v3552_v52 = vrot.slane %v2535_v48, 3 }
0x1b91   :  { %v2575_v35 = vunpack.c.l.b16 %v2571_v46 }
0x1b92   :  { %v2576_v58 = vunpack.c.l.b16 %v2572_v51  ;;  %v3553_v59 = vsel %vm1843_vm7, %v3552_v52, %v3551_v19 }
0x1b93   :  { %v2577_v62 = vrot.slane %v2575_v35, 4  ;;  %v3575_v55 = vsel %vm3518_vm10, %v3553_v59, %v5772_v54  ;;  %v2395_v54 = vand.u32 2147483648, %v2382_v36 }
0x1b94   :  { %v2578_v2 = vrot.slane %v2576_v58, 3  ;;  %v3576_v39 = vsel %vm331_vm9, %v3575_v55, %v5722_v5  ;;  %v2392_v5 = vsel %vm2391_vm6, %v4893_v17, %v2388_v44  ;;  %v2427_v15 = vpop.permute.xlu0 %2426 }
0x1b95   :  { %v2429_v6 = vpop.permute.xlu2 %2428  ;;  %v5832_v8 = vsel %vm3521_vm1, %v3576_v39, %v5676_v57  ;;  %v2396_v14 = vor.u32 1.1754944e-38, %v2395_v54 }
0x1b96   :  { %v2433_v7 = vmul.f32 %v2429_v6, %v2412_v4  ;;  %v2579_v9 = vsel %vm1843_vm7, %v2578_v2, %v2577_v62 }
0x1b97   :  { %v2580_v11 = vpack.c.b16 %v2579_v9, %v2579_v9  ;;  %v2397_v57 = vsel %vm2394_vm13, %v2396_v14, %v2392_v5 }
0x1b98   :  { %2438 = vrot.lane.b32.xlu0 %v2433_v7, %s5130_s13  ;;  %v2432_v16 = vmul.f32 %v2427_v15, %v2397_v57  ;;  %v2422_v30 = vmul.f32 %v2418_v26, %v2397_v57 }
0x1b99   :  { %2581 = vrot.lane.b32.xlu1 %v2580_v11, %s5131_s29 }
0x1ba1   :  { %2436 = vrot.lane.b32.xlu1 %v2432_v16, %s5130_s13 }
0x1c0a   :  { %v2439_v10 = vpop.permute.xlu0 %2438 }
0x1c0b   :  { %v5839_v56 = vadd.f32 %v2439_v10, %v2423_v23  ;;  %v2582_v25 = vpop.permute.xlu1 %2581 }
0x1c0c   :  { %4567 = vmatmul.msk.bf16.vlgmr.msrb.gmra.mxu2 %vm252_vm8, %v2582_v25 }
0x1c0d   :  { %4894 = vtanh.f32 %v5839_v56 }
0x1c13   :  { %v4895_v32 = vpop.eup %4894  ;;  %v2437_v33 = vpop.permute.xlu1 %2436 }
0x1c14   :  { %v5844_v29 = vadd.f32 %v2437_v33, %v2422_v30  ;;  %2450 = vrot.lane.b32.xlu1 %v4895_v32, %s5130_s13 }
0x1c16   :  { %4896 = vtanh.f32 %v5844_v29 }
0x1c1c   :  { %v4897_v1 = vpop.eup %4896 }
0x1c1d   :  { %2448 = vrot.lane.b32.xlu2 %v4897_v1, %s5130_s13 }
0x1c77   :  { %v2449_v47 = vpop.permute.xlu2 %2448 }
0x1c78   :  { %v2454_v34 = vmul.f32 %v2449_v47, %v2397_v57 }
0x1c7a   :  { %v2536_v28 = vpack.c.bf16 %v2454_v34, %v2454_v34  ;;  %v3490_v38 = vrot.slane %v2454_v34, 5 }
0x1c7c   :  { %v2540_v37 = vunpack.c.l.b16 %v2536_v28 }
0x1c7e   :  { %v2542_v18 = vrot.slane %v2540_v37, 3 }
0x1c86   :  { %v2451_v36 = vpop.permute.xlu1 %2450 }
0x1c87   :  { %v2455_v22 = vmul.f32 %v2451_v36, %v2412_v4 }
0x1c89   :  { %v2537_v61 = vpack.c.bf16 %v2455_v22, %v2455_v22  ;;  %v3491_v17 = vrot.slane %v2455_v22, 4 }
0x1c8b   :  { %v2541_v41 = vunpack.c.l.b16 %v2537_v61  ;;  %v3493_v27 = vsel %vm3492_vm3, %v3491_v17, %v3490_v38  ;;  %v2732_v61 = vrot.slane %v5812_v13, 1  ;;  %v2733_v17 = vrot.slane %v5819_v53, 1 }
0x1c8c   :  { %v5852_v42 = vsel %vm3521_vm1, %v5797_v31, %v3493_v27 }
0x1c8d   :  { %v2543_v45 = vrot.slane %v2541_v41, 2 }
0x1c8f   :  { %v2595_v48 = vpop.f32.mrf.mxu2  ;;  %v2544_v24 = vsel %vm1843_vm7, %v2543_v45, %v2542_v18 }
0x1c90   :  { %v2600_v46 = vrot.slane %v2595_v48, 5  ;;  %v2601_v19 = vrot.slane %v2595_v48, 6  ;;  %v2545_v21 = vpack.c.b16 %v2544_v24, %v2544_v24 }
0x1c92   :  { %2602 = vrot.lane.b32.xlu2 %v2600_v46, %s5128_s12  ;;  %2604 = vrot.lane.b32.xlu1 %v2601_v19, %s5128_s12 }
0x1c93   :  { %2546 = vrot.lane.b32.xlu0 %v2545_v21, %s5132_s4 }
0x1c97   :  { %v2597_v50 = vpop.f32.mrf.mxu2 }
0x1cec   :  { %v2603_v51 = vpop.permute.xlu2 %2602 }
0x1ced   :  { %v2608_v52 = vadd.f32 %v2603_v51, %v5651_v40 }
0x1cef   :  { %4898 = vtanh.f32 %v2608_v52  ;;  %v4570_v60 = vmul.f32 -1.442695, %v2608_v52 }
0x1cf5   :  { %v4899_v31 = vpop.eup %4898 }
0x1cf6   :  { %2740 = vrot.lane.b32.xlu0 %v4899_v31, %s5129_s11 }
0x1d04   :  { %v2605_v3 = vpop.permute.xlu1 %2604 }
0x1d05   :  { %v2609_v35 = vadd.f32 %v2605_v3, %v5654_v43  ;;  %v2547_v58 = vpop.permute.xlu0 %2546 }
0x1d06   :  { %4566 = vmatmul.msk.bf16.vlgmr.msrb.gmra.mxu1 %vm252_vm8, %v2547_v58 }
0x1d07   :  { %4900 = vtanh.f32 %v2609_v35  ;;  %v4571_v62 = vmul.f32 -1.442695, %v2609_v35 }
0x1d08   :  { %4902 = vpow2.f32 %v4570_v60 }
0x1d09   :  { %4904 = vpow2.f32 %v4571_v62 }
0x1d0d   :  { %v4901_v59 = vpop.eup %4900 }
0x1d0e   :  { %2742 = vrot.lane.b32.xlu2 %v4901_v59, %s5129_s11  ;;  %v4903_v55 = vpop.eup %4902 }
0x1d0f   :  { %v4905_v63 = vpop.eup %4904  ;;  %v2696_v0 = vadd.f32 1.0, %v4903_v55 }
0x1d10   :  { %v2697_v2 = vadd.f32 1.0, %v4905_v63 }
0x1d11   :  { %4906 = vrcp.f32 %v2696_v0  ;;  %vm2703_vm2 = vweird.f32 %v2696_v0  ;;  %v2709_v14 = vand.u32 2147483648, %v2696_v0  ;;  %v2707_v57 = vand.u32 2147483647, %v2696_v0 }
0x1d12   :  { %4908 = vrcp.f32 %v2697_v2  ;;  %v2724_v15 = vand.u32 2147483648, %v2697_v2  ;;  %vm2718_vm5 = vweird.f32 %v2697_v2  ;;  %v2722_v16 = vand.u32 2147483647, %v2697_v2 }
0x1d13   :  { %v2710_v10 = vor.u32 1.1754944e-38, %v2709_v14  ;;  %vm2708_vm13 = vcmp.eq.f32.partialorder %v2707_v57, 8.507059e+37 }
0x1d14   :  { %v2725_v25 = vor.u32 1.1754944e-38, %v2724_v15  ;;  %vm2723_vm0 = vcmp.eq.f32.partialorder %v2722_v16, 8.507059e+37 }
0x1d17   :  { %v4907_v39 = vpop.eup %4906 }
0x1d18   :  { %v4909_v4 = vpop.eup %4908  ;;  %v2699_v6 = vmul.f32 %v4907_v39, %v2696_v0  ;;  %vm2704_vm14 = vweird.f32 %v4907_v39 }
0x1d19   :  { %v2714_v7 = vmul.f32 %v4909_v4, %v2697_v2  ;;  %vm2719_vm15 = vweird.f32 %v4909_v4  ;;  %vm2705_vm4 = vmor %vm2703_vm2, %vm2704_vm14 }
0x1d1a   :  { %v2700_v9 = vsub.f32 1.0, %v2699_v6  ;;  %vm2720_vm6 = vmor %vm2718_vm5, %vm2719_vm15 }
0x1d1b   :  { %v2715_v44 = vsub.f32 1.0, %v2714_v7 }
0x1d1c   :  { %v2701_v11 = vmul.f32 %v4907_v39, %v2700_v9 }
0x1d1d   :  { %v2716_v54 = vmul.f32 %v4909_v4, %v2715_v44 }
0x1d1e   :  { %v2702_v12 = vadd.f32 %v4907_v39, %v2701_v11 }
0x1d1f   :  { %v2717_v5 = vadd.f32 %v4909_v4, %v2716_v54 }
0x1d20   :  { %v2706_v20 = vsel %vm2705_vm4, %v4907_v39, %v2702_v12 }
0x1d21   :  { %v2721_v23 = vsel %vm2720_vm6, %v4909_v4, %v2717_v5  ;;  %v5863_v30 = vsel %vm2708_vm13, %v2710_v10, %v2706_v20 }
0x1d22   :  { %v5865_v32 = vsel %vm2723_vm0, %v2725_v25, %v2721_v23  ;;  %v2736_v41 = vmul.f32 %v2732_v61, %v5863_v30 }
0x1d23   :  { %v2737_v27 = vmul.f32 %v2733_v17, %v5865_v32 }
0x1d68   :  { %v2741_v26 = vpop.permute.xlu0 %2740  ;;  %v2743_v33 = vpop.permute.xlu2 %2742 }
0x1d69   :  { %v2746_v1 = vmul.f32 %v2741_v26, %v5863_v30  ;;  %v2747_v47 = vmul.f32 %v2743_v33, %v5865_v32 }
0x1d6b   :  { %2750 = vrot.lane.b32.xlu1 %v2746_v1, %s5130_s13  ;;  %2752 = vrot.lane.b32.xlu0 %v2747_v47, %s5130_s13 }
0x1d83   :  { %v2560_v34 = vpop.f32.mrf.mxu1 }
0x1d84   :  { %v2565_v28 = vrot.slane %v2560_v34, 4  ;;  %v2566_v19 = vrot.slane %v2560_v34, 5 }
0x1d86   :  { %v2569_v36 = vadd.f32 %v2565_v28, %v5651_v40  ;;  %v2570_v13 = vadd.f32 %v2566_v19, %v5654_v43 }
0x1d88   :  { %4910 = vtanh.f32 %v2569_v36  ;;  %v4568_v38 = vmul.f32 -1.442695, %v2569_v36  ;;  %v4569_v39 = vmul.f32 -1.442695, %v2570_v13 }
0x1d8a   :  { %4912 = vpow2.f32 %v4568_v38 }
0x1d8b   :  { %v2562_v22 = vpop.f32.mrf.mxu1 }
0x1d8e   :  { %v4911_v37 = vpop.eup %4910 }
0x1d8f   :  { %2660 = vrot.lane.b32.xlu0 %v4911_v37, %s5129_s11 }
0x1d90   :  { %v4913_v48 = vpop.eup %4912 }
0x1d91   :  { %v2616_v21 = vadd.f32 1.0, %v4913_v48 }
0x1d93   :  { %v2629_v59 = vand.u32 2147483648, %v2616_v21  ;;  %vm2623_vm14 = vweird.f32 %v2616_v21  ;;  %v2627_v60 = vand.u32 2147483647, %v2616_v21 }
0x1d95   :  { %v2630_v55 = vor.u32 1.1754944e-38, %v2629_v59  ;;  %vm2628_vm2 = vcmp.eq.f32.partialorder %v2627_v60, 8.507059e+37 }
0x1ddd   :  { %v2751_v18 = vpop.permute.xlu1 %2750  ;;  %v2753_v45 = vpop.permute.xlu0 %2752 }
0x1dde   :  { %v5877_v24 = vadd.f32 %v2751_v18, %v2736_v41  ;;  %v5879_v46 = vadd.f32 %v2753_v45, %v2737_v27  ;;  %v2653_v45 = vrot.slane %v5839_v56, 7 }
0x1de0   :  { %4914 = vtanh.f32 %v5877_v24 }
0x1de1   :  { %4916 = vtanh.f32 %v5879_v46 }
0x1de2   :  { %4918 = vrcp.f32 %v2616_v21 }
0x1de3   :  { %4920 = vtanh.f32 %v2570_v13 }
0x1de4   :  { %4922 = vpow2.f32 %v4569_v39 }
0x1de6   :  { %v4915_v53 = vpop.eup %4914 }
0x1de7   :  { %v4917_v50 = vpop.eup %4916  ;;  %2762 = vrot.lane.b32.xlu2 %v4915_v53, %s5130_s13 }
0x1de8   :  { %2764 = vrot.lane.b32.xlu1 %v4917_v50, %s5130_s13  ;;  %v4919_v51 = vpop.eup %4918 }
0x1de9   :  { %v4921_v52 = vpop.eup %4920  ;;  %v2619_v31 = vmul.f32 %v4919_v51, %v2616_v21  ;;  %vm2624_vm0 = vweird.f32 %v4919_v51 }
0x1dea   :  { %vm2625_vm15 = vmor %vm2623_vm14, %vm2624_vm0  ;;  %v4923_v4 = vpop.eup %4922 }
0x1deb   :  { %v2620_v3 = vsub.f32 1.0, %v2619_v31  ;;  %v2617_v6 = vadd.f32 1.0, %v4923_v4 }
0x1ded   :  { %v2621_v35 = vmul.f32 %v4919_v51, %v2620_v3  ;;  %4924 = vrcp.f32 %v2617_v6  ;;  %v2644_v5 = vand.u32 2147483648, %v2617_v6  ;;  %vm2638_vm5 = vweird.f32 %v2617_v6 }
0x1dee   :  { %v2642_v14 = vand.u32 2147483647, %v2617_v6 }
0x1def   :  { %2662 = vrot.lane.b32.xlu2 %v4921_v52, %s5129_s11  ;;  %v2622_v58 = vadd.f32 %v4919_v51, %v2621_v35  ;;  %v2645_v57 = vor.u32 1.1754944e-38, %v2644_v5 }
0x1df0   :  { %vm2643_vm13 = vcmp.eq.f32.partialorder %v2642_v14, 8.507059e+37 }
0x1df1   :  { %v2626_v62 = vsel %vm2625_vm15, %v4919_v51, %v2622_v58 }
0x1df2   :  { %v2631_v63 = vsel %vm2628_vm2, %v2630_v55, %v2626_v62 }
0x1df3   :  { %v4925_v7 = vpop.eup %4924 }
0x1df4   :  { %v2634_v9 = vmul.f32 %v4925_v7, %v2617_v6  ;;  %vm2639_vm4 = vweird.f32 %v4925_v7 }
0x1df5   :  { %vm2640_vm6 = vmor %vm2638_vm5, %vm2639_vm4 }
0x1df6   :  { %v2635_v44 = vsub.f32 1.0, %v2634_v9 }
0x1df8   :  { %v2636_v11 = vmul.f32 %v4925_v7, %v2635_v44 }
0x1dfa   :  { %v2637_v12 = vadd.f32 %v4925_v7, %v2636_v11 }
0x1dfc   :  { %v2641_v15 = vsel %vm2640_vm6, %v4925_v7, %v2637_v12 }
0x1dfd   :  { %v2646_v16 = vsel %vm2643_vm13, %v2645_v57, %v2641_v15 }
0x1dfe   :  { %v2657_v48 = vmul.f32 %v2653_v45, %v2646_v16 }
0x1e01   :  { %v2661_v0 = vpop.permute.xlu0 %2660 }
0x1e02   :  { %v2666_v2 = vmul.f32 %v2661_v0, %v2631_v63 }
0x1e04   :  { %2670 = vrot.lane.b32.xlu0 %v2666_v2, %s5130_s13 }
0x1e41   :  { %v2763_v54 = vpop.permute.xlu2 %2762 }
0x1e42   :  { %v2768_v10 = vmul.f32 %v2763_v54, %v5863_v30  ;;  %v2652_v30 = vrot.slane %v5844_v29, 7 }
0x1e44   :  { %v2805_v25 = vpack.c.bf16 %v2768_v10, %v2768_v10  ;;  %v3545_v47 = vrot.slane %v2768_v10, 5  ;;  %v2656_v41 = vmul.f32 %v2652_v30, %v2631_v63 }
0x1e46   :  { %v2809_v1 = vunpack.c.l.b16 %v2805_v25 }
0x1e48   :  { %v2811_v37 = vrot.slane %v2809_v1, 3 }
0x1e49   :  { %v2663_v20 = vpop.permute.xlu2 %2662 }
0x1e4a   :  { %v2667_v23 = vmul.f32 %v2663_v20, %v2646_v16 }
0x1e4c   :  { %2672 = vrot.lane.b32.xlu2 %v2667_v23, %s5130_s13 }
0x1e5a   :  { %v2765_v26 = vpop.permute.xlu1 %2764 }
0x1e5b   :  { %v2769_v33 = vmul.f32 %v2765_v26, %v5865_v32 }
0x1e5d   :  { %v2806_v34 = vpack.c.bf16 %v2769_v33, %v2769_v33  ;;  %v3546_v28 = vrot.slane %v2769_v33, 4 }
0x1e5f   :  { %v2810_v36 = vunpack.c.l.b16 %v2806_v34  ;;  %v5892_v22 = vsel %vm3492_vm3, %v3546_v28, %v3545_v47 }
0x1e61   :  { %v2812_v38 = vrot.slane %v2810_v36, 2 }
0x1e63   :  { %v2813_v61 = vsel %vm1843_vm7, %v2812_v38, %v2811_v37 }
0x1e64   :  { %v2814_v17 = vpack.c.b16 %v2813_v61, %v2813_v61 }
0x1e66   :  { %2815 = vrot.lane.b32.xlu1 %v2814_v17, %s5131_s29 }
0x1e76   :  { %v2671_v27 = vpop.permute.xlu0 %2670 }
0x1e77   :  { %v5897_v32 = vadd.f32 %v2671_v27, %v2656_v41 }
0x1e79   :  { %4926 = vtanh.f32 %v5897_v32 }
0x1e7f   :  { %v4927_v18 = vpop.eup %4926 }
0x1e80   :  { %2682 = vrot.lane.b32.xlu1 %v4927_v18, %s5130_s13 }
0x1ea6   :  { %v2673_v19 = vpop.permute.xlu2 %2672 }
0x1ea7   :  { %v5902_v21 = vadd.f32 %v2673_v19, %v2657_v48 }
0x1ea9   :  { %4928 = vtanh.f32 %v5902_v21 }
0x1eaf   :  { %v4929_v13 = vpop.eup %4928 }
0x1eb0   :  { %2684 = vrot.lane.b32.xlu0 %v4929_v13, %s5130_s13 }
0x1ed8   :  { %v2816_v29 = vpop.permute.xlu1 %2815 }
0x1ed9   :  { %4573 = vmatmul.msk.bf16.vlgmr.msra.gmra.mxu0 %vm252_vm8, %v2816_v29 }
0x1ef2   :  { %v2683_v53 = vpop.permute.xlu1 %2682 }
0x1ef3   :  { %v2688_v50 = vmul.f32 %v2683_v53, %v2631_v63 }
0x1ef5   :  { %v2770_v51 = vpack.c.bf16 %v2688_v50, %v2688_v50  ;;  %v3497_v35 = vrot.slane %v2688_v50, 4 }
0x1ef7   :  { %v2774_v3 = vunpack.c.l.b16 %v2770_v51 }
0x1ef9   :  { %v2776_v62 = vrot.slane %v2774_v3, 4 }
0x1f22   :  { %v2685_v52 = vpop.permute.xlu0 %2684 }
0x1f23   :  { %v2689_v31 = vmul.f32 %v2685_v52, %v2646_v16 }
0x1f25   :  { %v2771_v56 = vpack.c.bf16 %v2689_v31, %v2689_v31  ;;  %v3498_v58 = vrot.slane %v2689_v31, 3 }
0x1f27   :  { %v2775_v59 = vunpack.c.l.b16 %v2771_v56  ;;  %v5908_v60 = vsel %vm1843_vm7, %v3498_v58, %v3497_v35 }
0x1f29   :  { %v2777_v55 = vrot.slane %v2775_v59, 3 }
0x1f2b   :  { %v2778_v0 = vsel %vm1843_vm7, %v2777_v55, %v2776_v62 }
0x1f2c   :  { %v2779_v2 = vpack.c.b16 %v2778_v0, %v2778_v0 }
0x1f2e   :  { %2780 = vrot.lane.b32.xlu2 %v2779_v2, %s5132_s4 }
0x1f56   :  { %v2829_v39 = vpop.f32.mrf.mxu0 }
0x1f57   :  { %v2834_v63 = vrot.slane %v2829_v39, 6  ;;  %v2835_v4 = vrot.slane %v2829_v39, 7 }
0x1f59   :  { %2836 = vrot.lane.b32.xlu1 %v2834_v63, %s5128_s12  ;;  %2838 = vrot.lane.b32.xlu0 %v2835_v4, %s5128_s12 }
0x1f5e   :  { %v2831_v6 = vpop.f32.mrf.mxu0 }
0x1f88   :  { %v2781_v7 = vpop.permute.xlu2 %2780 }
0x1f89   :  { %4572 = vmatmul.msk.bf16.vlgmr.msrb.gmra.mxu3 %vm252_vm8, %v2781_v7 }
0x1fcb   :  { %v2837_v9 = vpop.permute.xlu1 %2836  ;;  %v2839_v44 = vpop.permute.xlu0 %2838 }
0x1fcc   :  { %v2842_v11 = vadd.f32 %v2837_v9, %v5651_v40  ;;  %v2843_v54 = vadd.f32 %v2839_v44, %v5654_v43 }
0x1fce   :  { %4930 = vtanh.f32 %v2842_v11  ;;  %v4576_v14 = vmul.f32 -1.442695, %v2842_v11  ;;  %v4577_v33 = vmul.f32 -1.442695, %v2843_v54 }
0x1fcf   :  { %4932 = vtanh.f32 %v2843_v54 }
0x1fd0   :  { %4934 = vpow2.f32 %v4576_v14 }
0x1fd4   :  { %v4931_v12 = vpop.eup %4930 }
0x1fd5   :  { %v4933_v5 = vpop.eup %4932  ;;  %2974 = vrot.lane.b32.xlu2 %v4931_v12, %s5129_s11 }
0x1fd6   :  { %2976 = vrot.lane.b32.xlu1 %v4933_v5, %s5129_s11  ;;  %v4935_v15 = vpop.eup %4934 }
0x1fd7   :  { %v2930_v20 = vadd.f32 1.0, %v4935_v15 }
0x1fd9   :  { %v2943_v38 = vand.u32 2147483648, %v2930_v20  ;;  %vm2937_vm14 = vweird.f32 %v2930_v20  ;;  %v2941_v61 = vand.u32 2147483647, %v2930_v20 }
0x1fdb   :  { %v2944_v41 = vor.u32 1.1754944e-38, %v2943_v38  ;;  %vm2942_vm2 = vcmp.eq.f32.partialorder %v2941_v61, 8.507059e+37 }
0x200c   :  { %v2794_v57 = vpop.f32.mrf.mxu3 }
0x200d   :  { %v2799_v16 = vrot.slane %v2794_v57, 3  ;;  %v2800_v17 = vrot.slane %v2794_v57, 4 }
0x200f   :  { %v2803_v23 = vadd.f32 %v2799_v16, %v5651_v40  ;;  %v2804_v27 = vadd.f32 %v2800_v17, %v5654_v43 }
0x2011   :  { %4936 = vtanh.f32 %v2803_v23  ;;  %v4574_v62 = vmul.f32 -1.442695, %v2803_v23  ;;  %v4575_v44 = vmul.f32 -1.442695, %v2804_v27  ;;  %v2966_v23 = vrot.slane %v5877_v24, 1 }
0x2012   :  { %4938 = vrcp.f32 %v2930_v20 }
0x2013   :  { %4940 = vpow2.f32 %v4577_v33 }
0x2014   :  { %v2796_v10 = vpop.f32.mrf.mxu3 }
0x2015   :  { %v2967_v10 = vrot.slane %v5879_v46, 1 }
0x2017   :  { %v4937_v25 = vpop.eup %4936 }
0x2018   :  { %2894 = vrot.lane.b32.xlu1 %v4937_v25, %s5129_s11  ;;  %v4939_v26 = vpop.eup %4938 }
0x2019   :  { %v2933_v1 = vmul.f32 %v4939_v26, %v2930_v20  ;;  %v4941_v28 = vpop.eup %4940  ;;  %vm2938_vm0 = vweird.f32 %v4939_v26 }
0x201a   :  { %v2931_v36 = vadd.f32 1.0, %v4941_v28  ;;  %vm2939_vm15 = vmor %vm2937_vm14, %vm2938_vm0 }
0x201b   :  { %v2934_v47 = vsub.f32 1.0, %v2933_v1 }
0x201c   :  { %4942 = vrcp.f32 %v2931_v36  ;;  %v2958_v52 = vand.u32 2147483648, %v2931_v36  ;;  %vm2952_vm5 = vweird.f32 %v2931_v36  ;;  %v2956_v31 = vand.u32 2147483647, %v2931_v36 }
0x201d   :  { %v2935_v34 = vmul.f32 %v4939_v26, %v2934_v47  ;;  %4944 = vtanh.f32 %v2804_v27 }
0x201e   :  { %v2959_v35 = vor.u32 1.1754944e-38, %v2958_v52  ;;  %vm2957_vm13 = vcmp.eq.f32.partialorder %v2956_v31, 8.507059e+37  ;;  %4946 = vpow2.f32 %v4574_v62 }
0x201f   :  { %v2936_v37 = vadd.f32 %v4939_v26, %v2935_v34 }
0x2021   :  { %v2940_v30 = vsel %vm2939_vm15, %v4939_v26, %v2936_v37 }
0x2022   :  { %v5922_v18 = vsel %vm2942_vm2, %v2944_v41, %v2940_v30  ;;  %v4943_v19 = vpop.eup %4942 }
0x2023   :  { %v2948_v13 = vmul.f32 %v4943_v19, %v2931_v36  ;;  %v4945_v29 = vpop.eup %4944  ;;  %vm2953_vm4 = vweird.f32 %v4943_v19  ;;  %v2970_v25 = vmul.f32 %v2966_v23, %v5922_v18 }
0x2024   :  { %vm2954_vm6 = vmor %vm2952_vm5, %vm2953_vm4  ;;  %v4947_v55 = vpop.eup %4946 }
0x2025   :  { %v2949_v53 = vsub.f32 1.0, %v2948_v13  ;;  %v2850_v0 = vadd.f32 1.0, %v4947_v55 }
0x2027   :  { %v2950_v50 = vmul.f32 %v4943_v19, %v2949_v53  ;;  %4948 = vrcp.f32 %v2850_v0  ;;  %v2863_v7 = vand.u32 2147483648, %v2850_v0  ;;  %vm2857_vm14 = vweird.f32 %v2850_v0 }
0x2028   :  { %v2861_v9 = vand.u32 2147483647, %v2850_v0  ;;  %4950 = vpow2.f32 %v4575_v44 }
0x2029   :  { %v2951_v51 = vadd.f32 %v4943_v19, %v2950_v50  ;;  %v2864_v54 = vor.u32 1.1754944e-38, %v2863_v7 }
0x202a   :  { %vm2862_vm2 = vcmp.eq.f32.partialorder %v2861_v9, 8.507059e+37 }
0x202b   :  { %v2955_v3 = vsel %vm2954_vm6, %v4943_v19, %v2951_v51  ;;  %v2887_v51 = vrot.slane %v5902_v21, 7 }
0x202c   :  { %v5927_v58 = vsel %vm2957_vm13, %v2959_v35, %v2955_v3 }
0x202d   :  { %v4949_v2 = vpop.eup %4948  ;;  %v2971_v26 = vmul.f32 %v2967_v10, %v5927_v58 }
0x202e   :  { %v2853_v39 = vmul.f32 %v4949_v2, %v2850_v0  ;;  %vm2858_vm0 = vweird.f32 %v4949_v2  ;;  %v4951_v15 = vpop.eup %4950 }
0x202f   :  { %v2975_v45 = vpop.permute.xlu2 %2974  ;;  %vm2859_vm15 = vmor %vm2857_vm14, %vm2858_vm0  ;;  %v2851_v57 = vadd.f32 1.0, %v4951_v15 }
0x2030   :  { %v2980_v48 = vmul.f32 %v2975_v45, %v5922_v18  ;;  %v2854_v63 = vsub.f32 1.0, %v2853_v39 }
0x2031   :  { %4952 = vrcp.f32 %v2851_v57  ;;  %v2878_v46 = vand.u32 2147483648, %v2851_v57  ;;  %vm2872_vm5 = vweird.f32 %v2851_v57  ;;  %v2876_v61 = vand.u32 2147483647, %v2851_v57 }
0x2032   :  { %2984 = vrot.lane.b32.xlu0 %v2980_v48, %s5130_s13  ;;  %v2855_v4 = vmul.f32 %v4949_v2, %v2854_v63  ;;  %v2886_v48 = vrot.slane %v5897_v32, 7 }
0x2033   :  { %v2879_v30 = vor.u32 1.1754944e-38, %v2878_v46  ;;  %vm2877_vm13 = vcmp.eq.f32.partialorder %v2876_v61, 8.507059e+37 }
0x2034   :  { %v2856_v6 = vadd.f32 %v4949_v2, %v2855_v4 }
0x2036   :  { %v2860_v11 = vsel %vm2859_vm15, %v4949_v2, %v2856_v6 }
0x2037   :  { %v5931_v12 = vsel %vm2862_vm2, %v2864_v54, %v2860_v11  ;;  %v4953_v16 = vpop.eup %4952 }
0x2038   :  { %v2868_v20 = vmul.f32 %v4953_v16, %v2851_v57  ;;  %vm2873_vm4 = vweird.f32 %v4953_v16  ;;  %v2890_v19 = vmul.f32 %v2886_v48, %v5931_v12 }
0x2039   :  { %vm2874_vm6 = vmor %vm2872_vm5, %vm2873_vm4 }
0x203a   :  { %2896 = vrot.lane.b32.xlu0 %v4945_v29, %s5129_s11  ;;  %v2869_v1 = vsub.f32 1.0, %v2868_v20 }
0x203c   :  { %v2870_v36 = vmul.f32 %v4953_v16, %v2869_v1 }
0x203e   :  { %v2871_v37 = vadd.f32 %v4953_v16, %v2870_v36 }
0x2040   :  { %v2875_v17 = vsel %vm2874_vm6, %v4953_v16, %v2871_v37 }
0x2041   :  { %v2880_v27 = vsel %vm2877_vm13, %v2879_v30, %v2875_v17 }
0x2042   :  { %v2891_v52 = vmul.f32 %v2887_v51, %v2880_v27 }
0x2048   :  { %v2977_v56 = vpop.permute.xlu1 %2976 }
0x2049   :  { %v2981_v59 = vmul.f32 %v2977_v56, %v5927_v58 }
0x204b   :  { %2986 = vrot.lane.b32.xlu2 %v2981_v59, %s5130_s13 }
0x208a   :  { %v2895_v5 = vpop.permute.xlu1 %2894 }
0x208b   :  { %v2900_v14 = vmul.f32 %v2895_v5, %v5931_v12 }
0x208d   :  { %2904 = vrot.lane.b32.xlu0 %v2900_v14, %s5130_s13 }
0x20a4   :  { %v2985_v33 = vpop.permute.xlu0 %2984 }
0x20a5   :  { %v2987_v47 = vpop.permute.xlu2 %2986  ;;  %v5939_v34 = vadd.f32 %v2985_v33, %v2970_v25 }
0x20a6   :  { %v5941_v28 = vadd.f32 %v2987_v47, %v2971_v26 }
0x20a7   :  { %4954 = vtanh.f32 %v5939_v34 }
0x20a8   :  { %4956 = vtanh.f32 %v5941_v28 }
0x20ac   :  { %v2897_v41 = vpop.permute.xlu0 %2896 }
0x20ad   :  { %v4955_v24 = vpop.eup %4954  ;;  %v2901_v45 = vmul.f32 %v2897_v41, %v2880_v27 }
0x20ae   :  { %v4957_v38 = vpop.eup %4956  ;;  %2996 = vrot.lane.b32.xlu2 %v4955_v24, %s5130_s13 }
0x20af   :  { %2998 = vrot.lane.b32.xlu1 %v4957_v38, %s5130_s13 }
0x20b6   :  { %2906 = vrot.lane.b32.xlu2 %v2901_v45, %s5130_s13 }
0x20ff   :  { %v2905_v13 = vpop.permute.xlu0 %2904 }
0x2100   :  { %v5950_v29 = vadd.f32 %v2905_v13, %v2890_v19 }
0x2102   :  { %4958 = vtanh.f32 %v5950_v29 }
0x2108   :  { %v4959_v53 = vpop.eup %4958  ;;  %v2997_v50 = vpop.permute.xlu2 %2996 }
0x2109   :  { %2916 = vrot.lane.b32.xlu0 %v4959_v53, %s5130_s13  ;;  %v3002_v35 = vmul.f32 %v2997_v50, %v5922_v18 }
0x210b   :  { %v3039_v56 = vpack.c.bf16 %v3002_v35, %v3002_v35  ;;  %v3539_v0 = vrot.slane %v3002_v35, 6 }
0x210d   :  { %v3043_v55 = vunpack.c.l.b16 %v3039_v56 }
0x210f   :  { %v3045_v4 = vrot.slane %v3043_v55, 2 }
0x2110   :  { %v2907_v31 = vpop.permute.xlu2 %2906 }
0x2111   :  { %v5955_v3 = vadd.f32 %v2907_v31, %v2891_v52 }
0x2113   :  { %4960 = vtanh.f32 %v5955_v3 }
0x2119   :  { %v4961_v32 = vpop.eup %4960 }
0x211a   :  { %2918 = vrot.lane.b32.xlu2 %v4961_v32, %s5130_s13 }
0x2121   :  { %v2999_v59 = vpop.permute.xlu1 %2998 }
0x2122   :  { %v3003_v62 = vmul.f32 %v2999_v59, %v5927_v58 }
0x2124   :  { %v3040_v2 = vpack.c.bf16 %v3003_v62, %v3003_v62  ;;  %v3540_v39 = vrot.slane %v3003_v62, 5 }
0x2126   :  { %v3044_v21 = vunpack.c.l.b16 %v3040_v2  ;;  %v5962_v63 = vsel %vm3485_vm12, %v3540_v39, %v3539_v0 }
0x2128   :  { %v3046_v6 = vrot.slane %v3044_v21, 1 }
0x212a   :  { %v3047_v7 = vsel %vm1843_vm7, %v3046_v6, %v3045_v4 }
0x212b   :  { %v3048_v9 = vpack.c.b16 %v3047_v7, %v3047_v7 }
0x212d   :  { %3049 = vrot.lane.b32.xlu1 %v3048_v9, %s5131_s29 }
0x2174   :  { %v2919_v18 = vpop.permute.xlu2 %2918 }
0x2175   :  { %v2923_v44 = vmul.f32 %v2919_v18, %v2880_v27 }
0x2177   :  { %v3005_v11 = vpack.c.bf16 %v2923_v44, %v2923_v44  ;;  %v3504_v14 = vrot.slane %v2923_v44, 2 }
0x2179   :  { %v3009_v5 = vunpack.c.l.b16 %v3005_v11 }
0x217b   :  { %v2917_v54 = vpop.permute.xlu0 %2916  ;;  %v3011_v10 = vrot.slane %v3009_v5, 4 }
0x217c   :  { %v2922_v58 = vmul.f32 %v2917_v54, %v5931_v12 }
0x217e   :  { %v3004_v15 = vpack.c.bf16 %v2922_v58, %v2922_v58  ;;  %v3503_v57 = vrot.slane %v2922_v58, 3 }
0x2180   :  { %v3008_v16 = vunpack.c.l.b16 %v3004_v15  ;;  %v3505_v20 = vsel %vm3478_vm11, %v3504_v14, %v3503_v57 }
0x2181   :  { %v5970_v23 = vsel %vm3518_vm10, %v5908_v60, %v3505_v20 }
0x2182   :  { %v3010_v25 = vrot.slane %v3008_v16, 5 }
0x2184   :  { %v3012_v26 = vsel %vm1843_vm7, %v3011_v10, %v3010_v25 }
0x2185   :  { %v3013_v33 = vpack.c.b16 %v3012_v26, %v3012_v26 }
0x2187   :  { %3014 = vrot.lane.b32.xlu1 %v3013_v33, %s5132_s4 }
0x219f   :  { %v3050_v1 = vpop.permute.xlu1 %3049 }
0x21a0   :  { %4579 = vmatmul.msk.bf16.vlgmr.msra.gmra.mxu2 %vm252_vm8, %v3050_v1 }
0x21f9   :  { %v3015_v12 = vpop.permute.xlu1 %3014 }
0x21fa   :  { %4578 = vmatmul.msk.bf16.vlgmr.msra.gmra.mxu1 %vm252_vm8, %v3015_v12 }
0x2223   :  { %v3063_v47 = vpop.f32.mrf.mxu2 }
0x2224   :  { %v3068_v36 = vrot.slane %v3063_v47, 7  ;;  %3071 = vrot.lane.b32.xlu2 %v3063_v47, %s5128_s12 }
0x2226   :  { %3069 = vrot.lane.b32.xlu0 %v3068_v36, %s5128_s12 }
0x222b   :  { %v3065_v60 = vpop.f32.mrf.mxu2 }
0x2277   :  { %v3028_v37 = vpop.f32.mrf.mxu1 }
0x2278   :  { %v3033_v24 = vrot.slane %v3028_v37, 2  ;;  %v3034_v48 = vrot.slane %v3028_v37, 3 }
0x227a   :  { %v3037_v46 = vadd.f32 %v3033_v24, %v5651_v40  ;;  %v3038_v19 = vadd.f32 %v3034_v48, %v5654_v43 }
0x227c   :  { %4962 = vtanh.f32 %v3037_v46  ;;  %v4580_v50 = vmul.f32 -1.442695, %v3037_v46  ;;  %v4581_v58 = vmul.f32 -1.442695, %v3038_v19 }
0x227e   :  { %v3072_v38 = vpop.permute.xlu2 %3071 }
0x227f   :  { %v3076_v61 = vadd.f32 %v3072_v38, %v5654_v43  ;;  %v3030_v17 = vpop.f32.mrf.mxu1 }
0x2281   :  { %4964 = vtanh.f32 %v3076_v61  ;;  %v4583_v35 = vmul.f32 -1.442695, %v3076_v61 }
0x2282   :  { %v4963_v30 = vpop.eup %4962 }
0x2283   :  { %3127 = vrot.lane.b32.xlu2 %v4963_v30, %s5129_s11 }
0x2287   :  { %v4965_v41 = vpop.eup %4964 }
0x2288   :  { %3209 = vrot.lane.b32.xlu0 %v4965_v41, %s5129_s11 }
0x2298   :  { %v3070_v27 = vpop.permute.xlu0 %3069 }
0x2299   :  { %v3075_v45 = vadd.f32 %v3070_v27, %v5651_v40 }
0x229b   :  { %4966 = vtanh.f32 %v3075_v45  ;;  %v4582_v44 = vmul.f32 -1.442695, %v3075_v45 }
0x229c   :  { %4968 = vtanh.f32 %v3038_v19 }
0x229d   :  { %4970 = vpow2.f32 %v4580_v50 }
0x22a1   :  { %v4967_v13 = vpop.eup %4966 }
0x22a2   :  { %3207 = vrot.lane.b32.xlu1 %v4967_v13, %s5129_s11  ;;  %v4969_v53 = vpop.eup %4968 }
0x22a3   :  { %v4971_v51 = vpop.eup %4970 }
0x22a4   :  { %v3083_v52 = vadd.f32 1.0, %v4971_v51 }
0x22a6   :  { %4972 = vrcp.f32 %v3083_v52  ;;  %v3096_v0 = vand.u32 2147483648, %v3083_v52  ;;  %vm3090_vm14 = vweird.f32 %v3083_v52  ;;  %v3094_v2 = vand.u32 2147483647, %v3083_v52 }
0x22a7   :  { %4974 = vpow2.f32 %v4583_v35 }
0x22a8   :  { %v3097_v4 = vor.u32 1.1754944e-38, %v3096_v0  ;;  %vm3095_vm2 = vcmp.eq.f32.partialorder %v3094_v2, 8.507059e+37 }
0x22aa   :  { %3129 = vrot.lane.b32.xlu1 %v4969_v53, %s5129_s11 }
0x22ac   :  { %v4973_v31 = vpop.eup %4972 }
0x22ad   :  { %v3086_v32 = vmul.f32 %v4973_v31, %v3083_v52  ;;  %vm3091_vm0 = vweird.f32 %v4973_v31  ;;  %v4975_v55 = vpop.eup %4974 }
0x22ae   :  { %vm3092_vm15 = vmor %vm3090_vm14, %vm3091_vm0  ;;  %v3164_v39 = vadd.f32 1.0, %v4975_v55 }
0x22af   :  { %v3087_v56 = vsub.f32 1.0, %v3086_v32 }
0x22b0   :  { %4976 = vrcp.f32 %v3164_v39  ;;  %v3191_v16 = vand.u32 2147483648, %v3164_v39  ;;  %vm3185_vm5 = vweird.f32 %v3164_v39  ;;  %v3189_v20 = vand.u32 2147483647, %v3164_v39 }
0x22b1   :  { %v3088_v59 = vmul.f32 %v4973_v31, %v3087_v56  ;;  %4978 = vpow2.f32 %v4582_v44 }
0x22b2   :  { %4980 = vpow2.f32 %v4581_v58  ;;  %v3192_v25 = vor.u32 1.1754944e-38, %v3191_v16  ;;  %vm3190_vm13 = vcmp.eq.f32.partialorder %v3189_v20, 8.507059e+37 }
0x22b3   :  { %v3089_v62 = vadd.f32 %v4973_v31, %v3088_v59 }
0x22b5   :  { %v3093_v21 = vsel %vm3092_vm15, %v4973_v31, %v3089_v62  ;;  %v3119_v62 = vrot.slane %v5950_v29, 7 }
0x22b6   :  { %v5986_v7 = vsel %vm3095_vm2, %v3097_v4, %v3093_v21  ;;  %v4977_v18 = vpop.eup %4976 }
0x22b7   :  { %v3181_v11 = vmul.f32 %v4977_v18, %v3164_v39  ;;  %v4979_v14 = vpop.eup %4978  ;;  %vm3186_vm4 = vweird.f32 %v4977_v18  ;;  %v3123_v55 = vmul.f32 %v3119_v62, %v5986_v7  ;;  %v3200_v39 = vrot.slane %v5941_v28, 1 }
0x22b8   :  { %v3163_v57 = vadd.f32 1.0, %v4979_v14  ;;  %vm3187_vm6 = vmor %vm3185_vm5, %vm3186_vm4  ;;  %v4981_v26 = vpop.eup %4980 }
0x22b9   :  { %v3182_v54 = vsub.f32 1.0, %v3181_v11  ;;  %v3084_v47 = vadd.f32 1.0, %v4981_v26 }
0x22ba   :  { %4982 = vrcp.f32 %v3163_v57  ;;  %v3176_v30 = vand.u32 2147483648, %v3163_v57  ;;  %vm3170_vm14 = vweird.f32 %v3163_v57  ;;  %v3174_v41 = vand.u32 2147483647, %v3163_v57 }
0x22bb   :  { %v3183_v5 = vmul.f32 %v4977_v18, %v3182_v54  ;;  %4984 = vrcp.f32 %v3084_v47  ;;  %v3111_v51 = vand.u32 2147483648, %v3084_v47  ;;  %vm3105_vm5 = vweird.f32 %v3084_v47 }
0x22bc   :  { %v3177_v48 = vor.u32 1.1754944e-38, %v3176_v30  ;;  %vm3175_vm2 = vcmp.eq.f32.partialorder %v3174_v41, 8.507059e+37  ;;  %v3109_v52 = vand.u32 2147483647, %v3084_v47  ;;  %v3120_v54 = vrot.slane %v5955_v3, 7 }
0x22bd   :  { %v3184_v15 = vadd.f32 %v4977_v18, %v3183_v5  ;;  %v3112_v32 = vor.u32 1.1754944e-38, %v3111_v51 }
0x22bf   :  { %v3188_v10 = vsel %vm3187_vm6, %v4977_v18, %v3184_v15  ;;  %v3199_v18 = vrot.slane %v5939_v34, 1 }
0x22c0   :  { %v5990_v33 = vsel %vm3190_vm13, %v3192_v25, %v3188_v10  ;;  %v4983_v36 = vpop.eup %4982  ;;  %vm3110_vm13 = vcmp.eq.f32.partialorder %v3109_v52, 8.507059e+37 }
0x22c1   :  { %v3166_v60 = vmul.f32 %v4983_v36, %v3163_v57  ;;  %v4985_v24 = vpop.eup %4984  ;;  %vm3171_vm0 = vweird.f32 %v4983_v36  ;;  %v3204_v21 = vmul.f32 %v3200_v39, %v5990_v33 }
0x22c2   :  { %v3101_v38 = vmul.f32 %v4985_v24, %v3084_v47  ;;  %vm3172_vm15 = vmor %vm3170_vm14, %vm3171_vm0  ;;  %vm3106_vm4 = vweird.f32 %v4985_v24 }
0x22c3   :  { %v3167_v37 = vsub.f32 1.0, %v3166_v60  ;;  %vm3107_vm6 = vmor %vm3105_vm5, %vm3106_vm4 }
0x22c4   :  { %v3102_v17 = vsub.f32 1.0, %v3101_v38 }
0x22c5   :  { %v3168_v46 = vmul.f32 %v4983_v36, %v3167_v37 }
0x22c6   :  { %v3103_v45 = vmul.f32 %v4985_v24, %v3102_v17 }
0x22c7   :  { %v3169_v61 = vadd.f32 %v4983_v36, %v3168_v46 }
0x22c8   :  { %v3104_v50 = vadd.f32 %v4985_v24, %v3103_v45 }
0x22c9   :  { %v3173_v27 = vsel %vm3172_vm15, %v4983_v36, %v3169_v61 }
0x22ca   :  { %v3178_v13 = vsel %vm3175_vm2, %v3177_v48, %v3173_v27  ;;  %v3108_v31 = vsel %vm3107_vm6, %v4985_v24, %v3104_v50 }
0x22cb   :  { %v3113_v35 = vsel %vm3110_vm13, %v3112_v32, %v3108_v31  ;;  %v3203_v44 = vmul.f32 %v3199_v18, %v3178_v13 }
0x22cc   :  { %v3124_v58 = vmul.f32 %v3120_v54, %v3113_v35 }
0x22dd   :  { %v3128_v6 = vpop.permute.xlu2 %3127 }
0x22de   :  { %v3133_v9 = vmul.f32 %v3128_v6, %v5986_v7 }
0x22e0   :  { %3137 = vrot.lane.b32.xlu1 %v3133_v9, %s5130_s13 }
0x22fa   :  { %v3210_v1 = vpop.permute.xlu0 %3209 }
0x22fb   :  { %v3214_v12 = vmul.f32 %v3210_v1, %v5990_v33 }
0x22fd   :  { %3219 = vrot.lane.b32.xlu2 %v3214_v12, %s5130_s13 }
0x2314   :  { %v3208_v19 = vpop.permute.xlu1 %3207 }
0x2315   :  { %v3213_v53 = vmul.f32 %v3208_v19, %v3178_v13 }
0x2317   :  { %3217 = vrot.lane.b32.xlu0 %v3213_v53, %s5130_s13 }
0x231c   :  { %v3130_v56 = vpop.permute.xlu1 %3129 }
0x231d   :  { %v3134_v59 = vmul.f32 %v3130_v56, %v3113_v35 }
0x231f   :  { %3139 = vrot.lane.b32.xlu0 %v3134_v59, %s5130_s13 }
0x2352   :  { %v3138_v0 = vpop.permute.xlu1 %3137 }
0x2353   :  { %v5998_v2 = vadd.f32 %v3138_v0, %v3123_v55 }
0x2355   :  { %4986 = vtanh.f32 %v5998_v2 }
0x2357   :  { %v3220_v4 = vpop.permute.xlu2 %3219 }
0x2358   :  { %v6003_v6 = vadd.f32 %v3220_v4, %v3204_v21 }
0x235a   :  { %4988 = vtanh.f32 %v6003_v6 }
0x235b   :  { %v4987_v9 = vpop.eup %4986 }
0x235c   :  { %3149 = vrot.lane.b32.xlu0 %v4987_v9, %s5130_s13 }
0x2360   :  { %v4989_v29 = vpop.eup %4988 }
0x2361   :  { %3231 = vrot.lane.b32.xlu1 %v4989_v29, %s5130_s13 }
0x2389   :  { %v3218_v11 = vpop.permute.xlu0 %3217 }
0x238a   :  { %v6009_v28 = vadd.f32 %v3218_v11, %v3203_v44 }
0x238c   :  { %4990 = vtanh.f32 %v6009_v28 }
0x2391   :  { %v3140_v5 = vpop.permute.xlu0 %3139 }
0x2392   :  { %v4991_v14 = vpop.eup %4990  ;;  %v6013_v15 = vadd.f32 %v3140_v5, %v3124_v58 }
0x2393   :  { %3229 = vrot.lane.b32.xlu2 %v4991_v14, %s5130_s13 }
0x2394   :  { %4992 = vtanh.f32 %v6013_v15 }
0x239a   :  { %v4993_v57 = vpop.eup %4992 }
0x239b   :  { %3151 = vrot.lane.b32.xlu2 %v4993_v57, %s5130_s13 }
0x23ce   :  { %v3150_v16 = vpop.permute.xlu0 %3149 }
0x23cf   :  { %v3155_v3 = vmul.f32 %v3150_v16, %v5986_v7 }
0x23d1   :  { %v3237_v37 = vpack.c.bf16 %v3155_v3, %v3155_v3  ;;  %v3509_v41 = vrot.slane %v3155_v3, 2 }
0x23d3   :  { %v3232_v34 = vpop.permute.xlu1 %3231  ;;  %v3241_v30 = vunpack.c.l.b16 %v3237_v37 }
0x23d4   :  { %v3236_v20 = vmul.f32 %v3232_v34, %v5990_v33 }
0x23d6   :  { %v3273_v26 = vpack.c.bf16 %v3236_v20, %v3236_v20  ;;  %v3534_v1 = vrot.slane %v3236_v20, 6 }
0x23d8   :  { %v3277_v24 = vunpack.c.l.b16 %v3273_v26 }
0x23ed   :  { %v3230_v10 = vpop.permute.xlu2 %3229 }
0x23ee   :  { %v3235_v25 = vmul.f32 %v3230_v10, %v3178_v13  ;;  %v3243_v13 = vrot.slane %v3241_v30, 6 }
0x23f0   :  { %v3272_v12 = vpack.c.bf16 %v3235_v25, %v3235_v25  ;;  %v3533_v47 = vrot.slane %v3235_v25, 7 }
0x23f2   :  { %v3276_v36 = vunpack.c.l.b16 %v3272_v12  ;;  %v6021_v60 = vsel %vm3478_vm11, %v3534_v1, %v3533_v47 }
0x23f4   :  { %v3278_v46 = vrot.slane %v3276_v36, 1 }
0x23f5   :  { %v3152_v38 = vpop.permute.xlu2 %3151 }
0x23f6   :  { %v3156_v61 = vmul.f32 %v3152_v38, %v3113_v35  ;;  %v3279_v17 = vsel %vm1843_vm7, %v3277_v24, %v3278_v46 }
0x23f7   :  { %v3280_v33 = vpack.c.b16 %v3279_v17, %v3279_v17 }
0x23f8   :  { %v3238_v27 = vpack.c.bf16 %v3156_v61, %v3156_v61  ;;  %v3510_v7 = vrot.slane %v3156_v61, 1 }
0x23f9   :  { %3281 = vrot.lane.b32.xlu1 %v3280_v33, %s5131_s29 }
0x23fa   :  { %v3242_v45 = vunpack.c.l.b16 %v3238_v27  ;;  %v3511_v48 = vsel %vm3485_vm12, %v3510_v7, %v3509_v41 }
0x23fb   :  { %v6028_v19 = vsel %vm331_vm9, %v5970_v23, %v3511_v48 }
0x23fc   :  { %v3244_v53 = vrot.slane %v3242_v45, 5 }
0x23fe   :  { %v3245_v50 = vsel %vm1843_vm7, %v3244_v53, %v3243_v13 }
0x23ff   :  { %v3246_v51 = vpack.c.b16 %v3245_v50, %v3245_v50 }
0x2401   :  { %3247 = vrot.lane.b32.xlu0 %v3246_v51, %s5132_s4 }
0x246b   :  { %v3282_v52 = vpop.permute.xlu1 %3281 }
0x246c   :  { %4585 = vmatmul.msk.bf16.vlgmr.msrb.gmra.mxu0 %vm252_vm8, %v3282_v52 }
0x2473   :  { %v3248_v31 = vpop.permute.xlu0 %3247 }
0x2474   :  { %4584 = vmatmul.msk.bf16.vlgmr.msra.gmra.mxu3 %vm252_vm8, %v3248_v31 }
0x24e9   :  { %v3295_v32 = vpop.f32.mrf.mxu0 }
0x24ea   :  { %v3300_v35 = vrot.slane %v3295_v32, 1  ;;  %3301 = vrot.lane.b32.xlu1 %v3295_v32, %s5128_s12 }
0x24ec   :  { %3303 = vrot.lane.b32.xlu2 %v3300_v35, %s5128_s12 }
0x24f1   :  { %v3297_v23 = vpop.f32.mrf.mxu0 }
0x24f7   :  { %v3261_v56 = vpop.f32.mrf.mxu3 }
0x24f8   :  { %v3266_v59 = vrot.slane %v3261_v56, 1  ;;  %v3267_v62 = vrot.slane %v3261_v56, 2 }
0x24fa   :  { %v3270_v55 = vadd.f32 %v3266_v59, %v5651_v40  ;;  %v3271_v0 = vadd.f32 %v3267_v62, %v5654_v43 }
0x24fc   :  { %4994 = vtanh.f32 %v3270_v55  ;;  %v4587_v9 = vmul.f32 -1.442695, %v3271_v0  ;;  %v4586_v58 = vmul.f32 -1.442695, %v3270_v55 }
0x24fd   :  { %4996 = vtanh.f32 %v3271_v0 }
0x24fe   :  { %4998 = vpow2.f32 %v4587_v9 }
0x24ff   :  { %v3263_v39 = vpop.f32.mrf.mxu3 }
0x2502   :  { %v4995_v21 = vpop.eup %4994 }
0x2503   :  { %v4997_v4 = vpop.eup %4996  ;;  %3359 = vrot.lane.b32.xlu0 %v4995_v21, %s5129_s11 }
0x2504   :  { %3361 = vrot.lane.b32.xlu2 %v4997_v4, %s5129_s11  ;;  %v4999_v29 = vpop.eup %4998 }
0x2505   :  { %v3316_v18 = vadd.f32 1.0, %v4999_v29 }
0x2507   :  { %5000 = vrcp.f32 %v3316_v18  ;;  %v3343_v25 = vand.u32 2147483648, %v3316_v18  ;;  %vm3337_vm11 = vweird.f32 %v3316_v18  ;;  %v3341_v3 = vand.u32 2147483647, %v3316_v18 }
0x2509   :  { %v3344_v1 = vor.u32 1.1754944e-38, %v3343_v25  ;;  %vm3342_vm14 = vcmp.eq.f32.partialorder %v3341_v3, 8.507059e+37 }
0x250d   :  { %v5001_v54 = vpop.eup %5000 }
0x250e   :  { %v3333_v5 = vmul.f32 %v5001_v54, %v3316_v18  ;;  %vm3338_vm12 = vweird.f32 %v5001_v54 }
0x250f   :  { %vm3339_vm0 = vmor %vm3337_vm11, %vm3338_vm12 }
0x2510   :  { %v3334_v57 = vsub.f32 1.0, %v3333_v5 }
0x2512   :  { %v3335_v16 = vmul.f32 %v5001_v54, %v3334_v57 }
0x2514   :  { %v3336_v10 = vadd.f32 %v5001_v54, %v3335_v16 }
0x2546   :  { %v3304_v44 = vpop.permute.xlu2 %3303 }
0x2547   :  { %v3308_v11 = vadd.f32 %v3304_v44, %v5654_v43  ;;  %v3340_v43 = vsel %vm3339_vm0, %v5001_v54, %v3336_v10  ;;  %v3351_v54 = vrot.slane %v5998_v2, 7 }
0x2548   :  { %v6043_v36 = vsel %vm3342_vm14, %v3344_v1, %v3340_v43 }
0x2549   :  { %5002 = vtanh.f32 %v3308_v11  ;;  %v4589_v13 = vmul.f32 -1.442695, %v3308_v11 }
0x254a   :  { %5004 = vpow2.f32 %v4586_v58  ;;  %v3352_v58 = vrot.slane %v6013_v15, 7 }
0x254c   :  { %v3356_v57 = vmul.f32 %v3352_v58, %v6043_v36 }
0x254f   :  { %v5003_v14 = vpop.eup %5002 }
0x2550   :  { %3441 = vrot.lane.b32.xlu1 %v5003_v14, %s5129_s11  ;;  %v5005_v34 = vpop.eup %5004 }
0x2551   :  { %v3315_v20 = vadd.f32 1.0, %v5005_v34 }
0x2553   :  { %5006 = vrcp.f32 %v3315_v20  ;;  %v3328_v30 = vand.u32 2147483648, %v3315_v20  ;;  %vm3322_vm2 = vweird.f32 %v3315_v20 }
0x2555   :  { %v3329_v27 = vor.u32 1.1754944e-38, %v3328_v30 }
0x2559   :  { %v5007_v37 = vpop.eup %5006 }
0x255a   :  { %v3318_v46 = vmul.f32 %v5007_v37, %v3315_v20  ;;  %vm3323_vm15 = vweird.f32 %v5007_v37 }
0x255b   :  { %vm3324_vm4 = vmor %vm3322_vm2, %vm3323_vm15 }
0x255c   :  { %v3302_v26 = vpop.permute.xlu1 %3301  ;;  %v3319_v61 = vsub.f32 1.0, %v3318_v46 }
0x255d   :  { %v3307_v12 = vadd.f32 %v3302_v26, %v5651_v40  ;;  %v3326_v40 = vand.u32 2147483647, %v3315_v20 }
0x255e   :  { %v3362_v47 = vpop.permute.xlu2 %3361  ;;  %v3320_v17 = vmul.f32 %v5007_v37, %v3319_v61 }
0x255f   :  { %5008 = vtanh.f32 %v3307_v12  ;;  %v3366_v24 = vmul.f32 %v3362_v47, %v6043_v36  ;;  %vm3327_vm5 = vcmp.eq.f32.partialorder %v3326_v40, 8.507059e+37  ;;  %v4588_v51 = vmul.f32 -1.442695, %v3307_v12 }
0x2560   :  { %v3321_v33 = vadd.f32 %v5007_v37, %v3320_v17  ;;  %5010 = vpow2.f32 %v4589_v13 }
0x2561   :  { %3371 = vrot.lane.b32.xlu1 %v3366_v24, %s5130_s13  ;;  %v3432_v24 = vrot.slane %v6003_v6, 1 }
0x2562   :  { %v3325_v41 = vsel %vm3324_vm4, %v5007_v37, %v3321_v33  ;;  %v3431_v37 = vrot.slane %v6009_v28, 1 }
0x2563   :  { %v6048_v45 = vsel %vm3327_vm5, %v3329_v27, %v3325_v41 }
0x2564   :  { %v3355_v5 = vmul.f32 %v3351_v54, %v6048_v45 }
0x2565   :  { %v5009_v38 = vpop.eup %5008 }
0x2566   :  { %3439 = vrot.lane.b32.xlu0 %v5009_v38, %s5129_s11  ;;  %v5011_v53 = vpop.eup %5010 }
0x2567   :  { %v3396_v50 = vadd.f32 1.0, %v5011_v53 }
0x2569   :  { %5012 = vrcp.f32 %v3396_v50  ;;  %v3423_v62 = vand.u32 2147483648, %v3396_v50  ;;  %vm3417_vm13 = vweird.f32 %v3396_v50  ;;  %v3421_v55 = vand.u32 2147483647, %v3396_v50 }
0x256a   :  { %5014 = vpow2.f32 %v4588_v51  ;;  %v4665_v51 = vld [vmem:[%s6202_s15] sm:$0xff] }
0x256b   :  { %v3424_v39 = vor.u32 1.1754944e-38, %v3423_v62  ;;  %vm3422_vm11 = vcmp.eq.f32.partialorder %v3421_v55, 8.507059e+37  ;;  %3629 = vmatpush.bf16.msrb.mxu2 %v4665_v51 }
0x256f   :  { %v5013_v52 = vpop.eup %5012 }
0x2570   :  { %v3413_v31 = vmul.f32 %v5013_v52, %v3396_v50  ;;  %v5015_v35 = vpop.eup %5014  ;;  %vm3418_vm6 = vweird.f32 %v5013_v52 }
0x2571   :  { %v3395_v56 = vadd.f32 1.0, %v5015_v35  ;;  %vm3419_vm12 = vmor %vm3417_vm13, %vm3418_vm6 }
0x2572   :  { %v3414_v32 = vsub.f32 1.0, %v3413_v31 }
0x2573   :  { %5016 = vrcp.f32 %v3395_v56  ;;  %v3408_v16 = vand.u32 2147483648, %v3395_v56  ;;  %vm3402_vm14 = vweird.f32 %v3395_v56  ;;  %v3406_v25 = vand.u32 2147483647, %v3395_v56 }
0x2574   :  { %v3415_v23 = vmul.f32 %v5013_v52, %v3414_v32 }
0x2575   :  { %v3360_v7 = vpop.permute.xlu0 %3359  ;;  %v3409_v2 = vor.u32 1.1754944e-38, %v3408_v16  ;;  %vm3407_vm2 = vcmp.eq.f32.partialorder %v3406_v25, 8.507059e+37 }
0x2576   :  { %v3365_v48 = vmul.f32 %v3360_v7, %v6048_v45  ;;  %v3416_v59 = vadd.f32 %v5013_v52, %v3415_v23 }
0x2578   :  { %3369 = vrot.lane.b32.xlu2 %v3365_v48, %s5130_s13  ;;  %v3420_v0 = vsel %vm3419_vm12, %v5013_v52, %v3416_v59 }
0x2579   :  { %v5017_v21 = vpop.eup %5016  ;;  %v6052_v9 = vsel %vm3422_vm11, %v3424_v39, %v3420_v0 }
0x257a   :  { %v3398_v18 = vmul.f32 %v5017_v21, %v3395_v56  ;;  %vm3403_vm0 = vweird.f32 %v5017_v21  ;;  %v3436_v17 = vmul.f32 %v3432_v24, %v6052_v9 }
0x257b   :  { %vm3404_vm15 = vmor %vm3402_vm14, %vm3403_vm0 }
0x257c   :  { %v3399_v44 = vsub.f32 1.0, %v3398_v18 }
0x257e   :  { %v3400_v11 = vmul.f32 %v5017_v21, %v3399_v44 }
0x2580   :  { %v3401_v14 = vadd.f32 %v5017_v21, %v3400_v11 }
0x2582   :  { %v3405_v43 = vsel %vm3404_vm15, %v5017_v21, %v3401_v14 }
0x2583   :  { %v3410_v15 = vsel %vm3407_vm2, %v3409_v2, %v3405_v43 }
0x2584   :  { %v3435_v46 = vmul.f32 %v3431_v37, %v3410_v15 }
0x25c2   :  { %v3442_v4 = vpop.permute.xlu1 %3441 }
0x25c3   :  { %v3446_v29 = vmul.f32 %v3442_v4, %v6052_v9 }
0x25c5   :  { %3451 = vrot.lane.b32.xlu0 %v3446_v29, %s5130_s13 }
0x25d2   :  { %v3370_v34 = vpop.permute.xlu2 %3369 }
0x25d3   :  { %v3372_v20 = vpop.permute.xlu1 %3371  ;;  %v3375_v10 = vadd.f32 %v3370_v34, %v3355_v5 }
0x25d4   :  { %v3376_v3 = vadd.f32 %v3372_v20, %v3356_v57 }
0x25d5   :  { %5018 = vtanh.f32 %v3375_v10 }
0x25d6   :  { %5020 = vtanh.f32 %v3376_v3 }
0x25d8   :  { %v3440_v26 = vpop.permute.xlu0 %3439 }
0x25d9   :  { %v3445_v1 = vmul.f32 %v3440_v26, %v3410_v15 }
0x25db   :  { %v5019_v12 = vpop.eup %5018  ;;  %3449 = vrot.lane.b32.xlu2 %v3445_v1, %s5130_s13 }
0x25dc   :  { %v5021_v47 = vpop.eup %5020  ;;  %3381 = vrot.lane.b32.xlu1 %v5019_v12, %s5130_s13 }
0x25dd   :  { %3383 = vrot.lane.b32.xlu0 %v5021_v47, %s5130_s13 }
0x2635   :  { %v3450_v38 = vpop.permute.xlu2 %3449 }
0x2636   :  { %v3455_v61 = vadd.f32 %v3450_v38, %v3435_v46 }
0x2637   :  { %v3452_v33 = vpop.permute.xlu0 %3451 }
0x2638   :  { %5022 = vtanh.f32 %v3455_v61  ;;  %v3456_v30 = vadd.f32 %v3452_v33, %v3436_v17 }
0x263a   :  { %5024 = vtanh.f32 %v3456_v30 }
0x263e   :  { %v5023_v40 = vpop.eup %5022 }
0x263f   :  { %3461 = vrot.lane.b32.xlu1 %v5023_v40, %s5130_s13 }
0x2640   :  { %v5025_v41 = vpop.eup %5024 }
0x2641   :  { %3463 = vrot.lane.b32.xlu2 %v5025_v41, %s5130_s13 }
0x264e   :  { %v3382_v27 = vpop.permute.xlu1 %3381 }
0x264f   :  { %v3384_v7 = vpop.permute.xlu0 %3383  ;;  %v3387_v28 = vmul.f32 %v3382_v27, %v6048_v45  ;;  %v4667_v45 = vld [vmem:[%s6205_s18] sm:$0xff] }
0x2650   :  { %v3388_v6 = vmul.f32 %v3384_v7, %v6043_v36  ;;  %v4666_v36 = vld [vmem:[%s6203_s16] sm:$0xff]  ;;  %3657 = vmatpush.bf16.msrb.mxu3 %v4667_v45  ;;  %3715 = vmatpush.bf16.msra.mxu0 %v4667_v45 }
0x2651   :  { %v3515_v48 = vrot.slane %v3387_v28, 1  ;;  %3603 = vmatpush.bf16.msrb.mxu1 %v4666_v36  ;;  %3845 = vmatpush.bf16.msra.mxu2 %v4667_v45 }
0x2653   :  { %v3516_v13 = vsel %vm3492_vm3, %v3388_v6, %v3515_v48  ;;  %3658 = vmatmul.bf16.vlgmr.msrb.gmra.mxu3 %v5127_v49 }
0x2654   :  { %v3525_v53 = vsel %vm3521_vm1, %v6028_v19, %v3516_v13  ;;  %3910 = vmatpush.bf16.msra.mxu3 %v4667_v45  ;;  %3971 = vmatpush.bf16.msrb.mxu0 %v4667_v45 }
0x2655   :  { %v3578_v50 = vpack.c.bf16 %v3525_v53, %v5852_v42  ;;  %3780 = vmatpush.bf16.msra.mxu1 %v4667_v45 }
0x2657   :  { %3611 = vrot.lane.b32.xlu0 %v3578_v50, %s5132_s4 }
0x269b   :  { %v3464_v52 = vpop.permute.xlu2 %3463 }
0x269c   :  { %v3468_v42 = vmul.f32 %v3464_v52, %v6052_v9 }
0x269e   :  { %v3528_v31 = vrot.slane %v3468_v42, 7 }
0x26b1   :  { %v3462_v19 = vpop.permute.xlu1 %3461 }
0x26b2   :  { %v3467_v32 = vmul.f32 %v3462_v19, %v3410_v15 }
0x26b4   :  { %v3529_v35 = vsel %vm1843_vm7, %v3528_v31, %v3467_v32 }
0x26b5   :  { %v3572_v23 = vsel %vm3518_vm10, %v3529_v35, %v6021_v60 }
0x26b6   :  { %v3573_v56 = vsel %vm331_vm9, %v3572_v23, %v5962_v63  ;;  %v6100_v63 = vld [vmem:[%s6204_s17] ss:$0 sm:$0xff]  ;;  %s5133_s17 = smov 48  }
0x26b7   :  { %v3574_v59 = vsel %vm3521_vm1, %v3573_v56, %v5892_v22 }
0x26b8   :  { %v3581_v62 = vpack.c.bf16 %v5832_v8, %v3574_v59 }
0x26ba   :  { %3585 = vrot.lane.b32.xlu2 %v3581_v62, %s5131_s29 }
0x26c9   :  { %v3612_v49 = vpop.permute.xlu0 %3611 }
0x26ca   :  { %4599 = vmatmul.msk.bf16.vlgmr.msrb.gmra.mxu2 %vm252_vm8, %v3612_v49 }
0x26cb   :  { %4101 = vmatpush.bf16.msrb.mxu2 %v4667_v45 }
0x26d6   :  { %v3659_v0 = vpop.f32.mrf.mxu3 }
0x26de   :  { %v3661_v60 = vpop.f32.mrf.mxu3 }
0x2714   :  { %v3586_v55 = vpop.permute.xlu2 %3585 }
0x2715   :  { %4594 = vmatmul.msk.bf16.vlgmr.msrb.gmra.mxu1 %vm252_vm8, %v3586_v55 }
0x2716   :  { %4036 = vmatpush.bf16.msrb.mxu1 %v4667_v45 }
0x274d   :  { %v3631_v22 = vpop.f32.mrf.mxu2 }
0x2792   :  { %v3605_v39 = vpop.f32.mrf.mxu1 }
0x2793   :  { %v3632_v8 = vadd.f32 %v3631_v22, %v3605_v39 }
0x2795   :  { %v6103_v21 = vadd.f32 %v6100_v63, %v3632_v8 }
0x2797   :  { %v3663_v4 = vadd.f32 %v3659_v0, %v6103_v21 }
0x2799   :  { %5026 = vtanh.f32 %v3663_v4  ;;  %v4604_v29 = vmul.f32 -1.442695, %v3663_v4 }
0x279a   :  { %v6117_v49 = vpop.f32.mrf.mxu1 }
0x279b   :  { %5028 = vpow2.f32 %v4604_v29 }
0x279f   :  { %v5027_v9 = vpop.eup %5026 }
0x27a0   :  { %3686 = vrot.lane.b32.xlu1 %v5027_v9, %s5129_s11 }
0x27a1   :  { %v5029_v18 = vpop.eup %5028 }
0x27a2   :  { %v3667_v44 = vadd.f32 1.0, %v5029_v18 }
0x27a4   :  { %5030 = vrcp.f32 %v3667_v44  ;;  %v3679_v57 = vand.u32 2147483648, %v3667_v44  ;;  %vm3673_vm3 = vweird.f32 %v3667_v44  ;;  %v3677_v34 = vand.u32 2147483647, %v3667_v44 }
0x27a6   :  { %v3680_v20 = vor.u32 1.1754944e-38, %v3679_v57  ;;  %vm3678_vm10 = vcmp.eq.f32.partialorder %v3677_v34, 8.507059e+37 }
0x27aa   :  { %v5031_v11 = vpop.eup %5030 }
0x27ab   :  { %v3669_v54 = vmul.f32 %v5031_v11, %v3667_v44  ;;  %vm3674_vm9 = vweird.f32 %v5031_v11 }
0x27ac   :  { %vm3675_vm7 = vmor %vm3673_vm3, %vm3674_vm9 }
0x27ad   :  { %v3670_v58 = vsub.f32 1.0, %v3669_v54 }
0x27af   :  { %v3671_v5 = vmul.f32 %v5031_v11, %v3670_v58 }
0x27b1   :  { %v3672_v14 = vadd.f32 %v5031_v11, %v3671_v5 }
0x27b3   :  { %v3676_v16 = vsel %vm3675_vm7, %v5031_v11, %v3672_v14 }
0x27b4   :  { %v3681_v25 = vsel %vm3678_vm10, %v3680_v20, %v3676_v16 }
0x27b5   :  { %v3684_v43 = vmul.f32 0.0, %v3681_v25 }
0x2812   :  { %v3687_v10 = vpop.permute.xlu1 %3686 }
0x2813   :  { %v3689_v3 = vmul.f32 %v3687_v10, %v3681_v25 }
0x2815   :  { %3691 = vrot.lane.b32.xlu0 %v3689_v3, %s5130_s13 }
0x2887   :  { %v3692_v2 = vpop.permute.xlu0 %3691 }
0x2888   :  { %v3694_v15 = vadd.f32 %v3692_v2, %v3684_v43 }
0x288a   :  { %5032 = vtanh.f32 %v3694_v15  ;;  %v3746_v52 = vrot.slane %v3694_v15, 6 }
0x2890   :  { %v5033_v26 = vpop.eup %5032 }
0x2891   :  { %3697 = vrot.lane.b32.xlu2 %v5033_v26, %s5130_s13 }
0x28eb   :  { %v3698_v1 = vpop.permute.xlu2 %3697 }
0x28ec   :  { %v3700_v12 = vmul.f32 %v3698_v1, %v3681_v25 }
0x28ee   :  { %v3701_v47 = vpack.c.bf16 %v3700_v12, %v3700_v12 }
0x28f0   :  { %3703 = vrot.lane.b32.xlu1 %v3701_v47, %s5132_s4 }
0x2962   :  { %v3704_v37 = vpop.permute.xlu1 %3703 }
0x2963   :  { %4605 = vmatmul.msk.bf16.vlgmr.msra.gmra.mxu0 %vm252_vm8, %v3704_v37  ;;  %v3633_v37 = vpop.f32.mrf.mxu2 }
0x29e0   :  { %v3717_v24 = vpop.f32.mrf.mxu0 }
0x29e1   :  { %v3722_v46 = vrot.slane %v3717_v24, 6 }
0x29e3   :  { %v3724_v38 = vadd.f32 %v3722_v46, %v6103_v21 }
0x29e5   :  { %5034 = vtanh.f32 %v3724_v38  ;;  %v4606_v33 = vmul.f32 -1.442695, %v3724_v38 }
0x29e7   :  { %5036 = vpow2.f32 %v4606_v33 }
0x29e8   :  { %v3719_v61 = vpop.f32.mrf.mxu0 }
0x29eb   :  { %v5035_v17 = vpop.eup %5034 }
0x29ec   :  { %3750 = vrot.lane.b32.xlu0 %v5035_v17, %s5129_s11 }
0x29ed   :  { %v5037_v30 = vpop.eup %5036 }
0x29ee   :  { %v3728_v40 = vadd.f32 1.0, %v5037_v30 }
0x29f0   :  { %5038 = vrcp.f32 %v3728_v40  ;;  %v3740_v48 = vand.u32 2147483648, %v3728_v40  ;;  %vm3734_vm4 = vweird.f32 %v3728_v40  ;;  %v3738_v13 = vand.u32 2147483647, %v3728_v40 }
0x29f2   :  { %v3741_v50 = vor.u32 1.1754944e-38, %v3740_v48  ;;  %vm3739_vm6 = vcmp.eq.f32.partialorder %v3738_v13, 8.507059e+37 }
0x29f6   :  { %v5039_v41 = vpop.eup %5038 }
0x29f7   :  { %v3730_v27 = vmul.f32 %v5039_v41, %v3728_v40  ;;  %vm3735_vm1 = vweird.f32 %v5039_v41 }
0x29f8   :  { %vm3736_vm5 = vmor %vm3734_vm4, %vm3735_vm1 }
0x29f9   :  { %v3731_v7 = vsub.f32 1.0, %v3730_v27 }
0x29fb   :  { %v3732_v28 = vmul.f32 %v5039_v41, %v3731_v7 }
0x29fd   :  { %v3733_v6 = vadd.f32 %v5039_v41, %v3732_v28 }
0x29ff   :  { %v3737_v53 = vsel %vm3736_vm5, %v5039_v41, %v3733_v6 }
0x2a00   :  { %v3742_v45 = vsel %vm3739_vm6, %v3741_v50, %v3737_v53 }
0x2a01   :  { %v3748_v42 = vmul.f32 %v3746_v52, %v3742_v45 }
0x2a5e   :  { %v3751_v51 = vpop.permute.xlu0 %3750 }
0x2a5f   :  { %v3753_v36 = vmul.f32 %v3751_v51, %v3742_v45 }
0x2a61   :  { %3755 = vrot.lane.b32.xlu2 %v3753_v36, %s5130_s13 }
0x2abb   :  { %v3756_v19 = vpop.permute.xlu2 %3755 }
0x2abc   :  { %v3758_v31 = vadd.f32 %v3756_v19, %v3748_v42 }
0x2abe   :  { %5040 = vtanh.f32 %v3758_v31  ;;  %v3811_v10 = vrot.slane %v3758_v31, 6 }
0x2ac4   :  { %v5041_v32 = vpop.eup %5040 }
0x2ac5   :  { %3761 = vrot.lane.b32.xlu1 %v5041_v32, %s5130_s13 }
0x2b37   :  { %v3762_v35 = vpop.permute.xlu1 %3761 }
0x2b38   :  { %v3764_v23 = vmul.f32 %v3762_v35, %v3742_v45 }
0x2b3a   :  { %v3765_v56 = vpack.c.bf16 %v3764_v23, %v3764_v23 }
0x2b3c   :  { %v3767_v59 = vrot.slane %v3765_v56, 1 }
0x2b3e   :  { %3768 = vrot.lane.b32.xlu0 %v3767_v59, %s5132_s4 }
0x2bb0   :  { %v3769_v62 = vpop.permute.xlu0 %3768 }
0x2bb1   :  { %4607 = vmatmul.msk.bf16.vlgmr.msra.gmra.mxu1 %vm252_vm8, %v3769_v62  ;;  %v3634_v62 = vadd.f32 %v3633_v37, %v6117_v49 }
0x2c2e   :  { %v3782_v55 = vpop.f32.mrf.mxu1 }
0x2c2f   :  { %v3787_v0 = vrot.slane %v3782_v55, 4  ;;  %v6133_v55 = vadd.f32 %v6100_v63, %v3634_v62 }
0x2c31   :  { %v3789_v60 = vadd.f32 %v3787_v0, %v6103_v21 }
0x2c33   :  { %5042 = vtanh.f32 %v3789_v60  ;;  %v4608_v8 = vmul.f32 -1.442695, %v3789_v60 }
0x2c35   :  { %5044 = vpow2.f32 %v4608_v8 }
0x2c36   :  { %v3784_v22 = vpop.f32.mrf.mxu1 }
0x2c39   :  { %v5043_v39 = vpop.eup %5042 }
0x2c3a   :  { %3815 = vrot.lane.b32.xlu2 %v5043_v39, %s5129_s11 }
0x2c3b   :  { %v5045_v4 = vpop.eup %5044 }
0x2c3c   :  { %v3793_v9 = vadd.f32 1.0, %v5045_v4 }
0x2c3e   :  { %5046 = vrcp.f32 %v3793_v9  ;;  %v3805_v58 = vand.u32 2147483648, %v3793_v9  ;;  %vm3799_vm12 = vweird.f32 %v3793_v9  ;;  %v3803_v5 = vand.u32 2147483647, %v3793_v9 }
0x2c40   :  { %v3806_v57 = vor.u32 1.1754944e-38, %v3805_v58  ;;  %vm3804_vm0 = vcmp.eq.f32.partialorder %v3803_v5, 8.507059e+37 }
0x2c44   :  { %v5047_v29 = vpop.eup %5046 }
0x2c45   :  { %v3795_v18 = vmul.f32 %v5047_v29, %v3793_v9  ;;  %vm3800_vm13 = vweird.f32 %v5047_v29 }
0x2c46   :  { %vm3801_vm11 = vmor %vm3799_vm12, %vm3800_vm13 }
0x2c47   :  { %v3796_v44 = vsub.f32 1.0, %v3795_v18 }
0x2c49   :  { %v3797_v11 = vmul.f32 %v5047_v29, %v3796_v44 }
0x2c4b   :  { %v3798_v54 = vadd.f32 %v5047_v29, %v3797_v11 }
0x2c4d   :  { %v3802_v14 = vsel %vm3801_vm11, %v5047_v29, %v3798_v54 }
0x2c4e   :  { %v3807_v16 = vsel %vm3804_vm0, %v3806_v57, %v3802_v14 }
0x2c4f   :  { %v3813_v25 = vmul.f32 %v3811_v10, %v3807_v16 }
0x2c94   :  { %v3816_v34 = vpop.permute.xlu2 %3815 }
0x2c95   :  { %v3818_v20 = vmul.f32 %v3816_v34, %v3807_v16 }
0x2c97   :  { %3820 = vrot.lane.b32.xlu1 %v3818_v20, %s5130_s13 }
0x2d09   :  { %v3821_v3 = vpop.permute.xlu1 %3820 }
0x2d0a   :  { %v3823_v43 = vadd.f32 %v3821_v3, %v3813_v25 }
0x2d0c   :  { %5048 = vtanh.f32 %v3823_v43  ;;  %v3876_v36 = vrot.slane %v3823_v43, 6 }
0x2d12   :  { %v5049_v2 = vpop.eup %5048 }
0x2d13   :  { %3826 = vrot.lane.b32.xlu0 %v5049_v2, %s5130_s13 }
0x2d85   :  { %v3827_v15 = vpop.permute.xlu0 %3826 }
0x2d86   :  { %v3829_v26 = vmul.f32 %v3827_v15, %v3807_v16 }
0x2d88   :  { %v3830_v1 = vpack.c.bf16 %v3829_v26, %v3829_v26 }
0x2d8a   :  { %v3832_v12 = vrot.slane %v3830_v1, 2 }
0x2d8c   :  { %3833 = vrot.lane.b32.xlu2 %v3832_v12, %s5132_s4 }
0x2de6   :  { %v3834_v47 = vpop.permute.xlu2 %3833 }
0x2de7   :  { %4609 = vmatmul.msk.bf16.vlgmr.msra.gmra.mxu2 %vm252_vm8, %v3834_v47 }
0x2e6a   :  { %v3847_v24 = vpop.f32.mrf.mxu2 }
0x2e6b   :  { %v3852_v46 = vrot.slane %v3847_v24, 2 }
0x2e6d   :  { %v3854_v38 = vadd.f32 %v3852_v46, %v6103_v21 }
0x2e6f   :  { %5050 = vtanh.f32 %v3854_v38  ;;  %v4610_v33 = vmul.f32 -1.442695, %v3854_v38 }
0x2e71   :  { %5052 = vpow2.f32 %v4610_v33 }
0x2e72   :  { %v3849_v61 = vpop.f32.mrf.mxu2 }
0x2e75   :  { %v5051_v17 = vpop.eup %5050 }
0x2e76   :  { %3880 = vrot.lane.b32.xlu1 %v5051_v17, %s5129_s11 }
0x2e77   :  { %v5053_v30 = vpop.eup %5052 }
0x2e78   :  { %v3858_v40 = vadd.f32 1.0, %v5053_v30 }
0x2e7a   :  { %5054 = vrcp.f32 %v3858_v40  ;;  %v3870_v48 = vand.u32 2147483648, %v3858_v40  ;;  %vm3864_vm15 = vweird.f32 %v3858_v40  ;;  %v3868_v13 = vand.u32 2147483647, %v3858_v40 }
0x2e7c   :  { %v3871_v53 = vor.u32 1.1754944e-38, %v3870_v48  ;;  %vm3869_vm9 = vcmp.eq.f32.partialorder %v3868_v13, 8.507059e+37 }
0x2e80   :  { %v5055_v41 = vpop.eup %5054 }
0x2e81   :  { %v3860_v27 = vmul.f32 %v5055_v41, %v3858_v40  ;;  %vm3865_vm14 = vweird.f32 %v5055_v41 }
0x2e82   :  { %vm3866_vm2 = vmor %vm3864_vm15, %vm3865_vm14 }
0x2e83   :  { %v3861_v7 = vsub.f32 1.0, %v3860_v27 }
0x2e85   :  { %v3862_v28 = vmul.f32 %v5055_v41, %v3861_v7 }
0x2e87   :  { %v3863_v6 = vadd.f32 %v5055_v41, %v3862_v28 }
0x2e89   :  { %v3867_v21 = vsel %vm3866_vm2, %v5055_v41, %v3863_v6 }
0x2e8a   :  { %v3872_v51 = vsel %vm3869_vm9, %v3871_v53, %v3867_v21 }
0x2e8b   :  { %v3878_v52 = vmul.f32 %v3876_v36, %v3872_v51 }
0x2ee8   :  { %v3881_v50 = vpop.permute.xlu1 %3880 }
0x2ee9   :  { %v3883_v45 = vmul.f32 %v3881_v50, %v3872_v51 }
0x2eeb   :  { %3885 = vrot.lane.b32.xlu0 %v3883_v45, %s5130_s13 }
0x2f5d   :  { %v3886_v42 = vpop.permute.xlu0 %3885 }
0x2f5e   :  { %v3888_v19 = vadd.f32 %v3886_v42, %v3878_v52 }
0x2f60   :  { %5056 = vtanh.f32 %v3888_v19  ;;  %v3938_v16 = vrot.slane %v3888_v19, 6 }
0x2f66   :  { %v5057_v31 = vpop.eup %5056 }
0x2f67   :  { %3891 = vrot.lane.b32.xlu2 %v5057_v31, %s5130_s13 }
0x2fc1   :  { %v3892_v32 = vpop.permute.xlu2 %3891 }
0x2fc2   :  { %v3894_v35 = vmul.f32 %v3892_v32, %v3872_v51 }
0x2fc4   :  { %v3895_v23 = vpack.c.bf16 %v3894_v35, %v3894_v35 }
0x2fc6   :  { %v3897_v56 = vrot.slane %v3895_v23, 3 }
0x2fc8   :  { %3898 = vrot.lane.b32.xlu1 %v3897_v56, %s5132_s4 }
0x303a   :  { %v3899_v59 = vpop.permute.xlu1 %3898 }
0x303b   :  { %4611 = vmatmul.msk.bf16.vlgmr.msra.gmra.mxu3 %vm252_vm8, %v3899_v59 }
0x30be   :  { %v3912_v0 = vpop.f32.mrf.mxu3 }
0x30bf   :  { %v3916_v60 = vadd.f32 %v3912_v0, %v6133_v55 }
0x30c1   :  { %5058 = vtanh.f32 %v3916_v60  ;;  %v4612_v8 = vmul.f32 -1.442695, %v3916_v60 }
0x30c3   :  { %5060 = vpow2.f32 %v4612_v8 }
0x30c6   :  { %v3914_v22 = vpop.f32.mrf.mxu3 }
0x30c7   :  { %v5059_v39 = vpop.eup %5058 }
0x30c8   :  { %3942 = vrot.lane.b32.xlu0 %v5059_v39, %s5129_s11 }
0x30c9   :  { %v5061_v4 = vpop.eup %5060 }
0x30ca   :  { %v3920_v9 = vadd.f32 1.0, %v5061_v4 }
0x30cc   :  { %5062 = vrcp.f32 %v3920_v9  ;;  %v3932_v63 = vand.u32 2147483648, %v3920_v9  ;;  %vm3926_vm7 = vweird.f32 %v3920_v9  ;;  %v3930_v54 = vand.u32 2147483647, %v3920_v9 }
0x30ce   :  { %v3933_v5 = vor.u32 1.1754944e-38, %v3932_v63  ;;  %vm3931_vm1 = vcmp.eq.f32.partialorder %v3930_v54, 8.507059e+37 }
0x30d2   :  { %v5063_v29 = vpop.eup %5062 }
0x30d3   :  { %v3922_v18 = vmul.f32 %v5063_v29, %v3920_v9  ;;  %vm3927_vm3 = vweird.f32 %v5063_v29 }
0x30d4   :  { %vm3928_vm10 = vmor %vm3926_vm7, %vm3927_vm3 }
0x30d5   :  { %v3923_v44 = vsub.f32 1.0, %v3922_v18 }
0x30d7   :  { %v3924_v49 = vmul.f32 %v5063_v29, %v3923_v44 }
0x30d9   :  { %v3925_v11 = vadd.f32 %v5063_v29, %v3924_v49 }
0x30db   :  { %v3929_v58 = vsel %vm3928_vm10, %v5063_v29, %v3925_v11 }
0x30dc   :  { %v3934_v57 = vsel %vm3931_vm1, %v3933_v5, %v3929_v58 }
0x30dd   :  { %v3940_v20 = vmul.f32 %v3938_v16, %v3934_v57 }
0x313a   :  { %v3943_v14 = vpop.permute.xlu0 %3942 }
0x313b   :  { %v3945_v34 = vmul.f32 %v3943_v14, %v3934_v57 }
0x313d   :  { %3947 = vrot.lane.b32.xlu2 %v3945_v34, %s5130_s13 }
0x3197   :  { %v3948_v10 = vpop.permute.xlu2 %3947 }
0x3198   :  { %v3950_v25 = vadd.f32 %v3948_v10, %v3940_v20 }
0x319a   :  { %5064 = vtanh.f32 %v3950_v25  ;;  %v4002_v53 = vrot.slane %v3950_v25, 6 }
0x31a0   :  { %v5065_v3 = vpop.eup %5064 }
0x31a1   :  { %3953 = vrot.lane.b32.xlu1 %v5065_v3, %s5130_s13 }
0x3213   :  { %v3954_v43 = vpop.permute.xlu1 %3953 }
0x3214   :  { %v3956_v2 = vmul.f32 %v3954_v43, %v3934_v57 }
0x3216   :  { %v3957_v15 = vpack.c.bf16 %v3956_v2, %v3956_v2 }
0x3218   :  { %3959 = vrot.lane.b32.xlu0 %v3957_v15, %s5132_s4  ;;  %v4619_v15 = vmul.f32 -1.442695, %v6133_v55 }
0x328a   :  { %v3960_v26 = vpop.permute.xlu0 %3959 }
0x328b   :  { %4613 = vmatmul.msk.bf16.vlgmr.msrb.gmra.mxu0 %vm252_vm8, %v3960_v26 }
0x3308   :  { %v3973_v1 = vpop.f32.mrf.mxu0 }
0x3309   :  { %v3978_v12 = vrot.slane %v3973_v1, 6 }
0x330b   :  { %v3980_v47 = vadd.f32 %v3978_v12, %v6133_v55 }
0x330d   :  { %5066 = vtanh.f32 %v3980_v47  ;;  %v4614_v46 = vmul.f32 -1.442695, %v3980_v47 }
0x330f   :  { %5068 = vpow2.f32 %v4614_v46 }
0x3310   :  { %v3975_v37 = vpop.f32.mrf.mxu0 }
0x3313   :  { %v5067_v24 = vpop.eup %5066 }
0x3314   :  { %4006 = vrot.lane.b32.xlu2 %v5067_v24, %s5129_s11 }
0x3315   :  { %v5069_v38 = vpop.eup %5068 }
0x3316   :  { %v3984_v61 = vadd.f32 1.0, %v5069_v38 }
0x3318   :  { %5070 = vrcp.f32 %v3984_v61  ;;  %v3996_v27 = vand.u32 2147483648, %v3984_v61  ;;  %vm3990_vm5 = vweird.f32 %v3984_v61  ;;  %v3994_v7 = vand.u32 2147483647, %v3984_v61 }
0x331a   :  { %v3997_v6 = vor.u32 1.1754944e-38, %v3996_v27  ;;  %vm3995_vm13 = vcmp.eq.f32.partialorder %v3994_v7, 8.507059e+37 }
0x331e   :  { %v5071_v17 = vpop.eup %5070 }
0x331f   :  { %v3986_v33 = vmul.f32 %v5071_v17, %v3984_v61  ;;  %vm3991_vm4 = vweird.f32 %v5071_v17 }
0x3320   :  { %vm3992_vm6 = vmor %vm3990_vm5, %vm3991_vm4  ;;  %vm6228_vm5 = vcmask 261120  }
0x3321   :  { %v3987_v30 = vsub.f32 1.0, %v3986_v33 }
0x3323   :  { %v3988_v40 = vmul.f32 %v5071_v17, %v3987_v30 }
0x3325   :  { %v3989_v41 = vadd.f32 %v5071_v17, %v3988_v40 }
0x3327   :  { %v3993_v28 = vsel %vm3992_vm6, %v5071_v17, %v3989_v41  ;;  %vm4229_vm6 = vcmask 25600  }
0x3328   :  { %v3998_v13 = vsel %vm3995_vm13, %v3997_v6, %v3993_v28 }
0x3329   :  { %v4004_v50 = vmul.f32 %v4002_v53, %v3998_v13 }
0x336e   :  { %v4007_v48 = vpop.permute.xlu2 %4006 }
0x336f   :  { %v4009_v21 = vmul.f32 %v4007_v48, %v3998_v13 }
0x3371   :  { %4011 = vrot.lane.b32.xlu1 %v4009_v21, %s5130_s13 }
0x33e3   :  { %v4012_v51 = vpop.permute.xlu1 %4011 }
0x33e4   :  { %v4014_v45 = vadd.f32 %v4012_v51, %v4004_v50 }
0x33e6   :  { %5072 = vtanh.f32 %v4014_v45  ;;  %v4067_v5 = vrot.slane %v4014_v45, 6 }
0x33ec   :  { %v5073_v36 = vpop.eup %5072 }
0x33ed   :  { %4017 = vrot.lane.b32.xlu0 %v5073_v36, %s5130_s13 }
0x345f   :  { %v4018_v52 = vpop.permute.xlu0 %4017 }
0x3460   :  { %v4020_v42 = vmul.f32 %v4018_v52, %v3998_v13 }
0x3462   :  { %v4021_v19 = vpack.c.bf16 %v4020_v42, %v4020_v42 }
0x3464   :  { %v4023_v31 = vrot.slane %v4021_v19, 1 }
0x3466   :  { %4024 = vrot.lane.b32.xlu2 %v4023_v31, %s5132_s4 }
0x34c0   :  { %v4025_v32 = vpop.permute.xlu2 %4024 }
0x34c1   :  { %4615 = vmatmul.msk.bf16.vlgmr.msrb.gmra.mxu1 %vm252_vm8, %v4025_v32 }
0x353e   :  { %v4038_v35 = vpop.f32.mrf.mxu1 }
0x353f   :  { %v4043_v23 = vrot.slane %v4038_v35, 4 }
0x3541   :  { %v4045_v56 = vadd.f32 %v4043_v23, %v6133_v55 }
0x3543   :  { %5074 = vtanh.f32 %v4045_v56  ;;  %v4616_v0 = vmul.f32 -1.442695, %v4045_v56 }
0x3545   :  { %5076 = vpow2.f32 %v4616_v0 }
0x3546   :  { %v4040_v59 = vpop.f32.mrf.mxu1 }
0x3549   :  { %v5075_v62 = vpop.eup %5074 }
0x354a   :  { %4071 = vrot.lane.b32.xlu1 %v5075_v62, %s5129_s11 }
0x354b   :  { %v5077_v60 = vpop.eup %5076 }
0x354c   :  { %v4049_v22 = vadd.f32 1.0, %v5077_v60 }
0x354e   :  { %5078 = vrcp.f32 %v4049_v22  ;;  %v4061_v18 = vand.u32 2147483648, %v4049_v22  ;;  %vm4055_vm11 = vweird.f32 %v4049_v22  ;;  %v4059_v44 = vand.u32 2147483647, %v4049_v22 }
0x3550   :  { %v4062_v11 = vor.u32 1.1754944e-38, %v4061_v18  ;;  %vm4060_vm14 = vcmp.eq.f32.partialorder %v4059_v44, 8.507059e+37  ;;  %v4200_v18 = vld [vmem:[%s6206_s19 + $0x18] sm:$0xff]  ;;  %v4199_v44 = vld [vmem:[%s6206_s19 + $0x10] sm:$0xff] }
0x3551   :  { %4221 = vmatpush.msrb.mxu3 %v4200_v18 }
0x3553   :  { %4222 = vmatpush.msrb.mxu3 %v4199_v44 }
0x3554   :  { %v5079_v39 = vpop.eup %5078 }
0x3555   :  { %v4051_v8 = vmul.f32 %v5079_v39, %v4049_v22  ;;  %vm4056_vm12 = vweird.f32 %v5079_v39 }
0x3556   :  { %vm4057_vm0 = vmor %vm4055_vm11, %vm4056_vm12 }
0x3557   :  { %v4052_v4 = vsub.f32 1.0, %v4051_v8 }
0x3559   :  { %v4053_v9 = vmul.f32 %v5079_v39, %v4052_v4 }
0x355b   :  { %v4054_v29 = vadd.f32 %v5079_v39, %v4053_v9 }
0x355d   :  { %v4058_v49 = vsel %vm4057_vm0, %v5079_v39, %v4054_v29 }
0x355e   :  { %v4063_v54 = vsel %vm4060_vm14, %v4062_v11, %v4058_v49 }
0x355f   :  { %v4069_v14 = vmul.f32 %v4067_v5, %v4063_v54 }
0x35bc   :  { %v4072_v63 = vpop.permute.xlu1 %4071 }
0x35bd   :  { %v4074_v58 = vmul.f32 %v4072_v63, %v4063_v54  ;;  %v4198_v63 = vld [vmem:[%s6206_s19 + $0x8] sm:$0xff] }
0x35be   :  { %4223 = vmatpush.msrb.mxu3 %v4198_v63 }
0x35bf   :  { %4076 = vrot.lane.b32.xlu0 %v4074_v58, %s5130_s13 }
0x3631   :  { %v4077_v57 = vpop.permute.xlu0 %4076 }
0x3632   :  { %v6150_v34 = vadd.f32 %v4077_v57, %v4069_v14 }
0x3634   :  { %5080 = vtanh.f32 %v6150_v34  ;;  %v4132_v60 = vrot.slane %v6150_v34, 6  ;;  %v4707_v34 = vld [vmem:[%s6207_s20] ss:$0 sm:$0xff] }
0x3635   :  { %5082 = vtanh.f32 %v6133_v55 }
0x3636   :  { %5084 = vpow2.f32 %v4619_v15 }
0x363a   :  { %v5081_v16 = vpop.eup %5080 }
0x363b   :  { %4082 = vrot.lane.b32.xlu2 %v5081_v16, %s5130_s13  ;;  %v5083_v20 = vpop.eup %5082 }
0x363c   :  { %v5085_v26 = vpop.eup %5084 }
0x363d   :  { %v4154_v1 = vadd.f32 1.0, %v5085_v26 }
0x363f   :  { %5086 = vrcp.f32 %v4154_v1  ;;  %v4166_v40 = vand.u32 2147483648, %v4154_v1  ;;  %vm4160_vm2 = vweird.f32 %v4154_v1  ;;  %v4164_v41 = vand.u32 2147483647, %v4154_v1 }
0x3641   :  { %v4167_v7 = vor.u32 1.1754944e-38, %v4166_v40  ;;  %vm4165_vm3 = vcmp.eq.f32.partialorder %v4164_v41, 8.507059e+37 }
0x3643   :  { %4173 = vrot.lane.b32.xlu2 %v5083_v20, %s5129_s11 }
0x3645   :  { %v5087_v12 = vpop.eup %5086 }
0x3646   :  { %v4156_v47 = vmul.f32 %v5087_v12, %v4154_v1  ;;  %vm4161_vm15 = vweird.f32 %v5087_v12 }
0x3647   :  { %vm4162_vm9 = vmor %vm4160_vm2, %vm4161_vm15 }
0x3648   :  { %v4157_v46 = vsub.f32 1.0, %v4156_v47 }
0x364a   :  { %v4158_v61 = vmul.f32 %v5087_v12, %v4157_v46 }
0x364c   :  { %v4159_v33 = vadd.f32 %v5087_v12, %v4158_v61 }
0x364e   :  { %v4163_v27 = vsel %vm4162_vm9, %v5087_v12, %v4159_v33 }
0x364f   :  { %v4168_v6 = vsel %vm4165_vm3, %v4167_v7, %v4163_v27 }
0x3650   :  { %v4171_v56 = vmul.f32 0.0, %v4168_v6 }
0x3695   :  { %v4083_v10 = vpop.permute.xlu2 %4082 }
0x3696   :  { %v4085_v25 = vmul.f32 %v4083_v10, %v4063_v54  ;;  %v4197_v54 = vld [vmem:[%s6206_s19] sm:$0xff] }
0x3697   :  { %4224 = vmatpush.msrb.mxu3 %v4197_v54 }
0x3698   :  { %v4086_v3 = vpack.c.bf16 %v4085_v25, %v4085_v25 }
0x369a   :  { %v4088_v43 = vrot.slane %v4086_v3, 2 }
0x369c   :  { %4089 = vrot.lane.b32.xlu1 %v4088_v43, %s5132_s4 }
0x369d   :  { %v4174_v28 = vpop.permute.xlu2 %4173 }
0x369e   :  { %v4176_v48 = vmul.f32 %v4174_v28, %v4168_v6 }
0x370e   :  { %v4090_v2 = vpop.permute.xlu1 %4089 }
0x370f   :  { %4617 = vmatmul.msk.bf16.vlgmr.msrb.gmra.mxu2 %vm252_vm8, %v4090_v2 }
0x3792   :  { %v4103_v37 = vpop.f32.mrf.mxu2 }
0x3793   :  { %v4108_v24 = vrot.slane %v4103_v37, 2 }
0x3795   :  { %v4110_v38 = vadd.f32 %v4108_v24, %v6133_v55 }
0x3797   :  { %5088 = vtanh.f32 %v4110_v38  ;;  %v4618_v55 = vmul.f32 -1.442695, %v4110_v38 }
0x3799   :  { %5090 = vpow2.f32 %v4618_v55 }
0x379a   :  { %v4105_v17 = vpop.f32.mrf.mxu2 }
0x379d   :  { %v5089_v30 = vpop.eup %5088 }
0x379e   :  { %4136 = vrot.lane.b32.xlu0 %v5089_v30, %s5129_s11  ;;  %s4236_s11 = sshll.u32 %s5134_s22, 4  ;;  %s4237_s11 = int_to_ptr.vmem [resolvable:$true] %s4236_s11 }
0x379f   :  { %v5091_v13 = vpop.eup %5090 }
0x37a0   :  { %v4114_v21 = vadd.f32 1.0, %v5091_v13 }
0x37a2   :  { %5092 = vrcp.f32 %v4114_v21  ;;  %v4126_v52 = vand.u32 2147483648, %v4114_v21  ;;  %vm4120_vm10 = vweird.f32 %v4114_v21  ;;  %v4124_v42 = vand.u32 2147483647, %v4114_v21 }
0x37a4   :  { %v4127_v31 = vor.u32 1.1754944e-38, %v4126_v52  ;;  %vm4125_vm4 = vcmp.eq.f32.partialorder %v4124_v42, 8.507059e+37 }
0x37a6   :  { %4178 = vrot.lane.b32.xlu0 %v4176_v48, %s5130_s13 }
0x37a8   :  { %v5093_v53 = vpop.eup %5092 }
0x37a9   :  { %v4116_v50 = vmul.f32 %v5093_v53, %v4114_v21  ;;  %vm4121_vm7 = vweird.f32 %v5093_v53 }
0x37aa   :  { %vm4122_vm1 = vmor %vm4120_vm10, %vm4121_vm7 }
0x37ab   :  { %v4117_v51 = vsub.f32 1.0, %v4116_v50 }
0x37ad   :  { %v4118_v45 = vmul.f32 %v5093_v53, %v4117_v51 }
0x37af   :  { %v4119_v36 = vadd.f32 %v5093_v53, %v4118_v45 }
0x37b1   :  { %v4123_v19 = vsel %vm4122_vm1, %v5093_v53, %v4119_v36 }
0x37b2   :  { %v4128_v35 = vsel %vm4125_vm4, %v4127_v31, %v4123_v19 }
0x37b3   :  { %v4134_v22 = vmul.f32 %v4132_v60, %v4128_v35 }
0x3810   :  { %v4137_v32 = vpop.permute.xlu0 %4136 }
0x3811   :  { %v4139_v23 = vmul.f32 %v4137_v32, %v4128_v35 }
0x3813   :  { %4141 = vrot.lane.b32.xlu1 %v4139_v23, %s5130_s13 }
0x3818   :  { %v4179_v59 = vpop.permute.xlu0 %4178 }
0x3819   :  { %v4181_v62 = vadd.f32 %v4179_v59, %v4171_v56 }
0x381b   :  { %5094 = vtanh.f32 %v4181_v62 }
0x3821   :  { %v5095_v0 = vpop.eup %5094 }
0x3822   :  { %4184 = vrot.lane.b32.xlu1 %v5095_v0, %s5130_s13 }
0x3885   :  { %v4142_v39 = vpop.permute.xlu1 %4141 }
0x3886   :  { %v4144_v8 = vadd.f32 %v4142_v39, %v4134_v22 }
0x3888   :  { %5096 = vtanh.f32 %v4144_v8 }
0x388e   :  { %v5097_v4 = vpop.eup %5096 }
0x388f   :  { %4147 = vrot.lane.b32.xlu2 %v5097_v4, %s5130_s13 }
0x3894   :  { %v4185_v9 = vpop.permute.xlu1 %4184 }
0x3895   :  { %v4187_v29 = vmul.f32 %v4185_v9, %v4168_v6 }
0x3897   :  { %4193 = vrot.lane.b32.xlu2 %v4187_v29, %s5133_s17 }
0x38e9   :  { %v4148_v49 = vpop.permute.xlu2 %4147 }
0x38ea   :  { %v4150_v11 = vmul.f32 %v4148_v49, %v4128_v35 }
0x38ec   :  { %4189 = vrot.lane.b32.xlu0 %v4150_v11, %s5132_s4  ;;  %s4238_s4 = sshll.u32 %s6208_s21, 4  ;;  %s4239_s4 = int_to_ptr.hbm [resolvable:$true] %s4238_s4 }
0x38f1   :  { %v4194_v58 = vpop.permute.xlu2 %4193 }
0x395e   :  { %v4190_v5 = vpop.permute.xlu0 %4189 }
0x395f   :  { %v4196_v14 = vsel %vm252_vm8, %v4190_v5, %v4194_v58 }
0x3960   :  { %v4206_v57 = vrot.slane %v4196_v14, 6 }
0x3962   :  { %4620 = vmatmul.msk.f32.vlgmr.msrb.gmra.mxu3 %vm6228_vm5, %v4206_v57 }
0x39e5   :  { %v4226_v16 = vpop.f32.mrf.mxu3 }
0x39e6   :  { %v4227_v20 = vadd.f32 %v4707_v34, %v4226_v16 }
0x39e8   :  { %4230 = vst.msk [vmem:[#allocation2] sm:$0x3] %vm4229_vm6, %v4227_v20 }
0x39e9   :  { %4241 = dma.vmem_to_hbm [thread:$0]  %s4237_s11, 32, %s4239_s4, [#allocation3]  }
0x39ea   :  { %5124 = dma.done.wait [#allocation3], 32  }
0x39eb   :  { %5125 = vsyncadd [#allocation3], 4294967264 }
0x39ec   :  { %4246 = vsyncpa [#allocation3], 1 }

</bundles_post_ra>
